<compile_context>
chip_gen: v7x
topology: tpu7x:2x2x1
jax: 0.10.0
libtpu: 0.0.40
codegen_flags: <defaults>
</compile_context>

<pallas_src>
import jax
import jax.numpy as jnp
from jax.experimental import pallas as pl
from jax.experimental.pallas import tpu as pltpu


def encoder_layer_kernel(
    x_ref,
    wq_ref, wkv_ref, wo_ref, w1_ref, w2_ref,
    bkv_ref, b1_ref, vec_ref,
    out_ref, attn_ref,
    k_scr, v_scr,
):
    qi = pl.program_id(1)
    tq = out_ref.shape[1]
    d_model = out_ref.shape[2]

    # ---- once per batch element: fused K|V projection over the full sequence.
    # N = 2*D output columns -> fills the 256-wide MXU on v6e/v7x.
    @pl.when(qi == 0)
    def _():
        x_bf = x_ref[0].astype(jnp.bfloat16)                                # (L, D)
        kv = jnp.dot(x_bf, wkv_ref[...],
                     preferred_element_type=jnp.float32) + bkv_ref[...]     # (L, 2D)
        k_scr[...] = kv[:, :d_model].astype(jnp.bfloat16)
        v_scr[...] = kv[:, d_model:].astype(jnp.bfloat16)

    start = pl.multiple_of(qi * tq, tq)
    x_tile = x_ref[0, pl.ds(start, tq), :]                                  # (tq, D) f32
    x_bf = x_tile.astype(jnp.bfloat16)

    # Packed per-feature vectors (f32): rows of the (8, D) slab.
    bq = vec_ref[0:1, :]    # already pre-scaled by 1/sqrt(d_model)
    bo = vec_ref[1:2, :]
    b2 = vec_ref[2:3, :]
    g1 = vec_ref[3:4, :]
    be1 = vec_ref[4:5, :]
    g2 = vec_ref[5:6, :]
    be2 = vec_ref[6:7, :]

    # ---- attention: new_x, attn = attention(x, x, x, None) ----
    # wq / bq carry the 1/sqrt(d_model) scale already (folded in prepare_params).
    q = jnp.dot(x_bf, wq_ref[...], preferred_element_type=jnp.float32) + bq
    # contract last dims of both operands directly (no explicit k.T)
    scores = jax.lax.dot_general(
        q.astype(jnp.bfloat16), k_scr[...],
        dimension_numbers=(((1,), (1,)), ((), ())),
        preferred_element_type=jnp.float32)                                 # (tq, L)
    m = jnp.max(scores, axis=-1, keepdims=True)
    e = jnp.exp(scores - m)
    l = jnp.sum(e, axis=-1, keepdims=True)
    attn = e / l                          # exact divide: attn map is returned
    ctx = jnp.dot(attn.astype(jnp.bfloat16), v_scr[...],
                  preferred_element_type=jnp.float32)                       # (tq, D)
    new_x = jnp.dot(ctx.astype(jnp.bfloat16), wo_ref[...],
                    preferred_element_type=jnp.float32) + bo

    # TODO(synk): dropout layers are identity (inference / eval mode).
    x1 = x_tile + new_x                                                     # residual 1

    # ---- LayerNorm1 (f32 statistics) ----
    mu1 = jnp.mean(x1, axis=-1, keepdims=True)
    var1 = jnp.mean((x1 - mu1) ** 2, axis=-1, keepdims=True)
    xn = (x1 - mu1) * jax.lax.rsqrt(var1 + 1e-5)
    xn = xn * g1 + be1                                                      # y = x = norm1(x)

    # ---- feed-forward: conv1 (k=1) -> relu -> conv2 (k=1) ----
    h = jnp.dot(xn.astype(jnp.bfloat16), w1_ref[...],
                preferred_element_type=jnp.float32) + b1_ref[...]
    h = jnp.maximum(h, 0.0)                                                 # relu activation
    y = jnp.dot(h.astype(jnp.bfloat16), w2_ref[...],
                preferred_element_type=jnp.float32) + b2

    # ---- LayerNorm2 over (x + y) ----
    z = xn + y
    mu2 = jnp.mean(z, axis=-1, keepdims=True)
    var2 = jnp.mean((z - mu2) ** 2, axis=-1, keepdims=True)
    zn = (z - mu2) * jax.lax.rsqrt(var2 + 1e-5) * g2 + be2

    out_ref[0] = zn.astype(out_ref.dtype)
    attn_ref[0] = attn.astype(attn_ref.dtype)


def prepare_params(params):
    """One-time conversion of raw f32 params into kernel-ready operands.

    - weights cast to bf16 (halves their HBM DMA bytes, MXU-friendly)
    - K and V projection weights/biases fused into (D, 2D) / (1, 2D)
    - 1/sqrt(d_model) attention scale folded into wq / bq
    - (1, D) bias/gamma/beta vectors packed into a single (8, D) f32 slab
    """
    d_model = params["wq"].shape[0]
    bf16 = jnp.bfloat16
    scale = 1.0 / jnp.sqrt(jnp.float32(d_model))
    vec_slab = jnp.concatenate(
        [
            params["bq"] * scale,
            params["bo"],
            params["b2"],
            params["g1"],
            params["be1"],
            params["g2"],
            params["be2"],
            jnp.zeros((1, d_model), jnp.float32),   # pad row -> 8 sublanes
        ],
        axis=0,
    )
    return {
        "wq": (params["wq"] * scale).astype(bf16),
        "wkv": jnp.concatenate([params["wk"], params["wv"]], axis=1).astype(bf16),
        "wo": params["wo"].astype(bf16),
        "w1": params["w1"].astype(bf16),
        "w2": params["w2"].astype(bf16),
        "bkv": jnp.concatenate([params["bk"], params["bv"]], axis=1),       # f32 (1, 2D)
        "b1": params["b1"],                                                 # f32 (1, F)
        "vecs": vec_slab,                                                   # f32 (8, D)
    }


def _vmem_budget_bytes(L, D, F, tq, weight_buffers):
    nbuf = weight_buffers if weight_buffers else 2
    est = 0
    est += 2 * L * D * 4                       # resident x block (double-buffered, f32)
    est += 2 * tq * D * 4                      # out tile buffers (f32)
    est += 2 * tq * L * 2                      # attn tile buffers (bf16)
    est += 2 * L * D * 2                       # K / V scratch (bf16)
    est += nbuf * 2 * (D * D + D * 2 * D + D * D + D * F + F * D)   # bf16 weights
    est += nbuf * 4 * (2 * D + F + 8 * D)      # f32 bias slab / bkv / b1
    est = int(est * 1.5)                       # pipelining / compiler headroom
    return int(min(100 * 1024 * 1024, max(32 * 1024 * 1024, est)))


def encoder_layer(x, prepared, *, tq=None, weight_buffers=1):
    """x: (B, L, D) float32, prepared = prepare_params(params).

    Returns (out (B, L, D) f32, attn (B, L, L) bf16)."""
    B, L, D = x.shape
    F = prepared["w1"].shape[1]

    if tq is None:
        if L % 256 == 0 and L >= 256:
            tq = 256
        elif L % 128 == 0:
            tq = 128
        else:
            tq = L
    assert L % tq == 0, "seq_len must be divisible by the q-tile size"
    nq = L // tq
    # TODO(synk): for L not a multiple of 128 the attn writeback uses masked
    # partial stores; pad L upstream for lane-dense output on long sequences.

    def wspec(shape):
        # Weights/biases never change across the grid -> single VMEM buffer.
        if weight_buffers is None:
            return pl.BlockSpec(shape, lambda b, q: (0, 0))
        return pl.BlockSpec(shape, lambda b, q: (0, 0),
                            pipeline_mode=pl.Buffered(weight_buffers))

    in_specs = [
        pl.BlockSpec((1, L, D), lambda b, q: (b, 0, 0)),   # x: full seq, resident per batch
        wspec((D, D)),           # wq (scale folded in)
        wspec((D, 2 * D)),       # wkv (fused K|V)
        wspec((D, D)),           # wo
        wspec((D, F)),           # w1 (conv1, k=1)
        wspec((F, D)),           # w2 (conv2, k=1)
        wspec((1, 2 * D)),       # bkv
        wspec((1, F)),           # b1
        wspec((8, D)),           # packed bq|bo|b2|g1|be1|g2|be2|pad
    ]
    out_specs = [
        pl.BlockSpec((1, tq, D), lambda b, q: (b, q, 0)),
        pl.BlockSpec((1, tq, L), lambda b, q: (b, q, 0)),
    ]

    args = (
        x,
        prepared["wq"], prepared["wkv"], prepared["wo"],
        prepared["w1"], prepared["w2"],
        prepared["bkv"], prepared["b1"], prepared["vecs"],
    )

    return pl.pallas_call(
        encoder_layer_kernel,
        out_shape=(
            jax.ShapeDtypeStruct((B, L, D), x.dtype),
            jax.ShapeDtypeStruct((B, L, L), jnp.bfloat16),   # bf16 halves the dominant HBM writeback
        ),
        grid_spec=pltpu.PrefetchScalarGridSpec(
            num_scalar_prefetch=0,
            grid=(B, nq),
            in_specs=in_specs,
            out_specs=out_specs,
            scratch_shapes=[
                pltpu.VMEM((L, D), jnp.bfloat16),   # K of current batch element
                pltpu.VMEM((L, D), jnp.bfloat16),   # V of current batch element
            ],
        ),
        compiler_params=pltpu.CompilerParams(
            # q axis MUST stay "arbitrary": K/V scratch is filled at q-tile 0
            # and reused by later q-tiles of the same batch element.
            dimension_semantics=("parallel", "arbitrary"),
            vmem_limit_bytes=_vmem_budget_bytes(L, D, F, tq, weight_buffers),
        ),
    )(*args)


def encoder_layer_ref(x, params):
    """Pure-JAX f32 reference (for correctness checking only)."""
    D = x.shape[-1]
    hi = jax.lax.Precision.HIGHEST
    mm = lambda a, b: jnp.dot(a, b, precision=hi)
    q = mm(x, params["wq"]) + params["bq"]
    k = mm(x, params["wk"]) + params["bk"]
    v = mm(x, params["wv"]) + params["bv"]
    scores = jnp.einsum("bld,bmd->blm", q, k, precision=hi) / jnp.sqrt(jnp.float32(D))
    attn = jax.nn.softmax(scores, axis=-1)
    ctx = jnp.einsum("blm,bmd->bld", attn, v, precision=hi)
    new_x = mm(ctx, params["wo"]) + params["bo"]

    def ln(z, g, b):
        mu = jnp.mean(z, axis=-1, keepdims=True)
        var = jnp.mean((z - mu) ** 2, axis=-1, keepdims=True)
        return (z - mu) * jax.lax.rsqrt(var + 1e-5) * g + b

    x1 = x + new_x
    xn = ln(x1, params["g1"], params["be1"])
    h = jnp.maximum(mm(xn, params["w1"]) + params["b1"], 0.0)
    y = mm(h, params["w2"]) + params["b2"]
    return ln(xn + y, params["g2"], params["be2"]), attn


def init_params(key, d_model, d_ff):
    keys = jax.random.split(key, 8)
    s = 0.02
    return {
        "wq": s * jax.random.normal(keys[0], (d_model, d_model), jnp.float32),
        "wk": s * jax.random.normal(keys[1], (d_model, d_model), jnp.float32),
        "wv": s * jax.random.normal(keys[2], (d_model, d_model), jnp.float32),
        "wo": s * jax.random.normal(keys[3], (d_model, d_model), jnp.float32),
        "bq": jnp.zeros((1, d_model), jnp.float32),
        "bk": jnp.zeros((1, d_model), jnp.float32),
        "bv": jnp.zeros((1, d_model), jnp.float32),
        "bo": jnp.zeros((1, d_model), jnp.float32),
        "w1": s * jax.random.normal(keys[4], (d_model, d_ff), jnp.float32),
        "b1": jnp.zeros((1, d_ff), jnp.float32),
        "w2": s * jax.random.normal(keys[5], (d_ff, d_model), jnp.float32),
        "b2": jnp.zeros((1, d_model), jnp.float32),
        "g1": jnp.ones((1, d_model), jnp.float32),
        "be1": jnp.zeros((1, d_model), jnp.float32),
        "g2": jnp.ones((1, d_model), jnp.float32),
        "be2": jnp.zeros((1, d_model), jnp.float32),
    }


if __name__ == "__main__":
    # Small but tiling-friendly shapes: lane-dense D and L (multiples of 128).
    B, L, D, F = 2, 256, 128, 256

    key = jax.random.PRNGKey(0)
    kx, kp = jax.random.split(key)
    x = jax.random.normal(kx, (B, L, D), jnp.float32)
    params = init_params(kp, D, F)

    # One-time weight preparation (bf16 cast, K|V fusion, scale folding, packing).
    prepared = prepare_params(params)
    prepared = jax.tree_util.tree_map(jax.block_until_ready, prepared)

    try:
        out, attn = encoder_layer(x, prepared, weight_buffers=1)
    except Exception:
        # pipeline_mode=pl.Buffered may be unsupported in this jax build;
        # fall back to default double-buffered weight specs.
        out, attn = encoder_layer(x, prepared, weight_buffers=None)

    jax.block_until_ready(out)
    jax.block_until_ready(attn)

    assert out.shape == (B, L, D)
    assert attn.shape == (B, L, L)

    # Correctness vs pure-JAX f32 reference (bf16 matmuls / bf16 attn storage
    # -> loose tolerances).
    ref_out, ref_attn = encoder_layer_ref(x, params)
    err_out = float(jnp.max(jnp.abs(out.astype(jnp.float32) - ref_out)))
    err_attn = float(jnp.max(jnp.abs(attn.astype(jnp.float32) - ref_attn)))
    assert err_out < 5e-2, f"out mismatch: {err_out}"
    assert err_attn < 5e-3, f"attn mismatch: {err_attn}"

    print("KERNEL_OK")
</pallas_src>

<mosaic_0001>
module attributes {stable_mosaic.version = 11 : i64} {
  func.func @encoder_layer_kernel(%arg0: i32, %arg1: i32, %arg2: memref<1x256x128xf32, #tpu.memory_space<vmem>>, %arg3: memref<128x128xbf16, #tpu.memory_space<vmem>>, %arg4: memref<128x256xbf16, #tpu.memory_space<vmem>>, %arg5: memref<128x128xbf16, #tpu.memory_space<vmem>>, %arg6: memref<128x256xbf16, #tpu.memory_space<vmem>>, %arg7: memref<256x128xbf16, #tpu.memory_space<vmem>>, %arg8: memref<1x256xf32, #tpu.memory_space<vmem>>, %arg9: memref<1x256xf32, #tpu.memory_space<vmem>>, %arg10: memref<8x128xf32, #tpu.memory_space<vmem>>, %arg11: memref<1x256x128xf32, #tpu.memory_space<vmem>>, %arg12: memref<1x256x256xbf16, #tpu.memory_space<vmem>>, %arg13: memref<256x128xbf16, #tpu.memory_space<vmem>>, %arg14: memref<256x128xbf16, #tpu.memory_space<vmem>>) attributes {dimension_semantics = [#tpu.dimension_semantics<parallel>, #tpu.dimension_semantics<arbitrary>], iteration_bounds = array<i64: 2, 1>, scalar_prefetch = 0 : i64, scratch_operands = 2 : i64, tpu.core_type = #tpu.core_type<tc>, window_params = [{transform_indices = @transform_0, window_bounds = array<i64: 1, 256, 128>}, {pipeline_mode = #tpu.pipeline_mode<synchronous>, transform_indices = @transform_1, window_bounds = array<i64: 128, 128>}, {pipeline_mode = #tpu.pipeline_mode<synchronous>, transform_indices = @transform_2, window_bounds = array<i64: 128, 256>}, {pipeline_mode = #tpu.pipeline_mode<synchronous>, transform_indices = @transform_3, window_bounds = array<i64: 128, 128>}, {pipeline_mode = #tpu.pipeline_mode<synchronous>, transform_indices = @transform_4, window_bounds = array<i64: 128, 256>}, {pipeline_mode = #tpu.pipeline_mode<synchronous>, transform_indices = @transform_5, window_bounds = array<i64: 256, 128>}, {pipeline_mode = #tpu.pipeline_mode<synchronous>, transform_indices = @transform_6, window_bounds = array<i64: 1, 256>}, {pipeline_mode = #tpu.pipeline_mode<synchronous>, transform_indices = @transform_7, window_bounds = array<i64: 1, 256>}, {pipeline_mode = #tpu.pipeline_mode<synchronous>, transform_indices = @transform_8, window_bounds = array<i64: 8, 128>}, {transform_indices = @transform_9, window_bounds = array<i64: 1, 256, 128>}, {transform_indices = @transform_10, window_bounds = array<i64: 1, 256, 256>}]} {
    %c0_i32 = arith.constant 0 : i32
    %0 = arith.cmpi eq, %arg1, %c0_i32 : i32
    %1 = arith.extui %0 : i1 to i32
    %c0_i32_0 = arith.constant 0 : i32
    %2 = arith.cmpi ne, %1, %c0_i32_0 : i32
    scf.if %2 {
      %c0_48 = arith.constant 0 : index
      %c0_49 = arith.constant 0 : index
      %c0_50 = arith.constant 0 : index
      %106 = vector.load %arg2[%c0_48, %c0_49, %c0_50] : memref<1x256x128xf32, #tpu.memory_space<vmem>>, vector<1x256x128xf32>
      %107 = vector.shape_cast %106 : vector<1x256x128xf32> to vector<256x128xf32>
      %108 = arith.truncf %107 : vector<256x128xf32> to vector<256x128xbf16>
      %c0_51 = arith.constant 0 : index
      %c0_52 = arith.constant 0 : index
      %109 = vector.load %arg4[%c0_51, %c0_52] : memref<128x256xbf16, #tpu.memory_space<vmem>>, vector<128x256xbf16>
      %cst_53 = arith.constant dense<0.000000e+00> : vector<256x256xf32>
      %110 = tpu.matmul %108, %109, %cst_53 {dimension_numbers = #tpu.dot_dimension_numbers<[1], [0], [0], [1], [0, 0, 1, 1], [], []>} : vector<256x128xbf16>, vector<128x256xbf16>, vector<256x256xf32> -> vector<256x256xf32>
      %c0_54 = arith.constant 0 : index
      %c0_55 = arith.constant 0 : index
      %111 = vector.load %arg8[%c0_54, %c0_55] : memref<1x256xf32, #tpu.memory_space<vmem>>, vector<1x256xf32>
      %112 = vector.broadcast %111 : vector<1x256xf32> to vector<256x256xf32>
      %113 = arith.addf %110, %112 : vector<256x256xf32>
      %114 = vector.extract_strided_slice %113 {offsets = [0, 0], sizes = [256, 128], strides = [1, 1]} : vector<256x256xf32> to vector<256x128xf32>
      %115 = arith.truncf %114 : vector<256x128xf32> to vector<256x128xbf16>
      %c0_56 = arith.constant 0 : index
      %c0_57 = arith.constant 0 : index
      %116 = vector.load %arg13[%c0_56, %c0_57] : memref<256x128xbf16, #tpu.memory_space<vmem>>, vector<256x128xbf16>
      tpu.vector_store %arg13[%c0_56, %c0_57], %115 {strides = array<i32>} : memref<256x128xbf16, #tpu.memory_space<vmem>>, vector<256x128xbf16>,
      %117 = vector.extract_strided_slice %113 {offsets = [0, 128], sizes = [256, 128], strides = [1, 1]} : vector<256x256xf32> to vector<256x128xf32>
      %118 = arith.truncf %117 : vector<256x128xf32> to vector<256x128xbf16>
      %c0_58 = arith.constant 0 : index
      %c0_59 = arith.constant 0 : index
      %119 = vector.load %arg14[%c0_58, %c0_59] : memref<256x128xbf16, #tpu.memory_space<vmem>>, vector<256x128xbf16>
      tpu.vector_store %arg14[%c0_58, %c0_59], %118 {strides = array<i32>} : memref<256x128xbf16, #tpu.memory_space<vmem>>, vector<256x128xbf16>,
    } else {
    }
    %c256_i32 = arith.constant 256 : i32
    %3 = arith.muli %arg1, %c256_i32 : i32
    %4 = tpu.assume_multiple %3, 256 : i32
    %c0 = arith.constant 0 : index
    %5 = arith.index_cast %4 : i32 to index
    %c0_1 = arith.constant 0 : index
    %6 = vector.load %arg2[%c0, %5, %c0_1] : memref<1x256x128xf32, #tpu.memory_space<vmem>>, vector<1x256x128xf32>
    %7 = vector.shape_cast %6 : vector<1x256x128xf32> to vector<256x128xf32>
    %8 = arith.truncf %7 : vector<256x128xf32> to vector<256x128xbf16>
    %c0_2 = arith.constant 0 : index
    %c0_3 = arith.constant 0 : index
    %9 = vector.load %arg10[%c0_2, %c0_3] : memref<8x128xf32, #tpu.memory_space<vmem>>, vector<1x128xf32>
    %c1 = arith.constant 1 : index
    %c0_4 = arith.constant 0 : index
    %10 = vector.load %arg10[%c1, %c0_4] : memref<8x128xf32, #tpu.memory_space<vmem>>, vector<1x128xf32>
    %c2 = arith.constant 2 : index
    %c0_5 = arith.constant 0 : index
    %11 = vector.load %arg10[%c2, %c0_5] : memref<8x128xf32, #tpu.memory_space<vmem>>, vector<1x128xf32>
    %c3 = arith.constant 3 : index
    %c0_6 = arith.constant 0 : index
    %12 = vector.load %arg10[%c3, %c0_6] : memref<8x128xf32, #tpu.memory_space<vmem>>, vector<1x128xf32>
    %c4 = arith.constant 4 : index
    %c0_7 = arith.constant 0 : index
    %13 = vector.load %arg10[%c4, %c0_7] : memref<8x128xf32, #tpu.memory_space<vmem>>, vector<1x128xf32>
    %c5 = arith.constant 5 : index
    %c0_8 = arith.constant 0 : index
    %14 = vector.load %arg10[%c5, %c0_8] : memref<8x128xf32, #tpu.memory_space<vmem>>, vector<1x128xf32>
    %c6 = arith.constant 6 : index
    %c0_9 = arith.constant 0 : index
    %15 = vector.load %arg10[%c6, %c0_9] : memref<8x128xf32, #tpu.memory_space<vmem>>, vector<1x128xf32>
    %c0_10 = arith.constant 0 : index
    %c0_11 = arith.constant 0 : index
    %16 = vector.load %arg3[%c0_10, %c0_11] : memref<128x128xbf16, #tpu.memory_space<vmem>>, vector<128x128xbf16>
    %cst = arith.constant dense<0.000000e+00> : vector<256x128xf32>
    %17 = tpu.matmul %8, %16, %cst {dimension_numbers = #tpu.dot_dimension_numbers<[1], [0], [0], [1], [0, 0, 1, 1], [], []>} : vector<256x128xbf16>, vector<128x128xbf16>, vector<256x128xf32> -> vector<256x128xf32>
    %18 = vector.broadcast %9 : vector<1x128xf32> to vector<256x128xf32>
    %19 = arith.addf %17, %18 : vector<256x128xf32>
    %20 = arith.truncf %19 : vector<256x128xf32> to vector<256x128xbf16>
    %c0_12 = arith.constant 0 : index
    %c0_13 = arith.constant 0 : index
    %21 = vector.load %arg13[%c0_12, %c0_13] : memref<256x128xbf16, #tpu.memory_space<vmem>>, vector<256x128xbf16>
    %cst_14 = arith.constant dense<0.000000e+00> : vector<256x256xf32>
    %22 = tpu.matmul %20, %21, %cst_14 {dimension_numbers = #tpu.dot_dimension_numbers<[1], [1], [0], [0], [0, 0, 1, 0], [], []>} : vector<256x128xbf16>, vector<256x128xbf16>, vector<256x256xf32> -> vector<256x256xf32>
    %cst_15 = arith.constant dense<0xFF800000> : vector<256xf32>
    %23 = vector.multi_reduction <maximumf>, %22, %cst_15 [1] : vector<256x256xf32> to vector<256xf32>
    %24 = vector.shape_cast %23 : vector<256xf32> to vector<256x1xf32>
    %25 = vector.broadcast %24 : vector<256x1xf32> to vector<256x256xf32>
    %26 = arith.subf %22, %25 : vector<256x256xf32>
    %27 = math.exp %26 : vector<256x256xf32>
    %cst_16 = arith.constant dense<0.000000e+00> : vector<256xf32>
    %28 = vector.multi_reduction <add>, %27, %cst_16 [1] : vector<256x256xf32> to vector<256xf32>
    %29 = vector.shape_cast %28 : vector<256xf32> to vector<256x1xf32>
    %30 = vector.broadcast %29 : vector<256x1xf32> to vector<256x256xf32>
    %31 = arith.divf %27, %30 : vector<256x256xf32>
    %32 = arith.truncf %31 : vector<256x256xf32> to vector<256x256xbf16>
    %c0_17 = arith.constant 0 : index
    %c0_18 = arith.constant 0 : index
    %33 = vector.load %arg14[%c0_17, %c0_18] : memref<256x128xbf16, #tpu.memory_space<vmem>>, vector<256x128xbf16>
    %cst_19 = arith.constant dense<0.000000e+00> : vector<256x128xf32>
    %34 = tpu.matmul %32, %33, %cst_19 {dimension_numbers = #tpu.dot_dimension_numbers<[1], [0], [0], [1], [0, 0, 1, 1], [], []>} : vector<256x256xbf16>, vector<256x128xbf16>, vector<256x128xf32> -> vector<256x128xf32>
    %35 = arith.truncf %34 : vector<256x128xf32> to vector<256x128xbf16>
    %c0_20 = arith.constant 0 : index
    %c0_21 = arith.constant 0 : index
    %36 = vector.load %arg5[%c0_20, %c0_21] : memref<128x128xbf16, #tpu.memory_space<vmem>>, vector<128x128xbf16>
    %cst_22 = arith.constant dense<0.000000e+00> : vector<256x128xf32>
    %37 = tpu.matmul %35, %36, %cst_22 {dimension_numbers = #tpu.dot_dimension_numbers<[1], [0], [0], [1], [0, 0, 1, 1], [], []>} : vector<256x128xbf16>, vector<128x128xbf16>, vector<256x128xf32> -> vector<256x128xf32>
    %38 = vector.broadcast %10 : vector<1x128xf32> to vector<256x128xf32>
    %39 = arith.addf %37, %38 : vector<256x128xf32>
    %40 = arith.addf %7, %39 : vector<256x128xf32>
    %cst_23 = arith.constant dense<0.000000e+00> : vector<256xf32>
    %41 = vector.multi_reduction <add>, %40, %cst_23 [1] : vector<256x128xf32> to vector<256xf32>
    %42 = vector.shape_cast %41 : vector<256xf32> to vector<256x1xf32>
    %cst_24 = arith.constant 1.280000e+02 : f32
    %43 = vector.broadcast %cst_24 : f32 to vector<256x1xf32>
    %44 = arith.divf %42, %43 : vector<256x1xf32>
    %45 = vector.broadcast %44 : vector<256x1xf32> to vector<256x128xf32>
    %46 = arith.subf %40, %45 : vector<256x128xf32>
    %47 = arith.mulf %46, %46 : vector<256x128xf32>
    %cst_25 = arith.constant dense<0.000000e+00> : vector<256xf32>
    %48 = vector.multi_reduction <add>, %47, %cst_25 [1] : vector<256x128xf32> to vector<256xf32>
    %49 = vector.shape_cast %48 : vector<256xf32> to vector<256x1xf32>
    %cst_26 = arith.constant 1.280000e+02 : f32
    %50 = vector.broadcast %cst_26 : f32 to vector<256x1xf32>
    %51 = arith.divf %49, %50 : vector<256x1xf32>
    %52 = vector.broadcast %44 : vector<256x1xf32> to vector<256x128xf32>
    %53 = arith.subf %40, %52 : vector<256x128xf32>
    %cst_27 = arith.constant 9.99999974E-6 : f32
    %54 = vector.broadcast %cst_27 : f32 to vector<256x1xf32>
    %55 = arith.addf %51, %54 : vector<256x1xf32>
    %56 = math.rsqrt %55 : vector<256x1xf32>
    %57 = vector.broadcast %56 : vector<256x1xf32> to vector<256x128xf32>
    %58 = arith.mulf %53, %57 : vector<256x128xf32>
    %59 = vector.broadcast %12 : vector<1x128xf32> to vector<256x128xf32>
    %60 = arith.mulf %58, %59 : vector<256x128xf32>
    %61 = vector.broadcast %13 : vector<1x128xf32> to vector<256x128xf32>
    %62 = arith.addf %60, %61 : vector<256x128xf32>
    %63 = arith.truncf %62 : vector<256x128xf32> to vector<256x128xbf16>
    %c0_28 = arith.constant 0 : index
    %c0_29 = arith.constant 0 : index
    %64 = vector.load %arg6[%c0_28, %c0_29] : memref<128x256xbf16, #tpu.memory_space<vmem>>, vector<128x256xbf16>
    %cst_30 = arith.constant dense<0.000000e+00> : vector<256x256xf32>
    %65 = tpu.matmul %63, %64, %cst_30 {dimension_numbers = #tpu.dot_dimension_numbers<[1], [0], [0], [1], [0, 0, 1, 1], [], []>} : vector<256x128xbf16>, vector<128x256xbf16>, vector<256x256xf32> -> vector<256x256xf32>
    %c0_31 = arith.constant 0 : index
    %c0_32 = arith.constant 0 : index
    %66 = vector.load %arg9[%c0_31, %c0_32] : memref<1x256xf32, #tpu.memory_space<vmem>>, vector<1x256xf32>
    %67 = vector.broadcast %66 : vector<1x256xf32> to vector<256x256xf32>
    %68 = arith.addf %65, %67 : vector<256x256xf32>
    %cst_33 = arith.constant 0.000000e+00 : f32
    %69 = vector.broadcast %cst_33 : f32 to vector<256x256xf32>
    %70 = arith.maximumf %68, %69 : vector<256x256xf32>
    %71 = arith.truncf %70 : vector<256x256xf32> to vector<256x256xbf16>
    %c0_34 = arith.constant 0 : index
    %c0_35 = arith.constant 0 : index
    %72 = vector.load %arg7[%c0_34, %c0_35] : memref<256x128xbf16, #tpu.memory_space<vmem>>, vector<256x128xbf16>
    %cst_36 = arith.constant dense<0.000000e+00> : vector<256x128xf32>
    %73 = tpu.matmul %71, %72, %cst_36 {dimension_numbers = #tpu.dot_dimension_numbers<[1], [0], [0], [1], [0, 0, 1, 1], [], []>} : vector<256x256xbf16>, vector<256x128xbf16>, vector<256x128xf32> -> vector<256x128xf32>
    %74 = vector.broadcast %11 : vector<1x128xf32> to vector<256x128xf32>
    %75 = arith.addf %73, %74 : vector<256x128xf32>
    %76 = arith.addf %62, %75 : vector<256x128xf32>
    %cst_37 = arith.constant dense<0.000000e+00> : vector<256xf32>
    %77 = vector.multi_reduction <add>, %76, %cst_37 [1] : vector<256x128xf32> to vector<256xf32>
    %78 = vector.shape_cast %77 : vector<256xf32> to vector<256x1xf32>
    %cst_38 = arith.constant 1.280000e+02 : f32
    %79 = vector.broadcast %cst_38 : f32 to vector<256x1xf32>
    %80 = arith.divf %78, %79 : vector<256x1xf32>
    %81 = vector.broadcast %80 : vector<256x1xf32> to vector<256x128xf32>
    %82 = arith.subf %76, %81 : vector<256x128xf32>
    %83 = arith.mulf %82, %82 : vector<256x128xf32>
    %cst_39 = arith.constant dense<0.000000e+00> : vector<256xf32>
    %84 = vector.multi_reduction <add>, %83, %cst_39 [1] : vector<256x128xf32> to vector<256xf32>
    %85 = vector.shape_cast %84 : vector<256xf32> to vector<256x1xf32>
    %cst_40 = arith.constant 1.280000e+02 : f32
    %86 = vector.broadcast %cst_40 : f32 to vector<256x1xf32>
    %87 = arith.divf %85, %86 : vector<256x1xf32>
    %88 = vector.broadcast %80 : vector<256x1xf32> to vector<256x128xf32>
    %89 = arith.subf %76, %88 : vector<256x128xf32>
    %cst_41 = arith.constant 9.99999974E-6 : f32
    %90 = vector.broadcast %cst_41 : f32 to vector<256x1xf32>
    %91 = arith.addf %87, %90 : vector<256x1xf32>
    %92 = math.rsqrt %91 : vector<256x1xf32>
    %93 = vector.broadcast %92 : vector<256x1xf32> to vector<256x128xf32>
    %94 = arith.mulf %89, %93 : vector<256x128xf32>
    %95 = vector.broadcast %14 : vector<1x128xf32> to vector<256x128xf32>
    %96 = arith.mulf %94, %95 : vector<256x128xf32>
    %97 = vector.broadcast %15 : vector<1x128xf32> to vector<256x128xf32>
    %98 = arith.addf %96, %97 : vector<256x128xf32>
    %c0_42 = arith.constant 0 : index
    %c0_43 = arith.constant 0 : index
    %c0_44 = arith.constant 0 : index
    %99 = vector.load %arg11[%c0_42, %c0_43, %c0_44] : memref<1x256x128xf32, #tpu.memory_space<vmem>>, vector<1x256x128xf32>
    %100 = vector.shape_cast %99 : vector<1x256x128xf32> to vector<256x128xf32>
    %101 = vector.shape_cast %98 : vector<256x128xf32> to vector<1x256x128xf32>
    tpu.vector_store %arg11[%c0_42, %c0_43, %c0_44], %101 {strides = array<i32>} : memref<1x256x128xf32, #tpu.memory_space<vmem>>, vector<1x256x128xf32>,
    %102 = arith.truncf %31 : vector<256x256xf32> to vector<256x256xbf16>
    %c0_45 = arith.constant 0 : index
    %c0_46 = arith.constant 0 : index
    %c0_47 = arith.constant 0 : index
    %103 = vector.load %arg12[%c0_45, %c0_46, %c0_47] : memref<1x256x256xbf16, #tpu.memory_space<vmem>>, vector<1x256x256xbf16>
    %104 = vector.shape_cast %103 : vector<1x256x256xbf16> to vector<256x256xbf16>
    %105 = vector.shape_cast %102 : vector<256x256xbf16> to vector<1x256x256xbf16>
    tpu.vector_store %arg12[%c0_45, %c0_46, %c0_47], %105 {strides = array<i32>} : memref<1x256x256xbf16, #tpu.memory_space<vmem>>, vector<1x256x256xbf16>,
    return
  }
  func.func @transform_0(%arg0: i32, %arg1: i32) -> (i32, i32, i32) {
    %c0_i32 = arith.constant 0 : i32
    %c0_i32_0 = arith.constant 0 : i32
    %c0_i32_1 = arith.constant 0 : i32
    return %arg0, %c0_i32, %c0_i32_0 : i32, i32, i32
  }
  func.func @transform_1(%arg0: i32, %arg1: i32) -> (i32, i32) {
    %c0_i32 = arith.constant 0 : i32
    %c0_i32_0 = arith.constant 0 : i32
    %c0_i32_1 = arith.constant 0 : i32
    return %c0_i32, %c0_i32_0 : i32, i32
  }
  func.func @transform_2(%arg0: i32, %arg1: i32) -> (i32, i32) {
    %c0_i32 = arith.constant 0 : i32
    %c0_i32_0 = arith.constant 0 : i32
    %c0_i32_1 = arith.constant 0 : i32
    return %c0_i32, %c0_i32_0 : i32, i32
  }
  func.func @transform_3(%arg0: i32, %arg1: i32) -> (i32, i32) {
    %c0_i32 = arith.constant 0 : i32
    %c0_i32_0 = arith.constant 0 : i32
    %c0_i32_1 = arith.constant 0 : i32
    return %c0_i32, %c0_i32_0 : i32, i32
  }
  func.func @transform_4(%arg0: i32, %arg1: i32) -> (i32, i32) {
    %c0_i32 = arith.constant 0 : i32
    %c0_i32_0 = arith.constant 0 : i32
    %c0_i32_1 = arith.constant 0 : i32
    return %c0_i32, %c0_i32_0 : i32, i32
  }
  func.func @transform_5(%arg0: i32, %arg1: i32) -> (i32, i32) {
    %c0_i32 = arith.constant 0 : i32
    %c0_i32_0 = arith.constant 0 : i32
    %c0_i32_1 = arith.constant 0 : i32
    return %c0_i32, %c0_i32_0 : i32, i32
  }
  func.func @transform_6(%arg0: i32, %arg1: i32) -> (i32, i32) {
    %c0_i32 = arith.constant 0 : i32
    %c0_i32_0 = arith.constant 0 : i32
    %c0_i32_1 = arith.constant 0 : i32
    return %c0_i32, %c0_i32_0 : i32, i32
  }
  func.func @transform_7(%arg0: i32, %arg1: i32) -> (i32, i32) {
    %c0_i32 = arith.constant 0 : i32
    %c0_i32_0 = arith.constant 0 : i32
    %c0_i32_1 = arith.constant 0 : i32
    return %c0_i32, %c0_i32_0 : i32, i32
  }
  func.func @transform_8(%arg0: i32, %arg1: i32) -> (i32, i32) {
    %c0_i32 = arith.constant 0 : i32
    %c0_i32_0 = arith.constant 0 : i32
    %c0_i32_1 = arith.constant 0 : i32
    return %c0_i32, %c0_i32_0 : i32, i32
  }
  func.func @transform_9(%arg0: i32, %arg1: i32) -> (i32, i32, i32) {
    %c0_i32 = arith.constant 0 : i32
    %c0_i32_0 = arith.constant 0 : i32
    return %arg0, %arg1, %c0_i32 : i32, i32, i32
  }
  func.func @transform_10(%arg0: i32, %arg1: i32) -> (i32, i32, i32) {
    %c0_i32 = arith.constant 0 : i32
    %c0_i32_0 = arith.constant 0 : i32
    return %arg0, %arg1, %c0_i32 : i32, i32, i32
  }
}

module attributes {stable_mosaic.version = 11 : i64} {
  func.func @encoder_layer_kernel(%arg0: i32, %arg1: i32, %arg2: memref<1x256x128xf32, #tpu.memory_space<vmem>>, %arg3: memref<128x128xbf16, #tpu.memory_space<vmem>>, %arg4: memref<128x256xbf16, #tpu.memory_space<vmem>>, %arg5: memref<128x128xbf16, #tpu.memory_space<vmem>>, %arg6: memref<128x256xbf16, #tpu.memory_space<vmem>>, %arg7: memref<256x128xbf16, #tpu.memory_space<vmem>>, %arg8: memref<1x256xf32, #tpu.memory_space<vmem>>, %arg9: memref<1x256xf32, #tpu.memory_space<vmem>>, %arg10: memref<8x128xf32, #tpu.memory_space<vmem>>, %arg11: memref<1x256x128xf32, #tpu.memory_space<vmem>>, %arg12: memref<1x256x256xbf16, #tpu.memory_space<vmem>>, %arg13: memref<256x128xbf16, #tpu.memory_space<vmem>>, %arg14: memref<256x128xbf16, #tpu.memory_space<vmem>>) attributes {dimension_semantics = [#tpu.dimension_semantics<parallel>, #tpu.dimension_semantics<arbitrary>], iteration_bounds = array<i64: 2, 1>, scalar_prefetch = 0 : i64, scratch_operands = 2 : i64, tpu.core_type = #tpu.core_type<tc>, window_params = [{transform_indices = @transform_0, window_bounds = array<i64: 1, 256, 128>}, {pipeline_mode = #tpu.pipeline_mode<synchronous>, transform_indices = @transform_1, window_bounds = array<i64: 128, 128>}, {pipeline_mode = #tpu.pipeline_mode<synchronous>, transform_indices = @transform_2, window_bounds = array<i64: 128, 256>}, {pipeline_mode = #tpu.pipeline_mode<synchronous>, transform_indices = @transform_3, window_bounds = array<i64: 128, 128>}, {pipeline_mode = #tpu.pipeline_mode<synchronous>, transform_indices = @transform_4, window_bounds = array<i64: 128, 256>}, {pipeline_mode = #tpu.pipeline_mode<synchronous>, transform_indices = @transform_5, window_bounds = array<i64: 256, 128>}, {pipeline_mode = #tpu.pipeline_mode<synchronous>, transform_indices = @transform_6, window_bounds = array<i64: 1, 256>}, {pipeline_mode = #tpu.pipeline_mode<synchronous>, transform_indices = @transform_7, window_bounds = array<i64: 1, 256>}, {pipeline_mode = #tpu.pipeline_mode<synchronous>, transform_indices = @transform_8, window_bounds = array<i64: 8, 128>}, {transform_indices = @transform_9, window_bounds = array<i64: 1, 256, 128>}, {transform_indices = @transform_10, window_bounds = array<i64: 1, 256, 256>}]} {
    %c0_i32 = arith.constant 0 : i32
    %0 = arith.cmpi eq, %arg1, %c0_i32 : i32
    %1 = arith.extui %0 : i1 to i32
    %c0_i32_0 = arith.constant 0 : i32
    %2 = arith.cmpi ne, %1, %c0_i32_0 : i32
    scf.if %2 {
      %c0_48 = arith.constant 0 : index
      %c0_49 = arith.constant 0 : index
      %c0_50 = arith.constant 0 : index
      %106 = vector.load %arg2[%c0_48, %c0_49, %c0_50] : memref<1x256x128xf32, #tpu.memory_space<vmem>>, vector<1x256x128xf32>
      %107 = vector.shape_cast %106 : vector<1x256x128xf32> to vector<256x128xf32>
      %108 = arith.truncf %107 : vector<256x128xf32> to vector<256x128xbf16>
      %c0_51 = arith.constant 0 : index
      %c0_52 = arith.constant 0 : index
      %109 = vector.load %arg4[%c0_51, %c0_52] : memref<128x256xbf16, #tpu.memory_space<vmem>>, vector<128x256xbf16>
      %cst_53 = arith.constant dense<0.000000e+00> : vector<256x256xf32>
      %110 = tpu.matmul %108, %109, %cst_53 {dimension_numbers = #tpu.dot_dimension_numbers<[1], [0], [0], [1], [0, 0, 1, 1], [], []>} : vector<256x128xbf16>, vector<128x256xbf16>, vector<256x256xf32> -> vector<256x256xf32>
      %c0_54 = arith.constant 0 : index
      %c0_55 = arith.constant 0 : index
      %111 = vector.load %arg8[%c0_54, %c0_55] : memref<1x256xf32, #tpu.memory_space<vmem>>, vector<1x256xf32>
      %112 = vector.broadcast %111 : vector<1x256xf32> to vector<256x256xf32>
      %113 = arith.addf %110, %112 : vector<256x256xf32>
      %114 = vector.extract_strided_slice %113 {offsets = [0, 0], sizes = [256, 128], strides = [1, 1]} : vector<256x256xf32> to vector<256x128xf32>
      %115 = arith.truncf %114 : vector<256x128xf32> to vector<256x128xbf16>
      %c0_56 = arith.constant 0 : index
      %c0_57 = arith.constant 0 : index
      %116 = vector.load %arg13[%c0_56, %c0_57] : memref<256x128xbf16, #tpu.memory_space<vmem>>, vector<256x128xbf16>
      tpu.vector_store %arg13[%c0_56, %c0_57], %115 {strides = array<i32>} : memref<256x128xbf16, #tpu.memory_space<vmem>>, vector<256x128xbf16>,
      %117 = vector.extract_strided_slice %113 {offsets = [0, 128], sizes = [256, 128], strides = [1, 1]} : vector<256x256xf32> to vector<256x128xf32>
      %118 = arith.truncf %117 : vector<256x128xf32> to vector<256x128xbf16>
      %c0_58 = arith.constant 0 : index
      %c0_59 = arith.constant 0 : index
      %119 = vector.load %arg14[%c0_58, %c0_59] : memref<256x128xbf16, #tpu.memory_space<vmem>>, vector<256x128xbf16>
      tpu.vector_store %arg14[%c0_58, %c0_59], %118 {strides = array<i32>} : memref<256x128xbf16, #tpu.memory_space<vmem>>, vector<256x128xbf16>,
    } else {
    }
    %c256_i32 = arith.constant 256 : i32
    %3 = arith.muli %arg1, %c256_i32 : i32
    %4 = tpu.assume_multiple %3, 256 : i32
    %c0 = arith.constant 0 : index
    %5 = arith.index_cast %4 : i32 to index
    %c0_1 = arith.constant 0 : index
    %6 = vector.load %arg2[%c0, %5, %c0_1] : memref<1x256x128xf32, #tpu.memory_space<vmem>>, vector<1x256x128xf32>
    %7 = vector.shape_cast %6 : vector<1x256x128xf32> to vector<256x128xf32>
    %8 = arith.truncf %7 : vector<256x128xf32> to vector<256x128xbf16>
    %c0_2 = arith.constant 0 : index
    %c0_3 = arith.constant 0 : index
    %9 = vector.load %arg10[%c0_2, %c0_3] : memref<8x128xf32, #tpu.memory_space<vmem>>, vector<1x128xf32>
    %c1 = arith.constant 1 : index
    %c0_4 = arith.constant 0 : index
    %10 = vector.load %arg10[%c1, %c0_4] : memref<8x128xf32, #tpu.memory_space<vmem>>, vector<1x128xf32>
    %c2 = arith.constant 2 : index
    %c0_5 = arith.constant 0 : index
    %11 = vector.load %arg10[%c2, %c0_5] : memref<8x128xf32, #tpu.memory_space<vmem>>, vector<1x128xf32>
    %c3 = arith.constant 3 : index
    %c0_6 = arith.constant 0 : index
    %12 = vector.load %arg10[%c3, %c0_6] : memref<8x128xf32, #tpu.memory_space<vmem>>, vector<1x128xf32>
    %c4 = arith.constant 4 : index
    %c0_7 = arith.constant 0 : index
    %13 = vector.load %arg10[%c4, %c0_7] : memref<8x128xf32, #tpu.memory_space<vmem>>, vector<1x128xf32>
    %c5 = arith.constant 5 : index
    %c0_8 = arith.constant 0 : index
    %14 = vector.load %arg10[%c5, %c0_8] : memref<8x128xf32, #tpu.memory_space<vmem>>, vector<1x128xf32>
    %c6 = arith.constant 6 : index
    %c0_9 = arith.constant 0 : index
    %15 = vector.load %arg10[%c6, %c0_9] : memref<8x128xf32, #tpu.memory_space<vmem>>, vector<1x128xf32>
    %c0_10 = arith.constant 0 : index
    %c0_11 = arith.constant 0 : index
    %16 = vector.load %arg3[%c0_10, %c0_11] : memref<128x128xbf16, #tpu.memory_space<vmem>>, vector<128x128xbf16>
    %cst = arith.constant dense<0.000000e+00> : vector<256x128xf32>
    %17 = tpu.matmul %8, %16, %cst {dimension_numbers = #tpu.dot_dimension_numbers<[1], [0], [0], [1], [0, 0, 1, 1], [], []>} : vector<256x128xbf16>, vector<128x128xbf16>, vector<256x128xf32> -> vector<256x128xf32>
    %18 = vector.broadcast %9 : vector<1x128xf32> to vector<256x128xf32>
    %19 = arith.addf %17, %18 : vector<256x128xf32>
    %20 = arith.truncf %19 : vector<256x128xf32> to vector<256x128xbf16>
    %c0_12 = arith.constant 0 : index
    %c0_13 = arith.constant 0 : index
    %21 = vector.load %arg13[%c0_12, %c0_13] : memref<256x128xbf16, #tpu.memory_space<vmem>>, vector<256x128xbf16>
    %cst_14 = arith.constant dense<0.000000e+00> : vector<256x256xf32>
    %22 = tpu.matmul %20, %21, %cst_14 {dimension_numbers = #tpu.dot_dimension_numbers<[1], [1], [0], [0], [0, 0, 1, 0], [], []>} : vector<256x128xbf16>, vector<256x128xbf16>, vector<256x256xf32> -> vector<256x256xf32>
    %cst_15 = arith.constant dense<0xFF800000> : vector<256xf32>
    %23 = vector.multi_reduction <maximumf>, %22, %cst_15 [1] : vector<256x256xf32> to vector<256xf32>
    %24 = vector.shape_cast %23 : vector<256xf32> to vector<256x1xf32>
    %25 = vector.broadcast %24 : vector<256x1xf32> to vector<256x256xf32>
    %26 = arith.subf %22, %25 : vector<256x256xf32>
    %27 = math.exp %26 : vector<256x256xf32>
    %cst_16 = arith.constant dense<0.000000e+00> : vector<256xf32>
    %28 = vector.multi_reduction <add>, %27, %cst_16 [1] : vector<256x256xf32> to vector<256xf32>
    %29 = vector.shape_cast %28 : vector<256xf32> to vector<256x1xf32>
    %30 = vector.broadcast %29 : vector<256x1xf32> to vector<256x256xf32>
    %31 = arith.divf %27, %30 : vector<256x256xf32>
    %32 = arith.truncf %31 : vector<256x256xf32> to vector<256x256xbf16>
    %c0_17 = arith.constant 0 : index
    %c0_18 = arith.constant 0 : index
    %33 = vector.load %arg14[%c0_17, %c0_18] : memref<256x128xbf16, #tpu.memory_space<vmem>>, vector<256x128xbf16>
    %cst_19 = arith.constant dense<0.000000e+00> : vector<256x128xf32>
    %34 = tpu.matmul %32, %33, %cst_19 {dimension_numbers = #tpu.dot_dimension_numbers<[1], [0], [0], [1], [0, 0, 1, 1], [], []>} : vector<256x256xbf16>, vector<256x128xbf16>, vector<256x128xf32> -> vector<256x128xf32>
    %35 = arith.truncf %34 : vector<256x128xf32> to vector<256x128xbf16>
    %c0_20 = arith.constant 0 : index
    %c0_21 = arith.constant 0 : index
    %36 = vector.load %arg5[%c0_20, %c0_21] : memref<128x128xbf16, #tpu.memory_space<vmem>>, vector<128x128xbf16>
    %cst_22 = arith.constant dense<0.000000e+00> : vector<256x128xf32>
    %37 = tpu.matmul %35, %36, %cst_22 {dimension_numbers = #tpu.dot_dimension_numbers<[1], [0], [0], [1], [0, 0, 1, 1], [], []>} : vector<256x128xbf16>, vector<128x128xbf16>, vector<256x128xf32> -> vector<256x128xf32>
    %38 = vector.broadcast %10 : vector<1x128xf32> to vector<256x128xf32>
    %39 = arith.addf %37, %38 : vector<256x128xf32>
    %40 = arith.addf %7, %39 : vector<256x128xf32>
    %cst_23 = arith.constant dense<0.000000e+00> : vector<256xf32>
    %41 = vector.multi_reduction <add>, %40, %cst_23 [1] : vector<256x128xf32> to vector<256xf32>
    %42 = vector.shape_cast %41 : vector<256xf32> to vector<256x1xf32>
    %cst_24 = arith.constant 1.280000e+02 : f32
    %43 = vector.broadcast %cst_24 : f32 to vector<256x1xf32>
    %44 = arith.divf %42, %43 : vector<256x1xf32>
    %45 = vector.broadcast %44 : vector<256x1xf32> to vector<256x128xf32>
    %46 = arith.subf %40, %45 : vector<256x128xf32>
    %47 = arith.mulf %46, %46 : vector<256x128xf32>
    %cst_25 = arith.constant dense<0.000000e+00> : vector<256xf32>
    %48 = vector.multi_reduction <add>, %47, %cst_25 [1] : vector<256x128xf32> to vector<256xf32>
    %49 = vector.shape_cast %48 : vector<256xf32> to vector<256x1xf32>
    %cst_26 = arith.constant 1.280000e+02 : f32
    %50 = vector.broadcast %cst_26 : f32 to vector<256x1xf32>
    %51 = arith.divf %49, %50 : vector<256x1xf32>
    %52 = vector.broadcast %44 : vector<256x1xf32> to vector<256x128xf32>
    %53 = arith.subf %40, %52 : vector<256x128xf32>
    %cst_27 = arith.constant 9.99999974E-6 : f32
    %54 = vector.broadcast %cst_27 : f32 to vector<256x1xf32>
    %55 = arith.addf %51, %54 : vector<256x1xf32>
    %56 = math.rsqrt %55 : vector<256x1xf32>
    %57 = vector.broadcast %56 : vector<256x1xf32> to vector<256x128xf32>
    %58 = arith.mulf %53, %57 : vector<256x128xf32>
    %59 = vector.broadcast %12 : vector<1x128xf32> to vector<256x128xf32>
    %60 = arith.mulf %58, %59 : vector<256x128xf32>
    %61 = vector.broadcast %13 : vector<1x128xf32> to vector<256x128xf32>
    %62 = arith.addf %60, %61 : vector<256x128xf32>
    %63 = arith.truncf %62 : vector<256x128xf32> to vector<256x128xbf16>
    %c0_28 = arith.constant 0 : index
    %c0_29 = arith.constant 0 : index
    %64 = vector.load %arg6[%c0_28, %c0_29] : memref<128x256xbf16, #tpu.memory_space<vmem>>, vector<128x256xbf16>
    %cst_30 = arith.constant dense<0.000000e+00> : vector<256x256xf32>
    %65 = tpu.matmul %63, %64, %cst_30 {dimension_numbers = #tpu.dot_dimension_numbers<[1], [0], [0], [1], [0, 0, 1, 1], [], []>} : vector<256x128xbf16>, vector<128x256xbf16>, vector<256x256xf32> -> vector<256x256xf32>
    %c0_31 = arith.constant 0 : index
    %c0_32 = arith.constant 0 : index
    %66 = vector.load %arg9[%c0_31, %c0_32] : memref<1x256xf32, #tpu.memory_space<vmem>>, vector<1x256xf32>
    %67 = vector.broadcast %66 : vector<1x256xf32> to vector<256x256xf32>
    %68 = arith.addf %65, %67 : vector<256x256xf32>
    %cst_33 = arith.constant 0.000000e+00 : f32
    %69 = vector.broadcast %cst_33 : f32 to vector<256x256xf32>
    %70 = arith.maximumf %68, %69 : vector<256x256xf32>
    %71 = arith.truncf %70 : vector<256x256xf32> to vector<256x256xbf16>
    %c0_34 = arith.constant 0 : index
    %c0_35 = arith.constant 0 : index
    %72 = vector.load %arg7[%c0_34, %c0_35] : memref<256x128xbf16, #tpu.memory_space<vmem>>, vector<256x128xbf16>
    %cst_36 = arith.constant dense<0.000000e+00> : vector<256x128xf32>
    %73 = tpu.matmul %71, %72, %cst_36 {dimension_numbers = #tpu.dot_dimension_numbers<[1], [0], [0], [1], [0, 0, 1, 1], [], []>} : vector<256x256xbf16>, vector<256x128xbf16>, vector<256x128xf32> -> vector<256x128xf32>
    %74 = vector.broadcast %11 : vector<1x128xf32> to vector<256x128xf32>
    %75 = arith.addf %73, %74 : vector<256x128xf32>
    %76 = arith.addf %62, %75 : vector<256x128xf32>
    %cst_37 = arith.constant dense<0.000000e+00> : vector<256xf32>
    %77 = vector.multi_reduction <add>, %76, %cst_37 [1] : vector<256x128xf32> to vector<256xf32>
    %78 = vector.shape_cast %77 : vector<256xf32> to vector<256x1xf32>
    %cst_38 = arith.constant 1.280000e+02 : f32
    %79 = vector.broadcast %cst_38 : f32 to vector<256x1xf32>
    %80 = arith.divf %78, %79 : vector<256x1xf32>
    %81 = vector.broadcast %80 : vector<256x1xf32> to vector<256x128xf32>
    %82 = arith.subf %76, %81 : vector<256x128xf32>
    %83 = arith.mulf %82, %82 : vector<256x128xf32>
    %cst_39 = arith.constant dense<0.000000e+00> : vector<256xf32>
    %84 = vector.multi_reduction <add>, %83, %cst_39 [1] : vector<256x128xf32> to vector<256xf32>
    %85 = vector.shape_cast %84 : vector<256xf32> to vector<256x1xf32>
    %cst_40 = arith.constant 1.280000e+02 : f32
    %86 = vector.broadcast %cst_40 : f32 to vector<256x1xf32>
    %87 = arith.divf %85, %86 : vector<256x1xf32>
    %88 = vector.broadcast %80 : vector<256x1xf32> to vector<256x128xf32>
    %89 = arith.subf %76, %88 : vector<256x128xf32>
    %cst_41 = arith.constant 9.99999974E-6 : f32
    %90 = vector.broadcast %cst_41 : f32 to vector<256x1xf32>
    %91 = arith.addf %87, %90 : vector<256x1xf32>
    %92 = math.rsqrt %91 : vector<256x1xf32>
    %93 = vector.broadcast %92 : vector<256x1xf32> to vector<256x128xf32>
    %94 = arith.mulf %89, %93 : vector<256x128xf32>
    %95 = vector.broadcast %14 : vector<1x128xf32> to vector<256x128xf32>
    %96 = arith.mulf %94, %95 : vector<256x128xf32>
    %97 = vector.broadcast %15 : vector<1x128xf32> to vector<256x128xf32>
    %98 = arith.addf %96, %97 : vector<256x128xf32>
    %c0_42 = arith.constant 0 : index
    %c0_43 = arith.constant 0 : index
    %c0_44 = arith.constant 0 : index
    %99 = vector.load %arg11[%c0_42, %c0_43, %c0_44] : memref<1x256x128xf32, #tpu.memory_space<vmem>>, vector<1x256x128xf32>
    %100 = vector.shape_cast %99 : vector<1x256x128xf32> to vector<256x128xf32>
    %101 = vector.shape_cast %98 : vector<256x128xf32> to vector<1x256x128xf32>
    tpu.vector_store %arg11[%c0_42, %c0_43, %c0_44], %101 {strides = array<i32>} : memref<1x256x128xf32, #tpu.memory_space<vmem>>, vector<1x256x128xf32>,
    %102 = arith.truncf %31 : vector<256x256xf32> to vector<256x256xbf16>
    %c0_45 = arith.constant 0 : index
    %c0_46 = arith.constant 0 : index
    %c0_47 = arith.constant 0 : index
    %103 = vector.load %arg12[%c0_45, %c0_46, %c0_47] : memref<1x256x256xbf16, #tpu.memory_space<vmem>>, vector<1x256x256xbf16>
    %104 = vector.shape_cast %103 : vector<1x256x256xbf16> to vector<256x256xbf16>
    %105 = vector.shape_cast %102 : vector<256x256xbf16> to vector<1x256x256xbf16>
    tpu.vector_store %arg12[%c0_45, %c0_46, %c0_47], %105 {strides = array<i32>} : memref<1x256x256xbf16, #tpu.memory_space<vmem>>, vector<1x256x256xbf16>,
    return
  }
  func.func @transform_0(%arg0: i32, %arg1: i32) -> (i32, i32, i32) {
    %c0_i32 = arith.constant 0 : i32
    %c0_i32_0 = arith.constant 0 : i32
    %c0_i32_1 = arith.constant 0 : i32
    return %arg0, %c0_i32, %c0_i32_0 : i32, i32, i32
  }
  func.func @transform_1(%arg0: i32, %arg1: i32) -> (i32, i32) {
    %c0_i32 = arith.constant 0 : i32
    %c0_i32_0 = arith.constant 0 : i32
    %c0_i32_1 = arith.constant 0 : i32
    return %c0_i32, %c0_i32_0 : i32, i32
  }
  func.func @transform_2(%arg0: i32, %arg1: i32) -> (i32, i32) {
    %c0_i32 = arith.constant 0 : i32
    %c0_i32_0 = arith.constant 0 : i32
    %c0_i32_1 = arith.constant 0 : i32
    return %c0_i32, %c0_i32_0 : i32, i32
  }
  func.func @transform_3(%arg0: i32, %arg1: i32) -> (i32, i32) {
    %c0_i32 = arith.constant 0 : i32
    %c0_i32_0 = arith.constant 0 : i32
    %c0_i32_1 = arith.constant 0 : i32
    return %c0_i32, %c0_i32_0 : i32, i32
  }
  func.func @transform_4(%arg0: i32, %arg1: i32) -> (i32, i32) {
    %c0_i32 = arith.constant 0 : i32
    %c0_i32_0 = arith.constant 0 : i32
    %c0_i32_1 = arith.constant 0 : i32
    return %c0_i32, %c0_i32_0 : i32, i32
  }
  func.func @transform_5(%arg0: i32, %arg1: i32) -> (i32, i32) {
    %c0_i32 = arith.constant 0 : i32
    %c0_i32_0 = arith.constant 0 : i32
    %c0_i32_1 = arith.constant 0 : i32
    return %c0_i32, %c0_i32_0 : i32, i32
  }
  func.func @transform_6(%arg0: i32, %arg1: i32) -> (i32, i32) {
    %c0_i32 = arith.constant 0 : i32
    %c0_i32_0 = arith.constant 0 : i32
    %c0_i32_1 = arith.constant 0 : i32
    return %c0_i32, %c0_i32_0 : i32, i32
  }
  func.func @transform_7(%arg0: i32, %arg1: i32) -> (i32, i32) {
    %c0_i32 = arith.constant 0 : i32
    %c0_i32_0 = arith.constant 0 : i32
    %c0_i32_1 = arith.constant 0 : i32
    return %c0_i32, %c0_i32_0 : i32, i32
  }
  func.func @transform_8(%arg0: i32, %arg1: i32) -> (i32, i32) {
    %c0_i32 = arith.constant 0 : i32
    %c0_i32_0 = arith.constant 0 : i32
    %c0_i32_1 = arith.constant 0 : i32
    return %c0_i32, %c0_i32_0 : i32, i32
  }
  func.func @transform_9(%arg0: i32, %arg1: i32) -> (i32, i32, i32) {
    %c0_i32 = arith.constant 0 : i32
    %c0_i32_0 = arith.constant 0 : i32
    return %arg0, %arg1, %c0_i32 : i32, i32, i32
  }
  func.func @transform_10(%arg0: i32, %arg1: i32) -> (i32, i32, i32) {
    %c0_i32 = arith.constant 0 : i32
    %c0_i32_0 = arith.constant 0 : i32
    return %arg0, %arg1, %c0_i32 : i32, i32, i32
  }
}

</mosaic_0001>

<bundles_post_ra>
// kernel: tpu_custom_call.1
= control target key start
LH: loop header
LB: loop body
LE: loop exit
PB: predicated region body
PF: predicated region fallthrough
CT: control target
= control target key end

     0   :  { %s8310_s0 = inlined_call_operand.hbm [shape: f32[2,256,128], index: 0, kind: input, shape index: {}]   ;;  %s8311_s1 = inlined_call_operand.hbm [shape: bf16[128,128], index: 1, kind: input, shape index: {}]   ;;  %s8312_s2 = inlined_call_operand.hbm [shape: bf16[128,256], index: 2, kind: input, shape index: {}]   ;;  %s8313_s3 = inlined_call_operand.hbm [shape: bf16[128,128], index: 3, kind: input, shape index: {}]   ;;  %s8314_s4 = inlined_call_operand.hbm [shape: bf16[128,256], index: 4, kind: input, shape index: {}]   ;;  %s8315_s5 = inlined_call_operand.hbm [shape: bf16[256,128], index: 5, kind: input, shape index: {}]   ;;  %s8316_s6 = inlined_call_operand.vmem [shape: f32[1,256], index: 6, kind: input, shape index: {}]   ;;  %s8317_s7 = inlined_call_operand.vmem [shape: f32[1,256], index: 7, kind: input, shape index: {}]   ;;  %s8318_s8 = inlined_call_operand.vmem [shape: f32[8,128], index: 8, kind: input, shape index: {}]   ;;  %s8319_s9 = inlined_call_operand.hbm [shape: f32[2,256,128], index: 9, kind: output, shape index: {0}]   ;;  %s8320_s10 = inlined_call_operand.hbm [shape: bf16[2,256,256], index: 10, kind: output, shape index: {1}]  }
   0x1   :  { %8364 = sst [smem:[#allocation40_spill]] %s8311_s1 }
   0x2   :  { %8365 = sst [smem:[#allocation41_spill]] %s8313_s3 }
   0x3   :  { %8366 = sst [smem:[#allocation42_spill]] %s8317_s7 }
   0x4   :  { %8367 = sst [smem:[#allocation43_spill]] %s8319_s9 }
   0x5   :  { %8368 = sst [smem:[#allocation44_spill]] %s8320_s10 }
   0x6   :  { %16 = vsyncpa [#allocation5], 0 }
   0x7   :  { %18 = vsyncpa [#allocation5 + $0x1], 0 }
   0x8   :  { %19 = vsyncpa [#allocation8], 0 }
   0x9   :  { %20 = vsyncpa [#allocation11], 0 }
   0xa   :  { %21 = vsyncpa [#allocation14], 0 }
   0xb   :  { %22 = vsyncpa [#allocation6], 0 }
   0xc   :  { %24 = vsyncpa [#allocation6 + $0x1], 0 }
   0xd   :  { %25 = vsyncpa [#allocation17], 0 }
   0xe   :  { %27 = vsyncpa [#allocation17 + $0x1], 0  ;;  %s5903_s13 = smov 0   ;;  %s5905_s14 = smov 0  }
   0xf   :  { %s5907_s15 = smov 0   ;;  %s5909_s16 = smov 0  }
  0x10   :  { %s5911_s17 = smov 0   ;;  %s5913_s18 = smov 0  }
  0x11 LB: > { %8369 = sst [smem:[#allocation24_spill]] %s5823_s16  ;;  %s8321_s19 = sadd.s32 4294967295, %s5831_s18   ;;  %s5831_s18 = sphi %s5913_s18, %s33_s18   ;;  %s5827_s17 = sphi %s5911_s17, %s8480_s17   ;;  %s5823_s16 = sphi %s5909_s16, %s8479_s16   ;;  %s5819_s15 = sphi %s5907_s15, %s8478_s15   ;;  %s5815_s14 = sphi %s5905_s14, %s8477_s14   ;;  %s5811_s13 = sphi %s5903_s13, %s8476_s13  }
  0x12   : > { %p4397_p0 = scmp.ge.s32.totalorder %s5831_s18, 1  ;;  %p5937_p1 = scmp.eq.s32.totalorder %s8321_s19, 0 }
  0x13   : > { %p300_p2 = scmp.lt.s32.totalorder %s5831_s18, 3  ;;  %s5833_s22 = smov [#allocation7]  }
  0x14   : > { %s8370_s20 = scalar_select %p5937_p1, 1, 0 }
  0x15   : > { %p5942_p3 = pnand %p4397_p0, %p300_p2  ;;  %s312_s23 = sshll.u32 %s5833_s22, 4  ;;  %s5946_s23 = int_to_ptr.vmem [resolvable:$true] %s312_s23 }
  0x16   : > { %s5834_s25 = smov [#allocation10]   ;;  %s5835_s27 = smov [#allocation9]  }
  0x17   : > { %s8371_s21 = scalar_select %p5942_p3, 1, 0 }
  0x18   : > { %p5004_p4 = pneg %p5942_p3  ;;  %s338_s26 = sshll.u32 %s5834_s25, 4  ;;  %s5957_s26 = int_to_ptr.vmem [resolvable:$true] %s338_s26 }
  0x19   : > { %s5959_s28 = sshll.u32 %s5835_s27, 4  ;;  %s8373_s1 = sld [smem:[#allocation40_spill]]  ;;  %s326_s28 = int_to_ptr.vmem [resolvable:$true] %s5959_s28 }
  0x1a   : > { %p5953_p6 = pnand %p5004_p4, %p5937_p1 }
  0x1c   : > { %p5969_p8 = pneg %p5953_p6 }
  0x1f   : > { %s5535_s11 = scalar_lea.hbm %s8373_s1, 1024 }
  0x20   : > { %p5536_p7 = scmp.ne.s32.totalorder %s8373_s1, %s5535_s11  ;;  %p5542_p11 = scmp.lt.u32.totalorder %s5535_s11, %s8373_s1 }
  0x22   : > { %p5538_p9 = pnand %p5969_p8, %p5536_p7 }
  0x24   : > { %p5539_p10 = pneg %p5538_p9 }
  0x26   : > { %p5544_p12 = pnand %p5542_p11, %p5539_p10 }
  0x28   : > { %5547 = shalt.err (!%p5544_p12)
}
  0x29   : > { %s5548_s29 = scalar_lea.vmem %s5946_s23, 1024  ;;  %p5556_p4 = scmp.lt.s32.totalorder %s5946_s23, %s5946_s23 }
  0x2a   : > { %p5549_p13 = scmp.ne.s32.totalorder %s5946_s23, %s5548_s29  ;;  %p5557_p5 = scmp.lt.s32.totalorder %s5548_s29, %s5548_s29 }
  0x2c   : > { %p5551_p0 = pnand %p5549_p13, %p5969_p8  ;;  %p5558_p7 = por %p5557_p5, %p5556_p4 }
  0x2e   : > { %p5552_p2 = pneg %p5551_p0 }
  0x30   : > { %p5559_p9 = pnand %p5558_p7, %p5552_p2 }
  0x32   : > { %5562 = shalt.err (!%p5559_p9)
}
  0x33   : > { %s8328_s30 = smov 64   ;;  %s8329_s11 = smov 4  }
  0x34   : > { %5007 = dma.hbm_to_vmem [thread:$0]  (!%p5953_p6), %s8373_s1, 1024, %s5946_s23, [#allocation8], %s8328_s30, %s8328_s30, %s8329_s11  }
  0x35   : > { %s8375_s3 = sld [smem:[#allocation41_spill]] }
  0x3b   : > { %s5563_s29 = scalar_lea.hbm %s8375_s3, 1024 }
  0x3c   : > { %p5564_p5 = scmp.ne.s32.totalorder %s8375_s3, %s5563_s29  ;;  %p5570_p12 = scmp.lt.u32.totalorder %s5563_s29, %s8375_s3 }
  0x3e   : > { %p5566_p10 = pnand %p5564_p5, %p5969_p8 }
  0x40   : > { %p5567_p11 = pneg %p5566_p10 }
  0x42   : > { %p5572_p13 = pnand %p5570_p12, %p5567_p11 }
  0x44   : > { %5575 = shalt.err (!%p5572_p13)
}
  0x45   : > { %s5576_s23 = scalar_lea.vmem %s5957_s26, 1024  ;;  %p5584_p7 = scmp.lt.s32.totalorder %s5957_s26, %s5957_s26 }
  0x46   : > { %p5577_p0 = scmp.ne.s32.totalorder %s5957_s26, %s5576_s23  ;;  %p5585_p9 = scmp.lt.s32.totalorder %s5576_s23, %s5576_s23 }
  0x48   : > { %p5579_p2 = pnand %p5577_p0, %p5969_p8  ;;  %p5586_p5 = por %p5585_p9, %p5584_p7 }
  0x4a   : > { %p5580_p4 = pneg %p5579_p2 }
  0x4c   : > { %p5587_p10 = pnand %p5586_p5, %p5580_p4 }
  0x4e   : > { %5590 = shalt.err (!%p5587_p10)
}
  0x4f   : > { %5013 = dma.hbm_to_vmem [thread:$0]  (!%p5953_p6), %s8375_s3, 1024, %s5957_s26, [#allocation11], %s8328_s30, %s8328_s30, %s8329_s11  }
  0x50   : > { %s5591_s12 = scalar_lea.hbm %s8312_s2, 2048 }
  0x51   : > { %p5592_p11 = scmp.ne.s32.totalorder %s8312_s2, %s5591_s12  ;;  %p5598_p0 = scmp.lt.u32.totalorder %s5591_s12, %s8312_s2 }
  0x53   : > { %p5594_p12 = pnand %p5592_p11, %p5969_p8 }
  0x55   : > { %p5595_p13 = pneg %p5594_p12 }
  0x57   : > { %p5600_p2 = pnand %p5598_p0, %p5595_p13 }
  0x59   : > { %5603 = shalt.err (!%p5600_p2)
}
  0x5a   : > { %s5604_s23 = scalar_lea.vmem %s326_s28, 2048  ;;  %p5612_p5 = scmp.lt.s32.totalorder %s326_s28, %s326_s28 }
  0x5b   : > { %p5605_p4 = scmp.ne.s32.totalorder %s326_s28, %s5604_s23  ;;  %p5613_p10 = scmp.lt.s32.totalorder %s5604_s23, %s5604_s23 }
  0x5d   : > { %p5607_p7 = pnand %p5605_p4, %p5969_p8  ;;  %p5614_p3 = por %p5613_p10, %p5612_p5 }
  0x5f   : > { %p5608_p9 = pneg %p5607_p7 }
  0x61   : > { %p5615_p1 = pnand %p5614_p3, %p5608_p9 }
  0x63   : > { %5618 = shalt.err (!%p5615_p1)
}
  0x64   : > { %s5838_s26 = smov 128   ;;  %s5839_s7 = smov 8  }
  0x65   : > { %5010 = dma.hbm_to_vmem [thread:$0]  (!%p5953_p6), %s8312_s2, 2048, %s326_s28, [#allocation8], %s5838_s26, %s5838_s26, %s5839_s7  }
  0x66   : > { %s5840_s16 = smov [#allocation12]   ;;  %s5841_s22 = smov [#allocation13]  }
  0x67   : > { %s351_s12 = sshll.u32 %s5840_s16, 4  ;;  %s364_s25 = sshll.u32 %s5841_s22, 4  ;;  %s352_s12 = int_to_ptr.vmem [resolvable:$true] %s351_s12  ;;  %s365_s25 = int_to_ptr.vmem [resolvable:$true] %s364_s25 }
  0x68   : > { %s5619_s23 = scalar_lea.hbm %s8314_s4, 2048 }
  0x69   : > { %p5620_p1 = scmp.ne.s32.totalorder %s8314_s4, %s5619_s23  ;;  %p5626_p12 = scmp.lt.u32.totalorder %s5619_s23, %s8314_s4 }
  0x6b   : > { %p5622_p3 = pnand %p5620_p1, %p5969_p8 }
  0x6d   : > { %p5623_p11 = pneg %p5622_p3 }
  0x6f   : > { %p5628_p13 = pnand %p5626_p12, %p5623_p11 }
  0x71   : > { %5631 = shalt.err (!%p5628_p13)
}
  0x72   : > { %s5632_s28 = scalar_lea.vmem %s352_s12, 2048  ;;  %p5640_p7 = scmp.lt.s32.totalorder %s352_s12, %s352_s12 }
  0x73   : > { %p5633_p0 = scmp.ne.s32.totalorder %s352_s12, %s5632_s28  ;;  %p5641_p9 = scmp.lt.s32.totalorder %s5632_s28, %s5632_s28 }
  0x75   : > { %p5635_p2 = pnand %p5633_p0, %p5969_p8  ;;  %p5642_p5 = por %p5641_p9, %p5640_p7 }
  0x77   : > { %p5636_p4 = pneg %p5635_p2 }
  0x79   : > { %p5643_p10 = pnand %p5642_p5, %p5636_p4 }
  0x7b   : > { %5646 = shalt.err (!%p5643_p10)
}
  0x7c   : > { %5016 = dma.hbm_to_vmem [thread:$0]  (!%p5953_p6), %s8314_s4, 2048, %s352_s12, [#allocation11], %s5838_s26, %s5838_s26, %s5839_s7  }
  0x7d   : > { %s5647_s9 = scalar_lea.hbm %s8315_s5, 2048 }
  0x7e   : > { %p5648_p1 = scmp.ne.s32.totalorder %s8315_s5, %s5647_s9  ;;  %p5654_p12 = scmp.lt.u32.totalorder %s5647_s9, %s8315_s5 }
  0x80   : > { %p5650_p3 = pnand %p5648_p1, %p5969_p8 }
  0x82   : > { %p5651_p11 = pneg %p5650_p3 }
  0x84   : > { %p5656_p13 = pnand %p5654_p12, %p5651_p11 }
  0x86   : > { %5659 = shalt.err (!%p5656_p13)
}
  0x87   : > { %s5660_s29 = scalar_lea.vmem %s365_s25, 2048  ;;  %p5668_p7 = scmp.lt.s32.totalorder %s365_s25, %s365_s25 }
  0x88   : > { %p5661_p0 = scmp.ne.s32.totalorder %s365_s25, %s5660_s29  ;;  %p5669_p9 = scmp.lt.s32.totalorder %s5660_s29, %s5660_s29 }
  0x8a   : > { %p5663_p2 = pnand %p5661_p0, %p5969_p8  ;;  %p5670_p5 = por %p5669_p9, %p5668_p7 }
  0x8c   : > { %p5664_p4 = pneg %p5663_p2 }
  0x8e   : > { %p5671_p10 = pnand %p5670_p5, %p5664_p4 }
  0x90   : > { %5674 = shalt.err (!%p5671_p10)
}
  0x91   : > { %s8376_s12 = smov 4   ;;  %s8377_s23 = smov 64  }
  0x92   : > { %5019 = dma.hbm_to_vmem [thread:$0]  (!%p5953_p6), %s8315_s5, 2048, %s365_s25, [#allocation14], %s8377_s23, %s8377_s23, %s8376_s12  }
  0x93   : > { %s4396_s19 = sadd.s32 4294967294, %s5831_s18   ;;  %s45_s24 = sadd.s32 1, %s5827_s17 }
  0x94   : > { %s52_s3 = sadd.s32 1, %s5819_s15  ;;  %p47_p8 = scmp.ge.s32.totalorder %s45_s24, 2 }
  0x95   : > { %p59_p1 = scmp.ne.s32.totalorder %s5819_s15, %s5815_s14  ;;  %p60_p3 = scmp.eq.s32.totalorder %s5831_s18, 0 }
  0x96   : > { %p65_p11 = scmp.ne.s32.totalorder %s5815_s14, %s5811_s13  ;;  %s8482_s24 = smov (%p47_p8, %s45_s24), 0 }
  0x97   : > { %p6093_p12 = por %p60_p3, %p59_p1  ;;  %p8379_p13 = scmp.ne.s32.totalorder %s8370_s20, 0 }
  0x98   : > { %s49_s11 = ssub.s32 %s5827_s17, %s8482_s24  ;;  %s8381_s9 = sadd.s32 4294967295, %s5831_s18  }
  0x99   : > { %p6099_p6 = por %p8379_p13, %p65_p11  ;;  %p259_p0 = scmp.eq.s32.totalorder %s8381_s9, 1 }
  0x9a   : > { %p50_p2 = scmp.eq.s32.totalorder %s49_s11, 0  ;;  %p265_p4 = scmp.eq.s32.totalorder %s4396_s19, 1 }
  0x9b   : > { %p6107_p7 = por %p259_p0, %p59_p1  ;;  %p5036_p9 = scmp.lt.s32.totalorder %s5831_s18, 2 }
  0x9c   : > { %s6113_s16 = scalar_select %p50_p2, %s5819_s15, %s52_s3  }
  0x9d   : > { %s8382_s10 = scalar_select %p6107_p7, 1, 0 }
  0x9e   : > { %p6115_p5 = por %p265_p4, %p65_p11  ;;  %s387_s27 = sand.u32 1, %s5819_s15  }
  0x9f   : > { %s4404_s29 = sshll.u32 %s387_s27, 8  ;;  %s4527_s12 = sshll.u32 %s5827_s17, 12 }
  0xa0   : > { %s8383_s22 = scalar_select %p6115_p5, 1, 0 }
  0xa1   : > { %s6124_s1 = scalar_lea.hbm %s8310_s0, %s4527_s12  ;;  %s391_s19 = scalar_lea.vmem [#allocation4], %s4404_s29 }
  0xa2   : > { %s398_s11 = sshll.u32 %s391_s19, 4  ;;  %p6130_p10 = pnand %p5036_p9, %p6093_p12  ;;  %s6126_s11 = int_to_ptr.vmem [resolvable:$true] %s398_s11 }
  0xa3   : > { %s6134_s9 = scalar_lea.sflag [#allocation5], %s387_s27  ;;  %s5675_s23 = scalar_lea.hbm %s6124_s1, 4096 }
  0xa4   : > { %p5676_p8 = scmp.ne.s32.totalorder %s6124_s1, %s5675_s23  ;;  %p5677_p1 = pneg %p6130_p10 }
  0xa5   : > { %s5680_s30 = scalar_lea.hbm %s8310_s0, 8192  ;;  %p5681_p12 = scmp.lt.u32.totalorder %s6124_s1, %s8310_s0 }
  0xa6   : > { %p5678_p3 = pnand %p5677_p1, %p5676_p8  ;;  %p5682_p13 = scmp.lt.u32.totalorder %s5680_s30, %s5675_s23 }
  0xa7   : > { %p5684_p2 = scmp.lt.u32.totalorder %s5675_s23, %s6124_s1 }
  0xa8   : > { %p5679_p11 = pneg %p5678_p3  ;;  %p5683_p0 = por %p5682_p13, %p5681_p12 }
  0xaa   : > { %p5685_p4 = por %p5684_p2, %p5683_p0 }
  0xac   : > { %p5686_p9 = pnand %p5685_p4, %p5679_p11 }
  0xae   : > { %5689 = shalt.err (!%p5686_p9)
}
  0xaf   : > { %s5690_s27 = scalar_lea.vmem %s6126_s11, 4096  ;;  %s5842_s29 = smov [#allocation4]  }
  0xb0   : > { %p5691_p8 = scmp.ne.s32.totalorder %s6126_s11, %s5690_s27  ;;  %s5695_s12 = sshll.u32 %s5842_s29, 4  ;;  %s5696_s12 = int_to_ptr.vmem [resolvable:$false] %s5695_s12 }
  0xb1   : > { %s5697_s28 = scalar_lea.vmem %s5696_s12, 8192  ;;  %p5698_p7 = scmp.lt.s32.totalorder %s6126_s11, %s5696_s12 }
  0xb2   : > { %p5693_p3 = pnand %p5691_p8, %p5677_p1  ;;  %p5699_p12 = scmp.lt.s32.totalorder %s5697_s28, %s5690_s27 }
  0xb4   : > { %p5694_p5 = pneg %p5693_p3  ;;  %p5700_p13 = por %p5699_p12, %p5698_p7 }
  0xb6   : > { %p5701_p0 = pnand %p5700_p13, %p5694_p5 }
  0xb8   : > { %5704 = shalt.err (!%p5701_p0)
}
  0xb9   : > { %5023 = dma.hbm_to_vmem [thread:$0]  (!%p6130_p10), %s6124_s1, 4096, %s6126_s11, %s6134_s9, %s5838_s26, %s5838_s26, %s5839_s7  }
  0xba   : > { %p8385_p1 = scmp.ne.s32.totalorder %s8371_s21, 0 }
  0xbc   : > { %410 = sbr.rel (%p8385_p1) target bundleno = 2843 (0xb1b), region = 56 }
  0xc3   : > { %s6168_s23 = sand.u32 1, %s5815_s14  }
  0xc4   : > { %s6171_s30 = sshll.u32 %s6168_s23, 8  ;;  %s413_s3 = scalar_lea.sflag [#allocation5], %s6168_s23 }
  0xc5   : > { %s6175_s19 = scalar_lea.vmem [#allocation4], %s6171_s30 }
  0xc6   : > { %5786 = dma.done.wait (%p6099_p6), %s413_s3, 4096  }
  0xc7   : > { %5788 = vsyncadd (%p6099_p6), %s413_s3, 4294963200  ;;  %p8386_p7 = scmp.ne.s32.totalorder %s8370_s20, 0 }
  0xc9   : > { %5790 = dma.done.wait (%p8386_p7), [#allocation8], 3072  }
  0xca   : > { %5792 = vsyncadd (%p8386_p7), [#allocation8], 4294964224 }
  0xcb   : > { %5794 = dma.done.wait (%p8386_p7), [#allocation11], 3072  }
  0xcc   : > { %5796 = vsyncadd (%p8386_p7), [#allocation11], 4294964224 }
  0xcd   : > { %5798 = dma.done.wait (%p8386_p7), [#allocation14], 2048  }
  0xce   : > { %5800 = vsyncadd (%p8386_p7), [#allocation14], 4294965248  ;;  %v8333_v0 = vmov 0   ;;  %v5103_v1 = vld [vmem:[#allocation9 + $0x4] ss:$8 sps:$4 sm:$0xff]   ;;  %v5129_v20 = vld [vmem:[#allocation7 + $0x10] sm:$0xff]  }
  0xcf   : > { %673 = vmatprep.mubr.bf16.mxu0 %v8333_v0  ;;  %v5105_v2 = vld [vmem:[#allocation9] ss:$8 sps:$4 sm:$0xff]   ;;  %641 = vmatprep.subr.bf16.mxu0 %v5103_v1  ;;  %v5106_v3 = vld [vmem:[#allocation9 + $0x14] ss:$8 sps:$4 sm:$0xff]   ;;  %v5108_v4 = vld [vmem:[#allocation9 + $0x10] ss:$8 sps:$4 sm:$0xff]  }
  0xd0   : > { %642 = vmatpush1.bf16.msra.mxu0 %v5105_v2  ;;  %v5109_v5 = vld [vmem:[#allocation9 + $0x24] ss:$8 sps:$4 sm:$0xff]   ;;  %v5111_v6 = vld [vmem:[#allocation9 + $0x20] ss:$8 sps:$4 sm:$0xff]   ;;  %v5112_v7 = vld [vmem:[#allocation9 + $0x34] ss:$8 sps:$4 sm:$0xff]  }
  0xd1   : > { %643 = vmatprep.subr.bf16.mxu0 %v5106_v3  ;;  %v485_v8 = vld [vmem:[%s6175_s19] sm:$0xff]  ;;  %v5114_v9 = vld [vmem:[#allocation9 + $0x30] ss:$8 sps:$4 sm:$0xff]   ;;  %v486_v10 = vld [vmem:[%s6175_s19 + $0x8] sm:$0xff]  ;;  %s6976_s25 = scalar_lea.vmem [#allocation16], %s6171_s30  ;;  %s8088_s9 = scalar_lea.vmem [#allocation15], %s6171_s30 }
  0xd2   : > { %v5115_v11 = vld [vmem:[#allocation9 + $0x44] ss:$8 sps:$4 sm:$0xff]   ;;  %v517_v12 = vpack.c.bf16 %v486_v10, %v485_v8  ;;  %v5117_v13 = vld [vmem:[#allocation9 + $0x40] ss:$8 sps:$4 sm:$0xff]   ;;  %v5118_v14 = vld [vmem:[#allocation9 + $0x54] ss:$8 sps:$4 sm:$0xff]   ;;  %v551_v10 = vlaneseq }
  0xd3   : > { %v5120_v15 = vld [vmem:[#allocation9 + $0x50] ss:$8 sps:$4 sm:$0xff]   ;;  %v5127_v16 = vld [vmem:[#allocation7] sm:$0xff]   ;;  %v5128_v18 = vld [vmem:[#allocation7 + $0x8] sm:$0xff]   ;;  %s8470_s30 = sld [smem:[#allocation24_spill]]  ;;  %s8471_s28 = sld [smem:[#allocation44_spill]] }
  0xd4   : > { %644 = vmatpush1.bf16.msra.mxu0 %v5108_v4  ;;  %4898 = vmatprep.mubr.bf16.mxu1 %v517_v12  ;;  %v5121_v17 = vld [vmem:[#allocation9 + $0x64] ss:$8 sps:$4 sm:$0xff]   ;;  %v5123_v19 = vld [vmem:[#allocation9 + $0x60] ss:$8 sps:$4 sm:$0xff]   ;;  %v5124_v21 = vld [vmem:[#allocation9 + $0x74] ss:$8 sps:$4 sm:$0xff]  }
  0xd5   : > { %645 = vmatprep.subr.bf16.mxu0 %v5109_v5  ;;  %4882 = vmatprep.subr.bf16.mxu1 %v5127_v16  ;;  %v5126_v22 = vld [vmem:[#allocation9 + $0x70] ss:$8 sps:$4 sm:$0xff]   ;;  %v5131_v24 = vld [vmem:[#allocation7 + $0x20] sm:$0xff]   ;;  %v5132_v27 = vld [vmem:[#allocation7 + $0x28] sm:$0xff]   ;;  %s4192_s20 = scalar_lea.sflag [#allocation17], %s6168_s23  ;;  %p8472_p5 = scmp.ne.s32.totalorder %s8382_s10, 0 }
  0xd6   : > { %4883 = vmatpush3.bf16.msra.mxu1 %v5127_v16  ;;  %v5130_v23 = vld [vmem:[#allocation7 + $0x18] sm:$0xff]   ;;  %v487_v25 = vld [vmem:[%s6175_s19 + $0x10] sm:$0xff]  ;;  %v489_v30 = vld [vmem:[%s6175_s19 + $0x20] sm:$0xff] }
  0xd7   : > { %4884 = vmatprep.subr.bf16.mxu1 %v5128_v18  ;;  %v488_v26 = vld [vmem:[%s6175_s19 + $0x18] sm:$0xff]  ;;  %v5133_v28 = vld [vmem:[#allocation7 + $0x30] sm:$0xff]   ;;  %v490_v31 = vld [vmem:[%s6175_s19 + $0x28] sm:$0xff] }
  0xd8   : > { %646 = vmatpush1.bf16.msra.mxu0 %v5111_v6  ;;  %v518_v29 = vpack.c.bf16 %v488_v26, %v487_v25  ;;  %v5134_v32 = vld [vmem:[#allocation7 + $0x38] sm:$0xff]   ;;  %v519_v33 = vpack.c.bf16 %v490_v31, %v489_v30  ;;  %v491_v34 = vld [vmem:[%s6175_s19 + $0x30] sm:$0xff]  ;;  %v493_v37 = vld [vmem:[%s6175_s19 + $0x40] sm:$0xff] }
  0xd9   : > { %647 = vmatprep.subr.bf16.mxu0 %v5112_v7  ;;  %v492_v35 = vld [vmem:[%s6175_s19 + $0x38] sm:$0xff]  ;;  %v494_v38 = vld [vmem:[%s6175_s19 + $0x48] sm:$0xff]  ;;  %v495_v40 = vld [vmem:[%s6175_s19 + $0x50] sm:$0xff]  ;;  %s4560_s27 = sshll.u32 %s8470_s30, 12 }
  0xda   : > { %4885 = vmatpush3.bf16.msra.mxu1 %v5128_v18  ;;  %v520_v36 = vpack.c.bf16 %v492_v35, %v491_v34  ;;  %v521_v39 = vpack.c.bf16 %v494_v38, %v493_v37  ;;  %v496_v41 = vld [vmem:[%s6175_s19 + $0x58] sm:$0xff]  ;;  %v497_v42 = vld [vmem:[%s6175_s19 + $0x60] sm:$0xff]  ;;  %v498_v43 = vld [vmem:[%s6175_s19 + $0x68] sm:$0xff]  ;;  %s8140_s3 = scalar_lea.hbm %s8471_s28, %s4560_s27 }
  0xdb   : > { %4886 = vmatprep.subr.bf16.mxu1 %v5129_v20  ;;  %v522_v44 = vpack.c.bf16 %v496_v41, %v495_v40  ;;  %v523_v45 = vpack.c.bf16 %v498_v43, %v497_v42  ;;  %v499_v46 = vld [vmem:[%s6175_s19 + $0x70] sm:$0xff]  ;;  %v500_v47 = vld [vmem:[%s6175_s19 + $0x78] sm:$0xff]  ;;  %v501_v48 = vld [vmem:[%s6175_s19 + $0x80] sm:$0xff] }
  0xdc   : > { %648 = vmatpush1.bf16.msra.mxu0 %v5114_v9  ;;  %v502_v49 = vld [vmem:[%s6175_s19 + $0x88] sm:$0xff]  ;;  %v524_v50 = vpack.c.bf16 %v500_v47, %v499_v46  ;;  %v503_v52 = vld [vmem:[%s6175_s19 + $0x90] sm:$0xff]  ;;  %v504_v53 = vld [vmem:[%s6175_s19 + $0x98] sm:$0xff] }
  0xdd   : > { %649 = vmatprep.subr.bf16.mxu0 %v5115_v11  ;;  %v525_v51 = vpack.c.bf16 %v502_v49, %v501_v48  ;;  %v505_v54 = vld [vmem:[%s6175_s19 + $0xa0] sm:$0xff]  ;;  %v506_v55 = vld [vmem:[%s6175_s19 + $0xa8] sm:$0xff]  ;;  %v526_v56 = vpack.c.bf16 %v504_v53, %v503_v52  ;;  %v507_v58 = vld [vmem:[%s6175_s19 + $0xb0] sm:$0xff]  ;;  %v6241_v11 = vshrl.u32 %v551_v10, 7 }
  0xde   : > { %4887 = vmatpush3.bf16.msra.mxu1 %v5129_v20  ;;  %v527_v57 = vpack.c.bf16 %v506_v55, %v505_v54  ;;  %v508_v59 = vld [vmem:[%s6175_s19 + $0xb8] sm:$0xff]  ;;  %v509_v60 = vld [vmem:[%s6175_s19 + $0xc0] sm:$0xff]  ;;  %v510_v61 = vld [vmem:[%s6175_s19 + $0xc8] sm:$0xff] }
  0xdf   : > { %4888 = vmatprep.subr.bf16.mxu1 %v5130_v23  ;;  %v528_v62 = vpack.c.bf16 %v508_v59, %v507_v58  ;;  %v529_v63 = vpack.c.bf16 %v510_v61, %v509_v60  ;;  %v511_v1 = vld [vmem:[%s6175_s19 + $0xd0] sm:$0xff]  ;;  %v512_v2 = vld [vmem:[%s6175_s19 + $0xd8] sm:$0xff]  ;;  %v513_v3 = vld [vmem:[%s6175_s19 + $0xe0] sm:$0xff]  ;;  %8387 = vst [vmem:[#allocation25_spill] sm:$0xff] %v6241_v11 }
  0xe0   : > { %650 = vmatpush1.bf16.msra.mxu0 %v5117_v13  ;;  %v514_v4 = vld [vmem:[%s6175_s19 + $0xe8] sm:$0xff]  ;;  %v530_v5 = vpack.c.bf16 %v512_v2, %v511_v1  ;;  %v515_v7 = vld [vmem:[%s6175_s19 + $0xf0] sm:$0xff]  ;;  %v516_v8 = vld [vmem:[%s6175_s19 + $0xf8] sm:$0xff] }
  0xe1   : > { %651 = vmatprep.subr.bf16.mxu0 %v5118_v14  ;;  %v531_v6 = vpack.c.bf16 %v514_v4, %v513_v3  ;;  %v532_v9 = vpack.c.bf16 %v516_v8, %v515_v7  ;;  %v549_v13 = vld [vmem:[%s8316_s6] sm:$0x3]  ;;  %v8331_v14 = vsub.s32 1, %v6241_v11 }
  0xe2   : > { %4889 = vmatpush3.bf16.msra.mxu1 %v5130_v23 }
  0xe3   : > { %4890 = vmatprep.subr.bf16.mxu1 %v5131_v24 }
  0xe4   : > { %652 = vmatpush1.bf16.msra.mxu0 %v5120_v15 }
  0xe5   : > { %653 = vmatprep.subr.bf16.mxu0 %v5121_v17  ;;  %v6254_v17 = vrot.slane %v549_v13, %v8331_v14 }
  0xe6   : > { %4891 = vmatpush3.bf16.msra.mxu1 %v5131_v24 }
  0xe7   : > { %4892 = vmatprep.subr.bf16.mxu1 %v5132_v27 }
  0xe8   : > { %654 = vmatpush1.bf16.msra.mxu0 %v5123_v19 }
  0xe9   : > { %655 = vmatprep.subr.bf16.mxu0 %v5124_v21 }
  0xea   : > { %4893 = vmatpush3.bf16.msra.mxu1 %v5132_v27 }
  0xeb   : > { %4894 = vmatprep.subr.bf16.mxu1 %v5133_v28 }
  0xec   : > { %656 = vmatpush1.bf16.msra.mxu0 %v5126_v22 }
  0xee   : > { %4895 = vmatpush3.bf16.msra.mxu1 %v5133_v28 }
  0xef   : > { %674 = vmatmul.mubr.bf16.vlgmr.msra.gmra.mrb[0].mxu0 %v517_v12  ;;  %4896 = vmatprep.subr.bf16.mxu1 %v5134_v32  ;;  %v8332_v12 = vsub.s32 0, %v6241_v11 }
  0xf0   : > { %683 = vmatprep.mubr.bf16.mxu0 %v8333_v0 }
  0xf1   : > { %v6250_v15 = vrot.slane %v549_v13, %v8332_v12 }
  0xf2   : > { %4897 = vmatpush3.bf16.msra.mxu1 %v5134_v32 }
  0xf5   : > { %4899 = vmatmul.mubr.bf16.vlgmr.msra.gmra.mrb[0].mxu1 %v518_v29 }
  0xf6   : > { %4902 = vmatprep.mubr.bf16.mxu1 %v519_v33 }
  0xf7   : > { %684 = vmatmul.mubr.bf16.gmra.mrb[4].mxu0 %v518_v29 }
  0xf8   : > { %693 = vmatprep.mubr.bf16.mxu0 %v8333_v0 }
  0xfd   : > { %4903 = vmatmul.mubr.bf16.gmra.mrb[4].mxu1 %v520_v36 }
  0xfe   : > { %4906 = vmatprep.mubr.bf16.mxu1 %v521_v39 }
  0xff   : > { %694 = vmatmul.mubr.bf16.gmra.mrb[8].mxu0 %v519_v33 }
 0x100   : > { %703 = vmatprep.mubr.bf16.mxu0 %v8333_v0 }
 0x105   : > { %4907 = vmatmul.mubr.bf16.gmra.mrb[8].mxu1 %v522_v44 }
 0x106   : > { %4910 = vmatprep.mubr.bf16.mxu1 %v523_v45 }
 0x107   : > { %704 = vmatmul.mubr.bf16.gmra.mrb[12].mxu0 %v520_v36 }
 0x108   : > { %713 = vmatprep.mubr.bf16.mxu0 %v8333_v0 }
 0x10d   : > { %4911 = vmatmul.mubr.bf16.gmra.mrb[12].mxu1 %v524_v50 }
 0x10e   : > { %4914 = vmatprep.mubr.bf16.mxu1 %v525_v51 }
 0x10f   : > { %714 = vmatmul.mubr.bf16.gmra.mrb[16].mxu0 %v521_v39  ;;  %v6291_v39 = vld [vmem:[%s8318_s8] ss:$0 sm:$0xff] }
 0x110   : > { %723 = vmatprep.mubr.bf16.mxu0 %v8333_v0 }
 0x115   : > { %4915 = vmatmul.mubr.bf16.gmra.mrb[16].mxu1 %v526_v56 }
 0x116   : > { %4918 = vmatprep.mubr.bf16.mxu1 %v527_v57 }
 0x117   : > { %724 = vmatmul.mubr.bf16.gmra.mrb[20].mxu0 %v522_v44 }
 0x118   : > { %733 = vmatprep.mubr.bf16.mxu0 %v8333_v0 }
 0x11d   : > { %4919 = vmatmul.mubr.bf16.gmra.mrb[20].mxu1 %v528_v62 }
 0x11e   : > { %4922 = vmatprep.mubr.bf16.mxu1 %v529_v63 }
 0x11f   : > { %734 = vmatmul.mubr.bf16.gmra.mrb[24].mxu0 %v523_v45 }
 0x120   : > { %743 = vmatprep.mubr.bf16.mxu0 %v8333_v0 }
 0x125   : > { %4923 = vmatmul.mubr.bf16.gmra.mrb[24].mxu1 %v530_v5 }
 0x126   : > { %4926 = vmatprep.mubr.bf16.mxu1 %v531_v6 }
 0x127   : > { %744 = vmatmul.mubr.bf16.gmra.mrb[28].mxu0 %v524_v50 }
 0x128   : > { %753 = vmatprep.mubr.bf16.mxu0 %v8333_v0 }
 0x12d   : > { %4927 = vmatmul.mubr.bf16.gmra.mrb[28].mxu1 %v532_v9 }
 0x12f   : > { %754 = vmatmul.mubr.bf16.gmra.mrb[32].mxu0 %v525_v51 }
 0x130   : > { %763 = vmatprep.mubr.bf16.mxu0 %v8333_v0 }
 0x137   : > { %764 = vmatmul.mubr.bf16.gmra.mrb[36].mxu0 %v526_v56 }
 0x138   : > { %773 = vmatprep.mubr.bf16.mxu0 %v8333_v0 }
 0x13f   : > { %774 = vmatmul.mubr.bf16.gmra.mrb[40].mxu0 %v527_v57 }
 0x140   : > { %783 = vmatprep.mubr.bf16.mxu0 %v8333_v0 }
 0x147   : > { %784 = vmatmul.mubr.bf16.gmra.mrb[44].mxu0 %v528_v62 }
 0x148   : > { %793 = vmatprep.mubr.bf16.mxu0 %v8333_v0 }
 0x14f   : > { %794 = vmatmul.mubr.bf16.gmra.mrb[48].mxu0 %v529_v63 }
 0x150   : > { %803 = vmatprep.mubr.bf16.mxu0 %v8333_v0 }
 0x157   : > { %804 = vmatmul.mubr.bf16.gmra.mrb[52].mxu0 %v530_v5 }
 0x158   : > { %813 = vmatprep.mubr.bf16.mxu0 %v8333_v0 }
 0x15f   : > { %814 = vmatmul.mubr.bf16.gmra.mrb[56].mxu0 %v531_v6 }
 0x160   : > { %823 = vmatprep.mubr.bf16.mxu0 %v8333_v0 }
 0x167   : > { %824 = vmatmul.mubr.bf16.gmra.mrb[60].mxu0 %v532_v9 }
 0x1c2   : > { %v675_v16 = vpop.f32.mrb[0].mxu0 }
 0x1c3   : > { %v677_v18 = vpop.f32.mrb[1].mxu0  ;;  %v6257_v20 = vadd.f32 %v675_v16, %v6250_v15 }
 0x1c4   : > { %v679_v19 = vpop.f32.mrb[2].mxu0  ;;  %v6263_v23 = vadd.f32 %v677_v18, %v6254_v17 }
 0x1c5   : > { %v6260_v21 = vadd.f32 %v679_v19, %v6250_v15  ;;  %v681_v22 = vpop.f32.mrb[3].mxu0 }
 0x1c6   : > { %v6266_v24 = vadd.f32 %v681_v22, %v6254_v17 }
 0x1c7   : > { %v834_v25 = vpack.c.bf16 %v6260_v21, %v6257_v20 }
 0x1c8   : > { %v4900_v44 = vpop.f32.mrb[0].mxu1 }
 0x1c9   : > { %v1066_v47 = vadd.f32 %v4900_v44, %v6291_v39  ;;  %v1057_v48 = vpop.f32.mrb[1].mxu1 }
 0x1ca   : > { %v685_v27 = vpop.f32.mrb[4].mxu0  ;;  %v1058_v50 = vadd.f32 %v6291_v39, %v1057_v48  ;;  %v4901_v51 = vpop.f32.mrb[2].mxu1 }
 0x1cb   : > { %v687_v28 = vpop.f32.mrb[5].mxu0  ;;  %v6273_v30 = vadd.f32 %v685_v27, %v6250_v15  ;;  %v1069_v53 = vadd.f32 %v4901_v51, %v6291_v39  ;;  %v1060_v54 = vpop.f32.mrb[3].mxu1 }
 0x1cc   : > { %v689_v29 = vpop.f32.mrb[6].mxu0  ;;  %v6279_v33 = vadd.f32 %v687_v28, %v6254_v17  ;;  %v1061_v55 = vadd.f32 %v6291_v39, %v1060_v54 }
 0x1cd   : > { %v6276_v31 = vadd.f32 %v689_v29, %v6250_v15  ;;  %v691_v32 = vpop.f32.mrb[7].mxu0  ;;  %v6313_v57 = vpack.c.bf16 %v1069_v53, %v1066_v47 }
 0x1ce   : > { %v6282_v34 = vadd.f32 %v691_v32, %v6254_v17  ;;  %v6315_v59 = vpack.c.bf16 %v1061_v55, %v1058_v50 }
 0x1d0   : > { %4602 = vmatprep.mubr.bf16.mxu1 %v6315_v59  ;;  %v4904_v1 = vpop.f32.mrb[4].mxu1 }
 0x1d1   : > { %v1082_v4 = vadd.f32 %v4904_v1, %v6291_v39  ;;  %v1073_v5 = vpop.f32.mrb[5].mxu1 }
 0x1d2   : > { %v695_v37 = vpop.f32.mrb[8].mxu0  ;;  %v1074_v7 = vadd.f32 %v6291_v39, %v1073_v5  ;;  %v4905_v8 = vpop.f32.mrb[6].mxu1 }
 0x1d3   : > { %v697_v38 = vpop.f32.mrb[9].mxu0  ;;  %v6294_v41 = vadd.f32 %v695_v37, %v6250_v15  ;;  %v1085_v10 = vadd.f32 %v4905_v8, %v6291_v39  ;;  %v1076_v13 = vpop.f32.mrb[7].mxu1 }
 0x1d4   : > { %v699_v40 = vpop.f32.mrb[10].mxu0  ;;  %v6300_v45 = vadd.f32 %v697_v38, %v6254_v17  ;;  %v1077_v16 = vadd.f32 %v6291_v39, %v1076_v13 }
 0x1d5   : > { %v6297_v42 = vadd.f32 %v699_v40, %v6250_v15  ;;  %v701_v43 = vpop.f32.mrb[11].mxu0  ;;  %v6338_v19 = vpack.c.bf16 %v1085_v10, %v1082_v4 }
 0x1d6   : > { %v6303_v46 = vadd.f32 %v701_v43, %v6254_v17  ;;  %v6340_v27 = vpack.c.bf16 %v1077_v16, %v1074_v7 }
 0x1d8   : > { %v4908_v38 = vpop.f32.mrb[8].mxu1 }
 0x1d9   : > { %v1098_v44 = vadd.f32 %v4908_v38, %v6291_v39  ;;  %v1089_v47 = vpop.f32.mrb[9].mxu1 }
 0x1da   : > { %v705_v56 = vpop.f32.mrb[12].mxu0  ;;  %v1090_v50 = vadd.f32 %v6291_v39, %v1089_v47  ;;  %v4909_v51 = vpop.f32.mrb[10].mxu1 }
 0x1db   : > { %v707_v58 = vpop.f32.mrb[13].mxu0  ;;  %v6318_v61 = vadd.f32 %v705_v56, %v6250_v15  ;;  %v1101_v54 = vadd.f32 %v4909_v51, %v6291_v39  ;;  %v1092_v55 = vpop.f32.mrb[11].mxu1 }
 0x1dc   : > { %v709_v60 = vpop.f32.mrb[14].mxu0  ;;  %v6325_v2 = vadd.f32 %v707_v58, %v6254_v17  ;;  %v1093_v56 = vadd.f32 %v6291_v39, %v1092_v55 }
 0x1dd   : > { %v6321_v62 = vadd.f32 %v709_v60, %v6250_v15  ;;  %v711_v63 = vpop.f32.mrb[15].mxu0  ;;  %v6362_v60 = vpack.c.bf16 %v1101_v54, %v1098_v44 }
 0x1de   : > { %v6328_v3 = vadd.f32 %v711_v63, %v6254_v17  ;;  %v6364_v1 = vpack.c.bf16 %v1093_v56, %v1090_v50 }
 0x1e0   : > { %v4912_v10 = vpop.f32.mrb[12].mxu1 }
 0x1e2   : > { %v715_v18 = vpop.f32.mrb[16].mxu0 }
 0x1e3   : > { %v717_v22 = vpop.f32.mrb[17].mxu0  ;;  %v6343_v29 = vadd.f32 %v715_v18, %v6250_v15  ;;  %v1105_v18 = vpop.f32.mrb[13].mxu1 }
 0x1e4   : > { %v719_v28 = vpop.f32.mrb[18].mxu0  ;;  %v6349_v40 = vadd.f32 %v717_v22, %v6254_v17  ;;  %v1106_v38 = vadd.f32 %v6291_v39, %v1105_v18  ;;  %v4913_v44 = vpop.f32.mrb[14].mxu1 }
 0x1e5   : > { %v6346_v32 = vadd.f32 %v719_v28, %v6250_v15  ;;  %v721_v37 = vpop.f32.mrb[19].mxu0  ;;  %v1117_v50 = vadd.f32 %v4913_v44, %v6291_v39  ;;  %v1108_v51 = vpop.f32.mrb[15].mxu1 }
 0x1e6   : > { %v6352_v43 = vadd.f32 %v721_v37, %v6254_v17  ;;  %v1114_v37 = vadd.f32 %v4912_v10, %v6291_v39  ;;  %v1109_v55 = vadd.f32 %v6291_v39, %v1108_v51 }
 0x1e8   : > { %v6394_v10 = vpack.c.bf16 %v1109_v55, %v1106_v38 }
 0x1ea   : > { %v725_v58 = vpop.f32.mrb[20].mxu0 }
 0x1eb   : > { %v727_v63 = vpop.f32.mrb[21].mxu0  ;;  %v6367_v5 = vadd.f32 %v725_v58, %v6250_v15  ;;  %v6386_v58 = vpack.c.bf16 %v1117_v50, %v1114_v37 }
 0x1ec   : > { %v729_v4 = vpop.f32.mrb[22].mxu0  ;;  %v6373_v13 = vadd.f32 %v727_v63, %v6254_v17 }
 0x1ed   : > { %v6370_v7 = vadd.f32 %v729_v4, %v6250_v15  ;;  %v731_v8 = vpop.f32.mrb[23].mxu0 }
 0x1ee   : > { %v6376_v16 = vadd.f32 %v731_v8, %v6254_v17 }
 0x1f2   : > { %v735_v47 = vpop.f32.mrb[24].mxu0 }
 0x1f3   : > { %v737_v54 = vpop.f32.mrb[25].mxu0  ;;  %v6389_v63 = vadd.f32 %v735_v47, %v6250_v15  ;;  %v4916_v47 = vpop.f32.mrb[16].mxu1 }
 0x1f4   : > { %v739_v56 = vpop.f32.mrb[26].mxu0  ;;  %v6397_v18 = vadd.f32 %v737_v54, %v6254_v17  ;;  %v1121_v14 = vpop.f32.mrb[17].mxu1  ;;  %v1130_v28 = vadd.f32 %v4916_v47, %v6291_v39 }
 0x1f5   : > { %v6392_v4 = vadd.f32 %v739_v56, %v6250_v15  ;;  %v741_v8 = vpop.f32.mrb[27].mxu0  ;;  %v4917_v22 = vpop.f32.mrb[18].mxu1 }
 0x1f6   : > { %v6400_v44 = vadd.f32 %v741_v8, %v6254_v17  ;;  %v1133_v53 = vadd.f32 %v4917_v22, %v6291_v39  ;;  %v1124_v48 = vpop.f32.mrb[19].mxu1 }
 0x1f7   : > { %v1125_v9 = vadd.f32 %v6291_v39, %v1124_v48  ;;  %v4920_v35 = vpop.f32.mrb[20].mxu1 }
 0x1f8   : > { %v6426_v6 = vpack.c.bf16 %v1133_v53, %v1130_v28  ;;  %v1137_v48 = vpop.f32.mrb[21].mxu1  ;;  %v1146_v21 = vadd.f32 %v4920_v35, %v6291_v39 }
 0x1fa   : > { %v745_v50 = vpop.f32.mrb[28].mxu0 }
 0x1fb   : > { %v747_v56 = vpop.f32.mrb[29].mxu0  ;;  %v6407_v38 = vadd.f32 %v745_v50, %v6250_v15  ;;  %v1122_v50 = vadd.f32 %v6291_v39, %v1121_v14 }
 0x1fc   : > { %v749_v12 = vpop.f32.mrb[30].mxu0  ;;  %v6413_v8 = vadd.f32 %v747_v56, %v6254_v17 }
 0x1fd   : > { %v6410_v54 = vadd.f32 %v749_v12, %v6250_v15  ;;  %v751_v55 = vpop.f32.mrb[31].mxu0  ;;  %v6430_v49 = vpack.c.bf16 %v1125_v9, %v1122_v50  ;;  %v8388_v9 = vpack.c.bf16 %v6266_v24, %v6263_v23  ;;  %v8389_v24 = vpack.c.bf16 %v6276_v31, %v6273_v30 }
 0x1fe   : > { %v6416_v0 = vadd.f32 %v751_v55, %v6254_v17 }
 0x202   : > { %v755_v12 = vpop.f32.mrb[32].mxu0 }
 0x203   : > { %v757_v56 = vpop.f32.mrb[33].mxu0  ;;  %v756_v37 = vadd.f32 %v755_v12, %v6250_v15 }
 0x204   : > { %v759_v55 = vpop.f32.mrb[34].mxu0  ;;  %v758_v14 = vadd.f32 %v757_v56, %v6254_v17  ;;  %v4921_v56 = vpop.f32.mrb[22].mxu1 }
 0x205   : > { %v760_v52 = vadd.f32 %v759_v55, %v6250_v15  ;;  %v761_v51 = vpop.f32.mrb[35].mxu0  ;;  %v1140_v55 = vpop.f32.mrb[23].mxu1 }
 0x206   : > { %v762_v47 = vadd.f32 %v761_v51, %v6254_v17  ;;  %v1141_v35 = vadd.f32 %v6291_v39, %v1140_v55  ;;  %v8393_v55 = vpack.c.bf16 %v6321_v62, %v6318_v61 }
 0x207   : > { %v842_v36 = vpack.c.bf16 %v760_v52, %v756_v37 }
 0x208   : > { %v874_v22 = vpack.c.bf16 %v762_v47, %v758_v14  ;;  %v8390_v47 = vpack.c.bf16 %v6282_v34, %v6279_v33  ;;  %v8391_v34 = vpack.c.bf16 %v6297_v42, %v6294_v41  ;;  %v4924_v41 = vpop.f32.mrb[24].mxu1 }
 0x209   : > { %4586 = vmatprep.subr.bf16.mxu1 %v842_v36 }
 0x20a   : > { %v765_v26 = vpop.f32.mrb[36].mxu0  ;;  %4587 = vmatpush3.bf16.xpose.msra.mxu1 %v834_v25  ;;  %4634 = vmatprep.subr.bf16.mxu0 %v874_v22  ;;  %v1138_v25 = vadd.f32 %v6291_v39, %v1137_v48 }
 0x20b   : > { %v767_v53 = vpop.f32.mrb[37].mxu0  ;;  %4635 = vmatpush3.bf16.msra.mxu0 %v8388_v9  ;;  %v766_v50 = vadd.f32 %v765_v26, %v6250_v15  ;;  %v1149_v26 = vadd.f32 %v4921_v56, %v6291_v39 }
 0x20c   : > { %v769_v28 = vpop.f32.mrb[38].mxu0  ;;  %v768_v36 = vadd.f32 %v767_v53, %v6254_v17  ;;  %v6458_v31 = vpack.c.bf16 %v1141_v35, %v1138_v25 }
 0x20d   : > { %v770_v52 = vadd.f32 %v769_v28, %v6250_v15  ;;  %v771_v51 = vpop.f32.mrb[39].mxu0  ;;  %v6454_v53 = vpack.c.bf16 %v1149_v26, %v1146_v21 }
 0x20e   : > { %v772_v37 = vadd.f32 %v771_v51, %v6254_v17 }
 0x20f   : > { %v843_v12 = vpack.c.bf16 %v770_v52, %v766_v50 }
 0x210   : > { %v875_v20 = vpack.c.bf16 %v772_v37, %v768_v36  ;;  %v8392_v37 = vpack.c.bf16 %v6303_v46, %v6300_v45  ;;  %v1162_v45 = vadd.f32 %v4924_v41, %v6291_v39  ;;  %v1153_v46 = vpop.f32.mrb[25].mxu1 }
 0x211   : > { %4588 = vmatprep.subr.bf16.mxu1 %v843_v12  ;;  %v1154_v35 = vadd.f32 %v6291_v39, %v1153_v46 }
 0x212   : > { %v775_v23 = vpop.f32.mrb[40].mxu0  ;;  %4589 = vmatpush3.bf16.xpose.msra.mxu1 %v8389_v24  ;;  %4636 = vmatprep.subr.bf16.mxu0 %v875_v20 }
 0x213   : > { %v777_v14 = vpop.f32.mrb[41].mxu0  ;;  %4637 = vmatpush3.bf16.msra.mxu0 %v8390_v47  ;;  %v776_v48 = vadd.f32 %v775_v23, %v6250_v15  ;;  %v8394_v47 = vpack.c.bf16 %v6328_v3, %v6325_v2 }
 0x214   : > { %v779_v22 = vpop.f32.mrb[42].mxu0  ;;  %v778_v28 = vadd.f32 %v777_v14, %v6254_v17 }
 0x215   : > { %v780_v9 = vadd.f32 %v779_v22, %v6250_v15  ;;  %v781_v30 = vpop.f32.mrb[43].mxu0  ;;  %v4925_v22 = vpop.f32.mrb[26].mxu1 }
 0x216   : > { %v782_v50 = vadd.f32 %v781_v30, %v6254_v17  ;;  %v1156_v30 = vpop.f32.mrb[27].mxu1 }
 0x217   : > { %v844_v52 = vpack.c.bf16 %v780_v9, %v776_v48  ;;  %v1165_v9 = vadd.f32 %v4925_v22, %v6291_v39  ;;  %v8398_v22 = vpack.c.bf16 %v6376_v16, %v6373_v13  ;;  %v8399_v13 = vpack.c.bf16 %v6392_v4, %v6389_v63 }
 0x218   : > { %v876_v51 = vpack.c.bf16 %v782_v50, %v778_v28  ;;  %v1157_v50 = vadd.f32 %v6291_v39, %v1156_v30  ;;  %v8400_v16 = vpack.c.bf16 %v6400_v44, %v6397_v18  ;;  %v8401_v63 = vpack.c.bf16 %v6410_v54, %v6407_v38 }
 0x219   : > { %4590 = vmatprep.subr.bf16.mxu1 %v844_v52  ;;  %v6486_v2 = vpack.c.bf16 %v1165_v9, %v1162_v45  ;;  %v8402_v4 = vpack.c.bf16 %v6416_v0, %v6413_v8 }
 0x21a   : > { %v785_v33 = vpop.f32.mrb[44].mxu0  ;;  %4591 = vmatpush3.bf16.xpose.msra.mxu1 %v8391_v34  ;;  %4638 = vmatprep.subr.bf16.mxu0 %v876_v51 }
 0x21b   : > { %v787_v36 = vpop.f32.mrb[45].mxu0  ;;  %4639 = vmatpush3.bf16.msra.mxu0 %v8392_v37  ;;  %v786_v20 = vadd.f32 %v785_v33, %v6250_v15  ;;  %v6488_v33 = vpack.c.bf16 %v1157_v50, %v1154_v35 }
 0x21c   : > { %v789_v12 = vpop.f32.mrb[46].mxu0  ;;  %v788_v56 = vadd.f32 %v787_v36, %v6254_v17  ;;  %v4928_v36 = vpop.f32.mrb[28].mxu1 }
 0x21d   : > { %v790_v21 = vadd.f32 %v789_v12, %v6250_v15  ;;  %v791_v25 = vpop.f32.mrb[47].mxu0  ;;  %v8395_v12 = vpack.c.bf16 %v6346_v32, %v6343_v29  ;;  %v1178_v32 = vadd.f32 %v4928_v36, %v6291_v39 }
 0x21e   : > { %v792_v23 = vadd.f32 %v791_v25, %v6254_v17  ;;  %v8396_v25 = vpack.c.bf16 %v6352_v43, %v6349_v40  ;;  %v8397_v43 = vpack.c.bf16 %v6370_v7, %v6367_v5 }
 0x21f   : > { %v845_v24 = vpack.c.bf16 %v790_v21, %v786_v20  ;;  %v1169_v20 = vpop.f32.mrb[29].mxu1 }
 0x220   : > { %v877_v26 = vpack.c.bf16 %v792_v23, %v788_v56  ;;  %v1170_v45 = vadd.f32 %v6291_v39, %v1169_v20  ;;  %v4929_v46 = vpop.f32.mrb[30].mxu1 }
 0x221   : > { %4592 = vmatprep.subr.bf16.mxu1 %v845_v24 }
 0x222   : > { %v795_v42 = vpop.f32.mrb[48].mxu0  ;;  %4593 = vmatpush3.bf16.xpose.msra.mxu1 %v8393_v55  ;;  %4640 = vmatprep.subr.bf16.mxu0 %v877_v26 }
 0x223   : > { %v797_v14 = vpop.f32.mrb[49].mxu0  ;;  %4641 = vmatpush3.bf16.msra.mxu0 %v8394_v47  ;;  %v796_v28 = vadd.f32 %v795_v42, %v6250_v15  ;;  %v1172_v47 = vpop.f32.mrb[31].mxu1 }
 0x224   : > { %v799_v48 = vpop.f32.mrb[50].mxu0  ;;  %v798_v52 = vadd.f32 %v797_v14, %v6254_v17  ;;  %v1181_v14 = vadd.f32 %v4929_v46, %v6291_v39 }
 0x225   : > { %v800_v61 = vadd.f32 %v799_v48, %v6250_v15  ;;  %v801_v62 = vpop.f32.mrb[51].mxu0  ;;  %v1173_v48 = vadd.f32 %v6291_v39, %v1172_v47 }
 0x226   : > { %v802_v51 = vadd.f32 %v801_v62, %v6254_v17  ;;  %v1199_v30 = vpack.c.bf16 %v1181_v14, %v1178_v32 }
 0x227   : > { %v846_v3 = vpack.c.bf16 %v800_v61, %v796_v28  ;;  %v1198_v5 = vpack.c.bf16 %v1173_v48, %v1170_v45 }
 0x228   : > { %v878_v34 = vpack.c.bf16 %v802_v51, %v798_v52 }
 0x229   : > { %4594 = vmatprep.subr.bf16.mxu1 %v846_v3 }
 0x22a   : > { %v805_v37 = vpop.f32.mrb[52].mxu0  ;;  %4595 = vmatpush3.bf16.xpose.msra.mxu1 %v8395_v12  ;;  %4642 = vmatprep.subr.bf16.mxu0 %v878_v34 }
 0x22b   : > { %v807_v21 = vpop.f32.mrb[53].mxu0  ;;  %4643 = vmatpush3.bf16.msra.mxu0 %v8396_v25  ;;  %v806_v23 = vadd.f32 %v805_v37, %v6250_v15 }
 0x22c   : > { %v809_v56 = vpop.f32.mrb[54].mxu0  ;;  %v808_v41 = vadd.f32 %v807_v21, %v6254_v17 }
 0x22d   : > { %v810_v24 = vadd.f32 %v809_v56, %v6250_v15  ;;  %v811_v26 = vpop.f32.mrb[55].mxu0 }
 0x22e   : > { %v812_v42 = vadd.f32 %v811_v26, %v6254_v17 }
 0x22f   : > { %v847_v55 = vpack.c.bf16 %v810_v24, %v806_v23 }
 0x230   : > { %v879_v29 = vpack.c.bf16 %v812_v42, %v808_v41 }
 0x231   : > { %4596 = vmatprep.subr.bf16.mxu1 %v847_v55 }
 0x232   : > { %v815_v40 = vpop.f32.mrb[56].mxu0  ;;  %4597 = vmatpush3.bf16.xpose.msra.mxu1 %v8397_v43  ;;  %4644 = vmatprep.subr.bf16.mxu0 %v879_v29 }
 0x233   : > { %v817_v35 = vpop.f32.mrb[57].mxu0  ;;  %4645 = vmatpush3.bf16.msra.mxu0 %v8398_v22  ;;  %v816_v28 = vadd.f32 %v815_v40, %v6250_v15 }
 0x234   : > { %v819_v9 = vpop.f32.mrb[58].mxu0  ;;  %v818_v7 = vadd.f32 %v817_v35, %v6254_v17 }
 0x235   : > { %v820_v61 = vadd.f32 %v819_v9, %v6250_v15  ;;  %v821_v62 = vpop.f32.mrb[59].mxu0 }
 0x236   : > { %v822_v50 = vadd.f32 %v821_v62, %v6254_v17 }
 0x237   : > { %v848_v52 = vpack.c.bf16 %v820_v61, %v816_v28 }
 0x238   : > { %v880_v51 = vpack.c.bf16 %v822_v50, %v818_v7 }
 0x239   : > { %4598 = vmatprep.subr.bf16.mxu1 %v848_v52 }
 0x23a   : > { %v825_v3 = vpop.f32.mrb[60].mxu0  ;;  %4599 = vmatpush3.bf16.xpose.msra.mxu1 %v8399_v13  ;;  %4646 = vmatprep.subr.bf16.mxu0 %v880_v51 }
 0x23b   : > { %v827_v39 = vpop.f32.mrb[61].mxu0  ;;  %4647 = vmatpush3.bf16.msra.mxu0 %v8400_v16  ;;  %v826_v36 = vadd.f32 %v825_v3, %v6250_v15 }
 0x23c   : > { %v829_v34 = vpop.f32.mrb[62].mxu0  ;;  %v828_v20 = vadd.f32 %v827_v39, %v6254_v17 }
 0x23d   : > { %v830_v37 = vadd.f32 %v829_v34, %v6250_v15  ;;  %v831_v12 = vpop.f32.mrb[63].mxu0 }
 0x23e   : > { %v832_v21 = vadd.f32 %v831_v12, %v6254_v17 }
 0x23f   : > { %v849_v25 = vpack.c.bf16 %v830_v37, %v826_v36 }
 0x240   : > { %v881_v56 = vpack.c.bf16 %v832_v21, %v828_v20 }
 0x241   : > { %4600 = vmatprep.subr.bf16.mxu1 %v849_v25 }
 0x242   : > { %4601 = vmatpush3.bf16.xpose.msra.mxu1 %v8401_v63  ;;  %4648 = vmatprep.subr.bf16.mxu0 %v881_v56 }
 0x243   : > { %4649 = vmatpush3.bf16.msra.mxu0 %v8402_v4 }
 0x249   : > { %4603 = vmatmul.mubr.bf16.vlgmr.msra.gmra.mrb[32].mxu1 %v6315_v59 }
 0x24a   : > { %4604 = vmatprep.mubr.bf16.mxu1 %v6313_v57 }
 0x251   : > { %4605 = vmatmul.mubr.bf16.gmra.mrb[36].mxu1 %v6313_v57 }
 0x252   : > { %4606 = vmatprep.mubr.bf16.mxu1 %v6340_v27 }
 0x259   : > { %4607 = vmatmul.mubr.bf16.gmra.mrb[40].mxu1 %v6340_v27 }
 0x25a   : > { %4608 = vmatprep.mubr.bf16.mxu1 %v6338_v19 }
 0x261   : > { %4609 = vmatmul.mubr.bf16.gmra.mrb[44].mxu1 %v6338_v19 }
 0x262   : > { %4610 = vmatprep.mubr.bf16.mxu1 %v6364_v1 }
 0x269   : > { %4611 = vmatmul.mubr.bf16.gmra.mrb[48].mxu1 %v6364_v1 }
 0x26a   : > { %4612 = vmatprep.mubr.bf16.mxu1 %v6362_v60 }
 0x271   : > { %4613 = vmatmul.mubr.bf16.gmra.mrb[52].mxu1 %v6362_v60 }
 0x272   : > { %4614 = vmatprep.mubr.bf16.mxu1 %v6394_v10 }
 0x279   : > { %4615 = vmatmul.mubr.bf16.gmra.mrb[56].mxu1 %v6394_v10 }
 0x27a   : > { %4616 = vmatprep.mubr.bf16.mxu1 %v6386_v58 }
 0x281   : > { %4617 = vmatmul.mubr.bf16.gmra.mrb[60].mxu1 %v6386_v58 }
 0x282   : > { %4618 = vmatprep.mubr.bf16.mxu1 %v6430_v49 }
 0x289   : > { %4619 = vmatmul.mubr.bf16.gmra.mrb[64].mxu1 %v6430_v49 }
 0x28a   : > { %4620 = vmatprep.mubr.bf16.mxu1 %v6426_v6 }
 0x291   : > { %4621 = vmatmul.mubr.bf16.gmra.mrb[68].mxu1 %v6426_v6 }
 0x292   : > { %4622 = vmatprep.mubr.bf16.mxu1 %v6458_v31 }
 0x299   : > { %4623 = vmatmul.mubr.bf16.gmra.mrb[72].mxu1 %v6458_v31 }
 0x29a   : > { %4624 = vmatprep.mubr.bf16.mxu1 %v6454_v53 }
 0x2a1   : > { %4625 = vmatmul.mubr.bf16.gmra.mrb[76].mxu1 %v6454_v53 }
 0x2a2   : > { %4626 = vmatprep.mubr.bf16.mxu1 %v6488_v33 }
 0x2a9   : > { %4627 = vmatmul.mubr.bf16.gmra.mrb[80].mxu1 %v6488_v33 }
 0x2aa   : > { %4628 = vmatprep.mubr.bf16.mxu1 %v6486_v2 }
 0x2b1   : > { %4629 = vmatmul.mubr.bf16.gmra.mrb[84].mxu1 %v6486_v2 }
 0x2b2   : > { %4630 = vmatprep.mubr.bf16.mxu1 %v1198_v5 }
 0x2b9   : > { %4631 = vmatmul.mubr.bf16.gmra.mrb[88].mxu1 %v1198_v5 }
 0x2ba   : > { %4632 = vmatprep.mubr.bf16.mxu1 %v1199_v30 }
 0x2c1   : > { %4633 = vmatmul.mubr.bf16.gmra.mrb[92].mxu1 %v1199_v30 }
 0x31c   : > { %v6557_v0 = vpop.f32.mrb[32].mxu1 }
 0x31d   : > { %v6559_v15 = vpop.f32.mrb[33].mxu1 }
 0x31e   : > { %v6561_v17 = vpop.f32.mrb[34].mxu1  ;;  %v1409_v49 = vmax.f32 %v6557_v0, %v6559_v15 }
 0x31f   : > { %v6565_v57 = vpop.f32.mrb[35].mxu1 }
 0x320   : > { %1410 = vmax.xlane.f32.xlu0 %v1409_v49  ;;  %v1412_v59 = vmax.f32 %v6561_v17, %v6565_v57 }
 0x324   : > { %1413 = vmax.xlane.f32.xlu0 %v1412_v59  ;;  %v6569_v6 = vpop.f32.mrb[36].mxu1 }
 0x325   : > { %v6571_v19 = vpop.f32.mrb[37].mxu1 }
 0x326   : > { %v6573_v27 = vpop.f32.mrb[38].mxu1  ;;  %v1415_v60 = vmax.f32 %v6569_v6, %v6571_v19 }
 0x327   : > { %v6577_v1 = vpop.f32.mrb[39].mxu1 }
 0x328   : > { %1416 = vmax.xlane.f32.xlu1 %v1415_v60  ;;  %v1418_v58 = vmax.f32 %v6573_v27, %v6577_v1 }
 0x32c   : > { %1419 = vmax.xlane.f32.xlu1 %v1418_v58  ;;  %v6581_v10 = vpop.f32.mrb[40].mxu1 }
 0x32d   : > { %v6583_v18 = vpop.f32.mrb[41].mxu1 }
 0x32e   : > { %v6585_v44 = vpop.f32.mrb[42].mxu1  ;;  %v1421_v38 = vmax.f32 %v6581_v10, %v6583_v18 }
 0x32f   : > { %v6589_v54 = vpop.f32.mrb[43].mxu1 }
 0x330   : > { %1422 = vmax.xlane.f32.xlu0 %v1421_v38  ;;  %v1424_v8 = vmax.f32 %v6585_v44, %v6589_v54 }
 0x332   : > { %1425 = vmax.xlane.f32.xlu1 %v1424_v8 }
 0x334   : > { %v6593_v53 = vpop.f32.mrb[44].mxu1 }
 0x335   : > { %v6595_v31 = vpop.f32.mrb[45].mxu1 }
 0x336   : > { %v6597_v2 = vpop.f32.mrb[46].mxu1  ;;  %v1427_v33 = vmax.f32 %v6593_v53, %v6595_v31 }
 0x337   : > { %v6601_v23 = vpop.f32.mrb[47].mxu1 }
 0x338   : > { %1428 = vmax.xlane.f32.xlu0 %v1427_v33  ;;  %v1430_v24 = vmax.f32 %v6597_v2, %v6601_v23 }
 0x33a   : > { %1431 = vmax.xlane.f32.xlu1 %v1430_v24 }
 0x33c   : > { %v6605_v26 = vpop.f32.mrb[48].mxu1 }
 0x33d   : > { %v6607_v41 = vpop.f32.mrb[49].mxu1 }
 0x33e   : > { %v6609_v42 = vpop.f32.mrb[50].mxu1  ;;  %v1433_v55 = vmax.f32 %v6605_v26, %v6607_v41 }
 0x33f   : > { %v6613_v29 = vpop.f32.mrb[51].mxu1 }
 0x340   : > { %1434 = vmax.xlane.f32.xlu0 %v1433_v55  ;;  %v1436_v32 = vmax.f32 %v6609_v42, %v6613_v29 }
 0x342   : > { %1437 = vmax.xlane.f32.xlu1 %v1436_v32 }
 0x344   : > { %v6617_v45 = vpop.f32.mrb[52].mxu1 }
 0x345   : > { %v6619_v46 = vpop.f32.mrb[53].mxu1 }
 0x346   : > { %v6621_v40 = vpop.f32.mrb[54].mxu1  ;;  %v1439_v43 = vmax.f32 %v6617_v45, %v6619_v46 }
 0x347   : > { %v6625_v14 = vpop.f32.mrb[55].mxu1 }
 0x348   : > { %1440 = vmax.xlane.f32.xlu0 %v1439_v43  ;;  %v1442_v47 = vmax.f32 %v6621_v40, %v6625_v14 }
 0x34a   : > { %1443 = vmax.xlane.f32.xlu1 %v1442_v47 }
 0x34c   : > { %v6629_v35 = vpop.f32.mrb[56].mxu1 }
 0x34d   : > { %v6631_v22 = vpop.f32.mrb[57].mxu1 }
 0x34e   : > { %v6633_v48 = vpop.f32.mrb[58].mxu1  ;;  %v1445_v9 = vmax.f32 %v6629_v35, %v6631_v22 }
 0x34f   : > { %v6637_v30 = vpop.f32.mrb[59].mxu1 }
 0x350   : > { %1446 = vmax.xlane.f32.xlu0 %v1445_v9  ;;  %v1448_v28 = vmax.f32 %v6633_v48, %v6637_v30 }
 0x352   : > { %1449 = vmax.xlane.f32.xlu1 %v1448_v28 }
 0x354   : > { %v6641_v61 = vpop.f32.mrb[60].mxu1 }
 0x355   : > { %v6643_v62 = vpop.f32.mrb[61].mxu1 }
 0x356   : > { %v6645_v5 = vpop.f32.mrb[62].mxu1  ;;  %v1451_v7 = vmax.f32 %v6641_v61, %v6643_v62 }
 0x357   : > { %v6649_v50 = vpop.f32.mrb[63].mxu1 }
 0x358   : > { %1452 = vmax.xlane.f32.xlu0 %v1451_v7  ;;  %v1454_v52 = vmax.f32 %v6645_v5, %v6649_v50 }
 0x35a   : > { %1455 = vmax.xlane.f32.xlu1 %v1454_v52 }
 0x35c   : > { %v6653_v51 = vpop.f32.mrb[64].mxu1 }
 0x35d   : > { %v6655_v3 = vpop.f32.mrb[65].mxu1 }
 0x35e   : > { %v6657_v13 = vpop.f32.mrb[66].mxu1  ;;  %v1457_v39 = vmax.f32 %v6653_v51, %v6655_v3 }
 0x35f   : > { %v6661_v16 = vpop.f32.mrb[67].mxu1 }
 0x360   : > { %8403 = vst [vmem:[#allocation26_spill] sm:$0xff] %v6661_v16  ;;  %1458 = vmax.xlane.f32.xlu0 %v1457_v39  ;;  %v1460_v34 = vmax.f32 %v6657_v13, %v6661_v16 }
 0x362   : > { %1461 = vmax.xlane.f32.xlu1 %v1460_v34 }
 0x364   : > { %v6665_v36 = vpop.f32.mrb[68].mxu1 }
 0x365   : > { %8404 = vst [vmem:[#allocation27_spill] sm:$0xff] %v6665_v36  ;;  %v6667_v37 = vpop.f32.mrb[69].mxu1 }
 0x366   : > { %8405 = vst [vmem:[#allocation28_spill] sm:$0xff] %v6667_v37  ;;  %v6669_v12 = vpop.f32.mrb[70].mxu1  ;;  %v1463_v20 = vmax.f32 %v6665_v36, %v6667_v37 }
 0x367   : > { %8406 = vst [vmem:[#allocation29_spill] sm:$0xff] %v6669_v12  ;;  %v6673_v21 = vpop.f32.mrb[71].mxu1 }
 0x368   : > { %8407 = vst [vmem:[#allocation30_spill] sm:$0xff] %v6673_v21  ;;  %1464 = vmax.xlane.f32.xlu0 %v1463_v20  ;;  %v1466_v25 = vmax.f32 %v6669_v12, %v6673_v21 }
 0x36a   : > { %1467 = vmax.xlane.f32.xlu1 %v1466_v25 }
 0x36c   : > { %v6677_v56 = vpop.f32.mrb[72].mxu1 }
 0x36d   : > { %8408 = vst [vmem:[#allocation31_spill] sm:$0xff] %v6677_v56  ;;  %v6679_v63 = vpop.f32.mrb[73].mxu1 }
 0x36e   : > { %8409 = vst [vmem:[#allocation32_spill] sm:$0xff] %v6679_v63  ;;  %v6681_v4 = vpop.f32.mrb[74].mxu1  ;;  %v1469_v49 = vmax.f32 %v6677_v56, %v6679_v63 }
 0x36f   : > { %8410 = vst [vmem:[#allocation33_spill] sm:$0xff] %v6681_v4  ;;  %v6685_v59 = vpop.f32.mrb[75].mxu1 }
 0x370   : > { %8411 = vst [vmem:[#allocation34_spill] sm:$0xff] %v6685_v59  ;;  %1470 = vmax.xlane.f32.xlu0 %v1469_v49  ;;  %v1472_v60 = vmax.f32 %v6681_v4, %v6685_v59 }
 0x372   : > { %1473 = vmax.xlane.f32.xlu1 %v1472_v60 }
 0x374   : > { %v6689_v58 = vpop.f32.mrb[76].mxu1 }
 0x375   : > { %8412 = vst [vmem:[#allocation35_spill] sm:$0xff] %v6689_v58  ;;  %v6691_v38 = vpop.f32.mrb[77].mxu1 }
 0x376   : > { %8413 = vst [vmem:[#allocation36_spill] sm:$0xff] %v6691_v38  ;;  %v6693_v8 = vpop.f32.mrb[78].mxu1  ;;  %v1475_v33 = vmax.f32 %v6689_v58, %v6691_v38 }
 0x377   : > { %8414 = vst [vmem:[#allocation37_spill] sm:$0xff] %v6693_v8  ;;  %v6697_v24 = vpop.f32.mrb[79].mxu1 }
 0x378   : > { %8415 = vst [vmem:[#allocation38_spill] sm:$0xff] %v6697_v24  ;;  %1476 = vmax.xlane.f32.xlu0 %v1475_v33  ;;  %v1478_v55 = vmax.f32 %v6693_v8, %v6697_v24 }
 0x37a   : > { %1479 = vmax.xlane.f32.xlu1 %v1478_v55 }
 0x37c   : > { %v6701_v32 = vpop.f32.mrb[80].mxu1 }
 0x37d   : > { %v6703_v43 = vpop.f32.mrb[81].mxu1 }
 0x37e   : > { %v6705_v47 = vpop.f32.mrb[82].mxu1 }
 0x37f   : > { %v6709_v28 = vpop.f32.mrb[83].mxu1 }
 0x384   : > { %v6713_v52 = vpop.f32.mrb[84].mxu1 }
 0x385   : > { %v6715_v39 = vpop.f32.mrb[85].mxu1 }
 0x386   : > { %v6717_v34 = vpop.f32.mrb[86].mxu1 }
 0x387   : > { %v6721_v25 = vpop.f32.mrb[87].mxu1 }
 0x38c   : > { %v6725_v60 = vpop.f32.mrb[88].mxu1 }
 0x38d   : > { %v6727_v33 = vpop.f32.mrb[89].mxu1 }
 0x38e   : > { %v6729_v55 = vpop.f32.mrb[90].mxu1 }
 0x38f   : > { %v6733_v9 = vpop.f32.mrb[91].mxu1 }
 0x394   : > { %v6737_v20 = vpop.f32.mrb[92].mxu1 }
 0x395   : > { %v6739_v24 = vpop.f32.mrb[93].mxu1 }
 0x396   : > { %v6741_v8 = vpop.f32.mrb[94].mxu1 }
 0x397   : > { %v6745_v38 = vpop.f32.mrb[95].mxu1 }
 0x3ad   : > { %v1411_v7 = vpop.xlane.xlu0 %1410 }
 0x3ae   : > { %v1505_v59 = vsub.f32 %v6557_v0, %v1411_v7  ;;  %v1506_v4 = vsub.f32 %v6559_v15, %v1411_v7 }
 0x3b0   : > { %v1569_v11 = vmul.f32 1.442695, %v1505_v59  ;;  %v1571_v63 = vmul.f32 1.442695, %v1506_v4 }
 0x3b1   : > { %v1414_v56 = vpop.xlane.xlu0 %1413 }
 0x3b2   : > { %5183 = vpow2.f32 %v1569_v11  ;;  %v1507_v21 = vsub.f32 %v6561_v17, %v1414_v56  ;;  %v1508_v12 = vsub.f32 %v6565_v57, %v1414_v56 }
 0x3b3   : > { %5185 = vpow2.f32 %v1571_v63 }
 0x3b4   : > { %v1573_v49 = vmul.f32 1.442695, %v1507_v21  ;;  %v1575_v37 = vmul.f32 1.442695, %v1508_v12 }
 0x3b5   : > { %v1417_v36 = vpop.xlane.xlu1 %1416 }
 0x3b6   : > { %5187 = vpow2.f32 %v1573_v49  ;;  %v1509_v58 = vsub.f32 %v6569_v6, %v1417_v36  ;;  %v1510_v16 = vsub.f32 %v6571_v19, %v1417_v36 }
 0x3b7   : > { %5189 = vpow2.f32 %v1575_v37 }
 0x3b8   : > { %v1577_v0 = vmul.f32 1.442695, %v1509_v58  ;;  %v1579_v15 = vmul.f32 1.442695, %v1510_v16 }
 0x3b9   : > { %v1420_v59 = vpop.xlane.xlu1 %1419 }
 0x3ba   : > { %5191 = vpow2.f32 %v1577_v0  ;;  %v1511_v11 = vsub.f32 %v6573_v27, %v1420_v59  ;;  %v1512_v17 = vsub.f32 %v6577_v1, %v1420_v59 }
 0x3bb   : > { %5193 = vpow2.f32 %v1579_v15  ;;  %v8416_v15 = vmax.f32 %v6701_v32, %v6703_v43 }
 0x3bc   : > { %v6757_v57 = vpop.eup %5183  ;;  %v1581_v21 = vmul.f32 1.442695, %v1511_v11  ;;  %v1583_v12 = vmul.f32 1.442695, %v1512_v17 }
 0x3bd   : > { %v6759_v56 = vpop.eup %5185  ;;  %v1423_v63 = vpop.xlane.xlu0 %1422 }
 0x3be   : > { %5195 = vpow2.f32 %v1581_v21  ;;  %v1513_v6 = vsub.f32 %v6581_v10, %v1423_v63  ;;  %v1514_v19 = vsub.f32 %v6583_v18, %v1423_v63  ;;  %v1697_v16 = vadd.f32 %v6759_v56, %v6757_v57 }
 0x3bf   : > { %5197 = vpow2.f32 %v1583_v12  ;;  %v1426_v27 = vpop.xlane.xlu1 %1425 }
 0x3c0   : > { %v6765_v36 = vpop.eup %5187  ;;  %v1585_v1 = vmul.f32 1.442695, %v1513_v6  ;;  %v1587_v37 = vmul.f32 1.442695, %v1514_v19  ;;  %v1515_v4 = vsub.f32 %v6585_v44, %v1426_v27  ;;  %v1516_v58 = vsub.f32 %v6589_v54, %v1426_v27  ;;  %1698 = vadd.xlane.f32.xlu0 %v1697_v16 }
 0x3c1   : > { %v6769_v7 = vpop.eup %5189  ;;  %v8417_v27 = vmax.f32 %v6705_v47, %v6709_v28 }
 0x3c2   : > { %5199 = vpow2.f32 %v1585_v1  ;;  %v1589_v10 = vmul.f32 1.442695, %v1515_v4  ;;  %v1591_v49 = vmul.f32 1.442695, %v1516_v58  ;;  %v1700_v18 = vadd.f32 %v6769_v7, %v6765_v36 }
 0x3c3   : > { %5201 = vpow2.f32 %v1587_v37 }
 0x3c4   : > { %v6773_v0 = vpop.eup %5191  ;;  %5203 = vpow2.f32 %v1589_v10  ;;  %1701 = vadd.xlane.f32.xlu1 %v1700_v18  ;;  %1482 = vmax.xlane.f32.xlu0 %v8416_v15 }
 0x3c5   : > { %v6778_v44 = vpop.eup %5193  ;;  %5205 = vpow2.f32 %v1591_v49  ;;  %v1429_v54 = vpop.xlane.xlu0 %1428 }
 0x3c6   : > { %v1517_v59 = vsub.f32 %v6593_v53, %v1429_v54  ;;  %v1518_v11 = vsub.f32 %v6595_v31, %v1429_v54  ;;  %v1703_v17 = vadd.f32 %v6778_v44, %v6773_v0 }
 0x3c7   : > { %v1432_v21 = vpop.xlane.xlu1 %1431 }
 0x3c8   : > { %v6784_v12 = vpop.eup %5195  ;;  %v1593_v63 = vmul.f32 1.442695, %v1517_v59  ;;  %v1595_v6 = vmul.f32 1.442695, %v1518_v11  ;;  %v1519_v19 = vsub.f32 %v6597_v2, %v1432_v21  ;;  %v1520_v16 = vsub.f32 %v6601_v23, %v1432_v21  ;;  %1704 = vadd.xlane.f32.xlu0 %v1703_v17  ;;  %1485 = vmax.xlane.f32.xlu1 %v8417_v27 }
 0x3c9   : > { %v6791_v53 = vpop.eup %5197  ;;  %v8418_v2 = vmax.f32 %v6713_v52, %v6715_v39 }
 0x3ca   : > { %5207 = vpow2.f32 %v1593_v63  ;;  %v1597_v31 = vmul.f32 1.442695, %v1519_v19  ;;  %v1599_v1 = vmul.f32 1.442695, %v1520_v16  ;;  %v1706_v37 = vadd.f32 %v6791_v53, %v6784_v12 }
 0x3cb   : > { %5209 = vpow2.f32 %v1595_v6  ;;  %v8419_v6 = vmax.f32 %v6717_v34, %v6721_v25 }
 0x3cc   : > { %v6795_v4 = vpop.eup %5199  ;;  %5211 = vpow2.f32 %v1597_v31  ;;  %1707 = vadd.xlane.f32.xlu1 %v1706_v37  ;;  %1488 = vmax.xlane.f32.xlu0 %v8418_v2 }
 0x3cd   : > { %v6800_v23 = vpop.eup %5201  ;;  %5213 = vpow2.f32 %v1599_v1  ;;  %v1435_v58 = vpop.xlane.xlu0 %1434 }
 0x3ce   : > { %v6802_v10 = vpop.eup %5203  ;;  %v1521_v49 = vsub.f32 %v6605_v26, %v1435_v58  ;;  %v1522_v18 = vsub.f32 %v6607_v41, %v1435_v58  ;;  %v1709_v15 = vadd.f32 %v6800_v23, %v6795_v4 }
 0x3cf   : > { %v6808_v54 = vpop.eup %5205  ;;  %v1438_v59 = vpop.xlane.xlu1 %1437 }
 0x3d0   : > { %v1601_v11 = vmul.f32 1.442695, %v1521_v49  ;;  %v1603_v17 = vmul.f32 1.442695, %v1522_v18  ;;  %v1523_v21 = vsub.f32 %v6609_v42, %v1438_v59  ;;  %v1524_v63 = vsub.f32 %v6613_v29, %v1438_v59  ;;  %1710 = vadd.xlane.f32.xlu0 %v1709_v15  ;;  %1491 = vmax.xlane.f32.xlu1 %v8419_v6 }
 0x3d1   : > { %v1712_v19 = vadd.f32 %v6808_v54, %v6802_v10  ;;  %v8420_v42 = vmax.f32 %v6725_v60, %v6727_v33 }
 0x3d2   : > { %5215 = vpow2.f32 %v1601_v11  ;;  %v1605_v26 = vmul.f32 1.442695, %v1523_v21  ;;  %v1607_v41 = vmul.f32 1.442695, %v1524_v63 }
 0x3d3   : > { %5217 = vpow2.f32 %v1603_v17  ;;  %v8421_v17 = vmax.f32 %v6729_v55, %v6733_v9 }
 0x3d4   : > { %v6817_v16 = vpop.eup %5207  ;;  %5219 = vpow2.f32 %v1605_v26  ;;  %1713 = vadd.xlane.f32.xlu1 %v1712_v19  ;;  %1494 = vmax.xlane.f32.xlu0 %v8420_v42 }
 0x3d5   : > { %v6822_v29 = vpop.eup %5209  ;;  %5221 = vpow2.f32 %v1607_v41  ;;  %v1441_v27 = vpop.xlane.xlu0 %1440 }
 0x3d6   : > { %v6824_v31 = vpop.eup %5211  ;;  %v1525_v1 = vsub.f32 %v6617_v45, %v1441_v27  ;;  %v1526_v37 = vsub.f32 %v6619_v46, %v1441_v27  ;;  %v1715_v2 = vadd.f32 %v6822_v29, %v6817_v16 }
 0x3d7   : > { %v6830_v58 = vpop.eup %5213  ;;  %v1444_v49 = vpop.xlane.xlu1 %1443 }
 0x3d8   : > { %v1609_v18 = vmul.f32 1.442695, %v1525_v1  ;;  %v1611_v15 = vmul.f32 1.442695, %v1526_v37  ;;  %v1527_v59 = vsub.f32 %v6621_v40, %v1444_v49  ;;  %v1528_v11 = vsub.f32 %v6625_v14, %v1444_v49  ;;  %1716 = vadd.xlane.f32.xlu0 %v1715_v2  ;;  %1497 = vmax.xlane.f32.xlu1 %v8421_v17 }
 0x3d9   : > { %v1718_v21 = vadd.f32 %v6830_v58, %v6824_v31  ;;  %v8422_v40 = vmax.f32 %v6737_v20, %v6739_v24 }
 0x3da   : > { %5223 = vpow2.f32 %v1609_v18  ;;  %v1613_v45 = vmul.f32 1.442695, %v1527_v59  ;;  %v1615_v46 = vmul.f32 1.442695, %v1528_v11 }
 0x3db   : > { %5225 = vpow2.f32 %v1611_v15  ;;  %v8423_v15 = vmax.f32 %v6741_v8, %v6745_v38 }
 0x3dc   : > { %v6839_v63 = vpop.eup %5215  ;;  %5227 = vpow2.f32 %v1613_v45  ;;  %1719 = vadd.xlane.f32.xlu1 %v1718_v21  ;;  %1500 = vmax.xlane.f32.xlu0 %v8422_v40 }
 0x3dd   : > { %v6844_v14 = vpop.eup %5217  ;;  %5229 = vpow2.f32 %v1615_v46  ;;  %v1447_v6 = vpop.xlane.xlu0 %1446 }
 0x3de   : > { %v6846_v26 = vpop.eup %5219  ;;  %v1529_v41 = vsub.f32 %v6629_v35, %v1447_v6  ;;  %v1530_v19 = vsub.f32 %v6631_v22, %v1447_v6  ;;  %v1721_v42 = vadd.f32 %v6844_v14, %v6839_v63 }
 0x3df   : > { %v6852_v27 = vpop.eup %5221  ;;  %v1450_v1 = vpop.xlane.xlu1 %1449 }
 0x3e0   : > { %v1617_v37 = vmul.f32 1.442695, %v1529_v41  ;;  %v1619_v2 = vmul.f32 1.442695, %v1530_v19  ;;  %v1531_v49 = vsub.f32 %v6633_v48, %v1450_v1  ;;  %v1532_v18 = vsub.f32 %v6637_v30, %v1450_v1  ;;  %1722 = vadd.xlane.f32.xlu0 %v1721_v42  ;;  %1503 = vmax.xlane.f32.xlu1 %v8423_v15 }
 0x3e1   : > { %v1724_v59 = vadd.f32 %v6852_v27, %v6846_v26 }
 0x3e2   : > { %5231 = vpow2.f32 %v1617_v37  ;;  %v1621_v35 = vmul.f32 1.442695, %v1531_v49  ;;  %v1623_v22 = vmul.f32 1.442695, %v1532_v18 }
 0x3e3   : > { %5233 = vpow2.f32 %v1619_v2 }
 0x3e4   : > { %v6861_v11 = vpop.eup %5223  ;;  %5235 = vpow2.f32 %v1621_v35  ;;  %1725 = vadd.xlane.f32.xlu1 %v1724_v59 }
 0x3e5   : > { %v6863_v17 = vpop.eup %5225  ;;  %5237 = vpow2.f32 %v1623_v22  ;;  %v1453_v48 = vpop.xlane.xlu0 %1452 }
 0x3e6   : > { %v6865_v30 = vpop.eup %5227  ;;  %v1533_v45 = vsub.f32 %v6641_v61, %v1453_v48  ;;  %v1534_v46 = vsub.f32 %v6643_v62, %v1453_v48  ;;  %v1727_v21 = vadd.f32 %v6863_v17, %v6861_v11 }
 0x3e7   : > { %v6871_v40 = vpop.eup %5229  ;;  %v1456_v6 = vpop.xlane.xlu1 %1455 }
 0x3e8   : > { %v1625_v41 = vmul.f32 1.442695, %v1533_v45  ;;  %v1627_v19 = vmul.f32 1.442695, %v1534_v46  ;;  %v1535_v42 = vsub.f32 %v6645_v5, %v1456_v6  ;;  %v1536_v1 = vsub.f32 %v6649_v50, %v1456_v6  ;;  %1728 = vadd.xlane.f32.xlu0 %v1727_v21  ;;  %v8424_v21 = vld [vmem:[#allocation26_spill] sm:$0xff] }
 0x3e9   : > { %v1730_v37 = vadd.f32 %v6871_v40, %v6865_v30 }
 0x3ea   : > { %5239 = vpow2.f32 %v1625_v41  ;;  %v1629_v61 = vmul.f32 1.442695, %v1535_v42  ;;  %v1631_v2 = vmul.f32 1.442695, %v1536_v1 }
 0x3eb   : > { %5241 = vpow2.f32 %v1627_v19  ;;  %1731 = vadd.xlane.f32.xlu1 %v1730_v37 }
 0x3ec   : > { %v6877_v62 = vpop.eup %5231  ;;  %5243 = vpow2.f32 %v1629_v61 }
 0x3ed   : > { %v6879_v49 = vpop.eup %5233  ;;  %5245 = vpow2.f32 %v1631_v2  ;;  %v1459_v18 = vpop.xlane.xlu0 %1458  ;;  %v8428_v2 = vld [vmem:[#allocation28_spill] sm:$0xff] }
 0x3ee   : > { %v6881_v15 = vpop.eup %5235  ;;  %v1537_v5 = vsub.f32 %v6653_v51, %v1459_v18  ;;  %v1538_v50 = vsub.f32 %v6655_v3, %v1459_v18  ;;  %v1733_v35 = vadd.f32 %v6879_v49, %v6877_v62 }
 0x3ef   : > { %v6887_v22 = vpop.eup %5237  ;;  %v1462_v59 = vpop.xlane.xlu1 %1461 }
 0x3f0   : > { %v1633_v48 = vmul.f32 1.442695, %v1537_v5  ;;  %v1635_v45 = vmul.f32 1.442695, %v1538_v50  ;;  %v1539_v46 = vsub.f32 %v6657_v13, %v1462_v59  ;;  %v1540_v6 = vsub.f32 %v8424_v21, %v1462_v59  ;;  %1734 = vadd.xlane.f32.xlu0 %v1733_v35  ;;  %v8427_v13 = vld [vmem:[#allocation27_spill] sm:$0xff]  ;;  %v8431_v21 = vld [vmem:[#allocation30_spill] sm:$0xff] }
 0x3f1   : > { %v1736_v41 = vadd.f32 %v6887_v22, %v6881_v15 }
 0x3f2   : > { %5247 = vpow2.f32 %v1633_v48  ;;  %v1637_v51 = vmul.f32 1.442695, %v1539_v46  ;;  %v1639_v19 = vmul.f32 1.442695, %v1540_v6 }
 0x3f3   : > { %5249 = vpow2.f32 %v1635_v45  ;;  %1737 = vadd.xlane.f32.xlu1 %v1736_v41  ;;  %v8430_v45 = vld [vmem:[#allocation29_spill] sm:$0xff] }
 0x3f4   : > { %v6893_v3 = vpop.eup %5239  ;;  %5251 = vpow2.f32 %v1637_v51 }
 0x3f5   : > { %8425 = vst [vmem:[#allocation26_spill] sm:$0xff] %v6893_v3  ;;  %v6895_v42 = vpop.eup %5241  ;;  %5253 = vpow2.f32 %v1639_v19  ;;  %v1465_v1 = vpop.xlane.xlu0 %1464 }
 0x3f6   : > { %v6897_v37 = vpop.eup %5243  ;;  %v1541_v61 = vsub.f32 %v8427_v13, %v1465_v1  ;;  %v1542_v18 = vsub.f32 %v8428_v2, %v1465_v1  ;;  %v1739_v5 = vadd.f32 %v6895_v42, %v6893_v3 }
 0x3f7   : > { %8426 = vst [vmem:[#allocation39_spill] sm:$0xff] %v6897_v37  ;;  %v6903_v50 = vpop.eup %5245  ;;  %v1468_v35 = vpop.xlane.xlu1 %1467 }
 0x3f8   : > { %8429 = vst [vmem:[#allocation27_spill] sm:$0xff] %v6903_v50  ;;  %v1641_v59 = vmul.f32 1.442695, %v1541_v61  ;;  %v1643_v48 = vmul.f32 1.442695, %v1542_v18  ;;  %v1543_v46 = vsub.f32 %v8430_v45, %v1468_v35  ;;  %v1544_v6 = vsub.f32 %v8431_v21, %v1468_v35  ;;  %1740 = vadd.xlane.f32.xlu0 %v1739_v5  ;;  %v8435_v18 = vld [vmem:[#allocation31_spill] sm:$0xff] }
 0x3f9   : > { %v1742_v41 = vadd.f32 %v6903_v50, %v6897_v37  ;;  %v8436_v5 = vld [vmem:[#allocation32_spill] sm:$0xff]  ;;  %v8439_v37 = vld [vmem:[#allocation34_spill] sm:$0xff] }
 0x3fa   : > { %5255 = vpow2.f32 %v1641_v59  ;;  %v1645_v51 = vmul.f32 1.442695, %v1543_v46  ;;  %v1647_v19 = vmul.f32 1.442695, %v1544_v6 }
 0x3fb   : > { %5257 = vpow2.f32 %v1643_v48  ;;  %1743 = vadd.xlane.f32.xlu1 %v1742_v41  ;;  %v8438_v41 = vld [vmem:[#allocation33_spill] sm:$0xff] }
 0x3fc   : > { %v6909_v1 = vpop.eup %5247  ;;  %5259 = vpow2.f32 %v1645_v51 }
 0x3fd   : > { %8432 = vst [vmem:[#allocation28_spill] sm:$0xff] %v6909_v1  ;;  %v6911_v13 = vpop.eup %5249  ;;  %5261 = vpow2.f32 %v1647_v19  ;;  %v1471_v61 = vpop.xlane.xlu0 %1470 }
 0x3fe   : > { %8433 = vst [vmem:[#allocation29_spill] sm:$0xff] %v6911_v13  ;;  %v6913_v2 = vpop.eup %5251  ;;  %v1545_v35 = vsub.f32 %v8435_v18, %v1471_v61  ;;  %v1546_v45 = vsub.f32 %v8436_v5, %v1471_v61  ;;  %v1745_v59 = vadd.f32 %v6911_v13, %v6909_v1 }
 0x3ff   : > { %8434 = vst [vmem:[#allocation30_spill] sm:$0xff] %v6913_v2  ;;  %v6919_v46 = vpop.eup %5253  ;;  %v1474_v48 = vpop.xlane.xlu1 %1473 }
 0x400   : > { %8437 = vst [vmem:[#allocation31_spill] sm:$0xff] %v6919_v46  ;;  %v1649_v21 = vmul.f32 1.442695, %v1545_v35  ;;  %v1651_v6 = vmul.f32 1.442695, %v1546_v45  ;;  %v1547_v51 = vsub.f32 %v8438_v41, %v1474_v48  ;;  %v1548_v50 = vsub.f32 %v8439_v37, %v1474_v48  ;;  %1746 = vadd.xlane.f32.xlu0 %v1745_v59  ;;  %v8440_v41 = vld [vmem:[#allocation35_spill] sm:$0xff] }
 0x401   : > { %v1748_v19 = vadd.f32 %v6919_v46, %v6913_v2  ;;  %v8441_v59 = vld [vmem:[#allocation36_spill] sm:$0xff]  ;;  %v8442_v2 = vld [vmem:[#allocation37_spill] sm:$0xff]  ;;  %v8443_v46 = vld [vmem:[#allocation38_spill] sm:$0xff] }
 0x402   : > { %5263 = vpow2.f32 %v1649_v21  ;;  %v1653_v18 = vmul.f32 1.442695, %v1547_v51  ;;  %v1655_v3 = vmul.f32 1.442695, %v1548_v50 }
 0x403   : > { %5265 = vpow2.f32 %v1651_v6  ;;  %1749 = vadd.xlane.f32.xlu1 %v1748_v19 }
 0x404   : > { %v6925_v61 = vpop.eup %5255  ;;  %5267 = vpow2.f32 %v1653_v18 }
 0x405   : > { %v6927_v5 = vpop.eup %5257  ;;  %5269 = vpow2.f32 %v1655_v3  ;;  %v1477_v35 = vpop.xlane.xlu0 %1476 }
 0x406   : > { %v6929_v45 = vpop.eup %5259  ;;  %v1549_v37 = vsub.f32 %v8440_v41, %v1477_v35  ;;  %v1550_v48 = vsub.f32 %v8441_v59, %v1477_v35  ;;  %v1751_v21 = vadd.f32 %v6927_v5, %v6925_v61 }
 0x407   : > { %v6935_v51 = vpop.eup %5261  ;;  %v1480_v50 = vpop.xlane.xlu1 %1479 }
 0x408   : > { %v1657_v6 = vmul.f32 1.442695, %v1549_v37  ;;  %v1659_v19 = vmul.f32 1.442695, %v1550_v48  ;;  %v1551_v18 = vsub.f32 %v8442_v2, %v1480_v50  ;;  %v1552_v1 = vsub.f32 %v8443_v46, %v1480_v50  ;;  %1752 = vadd.xlane.f32.xlu0 %v1751_v21 }
 0x409   : > { %v1754_v3 = vadd.f32 %v6935_v51, %v6929_v45 }
 0x40a   : > { %5271 = vpow2.f32 %v1657_v6  ;;  %v1661_v41 = vmul.f32 1.442695, %v1551_v18  ;;  %v1663_v13 = vmul.f32 1.442695, %v1552_v1  ;;  %v5135_v18 = vld [vmem:[#allocation10] sm:$0xff]  }
 0x40b   : > { %5273 = vpow2.f32 %v1659_v19  ;;  %1755 = vadd.xlane.f32.xlu1 %v1754_v3  ;;  %v5136_v3 = vld [vmem:[#allocation10 + $0x8] sm:$0xff]   ;;  %4930 = vmatprep.subr.bf16.mxu1 %v5135_v18 }
 0x40c   : > { %v6941_v35 = vpop.eup %5263  ;;  %5275 = vpow2.f32 %v1661_v41  ;;  %4931 = vmatpush3.bf16.msra.mxu1 %v5135_v18  ;;  %v5137_v41 = vld [vmem:[#allocation10 + $0x10] sm:$0xff]  }
 0x40d   : > { %8444 = vst [vmem:[#allocation32_spill] sm:$0xff] %v6941_v35  ;;  %v6943_v59 = vpop.eup %5265  ;;  %5277 = vpow2.f32 %v1663_v13  ;;  %4932 = vmatprep.subr.bf16.mxu1 %v5136_v3 }
 0x40e   : > { %v6945_v37 = vpop.eup %5267  ;;  %v1757_v2 = vadd.f32 %v6943_v59, %v6941_v35 }
 0x40f   : > { %8445 = vst [vmem:[#allocation33_spill] sm:$0xff] %v6945_v37  ;;  %v6949_v46 = vpop.eup %5269 }
 0x410   : > { %8446 = vst [vmem:[#allocation34_spill] sm:$0xff] %v6949_v46  ;;  %1758 = vadd.xlane.f32.xlu0 %v1757_v2  ;;  %v1760_v48 = vadd.f32 %v6949_v46, %v6945_v37  ;;  %4933 = vmatpush3.bf16.msra.mxu1 %v5136_v3 }
 0x411   : > { %4934 = vmatprep.subr.bf16.mxu1 %v5137_v41 }
 0x412   : > { %1761 = vadd.xlane.f32.xlu1 %v1760_v48 }
 0x414   : > { %v6953_v1 = vpop.eup %5271  ;;  %4935 = vmatpush3.bf16.msra.mxu1 %v5137_v41 }
 0x415   : > { %8447 = vst [vmem:[#allocation35_spill] sm:$0xff] %v6953_v1  ;;  %v6955_v21 = vpop.eup %5273 }
 0x416   : > { %8448 = vst [vmem:[#allocation36_spill] sm:$0xff] %v6955_v21  ;;  %v6957_v50 = vpop.eup %5275  ;;  %v1763_v13 = vadd.f32 %v6955_v21, %v6953_v1 }
 0x417   : > { %8449 = vst [vmem:[#allocation37_spill] sm:$0xff] %v6957_v50  ;;  %v6961_v6 = vpop.eup %5277 }
 0x418   : > { %8450 = vst [vmem:[#allocation38_spill] sm:$0xff] %v6961_v6  ;;  %1764 = vadd.xlane.f32.xlu0 %v1763_v13  ;;  %v1766_v19 = vadd.f32 %v6961_v6, %v6957_v50 }
 0x41a   : > { %1767 = vadd.xlane.f32.xlu1 %v1766_v19 }
 0x44d   : > { %v1699_v2 = vpop.xlane.xlu0 %1698 }
 0x44e   : > { %5279 = vrcp.f32 %v1699_v2 }
 0x451   : > { %v1702_v48 = vpop.xlane.xlu1 %1701  ;;  %v1483_v1 = vpop.xlane.xlu0 %1482 }
 0x452   : > { %5281 = vrcp.f32 %v1702_v48  ;;  %v1553_v13 = vsub.f32 %v6701_v32, %v1483_v1  ;;  %v1554_v21 = vsub.f32 %v6703_v43, %v1483_v1 }
 0x454   : > { %v1665_v50 = vmul.f32 1.442695, %v1553_v13  ;;  %v1667_v19 = vmul.f32 1.442695, %v1554_v21 }
 0x455   : > { %v1705_v6 = vpop.xlane.xlu0 %1704  ;;  %v1486_v37 = vpop.xlane.xlu1 %1485 }
 0x456   : > { %5283 = vpow2.f32 %v1665_v50  ;;  %v1555_v18 = vsub.f32 %v6705_v47, %v1486_v37  ;;  %v1556_v3 = vsub.f32 %v6709_v28, %v1486_v37 }
 0x457   : > { %5285 = vpow2.f32 %v1667_v19 }
 0x458   : > { %v5280_v41 = vpop.eup %5279  ;;  %5287 = vrcp.f32 %v1705_v6  ;;  %v1669_v2 = vmul.f32 1.442695, %v1555_v18  ;;  %v1671_v46 = vmul.f32 1.442695, %v1556_v3 }
 0x459   : > { %v1708_v35 = vpop.xlane.xlu1 %1707  ;;  %v1489_v48 = vpop.xlane.xlu0 %1488  ;;  %v1794_v32 = vmul.f32 %v5280_v41, %v6757_v57  ;;  %v1795_v43 = vmul.f32 %v5280_v41, %v6759_v56 }
 0x45a   : > { %5289 = vpow2.f32 %v1669_v2  ;;  %v1557_v1 = vsub.f32 %v6713_v52, %v1489_v48  ;;  %v1558_v21 = vsub.f32 %v6715_v39, %v1489_v48 }
 0x45b   : > { %5291 = vpow2.f32 %v1671_v46  ;;  %v4528_v47 = vpack.c.bf16 %v1795_v43, %v1794_v32 }
 0x45c   : > { %v5282_v28 = vpop.eup %5281  ;;  %5293 = vrcp.f32 %v1708_v35  ;;  %v1673_v37 = vmul.f32 1.442695, %v1557_v1  ;;  %v1675_v50 = vmul.f32 1.442695, %v1558_v21 }
 0x45d   : > { %v1711_v6 = vpop.xlane.xlu0 %1710  ;;  %v1492_v13 = vpop.xlane.xlu1 %1491  ;;  %v1797_v19 = vmul.f32 %v5282_v28, %v6765_v36  ;;  %v1798_v18 = vmul.f32 %v5282_v28, %v6769_v7  ;;  %4154 = vst [vmem:[%s6976_s25] sm:$0xff] %v4528_v47 }
 0x45e   : > { %5295 = vpow2.f32 %v1673_v37  ;;  %v1559_v52 = vsub.f32 %v6717_v34, %v1492_v13  ;;  %v1560_v39 = vsub.f32 %v6721_v25, %v1492_v13 }
 0x45f   : > { %5297 = vpow2.f32 %v1675_v50  ;;  %v1890_v57 = vpack.c.bf16 %v1798_v18, %v1795_v43  ;;  %v4529_v56 = vpack.c.bf16 %v1798_v18, %v1797_v19  ;;  %v1889_v35 = vpack.c.bf16 %v1797_v19, %v1794_v32 }
 0x460   : > { %v6981_v46 = vpop.eup %5283  ;;  %5299 = vrcp.f32 %v1711_v6  ;;  %v1677_v36 = vmul.f32 1.442695, %v1559_v52  ;;  %v1679_v3 = vmul.f32 1.442695, %v1560_v39 }
 0x461   : > { %v6983_v7 = vpop.eup %5285  ;;  %1969 = vmatprep.mubr.bf16.mxu0 %v1890_v57  ;;  %4155 = vst [vmem:[%s6976_s25 + $0x8] sm:$0xff] %v4529_v56  ;;  %v1714_v41 = vpop.xlane.xlu1 %1713 }
 0x462   : > { %v1495_v2 = vpop.xlane.xlu0 %1494  ;;  %v5288_v48 = vpop.eup %5287  ;;  %5301 = vpow2.f32 %v1677_v36  ;;  %1970 = vmatmul.mubr.bf16.vlgmr.msra.gmra.mrb[64].mxu0 %v1889_v35  ;;  %v1769_v32 = vadd.f32 %v6983_v7, %v6981_v46 }
 0x463   : > { %v1561_v34 = vsub.f32 %v6725_v60, %v1495_v2  ;;  %v1562_v25 = vsub.f32 %v6727_v33, %v1495_v2  ;;  %5303 = vpow2.f32 %v1679_v3  ;;  %v1801_v43 = vmul.f32 %v5288_v48, %v6778_v44 }
 0x464   : > { %v1800_v1 = vmul.f32 %v5288_v48, %v6773_v0  ;;  %v6992_v21 = vpop.eup %5289  ;;  %5305 = vrcp.f32 %v1714_v41  ;;  %1770 = vadd.xlane.f32.xlu0 %v1769_v32 }
 0x465   : > { %v1681_v47 = vmul.f32 1.442695, %v1561_v34  ;;  %v1683_v28 = vmul.f32 1.442695, %v1562_v25  ;;  %v6994_v37 = vpop.eup %5291  ;;  %v1498_v33 = vpop.xlane.xlu1 %1497 }
 0x466   : > { %v1717_v60 = vpop.xlane.xlu0 %1716  ;;  %v4530_v50 = vpack.c.bf16 %v1801_v43, %v1800_v1  ;;  %v5294_v6 = vpop.eup %5293  ;;  %v1563_v13 = vsub.f32 %v6729_v55, %v1498_v33  ;;  %v1564_v44 = vsub.f32 %v6733_v9, %v1498_v33  ;;  %v1772_v0 = vadd.f32 %v6994_v37, %v6992_v21 }
 0x467   : > { %5307 = vpow2.f32 %v1681_v47  ;;  %v1804_v19 = vmul.f32 %v5294_v6, %v6791_v53  ;;  %v1803_v18 = vmul.f32 %v5294_v6, %v6784_v12 }
 0x468   : > { %5309 = vpow2.f32 %v1683_v28  ;;  %4156 = vst [vmem:[%s6976_s25 + $0x10] sm:$0xff] %v4530_v50  ;;  %v7003_v52 = vpop.eup %5295  ;;  %v1685_v39 = vmul.f32 1.442695, %v1563_v13  ;;  %v1687_v57 = vmul.f32 1.442695, %v1564_v44  ;;  %1773 = vadd.xlane.f32.xlu1 %v1772_v0 }
 0x469   : > { %5311 = vrcp.f32 %v1717_v60  ;;  %v7005_v56 = vpop.eup %5297  ;;  %v1892_v55 = vpack.c.bf16 %v1804_v19, %v1801_v43  ;;  %v1720_v9 = vpop.xlane.xlu1 %1719  ;;  %v1891_v36 = vpack.c.bf16 %v1803_v18, %v1800_v1  ;;  %v4531_v3 = vpack.c.bf16 %v1804_v19, %v1803_v18 }
 0x46a   : > { %v1501_v35 = vpop.xlane.xlu0 %1500  ;;  %v5300_v41 = vpop.eup %5299  ;;  %5313 = vpow2.f32 %v1685_v39  ;;  %v1775_v2 = vadd.f32 %v7005_v56, %v7003_v52 }
 0x46b   : > { %v1565_v53 = vsub.f32 %v6737_v20, %v1501_v35  ;;  %v1566_v12 = vsub.f32 %v6739_v24, %v1501_v35  ;;  %5315 = vpow2.f32 %v1687_v57  ;;  %1977 = vmatprep.mubr.bf16.mxu0 %v1892_v55  ;;  %4157 = vst [vmem:[%s6976_s25 + $0x18] sm:$0xff] %v4531_v3  ;;  %v1807_v48 = vmul.f32 %v5300_v41, %v6800_v23 }
 0x46c   : > { %v1806_v34 = vmul.f32 %v5300_v41, %v6795_v4  ;;  %v7014_v25 = vpop.eup %5301  ;;  %5317 = vrcp.f32 %v1720_v9  ;;  %1978 = vmatmul.mubr.bf16.gmra.mrb[68].mxu0 %v1891_v36  ;;  %1776 = vadd.xlane.f32.xlu0 %v1775_v2 }
 0x46d   : > { %v1689_v32 = vmul.f32 1.442695, %v1565_v53  ;;  %v1691_v43 = vmul.f32 1.442695, %v1566_v12  ;;  %v7016_v20 = vpop.eup %5303  ;;  %v1504_v1 = vpop.xlane.xlu1 %1503  ;;  %v5138_v53 = vld [vmem:[#allocation10 + $0x18] sm:$0xff]  }
 0x46e   : > { %v1723_v24 = vpop.xlane.xlu0 %1722  ;;  %v4532_v47 = vpack.c.bf16 %v1807_v48, %v1806_v34  ;;  %v5306_v28 = vpop.eup %5305  ;;  %v1567_v60 = vsub.f32 %v6741_v8, %v1504_v1  ;;  %v1568_v23 = vsub.f32 %v6745_v38, %v1504_v1  ;;  %v1778_v4 = vadd.f32 %v7016_v20, %v7014_v25  ;;  %4936 = vmatprep.subr.bf16.mxu1 %v5138_v53 }
 0x46f   : > { %5319 = vpow2.f32 %v1689_v32  ;;  %v1810_v33 = vmul.f32 %v5306_v28, %v6808_v54  ;;  %v1809_v50 = vmul.f32 %v5306_v28, %v6802_v10  ;;  %4937 = vmatpush3.bf16.msra.mxu1 %v5138_v53 }
 0x470   : > { %5321 = vpow2.f32 %v1691_v43  ;;  %4158 = vst [vmem:[%s6976_s25 + $0x20] sm:$0xff] %v4532_v47  ;;  %v1693_v13 = vmul.f32 1.442695, %v1567_v60  ;;  %v1695_v44 = vmul.f32 1.442695, %v1568_v23  ;;  %1779 = vadd.xlane.f32.xlu1 %v1778_v4 }
 0x471   : > { %v7025_v6 = vpop.eup %5307  ;;  %5323 = vrcp.f32 %v1723_v24  ;;  %v1894_v8 = vpack.c.bf16 %v1810_v33, %v1807_v48  ;;  %v1726_v38 = vpop.xlane.xlu1 %1725  ;;  %v1893_v19 = vpack.c.bf16 %v1809_v50, %v1806_v34  ;;  %v4533_v18 = vpack.c.bf16 %v1810_v33, %v1809_v50 }
 0x472   : > { %v7027_v0 = vpop.eup %5309  ;;  %5325 = vpow2.f32 %v1693_v13 }
 0x473   : > { %v5312_v39 = vpop.eup %5311  ;;  %v1781_v54 = vadd.f32 %v7027_v0, %v7025_v6  ;;  %5327 = vpow2.f32 %v1695_v44  ;;  %1985 = vmatprep.mubr.bf16.mxu0 %v1894_v8  ;;  %4159 = vst [vmem:[%s6976_s25 + $0x28] sm:$0xff] %v4533_v18 }
 0x474   : > { %v1813_v10 = vmul.f32 %v5312_v39, %v6822_v29  ;;  %v1812_v57 = vmul.f32 %v5312_v39, %v6817_v16  ;;  %v7034_v55 = vpop.eup %5313  ;;  %5329 = vrcp.f32 %v1726_v38  ;;  %1986 = vmatmul.mubr.bf16.gmra.mrb[72].mxu0 %v1893_v19 }
 0x475   : > { %1782 = vadd.xlane.f32.xlu0 %v1781_v54  ;;  %v7036_v9 = vpop.eup %5315  ;;  %v1729_v35 = vpop.xlane.xlu0 %1728 }
 0x476   : > { %v4534_v36 = vpack.c.bf16 %v1813_v10, %v1812_v57  ;;  %v5318_v3 = vpop.eup %5317  ;;  %5331 = vrcp.f32 %v1729_v35  ;;  %v1784_v41 = vadd.f32 %v7036_v9, %v7034_v55 }
 0x477   : > { %v1816_v12 = vmul.f32 %v5318_v3, %v6830_v58  ;;  %v1815_v16 = vmul.f32 %v5318_v3, %v6824_v31 }
 0x478   : > { %4160 = vst [vmem:[%s6976_s25 + $0x30] sm:$0xff] %v4534_v36  ;;  %1785 = vadd.xlane.f32.xlu1 %v1784_v41  ;;  %v1732_v2 = vpop.xlane.xlu1 %1731  ;;  %v5139_v36 = vld [vmem:[#allocation10 + $0x20] sm:$0xff]  }
 0x479   : > { %v7043_v29 = vpop.eup %5319  ;;  %5333 = vrcp.f32 %v1732_v2  ;;  %v1896_v34 = vpack.c.bf16 %v1816_v12, %v1813_v10  ;;  %v1895_v32 = vpack.c.bf16 %v1815_v16, %v1812_v57  ;;  %v4535_v43 = vpack.c.bf16 %v1816_v12, %v1815_v16  ;;  %4938 = vmatprep.subr.bf16.mxu1 %v5139_v36 }
 0x47a   : > { %v7045_v48 = vpop.eup %5321  ;;  %4939 = vmatpush3.bf16.msra.mxu1 %v5139_v36 }
 0x47b   : > { %v5324_v24 = vpop.eup %5323  ;;  %v1787_v58 = vadd.f32 %v7045_v48, %v7043_v29  ;;  %1993 = vmatprep.mubr.bf16.mxu0 %v1896_v34  ;;  %4161 = vst [vmem:[%s6976_s25 + $0x38] sm:$0xff] %v4535_v43 }
 0x47c   : > { %v1819_v31 = vmul.f32 %v5324_v24, %v6844_v14  ;;  %v1818_v1 = vmul.f32 %v5324_v24, %v6839_v63  ;;  %v7052_v47 = vpop.eup %5325  ;;  %1994 = vmatmul.mubr.bf16.gmra.mrb[76].mxu0 %v1895_v32  ;;  %v8451_v24 = vld [vmem:[#allocation26_spill] sm:$0xff] }
 0x47d   : > { %1788 = vadd.xlane.f32.xlu0 %v1787_v58  ;;  %v7054_v28 = vpop.eup %5327  ;;  %v1735_v60 = vpop.xlane.xlu0 %1734 }
 0x47e   : > { %v4536_v23 = vpack.c.bf16 %v1819_v31, %v1818_v1  ;;  %v5330_v4 = vpop.eup %5329  ;;  %5335 = vrcp.f32 %v1735_v60  ;;  %v1790_v33 = vadd.f32 %v7054_v28, %v7052_v47 }
 0x47f   : > { %v1822_v50 = vmul.f32 %v5330_v4, %v6852_v27  ;;  %v1821_v14 = vmul.f32 %v5330_v4, %v6846_v26 }
 0x480   : > { %4162 = vst [vmem:[%s6976_s25 + $0x40] sm:$0xff] %v4536_v23  ;;  %v5332_v63 = vpop.eup %5331  ;;  %1791 = vadd.xlane.f32.xlu1 %v1790_v33  ;;  %v1738_v13 = vpop.xlane.xlu1 %1737  ;;  %v8453_v23 = vld [vmem:[#allocation39_spill] sm:$0xff] }
 0x481   : > { %5337 = vrcp.f32 %v1738_v13  ;;  %v1898_v44 = vpack.c.bf16 %v1822_v50, %v1819_v31  ;;  %v1897_v8 = vpack.c.bf16 %v1821_v14, %v1818_v1  ;;  %v4537_v38 = vpack.c.bf16 %v1822_v50, %v1821_v14 }
 0x482   : > { %v1825_v19 = vmul.f32 %v5332_v63, %v6863_v17  ;;  %v1824_v18 = vmul.f32 %v5332_v63, %v6861_v11  ;;  %v5140_v63 = vld [vmem:[#allocation10 + $0x28] sm:$0xff]  }
 0x483   : > { %v5334_v39 = vpop.eup %5333  ;;  %2001 = vmatprep.mubr.bf16.mxu0 %v1898_v44  ;;  %4163 = vst [vmem:[%s6976_s25 + $0x48] sm:$0xff] %v4537_v38  ;;  %4940 = vmatprep.subr.bf16.mxu1 %v5140_v63  ;;  %v8454_v44 = vld [vmem:[#allocation29_spill] sm:$0xff]  ;;  %v8455_v38 = vld [vmem:[#allocation28_spill] sm:$0xff] }
 0x484   : > { %2002 = vmatmul.mubr.bf16.gmra.mrb[80].mxu0 %v1897_v8  ;;  %v1828_v26 = vmul.f32 %v5334_v39, %v6871_v40  ;;  %v1827_v27 = vmul.f32 %v5334_v39, %v6865_v30  ;;  %v4538_v54 = vpack.c.bf16 %v1825_v19, %v1824_v18  ;;  %4941 = vmatpush3.bf16.msra.mxu1 %v5140_v63 }
 0x485   : > { %v1741_v10 = vpop.xlane.xlu0 %1740 }
 0x486   : > { %5339 = vrcp.f32 %v1741_v10  ;;  %v1900_v57 = vpack.c.bf16 %v1828_v26, %v1825_v19  ;;  %v4539_v35 = vpack.c.bf16 %v1828_v26, %v1827_v27  ;;  %4164 = vst [vmem:[%s6976_s25 + $0x50] sm:$0xff] %v4538_v54  ;;  %v1899_v30 = vpack.c.bf16 %v1827_v27, %v1824_v18  ;;  %v8456_v27 = vld [vmem:[#allocation31_spill] sm:$0xff]  ;;  %v8457_v10 = vld [vmem:[#allocation30_spill] sm:$0xff] }
 0x488   : > { %v5336_v3 = vpop.eup %5335  ;;  %2009 = vmatprep.mubr.bf16.mxu0 %v1900_v57  ;;  %v1744_v11 = vpop.xlane.xlu1 %1743  ;;  %4165 = vst [vmem:[%s6976_s25 + $0x58] sm:$0xff] %v4539_v35 }
 0x489   : > { %5341 = vrcp.f32 %v1744_v11  ;;  %v1831_v17 = vmul.f32 %v5336_v3, %v6879_v49  ;;  %v1830_v40 = vmul.f32 %v5336_v3, %v6877_v62  ;;  %v5141_v11 = vld [vmem:[#allocation10 + $0x30] sm:$0xff]  }
 0x48a   : > { %4942 = vmatprep.subr.bf16.mxu1 %v5141_v11 }
 0x48b   : > { %v5338_v41 = vpop.eup %5337  ;;  %v4540_v53 = vpack.c.bf16 %v1831_v17, %v1830_v40  ;;  %4943 = vmatpush3.bf16.msra.mxu1 %v5141_v11 }
 0x48c   : > { %2010 = vmatmul.mubr.bf16.gmra.mrb[84].mxu0 %v1899_v30  ;;  %v1834_v12 = vmul.f32 %v5338_v41, %v6887_v22  ;;  %v1833_v16 = vmul.f32 %v5338_v41, %v6881_v15  ;;  %v8452_v15 = vld [vmem:[#allocation27_spill] sm:$0xff] }
 0x48d   : > { %v1747_v2 = vpop.xlane.xlu0 %1746  ;;  %4166 = vst [vmem:[%s6976_s25 + $0x60] sm:$0xff] %v4540_v53 }
 0x48e   : > { %5343 = vrcp.f32 %v1747_v2  ;;  %v1902_v34 = vpack.c.bf16 %v1834_v12, %v1831_v17  ;;  %v4541_v32 = vpack.c.bf16 %v1834_v12, %v1833_v16  ;;  %v1901_v31 = vpack.c.bf16 %v1833_v16, %v1830_v40 }
 0x490   : > { %v5340_v43 = vpop.eup %5339  ;;  %2017 = vmatprep.mubr.bf16.mxu0 %v1902_v34  ;;  %v1750_v49 = vpop.xlane.xlu1 %1749  ;;  %4167 = vst [vmem:[%s6976_s25 + $0x68] sm:$0xff] %v4541_v32 }
 0x491   : > { %5345 = vrcp.f32 %v1750_v49  ;;  %v1837_v62 = vmul.f32 %v5340_v43, %v6895_v42  ;;  %v1836_v58 = vmul.f32 %v5340_v43, %v8451_v24  ;;  %v8458_v24 = vld [vmem:[#allocation32_spill] sm:$0xff] }
 0x493   : > { %v5342_v22 = vpop.eup %5341  ;;  %v4542_v1 = vpack.c.bf16 %v1837_v62, %v1836_v58 }
 0x494   : > { %2018 = vmatmul.mubr.bf16.gmra.mrb[88].mxu0 %v1901_v31  ;;  %v1840_v60 = vmul.f32 %v5342_v22, %v8452_v15  ;;  %v1839_v4 = vmul.f32 %v5342_v22, %v8453_v23  ;;  %v8459_v22 = vld [vmem:[#allocation34_spill] sm:$0xff] }
 0x495   : > { %v1753_v33 = vpop.xlane.xlu0 %1752  ;;  %4168 = vst [vmem:[%s6976_s25 + $0x70] sm:$0xff] %v4542_v1  ;;  %v8460_v1 = vld [vmem:[#allocation33_spill] sm:$0xff] }
 0x496   : > { %5347 = vrcp.f32 %v1753_v33  ;;  %v1904_v50 = vpack.c.bf16 %v1840_v60, %v1837_v62  ;;  %v4543_v14 = vpack.c.bf16 %v1840_v60, %v1839_v4  ;;  %v1903_v18 = vpack.c.bf16 %v1839_v4, %v1836_v58 }
 0x498   : > { %v5344_v13 = vpop.eup %5343  ;;  %2025 = vmatprep.mubr.bf16.mxu0 %v1904_v50  ;;  %v1756_v42 = vpop.xlane.xlu1 %1755  ;;  %4169 = vst [vmem:[%s6976_s25 + $0x78] sm:$0xff] %v4543_v14  ;;  %v8461_v50 = vld [vmem:[#allocation36_spill] sm:$0xff]  ;;  %v8462_v14 = vld [vmem:[#allocation35_spill] sm:$0xff] }
 0x499   : > { %5349 = vrcp.f32 %v1756_v42  ;;  %v1843_v8 = vmul.f32 %v5344_v13, %v8454_v44  ;;  %v1842_v19 = vmul.f32 %v5344_v13, %v8455_v38  ;;  %v8463_v44 = vld [vmem:[#allocation38_spill] sm:$0xff]  ;;  %v8464_v38 = vld [vmem:[#allocation37_spill] sm:$0xff] }
 0x49b   : > { %v5346_v39 = vpop.eup %5345  ;;  %v4544_v26 = vpack.c.bf16 %v1843_v8, %v1842_v19 }
 0x49c   : > { %2026 = vmatmul.mubr.bf16.gmra.mrb[92].mxu0 %v1903_v18  ;;  %v1846_v54 = vmul.f32 %v5346_v39, %v8456_v27  ;;  %v1845_v57 = vmul.f32 %v5346_v39, %v8457_v10  ;;  %v5142_v27 = vld [vmem:[#allocation10 + $0x38] sm:$0xff]  }
 0x49d   : > { %v1759_v35 = vpop.xlane.xlu0 %1758  ;;  %4170 = vst [vmem:[%s6976_s25 + $0x80] sm:$0xff] %v4544_v26  ;;  %4944 = vmatprep.subr.bf16.mxu1 %v5142_v27 }
 0x49e   : > { %5351 = vrcp.f32 %v1759_v35  ;;  %v1906_v36 = vpack.c.bf16 %v1846_v54, %v1843_v8  ;;  %v4545_v3 = vpack.c.bf16 %v1846_v54, %v1845_v57  ;;  %v1905_v53 = vpack.c.bf16 %v1845_v57, %v1842_v19  ;;  %4945 = vmatpush3.bf16.msra.mxu1 %v5142_v27 }
 0x49f   : > { %v1762_v17 = vpop.xlane.xlu1 %1761 }
 0x4a0   : > { %v5348_v40 = vpop.eup %5347  ;;  %2033 = vmatprep.mubr.bf16.mxu0 %v1906_v36  ;;  %5353 = vrcp.f32 %v1762_v17  ;;  %4171 = vst [vmem:[%s6976_s25 + $0x88] sm:$0xff] %v4545_v3 }
 0x4a1   : > { %v1849_v30 = vmul.f32 %v5348_v40, %v6927_v5  ;;  %v1848_v41 = vmul.f32 %v5348_v40, %v6925_v61 }
 0x4a3   : > { %v5350_v12 = vpop.eup %5349  ;;  %v4546_v16 = vpack.c.bf16 %v1849_v30, %v1848_v41 }
 0x4a4   : > { %2034 = vmatmul.mubr.bf16.gmra.mrb[96].mxu0 %v1905_v53  ;;  %v1852_v2 = vmul.f32 %v5350_v12, %v6935_v51  ;;  %v1851_v34 = vmul.f32 %v5350_v12, %v6929_v45 }
 0x4a5   : > { %v1765_v32 = vpop.xlane.xlu0 %1764  ;;  %4172 = vst [vmem:[%s6976_s25 + $0x90] sm:$0xff] %v4546_v16 }
 0x4a6   : > { %5355 = vrcp.f32 %v1765_v32  ;;  %v1908_v43 = vpack.c.bf16 %v1852_v2, %v1849_v30  ;;  %v4547_v49 = vpack.c.bf16 %v1852_v2, %v1851_v34  ;;  %v1907_v51 = vpack.c.bf16 %v1851_v34, %v1848_v41 }
 0x4a7   : > { %v1768_v62 = vpop.xlane.xlu1 %1767 }
 0x4a8   : > { %v5352_v5 = vpop.eup %5351  ;;  %2041 = vmatprep.mubr.bf16.mxu0 %v1908_v43  ;;  %5357 = vrcp.f32 %v1768_v62  ;;  %4173 = vst [vmem:[%s6976_s25 + $0x98] sm:$0xff] %v4547_v49 }
 0x4a9   : > { %v1855_v61 = vmul.f32 %v5352_v5, %v6943_v59  ;;  %v1854_v58 = vmul.f32 %v5352_v5, %v8458_v24 }
 0x4aa   : > { %v5354_v31 = vpop.eup %5353 }
 0x4ab   : > { %v1858_v45 = vmul.f32 %v5354_v31, %v8459_v22  ;;  %v1857_v15 = vmul.f32 %v5354_v31, %v8460_v1  ;;  %v4548_v60 = vpack.c.bf16 %v1855_v61, %v1854_v58 }
 0x4ac   : > { %2042 = vmatmul.mubr.bf16.gmra.mrb[100].mxu0 %v1907_v51 }
 0x4ad   : > { %v1910_v23 = vpack.c.bf16 %v1858_v45, %v1855_v61  ;;  %v4549_v4 = vpack.c.bf16 %v1858_v45, %v1857_v15  ;;  %4174 = vst [vmem:[%s6976_s25 + $0xa0] sm:$0xff] %v4548_v60  ;;  %v1909_v42 = vpack.c.bf16 %v1857_v15, %v1854_v58 }
 0x4af   : > { %2049 = vmatprep.mubr.bf16.mxu0 %v1910_v23  ;;  %4175 = vst [vmem:[%s6976_s25 + $0xa8] sm:$0xff] %v4549_v4 }
 0x4b0   : > { %v5356_v33 = vpop.eup %5355 }
 0x4b1   : > { %v1861_v59 = vmul.f32 %v5356_v33, %v8461_v50  ;;  %v1860_v63 = vmul.f32 %v5356_v33, %v8462_v14 }
 0x4b2   : > { %v5358_v13 = vpop.eup %5357 }
 0x4b3   : > { %v1864_v8 = vmul.f32 %v5358_v13, %v8463_v44  ;;  %v1863_v19 = vmul.f32 %v5358_v13, %v8464_v38  ;;  %v4550_v18 = vpack.c.bf16 %v1861_v59, %v1860_v63 }
 0x4b4   : > { %2050 = vmatmul.mubr.bf16.gmra.mrb[104].mxu0 %v1909_v42 }
 0x4b5   : > { %v1912_v39 = vpack.c.bf16 %v1864_v8, %v1861_v59  ;;  %v4551_v26 = vpack.c.bf16 %v1864_v8, %v1863_v19  ;;  %4176 = vst [vmem:[%s6976_s25 + $0xb0] sm:$0xff] %v4550_v18  ;;  %v1911_v54 = vpack.c.bf16 %v1863_v19, %v1860_v63  ;;  %v8465_v63 = vmov 0  }
 0x4b7   : > { %2057 = vmatprep.mubr.bf16.mxu0 %v1912_v39  ;;  %4177 = vst [vmem:[%s6976_s25 + $0xb8] sm:$0xff] %v4551_v26 }
 0x4bc   : > { %2058 = vmatmul.mubr.bf16.gmra.mrb[108].mxu0 %v1911_v54 }
 0x4f1   : > { %v1771_v10 = vpop.xlane.xlu0 %1770 }
 0x4f2   : > { %5359 = vrcp.f32 %v1771_v10 }
 0x4f5   : > { %v1774_v57 = vpop.xlane.xlu1 %1773 }
 0x4f6   : > { %5361 = vrcp.f32 %v1774_v57 }
 0x4f9   : > { %v1777_v35 = vpop.xlane.xlu0 %1776 }
 0x4fa   : > { %5363 = vrcp.f32 %v1777_v35 }
 0x4fc   : > { %v5360_v36 = vpop.eup %5359 }
 0x4fd   : > { %v1780_v3 = vpop.xlane.xlu1 %1779  ;;  %v1867_v11 = vmul.f32 %v5360_v36, %v6983_v7  ;;  %v1866_v17 = vmul.f32 %v5360_v36, %v6981_v46 }
 0x4fe   : > { %5365 = vrcp.f32 %v1780_v3 }
 0x4ff   : > { %v4552_v40 = vpack.c.bf16 %v1867_v11, %v1866_v17 }
 0x500   : > { %v5362_v30 = vpop.eup %5361 }
 0x501   : > { %v1870_v53 = vmul.f32 %v5362_v30, %v6994_v37  ;;  %v1869_v12 = vmul.f32 %v5362_v30, %v6992_v21  ;;  %4178 = vst [vmem:[%s6976_s25 + $0xc0] sm:$0xff] %v4552_v40 }
 0x502   : > { %v1783_v41 = vpop.xlane.xlu0 %1782 }
 0x503   : > { %5367 = vrcp.f32 %v1783_v41  ;;  %v1914_v16 = vpack.c.bf16 %v1870_v53, %v1867_v11  ;;  %v1913_v2 = vpack.c.bf16 %v1869_v12, %v1866_v17  ;;  %v4553_v34 = vpack.c.bf16 %v1870_v53, %v1869_v12 }
 0x504   : > { %v5364_v32 = vpop.eup %5363 }
 0x505   : > { %2065 = vmatprep.mubr.bf16.mxu0 %v1914_v16  ;;  %v1786_v7 = vpop.xlane.xlu1 %1785  ;;  %4179 = vst [vmem:[%s6976_s25 + $0xc8] sm:$0xff] %v4553_v34  ;;  %v1873_v46 = vmul.f32 %v5364_v32, %v7005_v56  ;;  %v1872_v43 = vmul.f32 %v5364_v32, %v7003_v52 }
 0x506   : > { %5369 = vrcp.f32 %v1786_v7  ;;  %2066 = vmatmul.mubr.bf16.gmra.mrb[112].mxu0 %v1913_v2 }
 0x507   : > { %v4554_v37 = vpack.c.bf16 %v1873_v46, %v1872_v43 }
 0x508   : > { %v5366_v49 = vpop.eup %5365 }
 0x509   : > { %v1876_v62 = vmul.f32 %v5366_v49, %v7016_v20  ;;  %v1875_v5 = vmul.f32 %v5366_v49, %v7014_v25  ;;  %4180 = vst [vmem:[%s6976_s25 + $0xd0] sm:$0xff] %v4554_v37 }
 0x50a   : > { %v1789_v21 = vpop.xlane.xlu0 %1788 }
 0x50b   : > { %5371 = vrcp.f32 %v1789_v21  ;;  %v1916_v61 = vpack.c.bf16 %v1876_v62, %v1873_v46  ;;  %v1915_v24 = vpack.c.bf16 %v1875_v5, %v1872_v43  ;;  %v4555_v58 = vpack.c.bf16 %v1876_v62, %v1875_v5 }
 0x50d   : > { %v5368_v31 = vpop.eup %5367  ;;  %2073 = vmatprep.mubr.bf16.mxu0 %v1916_v61  ;;  %v1792_v56 = vpop.xlane.xlu1 %1791  ;;  %4181 = vst [vmem:[%s6976_s25 + $0xd8] sm:$0xff] %v4555_v58 }
 0x50e   : > { %v1879_v52 = vmul.f32 %v5368_v31, %v7027_v0  ;;  %v1878_v51 = vmul.f32 %v5368_v31, %v7025_v6  ;;  %5373 = vrcp.f32 %v1792_v56  ;;  %2074 = vmatmul.mubr.bf16.gmra.mrb[116].mxu0 %v1915_v24 }
 0x510   : > { %v4556_v20 = vpack.c.bf16 %v1879_v52, %v1878_v51  ;;  %v5370_v22 = vpop.eup %5369 }
 0x511   : > { %v1882_v25 = vmul.f32 %v5370_v22, %v7036_v9  ;;  %v1881_v45 = vmul.f32 %v5370_v22, %v7034_v55 }
 0x512   : > { %4182 = vst [vmem:[%s6976_s25 + $0xe0] sm:$0xff] %v4556_v20 }
 0x513   : > { %v1918_v1 = vpack.c.bf16 %v1882_v25, %v1879_v52  ;;  %v1917_v15 = vpack.c.bf16 %v1881_v45, %v1878_v51  ;;  %v4557_v60 = vpack.c.bf16 %v1882_v25, %v1881_v45 }
 0x515   : > { %v5372_v23 = vpop.eup %5371  ;;  %2081 = vmatprep.mubr.bf16.mxu0 %v1918_v1  ;;  %4183 = vst [vmem:[%s6976_s25 + $0xe8] sm:$0xff] %v4557_v60 }
 0x516   : > { %v1885_v0 = vmul.f32 %v5372_v23, %v7045_v48  ;;  %v1884_v6 = vmul.f32 %v5372_v23, %v7043_v29  ;;  %2082 = vmatmul.mubr.bf16.gmra.mrb[120].mxu0 %v1917_v15 }
 0x518   : > { %v4558_v4 = vpack.c.bf16 %v1885_v0, %v1884_v6  ;;  %v5374_v33 = vpop.eup %5373 }
 0x519   : > { %v1888_v9 = vmul.f32 %v5374_v33, %v7054_v28  ;;  %v1887_v50 = vmul.f32 %v5374_v33, %v7052_v47 }
 0x51a   : > { %4184 = vst [vmem:[%s6976_s25 + $0xf0] sm:$0xff] %v4558_v4 }
 0x51b   : > { %v1920_v55 = vpack.c.bf16 %v1888_v9, %v1885_v0  ;;  %v1919_v59 = vpack.c.bf16 %v1887_v50, %v1884_v6  ;;  %v4559_v14 = vpack.c.bf16 %v1888_v9, %v1887_v50 }
 0x51d   : > { %2089 = vmatprep.mubr.bf16.mxu0 %v1920_v55  ;;  %4185 = vst [vmem:[%s6976_s25 + $0xf8] sm:$0xff] %v4559_v14 }
 0x51e   : > { %2090 = vmatmul.mubr.bf16.gmra.mrb[124].mxu0 %v1919_v59 }
 0x51f   : > { %2956 = vmatprep.mubr.bf16.mxu0 %v8465_v63 }
 0x535   : > { %v4650_v13 = vpop.f32.mrb[64].mxu0 }
 0x536   : > { %v4651_v48 = vpop.f32.mrb[65].mxu0 }
 0x537   : > { %v4652_v42 = vadd.f32 %v4651_v48, %v4650_v13  ;;  %v4653_v29 = vpop.f32.mrb[66].mxu0 }
 0x538   : > { %v4654_v44 = vpop.f32.mrb[67].mxu0 }
 0x539   : > { %v4655_v8 = vadd.f32 %v4654_v44, %v4653_v29 }
 0x53b   : > { %v2098_v38 = vpack.c.bf16 %v4655_v8, %v4652_v42 }
 0x53d   : > { %4946 = vmatprep.mubr.bf16.mxu1 %v2098_v38 }
 0x53f   : > { %v4656_v28 = vpop.f32.mrb[68].mxu0 }
 0x540   : > { %v4657_v19 = vpop.f32.mrb[69].mxu0 }
 0x541   : > { %v4658_v47 = vadd.f32 %v4657_v19, %v4656_v28  ;;  %v4659_v18 = vpop.f32.mrb[70].mxu0 }
 0x542   : > { %v4660_v39 = vpop.f32.mrb[71].mxu0 }
 0x543   : > { %v4661_v26 = vadd.f32 %v4660_v39, %v4659_v18 }
 0x545   : > { %v2099_v27 = vpack.c.bf16 %v4661_v26, %v4658_v47 }
 0x547   : > { %v4662_v54 = vpop.f32.mrb[72].mxu0  ;;  %4947 = vmatmul.mubr.bf16.vlgmr.msra.gmra.mrb[96].mxu1 %v2099_v27 }
 0x548   : > { %v4663_v10 = vpop.f32.mrb[73].mxu0 }
 0x549   : > { %v4664_v57 = vadd.f32 %v4663_v10, %v4662_v54  ;;  %v4665_v35 = vpop.f32.mrb[74].mxu0 }
 0x54a   : > { %v4666_v36 = vpop.f32.mrb[75].mxu0 }
 0x54b   : > { %v4667_v3 = vadd.f32 %v4666_v36, %v4665_v35 }
 0x54d   : > { %v2100_v11 = vpack.c.bf16 %v4667_v3, %v4664_v57 }
 0x54f   : > { %v4668_v17 = vpop.f32.mrb[76].mxu0  ;;  %4950 = vmatprep.mubr.bf16.mxu1 %v2100_v11 }
 0x550   : > { %v4669_v40 = vpop.f32.mrb[77].mxu0 }
 0x551   : > { %v4670_v30 = vadd.f32 %v4669_v40, %v4668_v17  ;;  %v4671_v41 = vpop.f32.mrb[78].mxu0 }
 0x552   : > { %v4672_v53 = vpop.f32.mrb[79].mxu0 }
 0x553   : > { %v4673_v12 = vadd.f32 %v4672_v53, %v4671_v41 }
 0x555   : > { %v2101_v16 = vpack.c.bf16 %v4673_v12, %v4670_v30 }
 0x557   : > { %v4674_v2 = vpop.f32.mrb[80].mxu0  ;;  %4951 = vmatmul.mubr.bf16.gmra.mrb[100].mxu1 %v2101_v16 }
 0x558   : > { %v4675_v34 = vpop.f32.mrb[81].mxu0 }
 0x559   : > { %v4676_v32 = vadd.f32 %v4675_v34, %v4674_v2  ;;  %v4677_v7 = vpop.f32.mrb[82].mxu0 }
 0x55a   : > { %v4678_v46 = vpop.f32.mrb[83].mxu0 }
 0x55b   : > { %v4679_v43 = vadd.f32 %v4678_v46, %v4677_v7 }
 0x55d   : > { %v2102_v37 = vpack.c.bf16 %v4679_v43, %v4676_v32 }
 0x55f   : > { %v4680_v49 = vpop.f32.mrb[84].mxu0  ;;  %4954 = vmatprep.mubr.bf16.mxu1 %v2102_v37 }
 0x560   : > { %v4681_v21 = vpop.f32.mrb[85].mxu0 }
 0x561   : > { %v4682_v62 = vadd.f32 %v4681_v21, %v4680_v49  ;;  %v4683_v5 = vpop.f32.mrb[86].mxu0 }
 0x562   : > { %v4684_v61 = vpop.f32.mrb[87].mxu0 }
 0x563   : > { %v4685_v24 = vadd.f32 %v4684_v61, %v4683_v5 }
 0x565   : > { %v2103_v58 = vpack.c.bf16 %v4685_v24, %v4682_v62 }
 0x567   : > { %v4686_v31 = vpop.f32.mrb[88].mxu0  ;;  %4955 = vmatmul.mubr.bf16.gmra.mrb[104].mxu1 %v2103_v58 }
 0x568   : > { %v4687_v56 = vpop.f32.mrb[89].mxu0 }
 0x569   : > { %v4688_v52 = vadd.f32 %v4687_v56, %v4686_v31  ;;  %v4689_v51 = vpop.f32.mrb[90].mxu0 }
 0x56a   : > { %v4690_v20 = vpop.f32.mrb[91].mxu0 }
 0x56b   : > { %v4691_v22 = vadd.f32 %v4690_v20, %v4689_v51 }
 0x56d   : > { %v2104_v25 = vpack.c.bf16 %v4691_v22, %v4688_v52 }
 0x56f   : > { %v4692_v45 = vpop.f32.mrb[92].mxu0  ;;  %4958 = vmatprep.mubr.bf16.mxu1 %v2104_v25 }
 0x570   : > { %v4693_v1 = vpop.f32.mrb[93].mxu0 }
 0x571   : > { %v4694_v15 = vadd.f32 %v4693_v1, %v4692_v45  ;;  %v4695_v60 = vpop.f32.mrb[94].mxu0  ;;  %v7132_v45 = vld [vmem:[%s8318_s8 + $0x1] ss:$0 sm:$0xff] }
 0x572   : > { %v4696_v23 = vpop.f32.mrb[95].mxu0 }
 0x573   : > { %v4697_v0 = vadd.f32 %v4696_v23, %v4695_v60 }
 0x575   : > { %v2105_v6 = vpack.c.bf16 %v4697_v0, %v4694_v15 }
 0x577   : > { %v4698_v4 = vpop.f32.mrb[96].mxu0  ;;  %4959 = vmatmul.mubr.bf16.gmra.mrb[108].mxu1 %v2105_v6 }
 0x578   : > { %v4699_v33 = vpop.f32.mrb[97].mxu0 }
 0x579   : > { %v4700_v9 = vadd.f32 %v4699_v33, %v4698_v4  ;;  %v4701_v50 = vpop.f32.mrb[98].mxu0  ;;  %v5503_v33 = vld [vmem:[%s6175_s19] sm:$0xff] }
 0x57a   : > { %v4702_v55 = vpop.f32.mrb[99].mxu0 }
 0x57b   : > { %v4703_v59 = vadd.f32 %v4702_v55, %v4701_v50  ;;  %v5504_v55 = vld [vmem:[%s6175_s19 + $0x8] sm:$0xff] }
 0x57d   : > { %v2106_v14 = vpack.c.bf16 %v4703_v59, %v4700_v9 }
 0x57f   : > { %v4704_v13 = vpop.f32.mrb[100].mxu0  ;;  %4962 = vmatprep.mubr.bf16.mxu1 %v2106_v14  ;;  %v5505_v14 = vld [vmem:[%s6175_s19 + $0x10] sm:$0xff] }
 0x580   : > { %v4705_v48 = vpop.f32.mrb[101].mxu0 }
 0x581   : > { %v4706_v42 = vadd.f32 %v4705_v48, %v4704_v13  ;;  %v4707_v29 = vpop.f32.mrb[102].mxu0  ;;  %v5506_v48 = vld [vmem:[%s6175_s19 + $0x18] sm:$0xff] }
 0x582   : > { %v4708_v44 = vpop.f32.mrb[103].mxu0 }
 0x583   : > { %v4709_v8 = vadd.f32 %v4708_v44, %v4707_v29 }
 0x585   : > { %v2107_v38 = vpack.c.bf16 %v4709_v8, %v4706_v42 }
 0x587   : > { %v4710_v28 = vpop.f32.mrb[104].mxu0  ;;  %4963 = vmatmul.mubr.bf16.gmra.mrb[112].mxu1 %v2107_v38 }
 0x588   : > { %v4711_v19 = vpop.f32.mrb[105].mxu0 }
 0x589   : > { %v4712_v47 = vadd.f32 %v4711_v19, %v4710_v28  ;;  %v4713_v18 = vpop.f32.mrb[106].mxu0 }
 0x58a   : > { %v4714_v39 = vpop.f32.mrb[107].mxu0 }
 0x58b   : > { %v4715_v26 = vadd.f32 %v4714_v39, %v4713_v18  ;;  %v5507_v18 = vld [vmem:[%s6175_s19 + $0x20] sm:$0xff] }
 0x58d   : > { %v2108_v27 = vpack.c.bf16 %v4715_v26, %v4712_v47 }
 0x58f   : > { %v4716_v54 = vpop.f32.mrb[108].mxu0  ;;  %4966 = vmatprep.mubr.bf16.mxu1 %v2108_v27  ;;  %v5508_v27 = vld [vmem:[%s6175_s19 + $0x28] sm:$0xff] }
 0x590   : > { %v4717_v10 = vpop.f32.mrb[109].mxu0 }
 0x591   : > { %v4718_v57 = vadd.f32 %v4717_v10, %v4716_v54  ;;  %v4719_v35 = vpop.f32.mrb[110].mxu0  ;;  %v5509_v10 = vld [vmem:[%s6175_s19 + $0x30] sm:$0xff] }
 0x592   : > { %v4720_v36 = vpop.f32.mrb[111].mxu0 }
 0x593   : > { %v4721_v3 = vadd.f32 %v4720_v36, %v4719_v35  ;;  %v5510_v35 = vld [vmem:[%s6175_s19 + $0x38] sm:$0xff] }
 0x595   : > { %v2109_v11 = vpack.c.bf16 %v4721_v3, %v4718_v57 }
 0x597   : > { %4967 = vmatmul.mubr.bf16.gmra.mrb[116].mxu1 %v2109_v11 }
 0x5d9   : > { %v4722_v17 = vpop.f32.mrb[112].mxu0 }
 0x5da   : > { %v4723_v40 = vpop.f32.mrb[113].mxu0 }
 0x5db   : > { %v4724_v30 = vadd.f32 %v4723_v40, %v4722_v17  ;;  %v4725_v41 = vpop.f32.mrb[114].mxu0 }
 0x5dc   : > { %v4726_v53 = vpop.f32.mrb[115].mxu0 }
 0x5dd   : > { %v4727_v12 = vadd.f32 %v4726_v53, %v4725_v41 }
 0x5df   : > { %v2110_v16 = vpack.c.bf16 %v4727_v12, %v4724_v30  ;;  %v5511_v12 = vld [vmem:[%s6175_s19 + $0x40] sm:$0xff] }
 0x5e1   : > { %v4728_v2 = vpop.f32.mrb[116].mxu0  ;;  %4970 = vmatprep.mubr.bf16.mxu1 %v2110_v16 }
 0x5e2   : > { %v4729_v34 = vpop.f32.mrb[117].mxu0 }
 0x5e3   : > { %v4730_v32 = vadd.f32 %v4729_v34, %v4728_v2  ;;  %v4731_v7 = vpop.f32.mrb[118].mxu0  ;;  %v5512_v34 = vld [vmem:[%s6175_s19 + $0x48] sm:$0xff] }
 0x5e4   : > { %v4732_v46 = vpop.f32.mrb[119].mxu0 }
 0x5e5   : > { %v4733_v43 = vadd.f32 %v4732_v46, %v4731_v7  ;;  %v5513_v7 = vld [vmem:[%s6175_s19 + $0x50] sm:$0xff] }
 0x5e7   : > { %v2111_v37 = vpack.c.bf16 %v4733_v43, %v4730_v32  ;;  %v5514_v43 = vld [vmem:[%s6175_s19 + $0x58] sm:$0xff] }
 0x5e9   : > { %v4734_v49 = vpop.f32.mrb[120].mxu0  ;;  %4971 = vmatmul.mubr.bf16.gmra.mrb[120].mxu1 %v2111_v37 }
 0x5ea   : > { %v4735_v21 = vpop.f32.mrb[121].mxu0 }
 0x5eb   : > { %v4736_v62 = vadd.f32 %v4735_v21, %v4734_v49  ;;  %v4737_v5 = vpop.f32.mrb[122].mxu0 }
 0x5ec   : > { %v4738_v61 = vpop.f32.mrb[123].mxu0 }
 0x5ed   : > { %v4739_v24 = vadd.f32 %v4738_v61, %v4737_v5 }
 0x5ef   : > { %v2112_v58 = vpack.c.bf16 %v4739_v24, %v4736_v62 }
 0x5f1   : > { %v4740_v31 = vpop.f32.mrb[124].mxu0  ;;  %4974 = vmatprep.mubr.bf16.mxu1 %v2112_v58 }
 0x5f2   : > { %v4741_v56 = vpop.f32.mrb[125].mxu0 }
 0x5f3   : > { %v4742_v52 = vadd.f32 %v4741_v56, %v4740_v31  ;;  %v4743_v51 = vpop.f32.mrb[126].mxu0  ;;  %v5515_v31 = vld [vmem:[%s6175_s19 + $0x60] sm:$0xff] }
 0x5f4   : > { %v4744_v20 = vpop.f32.mrb[127].mxu0 }
 0x5f5   : > { %v4745_v22 = vadd.f32 %v4744_v20, %v4743_v51  ;;  %v5516_v51 = vld [vmem:[%s6175_s19 + $0x68] sm:$0xff] }
 0x5f7   : > { %v2113_v25 = vpack.c.bf16 %v4745_v22, %v4742_v52  ;;  %v5517_v22 = vld [vmem:[%s6175_s19 + $0x70] sm:$0xff] }
 0x5f9   : > { %4975 = vmatmul.mubr.bf16.gmra.mrb[124].mxu1 %v2113_v25 }
 0x61a   : > { %v4948_v1 = vpop.f32.mrb[96].mxu1 }
 0x61b   : > { %v2216_v15 = vpop.f32.mrb[97].mxu1  ;;  %v2225_v6 = vadd.f32 %v4948_v1, %v7132_v45  ;;  %v5518_v1 = vld [vmem:[%s6175_s19 + $0x78] sm:$0xff] }
 0x61c   : > { %v2217_v60 = vadd.f32 %v7132_v45, %v2216_v15  ;;  %v4949_v23 = vpop.f32.mrb[98].mxu1 }
 0x61d   : > { %v2219_v0 = vpop.f32.mrb[99].mxu1  ;;  %v2228_v50 = vadd.f32 %v4949_v23, %v7132_v45  ;;  %v7147_v13 = vadd.f32 %v5505_v14, %v2225_v6 }
 0x61e   : > { %v2220_v4 = vadd.f32 %v7132_v45, %v2219_v0  ;;  %v7138_v9 = vadd.f32 %v5503_v33, %v2217_v60 }
 0x61f   : > { %v7151_v42 = vadd.f32 %v5506_v48, %v2228_v50 }
 0x620   : > { %2375 = vadd.xlane.f32.xlu0 %v7138_v9  ;;  %v7143_v59 = vadd.f32 %v5504_v55, %v2220_v4  ;;  %v5519_v55 = vld [vmem:[%s6175_s19 + $0x80] sm:$0xff] }
 0x622   : > { %2377 = vadd.xlane.f32.xlu1 %v7143_v59 }
 0x624   : > { %2379 = vadd.xlane.f32.xlu0 %v7147_v13 }
 0x626   : > { %2381 = vadd.xlane.f32.xlu1 %v7151_v42 }
 0x62a   : > { %v4952_v29 = vpop.f32.mrb[100].mxu1 }
 0x62b   : > { %v2232_v44 = vpop.f32.mrb[101].mxu1  ;;  %v2241_v19 = vadd.f32 %v4952_v29, %v7132_v45  ;;  %v5520_v29 = vld [vmem:[%s6175_s19 + $0x88] sm:$0xff] }
 0x62c   : > { %v2233_v8 = vadd.f32 %v7132_v45, %v2232_v44  ;;  %v4953_v38 = vpop.f32.mrb[102].mxu1 }
 0x62d   : > { %v2235_v28 = vpop.f32.mrb[103].mxu1  ;;  %v2244_v26 = vadd.f32 %v4953_v38, %v7132_v45  ;;  %v7167_v57 = vadd.f32 %v5509_v10, %v2241_v19  ;;  %v5143_v10 = vld [vmem:[#allocation12] ss:$8 sps:$4 sm:$0xff]  }
 0x62e   : > { %v2236_v47 = vadd.f32 %v7132_v45, %v2235_v28  ;;  %v7158_v39 = vadd.f32 %v5507_v18, %v2233_v8  ;;  %v5521_v8 = vld [vmem:[%s6175_s19 + $0x90] sm:$0xff]  ;;  %v5522_v28 = vld [vmem:[%s6175_s19 + $0x98] sm:$0xff] }
 0x62f   : > { %v7171_v36 = vadd.f32 %v5510_v35, %v2244_v26  ;;  %v5145_v35 = vld [vmem:[#allocation12 + $0x4] ss:$8 sps:$4 sm:$0xff]  }
 0x630   : > { %2383 = vadd.xlane.f32.xlu0 %v7158_v39  ;;  %v7163_v54 = vadd.f32 %v5508_v27, %v2236_v47  ;;  %2924 = vmatprep.subr.bf16.mxu0 %v5145_v35  ;;  %v5149_v35 = vld [vmem:[#allocation12 + $0x20] ss:$8 sps:$4 sm:$0xff]  }
 0x631   : > { %2925 = vmatpush1.bf16.msra.mxu0 %v5143_v10 }
 0x632   : > { %2385 = vadd.xlane.f32.xlu1 %v7163_v54 }
 0x634   : > { %2387 = vadd.xlane.f32.xlu0 %v7167_v57 }
 0x636   : > { %2389 = vadd.xlane.f32.xlu1 %v7171_v36 }
 0x63a   : > { %v4956_v3 = vpop.f32.mrb[104].mxu1 }
 0x63b   : > { %v2248_v11 = vpop.f32.mrb[105].mxu1  ;;  %v2257_v41 = vadd.f32 %v4956_v3, %v7132_v45  ;;  %v5148_v3 = vld [vmem:[#allocation12 + $0x14] ss:$8 sps:$4 sm:$0xff]  }
 0x63c   : > { %v2249_v17 = vadd.f32 %v7132_v45, %v2248_v11  ;;  %v4957_v40 = vpop.f32.mrb[106].mxu1  ;;  %v5146_v11 = vld [vmem:[#allocation12 + $0x10] ss:$8 sps:$4 sm:$0xff]   ;;  %2926 = vmatprep.subr.bf16.mxu0 %v5148_v3 }
 0x63d   : > { %v2251_v30 = vpop.f32.mrb[107].mxu1  ;;  %v2260_v2 = vadd.f32 %v4957_v40, %v7132_v45  ;;  %v7187_v46 = vadd.f32 %v5513_v7, %v2257_v41  ;;  %2927 = vmatpush1.bf16.msra.mxu0 %v5146_v11 }
 0x63e   : > { %v2252_v53 = vadd.f32 %v7132_v45, %v2251_v30  ;;  %v7178_v16 = vadd.f32 %v5511_v12, %v2249_v17 }
 0x63f   : > { %v7191_v37 = vadd.f32 %v5514_v43, %v2260_v2 }
 0x640   : > { %2391 = vadd.xlane.f32.xlu0 %v7178_v16  ;;  %v7183_v32 = vadd.f32 %v5512_v34, %v2252_v53 }
 0x642   : > { %2393 = vadd.xlane.f32.xlu1 %v7183_v32 }
 0x644   : > { %2395 = vadd.xlane.f32.xlu0 %v7187_v46 }
 0x646   : > { %2397 = vadd.xlane.f32.xlu1 %v7191_v37 }
 0x64a   : > { %v4960_v49 = vpop.f32.mrb[108].mxu1 }
 0x64b   : > { %v2264_v21 = vpop.f32.mrb[109].mxu1  ;;  %v2273_v24 = vadd.f32 %v4960_v49, %v7132_v45 }
 0x64c   : > { %v2265_v62 = vadd.f32 %v7132_v45, %v2264_v21  ;;  %v4961_v5 = vpop.f32.mrb[110].mxu1 }
 0x64d   : > { %v2267_v61 = vpop.f32.mrb[111].mxu1  ;;  %v2276_v52 = vadd.f32 %v4961_v5, %v7132_v45  ;;  %v7207_v25 = vadd.f32 %v5517_v22, %v2273_v24  ;;  %v5523_v5 = vld [vmem:[%s6175_s19 + $0xa0] sm:$0xff] }
 0x64e   : > { %v2268_v58 = vadd.f32 %v7132_v45, %v2267_v61  ;;  %v7198_v56 = vadd.f32 %v5515_v31, %v2265_v62 }
 0x64f   : > { %v7211_v15 = vadd.f32 %v5518_v1, %v2276_v52 }
 0x650   : > { %2399 = vadd.xlane.f32.xlu0 %v7198_v56  ;;  %v7203_v20 = vadd.f32 %v5516_v51, %v2268_v58 }
 0x652   : > { %2401 = vadd.xlane.f32.xlu1 %v7203_v20 }
 0x654   : > { %2403 = vadd.xlane.f32.xlu0 %v7207_v25 }
 0x656   : > { %2405 = vadd.xlane.f32.xlu1 %v7211_v15 }
 0x65a   : > { %v4964_v60 = vpop.f32.mrb[112].mxu1 }
 0x65b   : > { %v2280_v23 = vpop.f32.mrb[113].mxu1  ;;  %v2289_v33 = vadd.f32 %v4964_v60, %v7132_v45 }
 0x65c   : > { %v2281_v0 = vadd.f32 %v7132_v45, %v2280_v23  ;;  %v4965_v6 = vpop.f32.mrb[114].mxu1 }
 0x65d   : > { %v2283_v4 = vpop.f32.mrb[115].mxu1  ;;  %v2292_v48 = vadd.f32 %v4965_v6, %v7132_v45  ;;  %v7227_v38 = vadd.f32 %v5521_v8, %v2289_v33  ;;  %v5525_v6 = vld [vmem:[%s6175_s19 + $0xb0] sm:$0xff] }
 0x65e   : > { %v2284_v50 = vadd.f32 %v7132_v45, %v2283_v4  ;;  %v7218_v14 = vadd.f32 %v5519_v55, %v2281_v0 }
 0x65f   : > { %v7231_v19 = vadd.f32 %v5522_v28, %v2292_v48  ;;  %v5526_v48 = vld [vmem:[%s6175_s19 + $0xb8] sm:$0xff] }
 0x660   : > { %2407 = vadd.xlane.f32.xlu0 %v7218_v14  ;;  %v7223_v44 = vadd.f32 %v5520_v29, %v2284_v50 }
 0x662   : > { %2409 = vadd.xlane.f32.xlu1 %v7223_v44 }
 0x664   : > { %2411 = vadd.xlane.f32.xlu0 %v7227_v38 }
 0x666   : > { %2413 = vadd.xlane.f32.xlu1 %v7231_v19 }
 0x66a   : > { %v4968_v47 = vpop.f32.mrb[116].mxu1 }
 0x66b   : > { %v2296_v18 = vpop.f32.mrb[117].mxu1  ;;  %v2305_v52 = vadd.f32 %v4968_v47, %v7132_v45  ;;  %v5151_v47 = vld [vmem:[#allocation12 + $0x24] ss:$8 sps:$4 sm:$0xff]  }
 0x66c   : > { %v4969_v26 = vpop.f32.mrb[118].mxu1  ;;  %v2297_v2 = vadd.f32 %v7132_v45, %v2296_v18  ;;  %2928 = vmatprep.subr.bf16.mxu0 %v5151_v47 }
 0x66d   : > { %v2299_v27 = vpop.f32.mrb[119].mxu1  ;;  %v7267_v4 = vadd.f32 %v5525_v6, %v2305_v52  ;;  %2929 = vmatpush1.bf16.msra.mxu0 %v5149_v35 }
 0x66e   : > { %v2300_v21 = vadd.f32 %v7132_v45, %v2299_v27  ;;  %v7247_v61 = vadd.f32 %v5523_v5, %v2297_v2  ;;  %v5528_v2 = vld [vmem:[%s6175_s19 + $0xc8] sm:$0xff] }
 0x6ad   : > { %v2376_v17 = vpop.xlane.xlu0 %2375 }
 0x6ae   : > { %v2440_v40 = vmul.f32 0.0078125, %v2376_v17 }
 0x6af   : > { %v2378_v30 = vpop.xlane.xlu1 %2377 }
 0x6b0   : > { %v2441_v41 = vmul.f32 0.0078125, %v2378_v30  ;;  %v7235_v53 = vsub.f32 %v7138_v9, %v2440_v40  ;;  %v5154_v40 = vld [vmem:[#allocation12 + $0x34] ss:$8 sps:$4 sm:$0xff]   ;;  %v5527_v30 = vld [vmem:[%s6175_s19 + $0xc0] sm:$0xff] }
 0x6b1   : > { %v2380_v12 = vpop.xlane.xlu0 %2379  ;;  %2930 = vmatprep.subr.bf16.mxu0 %v5154_v40 }
 0x6b2   : > { %v2442_v34 = vmul.f32 0.0078125, %v2380_v12  ;;  %v2504_v7 = vmul.f32 %v7235_v53, %v7235_v53  ;;  %v7241_v43 = vsub.f32 %v7143_v59, %v2441_v41  ;;  %v5524_v59 = vld [vmem:[%s6175_s19 + $0xa8] sm:$0xff]  ;;  %v5152_v12 = vld [vmem:[#allocation12 + $0x30] ss:$8 sps:$4 sm:$0xff]  }
 0x6b3   : > { %v2382_v49 = vpop.xlane.xlu1 %2381  ;;  %v7254_v58 = vadd.f32 %v5524_v59, %v2300_v21  ;;  %2931 = vmatpush1.bf16.msra.mxu0 %v5152_v12  ;;  %v5164_v12 = vld [vmem:[#allocation12 + $0x70] ss:$8 sps:$4 sm:$0xff]  }
 0x6b4   : > { %v2443_v62 = vmul.f32 0.0078125, %v2382_v49  ;;  %2536 = vadd.xlane.f32.xlu0 %v2504_v7  ;;  %v2505_v9 = vmul.f32 %v7241_v43, %v7241_v43  ;;  %v7250_v24 = vsub.f32 %v7147_v13, %v2442_v34  ;;  %v2308_v13 = vadd.f32 %v4969_v26, %v7132_v45  ;;  %v5157_v49 = vld [vmem:[#allocation12 + $0x44] ss:$8 sps:$4 sm:$0xff]  }
 0x6b5   : > { %2932 = vmatprep.subr.bf16.mxu0 %v5157_v49 }
 0x6b6   : > { %2538 = vadd.xlane.f32.xlu1 %v2505_v9  ;;  %v7257_v31 = vsub.f32 %v7151_v42, %v2443_v62  ;;  %v2506_v51 = vmul.f32 %v7250_v24, %v7250_v24  ;;  %v7271_v29 = vadd.f32 %v5526_v48, %v2308_v13  ;;  %v5155_v62 = vld [vmem:[#allocation12 + $0x40] ss:$8 sps:$4 sm:$0xff]   ;;  %v5529_v13 = vld [vmem:[%s6175_s19 + $0xd0] sm:$0xff] }
 0x6b7   : > { %2933 = vmatpush1.bf16.msra.mxu0 %v5155_v62 }
 0x6b8   : > { %2415 = vadd.xlane.f32.xlu0 %v7247_v61  ;;  %v2507_v1 = vmul.f32 %v7257_v31, %v7257_v31 }
 0x6ba   : > { %2417 = vadd.xlane.f32.xlu1 %v7254_v58 }
 0x6bc   : > { %2540 = vadd.xlane.f32.xlu0 %v2506_v51  ;;  %v4972_v22 = vpop.f32.mrb[120].mxu1  ;;  %v5160_v51 = vld [vmem:[#allocation12 + $0x54] ss:$8 sps:$4 sm:$0xff]  }
 0x6bd   : > { %v2384_v60 = vpop.xlane.xlu0 %2383  ;;  %v2312_v23 = vpop.f32.mrb[121].mxu1  ;;  %v2321_v21 = vadd.f32 %v4972_v22, %v7132_v45  ;;  %2934 = vmatprep.subr.bf16.mxu0 %v5160_v51 }
 0x6be   : > { %v2444_v0 = vmul.f32 0.0078125, %v2384_v60  ;;  %2542 = vadd.xlane.f32.xlu1 %v2507_v1  ;;  %v4973_v42 = vpop.f32.mrb[122].mxu1  ;;  %v2313_v18 = vadd.f32 %v7132_v45, %v2312_v23  ;;  %v5158_v23 = vld [vmem:[#allocation12 + $0x50] ss:$8 sps:$4 sm:$0xff]  }
 0x6bf   : > { %v2386_v33 = vpop.xlane.xlu1 %2385  ;;  %v2315_v50 = vpop.f32.mrb[123].mxu1  ;;  %v2324_v9 = vadd.f32 %v4973_v42, %v7132_v45  ;;  %v7307_v22 = vadd.f32 %v5529_v13, %v2321_v21  ;;  %v5530_v42 = vld [vmem:[%s6175_s19 + $0xd8] sm:$0xff]  ;;  %2935 = vmatpush1.bf16.msra.mxu0 %v5158_v23 }
 0x6c0   : > { %v2445_v55 = vmul.f32 0.0078125, %v2386_v33  ;;  %2419 = vadd.xlane.f32.xlu0 %v7267_v4  ;;  %v7274_v8 = vsub.f32 %v7158_v39, %v2444_v0  ;;  %v2316_v39 = vadd.f32 %v7132_v45, %v2315_v50  ;;  %v7287_v41 = vadd.f32 %v5527_v30, %v2313_v18  ;;  %v5534_v13 = vld [vmem:[%s6175_s19 + $0xf8] sm:$0xff] }
 0x6c1   : > { %v2388_v28 = vpop.xlane.xlu0 %2387  ;;  %v7310_v33 = vadd.f32 %v5530_v42, %v2324_v9 }
 0x6c2   : > { %v2446_v26 = vmul.f32 0.0078125, %v2388_v28  ;;  %2421 = vadd.xlane.f32.xlu1 %v7271_v29  ;;  %v2508_v27 = vmul.f32 %v7274_v8, %v7274_v8  ;;  %v7281_v10 = vsub.f32 %v7163_v54, %v2445_v55  ;;  %v7294_v34 = vadd.f32 %v5528_v2, %v2316_v39  ;;  %v5163_v28 = vld [vmem:[#allocation12 + $0x64] ss:$8 sps:$4 sm:$0xff]  }
 0x6c3   : > { %v2390_v3 = vpop.xlane.xlu1 %2389  ;;  %2936 = vmatprep.subr.bf16.mxu0 %v5163_v28  ;;  %v5532_v2 = vld [vmem:[%s6175_s19 + $0xe8] sm:$0xff] }
 0x6c4   : > { %v2447_v11 = vmul.f32 0.0078125, %v2390_v3  ;;  %2544 = vadd.xlane.f32.xlu0 %v2508_v27  ;;  %v2509_v17 = vmul.f32 %v7281_v10, %v7281_v10  ;;  %v7290_v54 = vsub.f32 %v7167_v57, %v2446_v26 }
 0x6c6   : > { %2546 = vadd.xlane.f32.xlu1 %v2509_v17  ;;  %v7297_v7 = vsub.f32 %v7171_v36, %v2447_v11  ;;  %v2510_v57 = vmul.f32 %v7290_v54, %v7290_v54  ;;  %v5531_v17 = vld [vmem:[%s6175_s19 + $0xe0] sm:$0xff] }
 0x6c8   : > { %2423 = vadd.xlane.f32.xlu0 %v7287_v41  ;;  %v2511_v36 = vmul.f32 %v7297_v7, %v7297_v7 }
 0x6ca   : > { %2425 = vadd.xlane.f32.xlu1 %v7294_v34 }
 0x6cc   : > { %2548 = vadd.xlane.f32.xlu0 %v2510_v57  ;;  %v4976_v5 = vpop.f32.mrb[124].mxu1 }
 0x6cd   : > { %v2392_v59 = vpop.xlane.xlu0 %2391  ;;  %v2328_v52 = vpop.f32.mrb[125].mxu1  ;;  %v2337_v57 = vadd.f32 %v4976_v5, %v7132_v45 }
 0x6ce   : > { %v2448_v1 = vmul.f32 0.0078125, %v2392_v59  ;;  %2550 = vadd.xlane.f32.xlu1 %v2511_v36  ;;  %v4977_v60 = vpop.f32.mrb[126].mxu1  ;;  %v2329_v47 = vadd.f32 %v7132_v45, %v2328_v52  ;;  %v5533_v59 = vld [vmem:[%s6175_s19 + $0xf0] sm:$0xff]  ;;  %s8466_s19 = sld [smem:[#allocation42_spill]] }
 0x6cf   : > { %v2394_v0 = vpop.xlane.xlu1 %2393  ;;  %v2331_v6 = vpop.f32.mrb[127].mxu1  ;;  %v2340_v62 = vadd.f32 %v4977_v60, %v7132_v45 }
 0x6d0   : > { %v7313_v50 = vsub.f32 %v7178_v16, %v2448_v1  ;;  %v2449_v55 = vmul.f32 0.0078125, %v2394_v0  ;;  %2427 = vadd.xlane.f32.xlu0 %v7307_v22  ;;  %v5161_v16 = vld [vmem:[#allocation12 + $0x60] ss:$8 sps:$4 sm:$0xff]   ;;  %v2332_v3 = vadd.f32 %v7132_v45, %v2331_v6  ;;  %v7327_v40 = vadd.f32 %v5531_v17, %v2329_v47 }
 0x6d1   : > { %v2396_v48 = vpop.xlane.xlu0 %2395  ;;  %2937 = vmatpush1.bf16.msra.mxu0 %v5161_v16  ;;  %v7350_v5 = vadd.f32 %v5534_v13, %v2340_v62 }
 0x6d2   : > { %v7318_v18 = vsub.f32 %v7183_v32, %v2449_v55  ;;  %v2450_v26 = vmul.f32 0.0078125, %v2396_v48  ;;  %2429 = vadd.xlane.f32.xlu1 %v7310_v33  ;;  %v2512_v27 = vmul.f32 %v7313_v50, %v7313_v50  ;;  %v5166_v32 = vld [vmem:[#allocation12 + $0x74] ss:$8 sps:$4 sm:$0xff]   ;;  %v7333_v49 = vadd.f32 %v5532_v2, %v2332_v3 }
 0x6d3   : > { %v2398_v35 = vpop.xlane.xlu1 %2397  ;;  %2938 = vmatprep.subr.bf16.mxu0 %v5166_v32 }
 0x6d4   : > { %v2451_v39 = vmul.f32 0.0078125, %v2398_v35  ;;  %2552 = vadd.xlane.f32.xlu0 %v2512_v27  ;;  %v2513_v11 = vmul.f32 %v7318_v18, %v7318_v18  ;;  %v7330_v30 = vsub.f32 %v7187_v46, %v2450_v26 }
 0x6d5   : > { %2939 = vmatpush1.bf16.msra.mxu0 %v5164_v12 }
 0x6d6   : > { %2554 = vadd.xlane.f32.xlu1 %v2513_v11  ;;  %v7336_v21 = vsub.f32 %v7191_v37, %v2451_v39  ;;  %v2514_v46 = vmul.f32 %v7330_v30, %v7330_v30  ;;  %v7347_v37 = vadd.f32 %v5533_v59, %v2337_v57 }
 0x6d8   : > { %2431 = vadd.xlane.f32.xlu0 %v7327_v40  ;;  %v2515_v9 = vmul.f32 %v7336_v21, %v7336_v21 }
 0x6da   : > { %2433 = vadd.xlane.f32.xlu1 %v7333_v49 }
 0x6dc   : > { %2556 = vadd.xlane.f32.xlu0 %v2514_v46 }
 0x6dd   : > { %v2400_v36 = vpop.xlane.xlu0 %2399 }
 0x6de   : > { %v2452_v52 = vmul.f32 0.0078125, %v2400_v36  ;;  %2558 = vadd.xlane.f32.xlu1 %v2515_v9 }
 0x6df   : > { %v2402_v51 = vpop.xlane.xlu1 %2401 }
 0x6e0   : > { %v7353_v1 = vsub.f32 %v7198_v56, %v2452_v52  ;;  %v2453_v23 = vmul.f32 0.0078125, %v2402_v51  ;;  %2435 = vadd.xlane.f32.xlu0 %v7347_v37 }
 0x6e1   : > { %v2404_v45 = vpop.xlane.xlu0 %2403 }
 0x6e2   : > { %v7357_v60 = vsub.f32 %v7203_v20, %v2453_v23  ;;  %v2454_v0 = vmul.f32 0.0078125, %v2404_v45  ;;  %2437 = vadd.xlane.f32.xlu1 %v7350_v5  ;;  %v2516_v6 = vmul.f32 %v7353_v1, %v7353_v1 }
 0x6e3   : > { %v2406_v42 = vpop.xlane.xlu1 %2405 }
 0x6e4   : > { %v7363_v55 = vsub.f32 %v7207_v25, %v2454_v0  ;;  %v2455_v48 = vmul.f32 0.0078125, %v2406_v42  ;;  %2560 = vadd.xlane.f32.xlu0 %v2516_v6  ;;  %v2517_v56 = vmul.f32 %v7357_v60, %v7357_v60 }
 0x6e6   : > { %v7368_v28 = vsub.f32 %v7211_v15, %v2455_v48  ;;  %2562 = vadd.xlane.f32.xlu1 %v2517_v56  ;;  %v2518_v20 = vmul.f32 %v7363_v55, %v7363_v55 }
 0x6e8   : > { %2564 = vadd.xlane.f32.xlu0 %v2518_v20  ;;  %v2519_v47 = vmul.f32 %v7368_v28, %v7368_v28 }
 0x6ea   : > { %2566 = vadd.xlane.f32.xlu1 %v2519_v47 }
 0x6ed   : > { %v2408_v26 = vpop.xlane.xlu0 %2407 }
 0x6ee   : > { %v2456_v25 = vmul.f32 0.0078125, %v2408_v26 }
 0x6ef   : > { %v2410_v27 = vpop.xlane.xlu1 %2409 }
 0x6f0   : > { %v7375_v16 = vsub.f32 %v7218_v14, %v2456_v25  ;;  %v2457_v35 = vmul.f32 0.0078125, %v2410_v27 }
 0x6f1   : > { %v2412_v3 = vpop.xlane.xlu0 %2411 }
 0x6f2   : > { %v7378_v15 = vsub.f32 %v7223_v44, %v2457_v35  ;;  %v2458_v39 = vmul.f32 0.0078125, %v2412_v3  ;;  %v2520_v11 = vmul.f32 %v7375_v16, %v7375_v16 }
 0x6f3   : > { %v2414_v32 = vpop.xlane.xlu1 %2413 }
 0x6f4   : > { %v7383_v17 = vsub.f32 %v7227_v38, %v2458_v39  ;;  %v2459_v12 = vmul.f32 0.0078125, %v2414_v32  ;;  %2568 = vadd.xlane.f32.xlu0 %v2520_v11  ;;  %v2521_v2 = vmul.f32 %v7378_v15, %v7378_v15 }
 0x6f6   : > { %v7388_v14 = vsub.f32 %v7231_v19, %v2459_v12  ;;  %2570 = vadd.xlane.f32.xlu1 %v2521_v2  ;;  %v2522_v44 = vmul.f32 %v7383_v17, %v7383_v17 }
 0x6f8   : > { %2572 = vadd.xlane.f32.xlu0 %v2522_v44  ;;  %v2523_v57 = vmul.f32 %v7388_v14, %v7388_v14 }
 0x6fa   : > { %2574 = vadd.xlane.f32.xlu1 %v2523_v57 }
 0x741   : > { %v2537_v46 = vpop.xlane.xlu0 %2536 }
 0x742   : > { %v2600_v38 = vmul.f32 0.0078125, %v2537_v46 }
 0x743   : > { %v2539_v62 = vpop.xlane.xlu1 %2538 }
 0x744   : > { %v2632_v9 = vadd.f32 1e-05, %v2600_v38  ;;  %v2601_v36 = vmul.f32 0.0078125, %v2539_v62 }
 0x745   : > { %v2416_v59 = vpop.xlane.xlu0 %2415 }
 0x746   : > { %5375 = vrsqrt.f32 %v2632_v9  ;;  %v2633_v52 = vadd.f32 1e-05, %v2601_v36  ;;  %v2460_v51 = vmul.f32 0.0078125, %v2416_v59 }
 0x747   : > { %v2418_v19 = vpop.xlane.xlu1 %2417 }
 0x748   : > { %5377 = vrsqrt.f32 %v2633_v52  ;;  %v7395_v13 = vsub.f32 %v7247_v61, %v2460_v51  ;;  %v2461_v23 = vmul.f32 0.0078125, %v2418_v19 }
 0x749   : > { %v2541_v45 = vpop.xlane.xlu0 %2540 }
 0x74a   : > { %v7398_v0 = vsub.f32 %v7254_v58, %v2461_v23  ;;  %v2602_v6 = vmul.f32 0.0078125, %v2541_v45  ;;  %v2524_v42 = vmul.f32 %v7395_v13, %v7395_v13  ;;  %v7407_v58 = vld [vmem:[%s8318_s8 + $0x3] ss:$0 sm:$0xff] }
 0x74b   : > { %v2543_v48 = vpop.xlane.xlu1 %2542 }
 0x74c   : > { %v2634_v56 = vadd.f32 1e-05, %v2602_v6  ;;  %v2603_v20 = vmul.f32 0.0078125, %v2543_v48  ;;  %2576 = vadd.xlane.f32.xlu0 %v2524_v42  ;;  %v2525_v47 = vmul.f32 %v7398_v0, %v7398_v0 }
 0x74d   : > { %v2420_v26 = vpop.xlane.xlu0 %2419 }
 0x74e   : > { %5379 = vrsqrt.f32 %v2634_v56  ;;  %v2635_v61 = vadd.f32 1e-05, %v2603_v20  ;;  %v2462_v25 = vmul.f32 0.0078125, %v2420_v26  ;;  %2578 = vadd.xlane.f32.xlu1 %v2525_v47 }
 0x74f   : > { %v2422_v27 = vpop.xlane.xlu1 %2421 }
 0x750   : > { %v5376_v35 = vpop.eup %5375  ;;  %5381 = vrsqrt.f32 %v2635_v61  ;;  %v7410_v3 = vsub.f32 %v7267_v4, %v2462_v25  ;;  %v2463_v39 = vmul.f32 0.0078125, %v2422_v27 }
 0x751   : > { %v2696_v11 = vmul.f32 %v5376_v35, %v7235_v53  ;;  %v2545_v32 = vpop.xlane.xlu0 %2544 }
 0x752   : > { %v5378_v12 = vpop.eup %5377  ;;  %v7414_v2 = vsub.f32 %v7271_v29, %v2463_v39  ;;  %v2604_v44 = vmul.f32 0.0078125, %v2545_v32  ;;  %v2526_v57 = vmul.f32 %v7410_v3, %v7410_v3  ;;  %v7425_v29 = vld [vmem:[%s8318_s8 + $0x4] ss:$0 sm:$0xff] }
 0x753   : > { %v2732_v46 = vmul.f32 %v7407_v58, %v2696_v11  ;;  %v2697_v38 = vmul.f32 %v5378_v12, %v7241_v43  ;;  %v2547_v62 = vpop.xlane.xlu1 %2546 }
 0x754   : > { %v2636_v9 = vadd.f32 1e-05, %v2604_v44  ;;  %v2605_v4 = vmul.f32 0.0078125, %v2547_v62  ;;  %2580 = vadd.xlane.f32.xlu0 %v2526_v57  ;;  %v2527_v53 = vmul.f32 %v7414_v2, %v7414_v2 }
 0x755   : > { %v2733_v36 = vmul.f32 %v7407_v58, %v2697_v38  ;;  %v2424_v59 = vpop.xlane.xlu0 %2423  ;;  %v7429_v19 = vadd.f32 %v7425_v29, %v2732_v46 }
 0x756   : > { %5383 = vrsqrt.f32 %v2636_v9  ;;  %v2637_v52 = vadd.f32 1e-05, %v2605_v4  ;;  %v2464_v51 = vmul.f32 0.0078125, %v2424_v59  ;;  %2582 = vadd.xlane.f32.xlu1 %v2527_v53 }
 0x757   : > { %v2426_v43 = vpop.xlane.xlu1 %2425  ;;  %v7432_v23 = vadd.f32 %v7425_v29, %v2733_v36 }
 0x758   : > { %v5380_v45 = vpop.eup %5379  ;;  %5385 = vrsqrt.f32 %v2637_v52  ;;  %v7435_v6 = vsub.f32 %v7287_v41, %v2464_v51  ;;  %v2465_v42 = vmul.f32 0.0078125, %v2426_v43 }
 0x759   : > { %v2549_v48 = vpop.xlane.xlu0 %2548  ;;  %v2800_v56 = vpack.c.bf16 %v7432_v23, %v7429_v19  ;;  %v2698_v20 = vmul.f32 %v5380_v45, %v7250_v24 }
 0x75a   : > { %v5382_v47 = vpop.eup %5381  ;;  %v7441_v26 = vsub.f32 %v7294_v34, %v2465_v42  ;;  %v2606_v61 = vmul.f32 0.0078125, %v2549_v48  ;;  %v2528_v25 = vmul.f32 %v7435_v6, %v7435_v6 }
 0x75b   : > { %2957 = vmatmul.mubr.bf16.vlgmr.msra.gmra.mrb[128].mxu0 %v2800_v56  ;;  %v2551_v27 = vpop.xlane.xlu1 %2550  ;;  %v2699_v41 = vmul.f32 %v5382_v47, %v7257_v31  ;;  %v2734_v35 = vmul.f32 %v7407_v58, %v2698_v20 }
 0x75c   : > { %v2638_v39 = vadd.f32 1e-05, %v2606_v61  ;;  %v2607_v11 = vmul.f32 0.0078125, %v2551_v27  ;;  %2584 = vadd.xlane.f32.xlu0 %v2528_v25  ;;  %v2529_v24 = vmul.f32 %v7441_v26, %v7441_v26  ;;  %2966 = vmatprep.mubr.bf16.mxu0 %v8465_v63 }
 0x75d   : > { %v2428_v34 = vpop.xlane.xlu0 %2427  ;;  %v2735_v32 = vmul.f32 %v7407_v58, %v2699_v41  ;;  %v7452_v31 = vadd.f32 %v7425_v29, %v2734_v35 }
 0x75e   : > { %5387 = vrsqrt.f32 %v2638_v39  ;;  %v2639_v12 = vadd.f32 1e-05, %v2607_v11  ;;  %v2466_v44 = vmul.f32 0.0078125, %v2428_v34  ;;  %2586 = vadd.xlane.f32.xlu1 %v2529_v24 }
 0x75f   : > { %v2430_v57 = vpop.xlane.xlu1 %2429  ;;  %v7455_v46 = vadd.f32 %v7425_v29, %v2735_v32 }
 0x760   : > { %v5384_v38 = vpop.eup %5383  ;;  %5389 = vrsqrt.f32 %v2639_v12  ;;  %v7458_v62 = vsub.f32 %v7307_v22, %v2466_v44  ;;  %v2467_v9 = vmul.f32 0.0078125, %v2430_v57 }
 0x761   : > { %v2553_v4 = vpop.xlane.xlu0 %2552  ;;  %v2801_v53 = vpack.c.bf16 %v7455_v46, %v7452_v31  ;;  %v2700_v36 = vmul.f32 %v5384_v38, %v7274_v8 }
 0x762   : > { %v5386_v59 = vpop.eup %5385  ;;  %v7464_v52 = vsub.f32 %v7310_v33, %v2467_v9  ;;  %v2608_v51 = vmul.f32 0.0078125, %v2553_v4  ;;  %v2530_v43 = vmul.f32 %v7458_v62, %v7458_v62 }
 0x763   : > { %2967 = vmatmul.mubr.bf16.gmra.mrb[132].mxu0 %v2801_v53  ;;  %v2555_v45 = vpop.xlane.xlu1 %2554  ;;  %v2701_v22 = vmul.f32 %v5386_v59, %v7281_v10  ;;  %v2736_v42 = vmul.f32 %v7407_v58, %v2700_v36 }
 0x764   : > { %v2640_v48 = vadd.f32 1e-05, %v2608_v51  ;;  %v2609_v56 = vmul.f32 0.0078125, %v2555_v45  ;;  %2588 = vadd.xlane.f32.xlu0 %v2530_v43  ;;  %v2531_v8 = vmul.f32 %v7464_v52, %v7464_v52  ;;  %2976 = vmatprep.mubr.bf16.mxu0 %v8465_v63 }
 0x765   : > { %v2432_v33 = vpop.xlane.xlu0 %2431  ;;  %v2737_v20 = vmul.f32 %v7407_v58, %v2701_v22  ;;  %v7475_v10 = vadd.f32 %v7425_v29, %v2736_v42 }
 0x766   : > { %5391 = vrsqrt.f32 %v2640_v48  ;;  %v2641_v47 = vadd.f32 1e-05, %v2609_v56  ;;  %v2468_v61 = vmul.f32 0.0078125, %v2432_v33  ;;  %2590 = vadd.xlane.f32.xlu1 %v2531_v8 }
 0x767   : > { %v2434_v25 = vpop.xlane.xlu1 %2433  ;;  %v7478_v27 = vadd.f32 %v7425_v29, %v2737_v20 }
 0x768   : > { %v5388_v41 = vpop.eup %5387  ;;  %5393 = vrsqrt.f32 %v2641_v47  ;;  %v7481_v35 = vsub.f32 %v7327_v40, %v2468_v61  ;;  %v2469_v39 = vmul.f32 0.0078125, %v2434_v25 }
 0x769   : > { %v2557_v11 = vpop.xlane.xlu0 %2556  ;;  %v2802_v24 = vpack.c.bf16 %v7478_v27, %v7475_v10  ;;  %v2702_v34 = vmul.f32 %v5388_v41, %v7290_v54 }
 0x76a   : > { %v5390_v32 = vpop.eup %5389  ;;  %v7487_v12 = vsub.f32 %v7333_v49, %v2469_v39  ;;  %v2610_v44 = vmul.f32 0.0078125, %v2557_v11  ;;  %v2532_v57 = vmul.f32 %v7481_v35, %v7481_v35 }
 0x76b   : > { %2977 = vmatmul.mubr.bf16.gmra.mrb[136].mxu0 %v2802_v24  ;;  %v2559_v38 = vpop.xlane.xlu1 %2558  ;;  %v2703_v40 = vmul.f32 %v5390_v32, %v7297_v7  ;;  %v2738_v9 = vmul.f32 %v7407_v58, %v2702_v34 }
 0x76c   : > { %v2642_v4 = vadd.f32 1e-05, %v2610_v44  ;;  %v2611_v53 = vmul.f32 0.0078125, %v2559_v38  ;;  %2592 = vadd.xlane.f32.xlu0 %v2532_v57  ;;  %v2533_v54 = vmul.f32 %v7487_v12, %v7487_v12  ;;  %2986 = vmatprep.mubr.bf16.mxu0 %v8465_v63 }
 0x76d   : > { %v2436_v49 = vpop.xlane.xlu0 %2435  ;;  %v2739_v36 = vmul.f32 %v7407_v58, %v2703_v40  ;;  %v7498_v7 = vadd.f32 %v7425_v29, %v2738_v9 }
 0x76e   : > { %5395 = vrsqrt.f32 %v2642_v4  ;;  %v2643_v59 = vadd.f32 1e-05, %v2611_v53  ;;  %v2470_v51 = vmul.f32 0.0078125, %v2436_v49  ;;  %2594 = vadd.xlane.f32.xlu1 %v2533_v54 }
 0x76f   : > { %v2438_v43 = vpop.xlane.xlu1 %2437  ;;  %v7501_v45 = vadd.f32 %v7425_v29, %v2739_v36 }
 0x770   : > { %v5392_v22 = vpop.eup %5391  ;;  %5397 = vrsqrt.f32 %v2643_v59  ;;  %v7504_v42 = vsub.f32 %v7347_v37, %v2470_v51  ;;  %v2471_v48 = vmul.f32 0.0078125, %v2438_v43 }
 0x771   : > { %v2561_v56 = vpop.xlane.xlu0 %2560  ;;  %v2803_v8 = vpack.c.bf16 %v7501_v45, %v7498_v7  ;;  %v2704_v33 = vmul.f32 %v5392_v22, %v7313_v50 }
 0x772   : > { %v5394_v20 = vpop.eup %5393  ;;  %v7510_v47 = vsub.f32 %v7350_v5, %v2471_v48  ;;  %v2612_v61 = vmul.f32 0.0078125, %v2561_v56  ;;  %v2534_v25 = vmul.f32 %v7504_v42, %v7504_v42 }
 0x773   : > { %2987 = vmatmul.mubr.bf16.gmra.mrb[140].mxu0 %v2803_v8  ;;  %v2563_v41 = vpop.xlane.xlu1 %2562  ;;  %v2705_v37 = vmul.f32 %v5394_v20, %v7318_v18  ;;  %v2740_v39 = vmul.f32 %v7407_v58, %v2704_v33 }
 0x774   : > { %v2644_v11 = vadd.f32 1e-05, %v2612_v61  ;;  %v2613_v24 = vmul.f32 0.0078125, %v2563_v41  ;;  %2596 = vadd.xlane.f32.xlu0 %v2534_v25  ;;  %v2535_v50 = vmul.f32 %v7510_v47, %v7510_v47  ;;  %2996 = vmatprep.mubr.bf16.mxu0 %v8465_v63 }
 0x775   : > { %v2565_v5 = vpop.xlane.xlu0 %2564  ;;  %v2741_v34 = vmul.f32 %v7407_v58, %v2705_v37  ;;  %v7521_v18 = vadd.f32 %v7425_v29, %v2740_v39 }
 0x776   : > { %5399 = vrsqrt.f32 %v2644_v11  ;;  %v2645_v32 = vadd.f32 1e-05, %v2613_v24  ;;  %v2614_v44 = vmul.f32 0.0078125, %v2565_v5  ;;  %2598 = vadd.xlane.f32.xlu1 %v2535_v50 }
 0x777   : > { %v2567_v57 = vpop.xlane.xlu1 %2566  ;;  %v7524_v38 = vadd.f32 %v7425_v29, %v2741_v34 }
 0x778   : > { %v5396_v40 = vpop.eup %5395  ;;  %5401 = vrsqrt.f32 %v2645_v32  ;;  %v2646_v9 = vadd.f32 1e-05, %v2614_v44  ;;  %v2615_v4 = vmul.f32 0.0078125, %v2567_v57 }
 0x779   : > { %v2804_v53 = vpack.c.bf16 %v7524_v38, %v7521_v18  ;;  %v2706_v54 = vmul.f32 %v5396_v40, %v7330_v30 }
 0x77a   : > { %v5398_v49 = vpop.eup %5397  ;;  %5403 = vrsqrt.f32 %v2646_v9  ;;  %v2647_v36 = vadd.f32 1e-05, %v2615_v4 }
 0x77b   : > { %2997 = vmatmul.mubr.bf16.gmra.mrb[144].mxu0 %v2804_v53  ;;  %v2707_v59 = vmul.f32 %v5398_v49, %v7336_v21  ;;  %v2742_v51 = vmul.f32 %v7407_v58, %v2706_v54 }
 0x77c   : > { %5405 = vrsqrt.f32 %v2647_v36  ;;  %3006 = vmatprep.mubr.bf16.mxu0 %v8465_v63 }
 0x77d   : > { %v2743_v43 = vmul.f32 %v7407_v58, %v2707_v59  ;;  %v7534_v22 = vadd.f32 %v7425_v29, %v2742_v51 }
 0x77f   : > { %v7537_v48 = vadd.f32 %v7425_v29, %v2743_v43 }
 0x780   : > { %v5400_v30 = vpop.eup %5399 }
 0x781   : > { %v2569_v56 = vpop.xlane.xlu0 %2568  ;;  %v2805_v8 = vpack.c.bf16 %v7537_v48, %v7534_v22  ;;  %v2708_v21 = vmul.f32 %v5400_v30, %v7353_v1 }
 0x782   : > { %v5402_v33 = vpop.eup %5401  ;;  %v2616_v20 = vmul.f32 0.0078125, %v2569_v56 }
 0x783   : > { %3007 = vmatmul.mubr.bf16.gmra.mrb[148].mxu0 %v2805_v8  ;;  %v2571_v61 = vpop.xlane.xlu1 %2570  ;;  %v2709_v25 = vmul.f32 %v5402_v33, %v7357_v60  ;;  %v2744_v41 = vmul.f32 %v7407_v58, %v2708_v21  ;;  %v5167_v21 = vld [vmem:[#allocation13 + $0x40] sm:$0xff]  }
 0x784   : > { %v5404_v37 = vpop.eup %5403  ;;  %v2648_v39 = vadd.f32 1e-05, %v2616_v20  ;;  %v2617_v11 = vmul.f32 0.0078125, %v2571_v61  ;;  %3016 = vmatprep.mubr.bf16.mxu0 %v8465_v63  ;;  %v5168_v20 = vld [vmem:[#allocation13] sm:$0xff]   ;;  %4770 = vmatprep.subr.bf16.mxu1 %v5167_v21 }
 0x785   : > { %v2573_v24 = vpop.xlane.xlu0 %2572  ;;  %v2745_v50 = vmul.f32 %v7407_v58, %v2709_v25  ;;  %v7547_v44 = vadd.f32 %v7425_v29, %v2744_v41  ;;  %v2710_v57 = vmul.f32 %v5404_v37, %v7363_v55  ;;  %4771 = vmatpush3.bf16.msra.mxu1 %v5168_v20 }
 0x786   : > { %v5406_v5 = vpop.eup %5405  ;;  %5407 = vrsqrt.f32 %v2648_v39  ;;  %v2649_v34 = vadd.f32 1e-05, %v2617_v11  ;;  %v2618_v1 = vmul.f32 0.0078125, %v2573_v24 }
 0x787   : > { %v2575_v32 = vpop.xlane.xlu1 %2574  ;;  %v7550_v60 = vadd.f32 %v7425_v29, %v2745_v50  ;;  %v2711_v40 = vmul.f32 %v5406_v5, %v7368_v28  ;;  %v2746_v36 = vmul.f32 %v7407_v58, %v2710_v57  ;;  %v5169_v50 = vld [vmem:[#allocation13 + $0x48] sm:$0xff]  }
 0x788   : > { %5409 = vrsqrt.f32 %v2649_v34  ;;  %v2650_v9 = vadd.f32 1e-05, %v2618_v1  ;;  %v2619_v4 = vmul.f32 0.0078125, %v2575_v32  ;;  %v5170_v5 = vld [vmem:[#allocation13 + $0x8] sm:$0xff]   ;;  %v5171_v34 = vld [vmem:[#allocation13 + $0x50] sm:$0xff]   ;;  %4772 = vmatprep.subr.bf16.mxu1 %v5169_v50  ;;  %v5173_v32 = vld [vmem:[#allocation13 + $0x58] sm:$0xff]  }
 0x789   : > { %v2806_v53 = vpack.c.bf16 %v7550_v60, %v7547_v44  ;;  %v2747_v54 = vmul.f32 %v7407_v58, %v2711_v40  ;;  %v7563_v28 = vadd.f32 %v7425_v29, %v2746_v36  ;;  %4773 = vmatpush3.bf16.msra.mxu1 %v5170_v5  ;;  %v5174_v40 = vld [vmem:[#allocation13 + $0x18] sm:$0xff]   ;;  %v5180_v36 = vld [vmem:[#allocation13 + $0x30] sm:$0xff]  }
 0x78a   : > { %5411 = vrsqrt.f32 %v2650_v9  ;;  %v2651_v49 = vadd.f32 1e-05, %v2619_v4  ;;  %4774 = vmatprep.subr.bf16.mxu1 %v5171_v34  ;;  %v5175_v9 = vld [vmem:[#allocation13 + $0x60] sm:$0xff]  }
 0x78b   : > { %3017 = vmatmul.mubr.bf16.gmra.mrb[152].mxu0 %v2806_v53  ;;  %v7560_v55 = vadd.f32 %v7425_v29, %v2747_v54  ;;  %v5176_v4 = vld [vmem:[#allocation13 + $0x20] sm:$0xff]   ;;  %v5177_v53 = vld [vmem:[#allocation13 + $0x68] sm:$0xff]  }
 0x78c   : > { %5413 = vrsqrt.f32 %v2651_v49  ;;  %3026 = vmatprep.mubr.bf16.mxu0 %v8465_v63  ;;  %v5178_v54 = vld [vmem:[#allocation13 + $0x28] sm:$0xff]   ;;  %v5179_v49 = vld [vmem:[#allocation13 + $0x70] sm:$0xff]  }
 0x78d   : > { %v2807_v51 = vpack.c.bf16 %v7560_v55, %v7563_v28 }
 0x790   : > { %v5408_v59 = vpop.eup %5407 }
 0x791   : > { %v2712_v43 = vmul.f32 %v5408_v59, %v7375_v16  ;;  %v5181_v59 = vld [vmem:[#allocation13 + $0x78] sm:$0xff]  }
 0x792   : > { %v5410_v30 = vpop.eup %5409 }
 0x793   : > { %3027 = vmatmul.mubr.bf16.gmra.mrb[156].mxu0 %v2807_v51  ;;  %v2713_v56 = vmul.f32 %v5410_v30, %v7378_v15  ;;  %v2748_v8 = vmul.f32 %v7407_v58, %v2712_v43  ;;  %v5182_v51 = vld [vmem:[#allocation13 + $0x38] sm:$0xff]  }
 0x794   : > { %v5412_v33 = vpop.eup %5411  ;;  %3036 = vmatprep.mubr.bf16.mxu0 %v8465_v63 }
 0x795   : > { %v2749_v61 = vmul.f32 %v7407_v58, %v2713_v56  ;;  %v7573_v41 = vadd.f32 %v7425_v29, %v2748_v8  ;;  %v2714_v15 = vmul.f32 %v5412_v33, %v7383_v17  ;;  %v5172_v17 = vld [vmem:[#allocation13 + $0x10] sm:$0xff]  }
 0x796   : > { %v5414_v25 = vpop.eup %5413  ;;  %4775 = vmatpush3.bf16.msra.mxu1 %v5172_v17 }
 0x797   : > { %v7576_v16 = vadd.f32 %v7425_v29, %v2749_v61  ;;  %v2715_v37 = vmul.f32 %v5414_v25, %v7388_v14  ;;  %v2750_v24 = vmul.f32 %v7407_v58, %v2714_v15  ;;  %4776 = vmatprep.subr.bf16.mxu1 %v5173_v32 }
 0x799   : > { %v2808_v39 = vpack.c.bf16 %v7576_v16, %v7573_v41  ;;  %v2751_v11 = vmul.f32 %v7407_v58, %v2715_v37  ;;  %v7589_v14 = vadd.f32 %v7425_v29, %v2750_v24 }
 0x79a   : > { %4777 = vmatpush3.bf16.msra.mxu1 %v5174_v40 }
 0x79b   : > { %3037 = vmatmul.mubr.bf16.gmra.mrb[160].mxu0 %v2808_v39  ;;  %v7586_v1 = vadd.f32 %v7425_v29, %v2751_v11  ;;  %4778 = vmatprep.subr.bf16.mxu1 %v5175_v9 }
 0x79c   : > { %3046 = vmatprep.mubr.bf16.mxu0 %v8465_v63 }
 0x79d   : > { %v2809_v57 = vpack.c.bf16 %v7586_v1, %v7589_v14 }
 0x79e   : > { %4779 = vmatpush3.bf16.msra.mxu1 %v5176_v4 }
 0x79f   : > { %4780 = vmatprep.subr.bf16.mxu1 %v5177_v53 }
 0x7a2   : > { %4781 = vmatpush3.bf16.msra.mxu1 %v5178_v54 }
 0x7a3   : > { %3047 = vmatmul.mubr.bf16.gmra.mrb[164].mxu0 %v2809_v57  ;;  %4782 = vmatprep.subr.bf16.mxu1 %v5179_v49 }
 0x7a4   : > { %3056 = vmatprep.mubr.bf16.mxu0 %v8465_v63 }
 0x7a6   : > { %4783 = vmatpush3.bf16.msra.mxu1 %v5180_v36 }
 0x7a7   : > { %4784 = vmatprep.subr.bf16.mxu1 %v5181_v59 }
 0x7aa   : > { %4785 = vmatpush3.bf16.msra.mxu1 %v5182_v51 }
 0x7d9   : > { %v2577_v43 = vpop.xlane.xlu0 %2576 }
 0x7da   : > { %v2620_v30 = vmul.f32 0.0078125, %v2577_v43 }
 0x7db   : > { %v2579_v56 = vpop.xlane.xlu1 %2578 }
 0x7dc   : > { %v2652_v8 = vadd.f32 1e-05, %v2620_v30  ;;  %v2621_v21 = vmul.f32 0.0078125, %v2579_v56 }
 0x7de   : > { %5415 = vrsqrt.f32 %v2652_v8  ;;  %v2653_v33 = vadd.f32 1e-05, %v2621_v21 }
 0x7e0   : > { %5417 = vrsqrt.f32 %v2653_v33 }
 0x7e1   : > { %v2581_v20 = vpop.xlane.xlu0 %2580 }
 0x7e2   : > { %v2622_v61 = vmul.f32 0.0078125, %v2581_v20 }
 0x7e3   : > { %v2583_v25 = vpop.xlane.xlu1 %2582 }
 0x7e4   : > { %v2654_v15 = vadd.f32 1e-05, %v2622_v61  ;;  %v2623_v37 = vmul.f32 0.0078125, %v2583_v25 }
 0x7e6   : > { %5419 = vrsqrt.f32 %v2654_v15  ;;  %v2655_v39 = vadd.f32 1e-05, %v2623_v37 }
 0x7e8   : > { %v5416_v11 = vpop.eup %5415  ;;  %5421 = vrsqrt.f32 %v2655_v39 }
 0x7e9   : > { %v2585_v24 = vpop.xlane.xlu0 %2584  ;;  %v2716_v50 = vmul.f32 %v5416_v11, %v7395_v13 }
 0x7ea   : > { %v5418_v5 = vpop.eup %5417  ;;  %v2624_v34 = vmul.f32 0.0078125, %v2585_v24 }
 0x7eb   : > { %v2587_v17 = vpop.xlane.xlu1 %2586  ;;  %v2717_v32 = vmul.f32 %v5418_v5, %v7398_v0  ;;  %v2752_v57 = vmul.f32 %v7407_v58, %v2716_v50 }
 0x7ec   : > { %v2656_v40 = vadd.f32 1e-05, %v2624_v34  ;;  %v2625_v9 = vmul.f32 0.0078125, %v2587_v17 }
 0x7ed   : > { %v2753_v4 = vmul.f32 %v7407_v58, %v2717_v32  ;;  %v7599_v54 = vadd.f32 %v7425_v29, %v2752_v57 }
 0x7ee   : > { %5423 = vrsqrt.f32 %v2656_v40  ;;  %v2657_v53 = vadd.f32 1e-05, %v2625_v9 }
 0x7ef   : > { %v7602_v49 = vadd.f32 %v7425_v29, %v2753_v4 }
 0x7f0   : > { %v5420_v13 = vpop.eup %5419  ;;  %5425 = vrsqrt.f32 %v2657_v53 }
 0x7f1   : > { %v2589_v36 = vpop.xlane.xlu0 %2588  ;;  %v2810_v0 = vpack.c.bf16 %v7602_v49, %v7599_v54  ;;  %v2718_v59 = vmul.f32 %v5420_v13, %v7410_v3 }
 0x7f2   : > { %v5422_v51 = vpop.eup %5421  ;;  %v2626_v43 = vmul.f32 0.0078125, %v2589_v36 }
 0x7f3   : > { %3057 = vmatmul.mubr.bf16.gmra.mrb[168].mxu0 %v2810_v0  ;;  %v2591_v30 = vpop.xlane.xlu1 %2590  ;;  %v2719_v56 = vmul.f32 %v5422_v51, %v7414_v2  ;;  %v2754_v8 = vmul.f32 %v7407_v58, %v2718_v59 }
 0x7f4   : > { %v2658_v21 = vadd.f32 1e-05, %v2626_v43  ;;  %v2627_v33 = vmul.f32 0.0078125, %v2591_v30  ;;  %3066 = vmatprep.mubr.bf16.mxu0 %v8465_v63 }
 0x7f5   : > { %v2755_v20 = vmul.f32 %v7407_v58, %v2719_v56  ;;  %v7612_v25 = vadd.f32 %v7425_v29, %v2754_v8 }
 0x7f6   : > { %5427 = vrsqrt.f32 %v2658_v21  ;;  %v2659_v61 = vadd.f32 1e-05, %v2627_v33 }
 0x7f7   : > { %v7615_v3 = vadd.f32 %v7425_v29, %v2755_v20 }
 0x7f8   : > { %v5424_v15 = vpop.eup %5423  ;;  %5429 = vrsqrt.f32 %v2659_v61 }
 0x7f9   : > { %v2593_v37 = vpop.xlane.xlu0 %2592  ;;  %v2811_v2 = vpack.c.bf16 %v7615_v3, %v7612_v25  ;;  %v2720_v39 = vmul.f32 %v5424_v15, %v7435_v6 }
 0x7fa   : > { %v5426_v11 = vpop.eup %5425  ;;  %v2628_v24 = vmul.f32 0.0078125, %v2593_v37 }
 0x7fb   : > { %3067 = vmatmul.mubr.bf16.gmra.mrb[172].mxu0 %v2811_v2  ;;  %v2595_v50 = vpop.xlane.xlu1 %2594  ;;  %v2721_v5 = vmul.f32 %v5426_v11, %v7441_v26  ;;  %v2756_v34 = vmul.f32 %v7407_v58, %v2720_v39 }
 0x7fc   : > { %v2660_v17 = vadd.f32 1e-05, %v2628_v24  ;;  %v2629_v32 = vmul.f32 0.0078125, %v2595_v50  ;;  %3076 = vmatprep.mubr.bf16.mxu0 %v8465_v63 }
 0x7fd   : > { %v2757_v57 = vmul.f32 %v7407_v58, %v2721_v5  ;;  %v7625_v9 = vadd.f32 %v7425_v29, %v2756_v34 }
 0x7fe   : > { %5431 = vrsqrt.f32 %v2660_v17  ;;  %v2661_v40 = vadd.f32 1e-05, %v2629_v32 }
 0x7ff   : > { %v7628_v6 = vadd.f32 %v7425_v29, %v2757_v57 }
 0x800   : > { %v5428_v4 = vpop.eup %5427  ;;  %5433 = vrsqrt.f32 %v2661_v40 }
 0x801   : > { %v2597_v53 = vpop.xlane.xlu0 %2596  ;;  %v2812_v26 = vpack.c.bf16 %v7628_v6, %v7625_v9  ;;  %v2722_v13 = vmul.f32 %v5428_v4, %v7458_v62 }
 0x802   : > { %v5430_v36 = vpop.eup %5429  ;;  %v2630_v0 = vmul.f32 0.0078125, %v2597_v53 }
 0x803   : > { %3077 = vmatmul.mubr.bf16.gmra.mrb[176].mxu0 %v2812_v26  ;;  %v2599_v59 = vpop.xlane.xlu1 %2598  ;;  %v2723_v51 = vmul.f32 %v5430_v36, %v7464_v52  ;;  %v2758_v43 = vmul.f32 %v7407_v58, %v2722_v13 }
 0x804   : > { %v2662_v30 = vadd.f32 1e-05, %v2630_v0  ;;  %v2631_v56 = vmul.f32 0.0078125, %v2599_v59  ;;  %3086 = vmatprep.mubr.bf16.mxu0 %v8465_v63 }
 0x805   : > { %v2759_v8 = vmul.f32 %v7407_v58, %v2723_v51  ;;  %v7638_v33 = vadd.f32 %v7425_v29, %v2758_v43 }
 0x806   : > { %5435 = vrsqrt.f32 %v2662_v30  ;;  %v2663_v21 = vadd.f32 1e-05, %v2631_v56 }
 0x807   : > { %v7641_v62 = vadd.f32 %v7425_v29, %v2759_v8 }
 0x808   : > { %v5432_v20 = vpop.eup %5431  ;;  %5437 = vrsqrt.f32 %v2663_v21 }
 0x809   : > { %v2813_v52 = vpack.c.bf16 %v7641_v62, %v7638_v33  ;;  %v2724_v61 = vmul.f32 %v5432_v20, %v7481_v35 }
 0x80a   : > { %v5434_v15 = vpop.eup %5433 }
 0x80b   : > { %3087 = vmatmul.mubr.bf16.gmra.mrb[180].mxu0 %v2813_v52  ;;  %v2725_v37 = vmul.f32 %v5434_v15, %v7487_v12  ;;  %v2760_v2 = vmul.f32 %v7407_v58, %v2724_v61 }
 0x80c   : > { %3096 = vmatprep.mubr.bf16.mxu0 %v8465_v63 }
 0x80d   : > { %v2761_v39 = vmul.f32 %v7407_v58, %v2725_v37  ;;  %v7651_v11 = vadd.f32 %v7425_v29, %v2760_v2 }
 0x80f   : > { %v7654_v24 = vadd.f32 %v7425_v29, %v2761_v39 }
 0x810   : > { %v5436_v50 = vpop.eup %5435 }
 0x811   : > { %v2814_v35 = vpack.c.bf16 %v7654_v24, %v7651_v11  ;;  %v2726_v5 = vmul.f32 %v5436_v50, %v7504_v42  ;;  %v2832_v42 = vld [vmem:[%s8466_s19] sm:$0x3]  ;;  %s4226_s19 = sshll.u32 %s6976_s25, 4  ;;  %s5844_s25 = smov [#allocation16]   ;;  %s8147_s19 = int_to_ptr.vmem [resolvable:$true] %s4226_s19 }
 0x812   : > { %v5438_v34 = vpop.eup %5437  ;;  %s5705_s21 = scalar_lea.vmem %s8147_s19, 4096  ;;  %s5709_s26 = sshll.u32 %s5844_s25, 4  ;;  %s5710_s26 = int_to_ptr.vmem [resolvable:$false] %s5709_s26 }
 0x813   : > { %3097 = vmatmul.mubr.bf16.gmra.mrb[184].mxu0 %v2814_v35  ;;  %v2727_v12 = vmul.f32 %v5438_v34, %v7510_v47  ;;  %v2762_v17 = vmul.f32 %v7407_v58, %v2726_v5  ;;  %v8467_v47 = vld [vmem:[#allocation25_spill] sm:$0xff]  ;;  %p5706_p6 = scmp.ne.s32.totalorder %s8147_s19, %s5705_s21  ;;  %s5711_s7 = scalar_lea.vmem %s5710_s26, 8192 }
 0x814   : > { %3106 = vmatprep.mubr.bf16.mxu0 %v8465_v63  ;;  %v8468_v53 = vsub.s32 0, %v8467_v47  ;;  %v8469_v63 = vsub.s32 1, %v8467_v47  ;;  %p5712_p2 = scmp.lt.s32.totalorder %s8147_s19, %s5710_s26  ;;  %p5713_p4 = scmp.lt.s32.totalorder %s5711_s7, %s5705_s21 }
 0x815   : > { %v2763_v32 = vmul.f32 %v7407_v58, %v2727_v12  ;;  %v7664_v57 = vadd.f32 %v7425_v29, %v2762_v17  ;;  %p5707_p10 = pnand %p5706_p6, %p8472_p5 }
 0x816   : > { %v7676_v26 = vrot.slane %v2832_v42, %v8468_v53  ;;  %v7680_v58 = vrot.slane %v2832_v42, %v8469_v63  ;;  %p5714_p9 = por %p5713_p4, %p5712_p2 }
 0x817   : > { %v7667_v40 = vadd.f32 %v7425_v29, %v2763_v32  ;;  %p5708_p11 = pneg %p5707_p10 }
 0x819   : > { %v2815_v4 = vpack.c.bf16 %v7667_v40, %v7664_v57  ;;  %p5715_p8 = pnand %p5714_p9, %p5708_p11 }
 0x81b   : > { %3107 = vmatmul.mubr.bf16.gmra.mrb[188].mxu0 %v2815_v4 }
 0x82e   : > { %v2958_v13 = vpop.f32.mrb[128].mxu0 }
 0x82f   : > { %v2959_v29 = vadd.f32 %v2958_v13, %v7676_v26  ;;  %v2960_v36 = vpop.f32.mrb[129].mxu0 }
 0x830   : > { %v2961_v0 = vadd.f32 %v2960_v36, %v7680_v58  ;;  %v2962_v59 = vpop.f32.mrb[130].mxu0 }
 0x831   : > { %v2963_v51 = vadd.f32 %v2962_v59, %v7676_v26  ;;  %v2964_v43 = vpop.f32.mrb[131].mxu0  ;;  %v3117_v56 = vmax.f32 %v2959_v29, 0.0 }
 0x832   : > { %v2965_v30 = vadd.f32 %v2964_v43, %v7680_v58  ;;  %v3118_v21 = vmax.f32 %v2961_v0, 0.0 }
 0x833   : > { %v3119_v8 = vmax.f32 %v2963_v51, 0.0 }
 0x834   : > { %v3120_v20 = vmax.f32 %v2965_v30, 0.0 }
 0x835   : > { %v3181_v52 = vpack.c.bf16 %v3119_v8, %v3117_v56 }
 0x836   : > { %v3182_v61 = vpack.c.bf16 %v3120_v20, %v3118_v21  ;;  %v2968_v15 = vpop.f32.mrb[132].mxu0 }
 0x837   : > { %v2969_v37 = vadd.f32 %v2968_v15, %v7676_v26  ;;  %v2970_v2 = vpop.f32.mrb[133].mxu0 }
 0x838   : > { %v2971_v39 = vadd.f32 %v2970_v2, %v7680_v58  ;;  %v2972_v50 = vpop.f32.mrb[134].mxu0  ;;  %3377 = vmatprep.mubr.bf16.mxu1 %v3182_v61 }
 0x839   : > { %v2973_v35 = vadd.f32 %v2972_v50, %v7676_v26  ;;  %v2974_v5 = vpop.f32.mrb[135].mxu0  ;;  %3378 = vmatmul.mubr.bf16.vlgmr.msra.gmra.mrb[128].mxu1 %v3181_v52  ;;  %v3121_v12 = vmax.f32 %v2969_v37, 0.0 }
 0x83a   : > { %v2975_v34 = vadd.f32 %v2974_v5, %v7680_v58  ;;  %v3122_v32 = vmax.f32 %v2971_v39, 0.0 }
 0x83b   : > { %v3123_v17 = vmax.f32 %v2973_v35, 0.0 }
 0x83c   : > { %v3124_v4 = vmax.f32 %v2975_v34, 0.0 }
 0x83d   : > { %v3183_v42 = vpack.c.bf16 %v3123_v17, %v3121_v12 }
 0x83e   : > { %v3184_v47 = vpack.c.bf16 %v3124_v4, %v3122_v32  ;;  %v2978_v53 = vpop.f32.mrb[136].mxu0 }
 0x83f   : > { %v2979_v63 = vadd.f32 %v2978_v53, %v7676_v26  ;;  %v2980_v13 = vpop.f32.mrb[137].mxu0 }
 0x840   : > { %v2981_v29 = vadd.f32 %v2980_v13, %v7680_v58  ;;  %v2982_v36 = vpop.f32.mrb[138].mxu0  ;;  %3385 = vmatprep.mubr.bf16.mxu1 %v3184_v47 }
 0x841   : > { %v2983_v0 = vadd.f32 %v2982_v36, %v7676_v26  ;;  %v2984_v59 = vpop.f32.mrb[139].mxu0  ;;  %3386 = vmatmul.mubr.bf16.gmra.mrb[132].mxu1 %v3183_v42  ;;  %v3125_v43 = vmax.f32 %v2979_v63, 0.0 }
 0x842   : > { %v2985_v51 = vadd.f32 %v2984_v59, %v7680_v58  ;;  %v3126_v56 = vmax.f32 %v2981_v29, 0.0 }
 0x843   : > { %v3127_v30 = vmax.f32 %v2983_v0, 0.0 }
 0x844   : > { %v3128_v8 = vmax.f32 %v2985_v51, 0.0 }
 0x845   : > { %v3185_v21 = vpack.c.bf16 %v3127_v30, %v3125_v43 }
 0x846   : > { %v3186_v20 = vpack.c.bf16 %v3128_v8, %v3126_v56  ;;  %v2988_v52 = vpop.f32.mrb[140].mxu0 }
 0x847   : > { %v2989_v61 = vadd.f32 %v2988_v52, %v7676_v26  ;;  %v2990_v15 = vpop.f32.mrb[141].mxu0 }
 0x848   : > { %v2991_v37 = vadd.f32 %v2990_v15, %v7680_v58  ;;  %v2992_v2 = vpop.f32.mrb[142].mxu0  ;;  %3393 = vmatprep.mubr.bf16.mxu1 %v3186_v20 }
 0x849   : > { %v2993_v39 = vadd.f32 %v2992_v2, %v7676_v26  ;;  %v2994_v50 = vpop.f32.mrb[143].mxu0  ;;  %3394 = vmatmul.mubr.bf16.gmra.mrb[136].mxu1 %v3185_v21  ;;  %v3129_v5 = vmax.f32 %v2989_v61, 0.0 }
 0x84a   : > { %v2995_v35 = vadd.f32 %v2994_v50, %v7680_v58  ;;  %v3130_v12 = vmax.f32 %v2991_v37, 0.0 }
 0x84b   : > { %v3131_v34 = vmax.f32 %v2993_v39, 0.0 }
 0x84c   : > { %v3132_v17 = vmax.f32 %v2995_v35, 0.0 }
 0x84d   : > { %v3187_v32 = vpack.c.bf16 %v3131_v34, %v3129_v5 }
 0x84e   : > { %v3188_v4 = vpack.c.bf16 %v3132_v17, %v3130_v12  ;;  %v2998_v42 = vpop.f32.mrb[144].mxu0 }
 0x84f   : > { %v2999_v47 = vadd.f32 %v2998_v42, %v7676_v26  ;;  %v3000_v53 = vpop.f32.mrb[145].mxu0 }
 0x850   : > { %v3001_v63 = vadd.f32 %v3000_v53, %v7680_v58  ;;  %v3002_v13 = vpop.f32.mrb[146].mxu0  ;;  %3401 = vmatprep.mubr.bf16.mxu1 %v3188_v4 }
 0x851   : > { %v3003_v29 = vadd.f32 %v3002_v13, %v7676_v26  ;;  %v3004_v36 = vpop.f32.mrb[147].mxu0  ;;  %3402 = vmatmul.mubr.bf16.gmra.mrb[140].mxu1 %v3187_v32  ;;  %v3133_v59 = vmax.f32 %v2999_v47, 0.0 }
 0x852   : > { %v3005_v0 = vadd.f32 %v3004_v36, %v7680_v58  ;;  %v3134_v43 = vmax.f32 %v3001_v63, 0.0 }
 0x853   : > { %v3135_v51 = vmax.f32 %v3003_v29, 0.0 }
 0x854   : > { %v3136_v30 = vmax.f32 %v3005_v0, 0.0 }
 0x855   : > { %v3189_v56 = vpack.c.bf16 %v3135_v51, %v3133_v59 }
 0x856   : > { %v3190_v8 = vpack.c.bf16 %v3136_v30, %v3134_v43  ;;  %v3008_v21 = vpop.f32.mrb[148].mxu0 }
 0x857   : > { %v3009_v20 = vadd.f32 %v3008_v21, %v7676_v26  ;;  %v3010_v52 = vpop.f32.mrb[149].mxu0 }
 0x858   : > { %v3011_v61 = vadd.f32 %v3010_v52, %v7680_v58  ;;  %v3012_v15 = vpop.f32.mrb[150].mxu0  ;;  %3409 = vmatprep.mubr.bf16.mxu1 %v3190_v8 }
 0x859   : > { %v3013_v37 = vadd.f32 %v3012_v15, %v7676_v26  ;;  %v3014_v2 = vpop.f32.mrb[151].mxu0  ;;  %3410 = vmatmul.mubr.bf16.gmra.mrb[144].mxu1 %v3189_v56  ;;  %v3137_v50 = vmax.f32 %v3009_v20, 0.0 }
 0x85a   : > { %v3015_v39 = vadd.f32 %v3014_v2, %v7680_v58  ;;  %v3138_v5 = vmax.f32 %v3011_v61, 0.0 }
 0x85b   : > { %v3139_v35 = vmax.f32 %v3013_v37, 0.0 }
 0x85c   : > { %v3140_v34 = vmax.f32 %v3015_v39, 0.0 }
 0x85d   : > { %v3191_v12 = vpack.c.bf16 %v3139_v35, %v3137_v50 }
 0x85e   : > { %v3192_v17 = vpack.c.bf16 %v3140_v34, %v3138_v5  ;;  %v3018_v32 = vpop.f32.mrb[152].mxu0 }
 0x85f   : > { %v3019_v4 = vadd.f32 %v3018_v32, %v7676_v26  ;;  %v3020_v42 = vpop.f32.mrb[153].mxu0 }
 0x860   : > { %v3021_v47 = vadd.f32 %v3020_v42, %v7680_v58  ;;  %v3022_v53 = vpop.f32.mrb[154].mxu0  ;;  %3417 = vmatprep.mubr.bf16.mxu1 %v3192_v17 }
 0x861   : > { %v3023_v63 = vadd.f32 %v3022_v53, %v7676_v26  ;;  %v3024_v13 = vpop.f32.mrb[155].mxu0  ;;  %3418 = vmatmul.mubr.bf16.gmra.mrb[148].mxu1 %v3191_v12  ;;  %v3141_v36 = vmax.f32 %v3019_v4, 0.0 }
 0x862   : > { %v3025_v29 = vadd.f32 %v3024_v13, %v7680_v58  ;;  %v3142_v59 = vmax.f32 %v3021_v47, 0.0 }
 0x863   : > { %v3143_v0 = vmax.f32 %v3023_v63, 0.0 }
 0x864   : > { %v3144_v51 = vmax.f32 %v3025_v29, 0.0 }
 0x865   : > { %v3193_v43 = vpack.c.bf16 %v3143_v0, %v3141_v36 }
 0x866   : > { %v3194_v30 = vpack.c.bf16 %v3144_v51, %v3142_v59  ;;  %v3028_v56 = vpop.f32.mrb[156].mxu0 }
 0x867   : > { %v3029_v8 = vadd.f32 %v3028_v56, %v7676_v26  ;;  %v3030_v21 = vpop.f32.mrb[157].mxu0 }
 0x868   : > { %v3031_v20 = vadd.f32 %v3030_v21, %v7680_v58  ;;  %v3032_v52 = vpop.f32.mrb[158].mxu0  ;;  %3425 = vmatprep.mubr.bf16.mxu1 %v3194_v30 }
 0x869   : > { %v3033_v61 = vadd.f32 %v3032_v52, %v7676_v26  ;;  %v3034_v15 = vpop.f32.mrb[159].mxu0  ;;  %3426 = vmatmul.mubr.bf16.gmra.mrb[152].mxu1 %v3193_v43  ;;  %v3145_v2 = vmax.f32 %v3029_v8, 0.0 }
 0x86a   : > { %v3035_v37 = vadd.f32 %v3034_v15, %v7680_v58  ;;  %v3146_v50 = vmax.f32 %v3031_v20, 0.0 }
 0x86b   : > { %v3147_v39 = vmax.f32 %v3033_v61, 0.0 }
 0x86c   : > { %v3148_v35 = vmax.f32 %v3035_v37, 0.0 }
 0x86d   : > { %v3195_v5 = vpack.c.bf16 %v3147_v39, %v3145_v2 }
 0x86e   : > { %v3196_v34 = vpack.c.bf16 %v3148_v35, %v3146_v50  ;;  %v3038_v12 = vpop.f32.mrb[160].mxu0 }
 0x86f   : > { %v3039_v17 = vadd.f32 %v3038_v12, %v7676_v26  ;;  %v3040_v32 = vpop.f32.mrb[161].mxu0 }
 0x870   : > { %v3041_v4 = vadd.f32 %v3040_v32, %v7680_v58  ;;  %v3042_v42 = vpop.f32.mrb[162].mxu0  ;;  %3433 = vmatprep.mubr.bf16.mxu1 %v3196_v34 }
 0x871   : > { %v3043_v47 = vadd.f32 %v3042_v42, %v7676_v26  ;;  %v3044_v53 = vpop.f32.mrb[163].mxu0  ;;  %3434 = vmatmul.mubr.bf16.gmra.mrb[156].mxu1 %v3195_v5  ;;  %v3149_v13 = vmax.f32 %v3039_v17, 0.0 }
 0x872   : > { %v3045_v63 = vadd.f32 %v3044_v53, %v7680_v58  ;;  %v3150_v36 = vmax.f32 %v3041_v4, 0.0 }
 0x873   : > { %v3151_v29 = vmax.f32 %v3043_v47, 0.0 }
 0x874   : > { %v3152_v0 = vmax.f32 %v3045_v63, 0.0 }
 0x875   : > { %v3197_v59 = vpack.c.bf16 %v3151_v29, %v3149_v13 }
 0x876   : > { %v3198_v51 = vpack.c.bf16 %v3152_v0, %v3150_v36  ;;  %v3048_v43 = vpop.f32.mrb[164].mxu0 }
 0x877   : > { %v3049_v30 = vadd.f32 %v3048_v43, %v7676_v26  ;;  %v3050_v56 = vpop.f32.mrb[165].mxu0 }
 0x878   : > { %v3051_v8 = vadd.f32 %v3050_v56, %v7680_v58  ;;  %v3052_v21 = vpop.f32.mrb[166].mxu0  ;;  %3441 = vmatprep.mubr.bf16.mxu1 %v3198_v51 }
 0x879   : > { %v3053_v20 = vadd.f32 %v3052_v21, %v7676_v26  ;;  %v3054_v52 = vpop.f32.mrb[167].mxu0  ;;  %3442 = vmatmul.mubr.bf16.gmra.mrb[160].mxu1 %v3197_v59  ;;  %v3153_v15 = vmax.f32 %v3049_v30, 0.0 }
 0x87a   : > { %v3055_v61 = vadd.f32 %v3054_v52, %v7680_v58  ;;  %v3154_v2 = vmax.f32 %v3051_v8, 0.0 }
 0x87b   : > { %v3155_v37 = vmax.f32 %v3053_v20, 0.0 }
 0x87c   : > { %v3156_v39 = vmax.f32 %v3055_v61, 0.0 }
 0x87d   : > { %v3199_v50 = vpack.c.bf16 %v3155_v37, %v3153_v15 }
 0x87e   : > { %v3200_v35 = vpack.c.bf16 %v3156_v39, %v3154_v2 }
 0x880   : > { %3449 = vmatprep.mubr.bf16.mxu1 %v3200_v35 }
 0x881   : > { %3450 = vmatmul.mubr.bf16.gmra.mrb[164].mxu1 %v3199_v50 }
 0x8c6   : > { %v3058_v5 = vpop.f32.mrb[168].mxu0 }
 0x8c7   : > { %v3059_v34 = vadd.f32 %v3058_v5, %v7676_v26  ;;  %v3060_v12 = vpop.f32.mrb[169].mxu0 }
 0x8c8   : > { %v3061_v17 = vadd.f32 %v3060_v12, %v7680_v58  ;;  %v3062_v32 = vpop.f32.mrb[170].mxu0 }
 0x8c9   : > { %v3063_v4 = vadd.f32 %v3062_v32, %v7676_v26  ;;  %v3064_v42 = vpop.f32.mrb[171].mxu0  ;;  %v3157_v53 = vmax.f32 %v3059_v34, 0.0 }
 0x8ca   : > { %v3065_v47 = vadd.f32 %v3064_v42, %v7680_v58  ;;  %v3158_v13 = vmax.f32 %v3061_v17, 0.0 }
 0x8cb   : > { %v3159_v63 = vmax.f32 %v3063_v4, 0.0 }
 0x8cc   : > { %v3160_v29 = vmax.f32 %v3065_v47, 0.0 }
 0x8cd   : > { %v3201_v36 = vpack.c.bf16 %v3159_v63, %v3157_v53 }
 0x8ce   : > { %v3202_v0 = vpack.c.bf16 %v3160_v29, %v3158_v13  ;;  %v3068_v59 = vpop.f32.mrb[172].mxu0 }
 0x8cf   : > { %v3069_v51 = vadd.f32 %v3068_v59, %v7676_v26  ;;  %v3070_v43 = vpop.f32.mrb[173].mxu0 }
 0x8d0   : > { %v3071_v30 = vadd.f32 %v3070_v43, %v7680_v58  ;;  %v3072_v56 = vpop.f32.mrb[174].mxu0  ;;  %3457 = vmatprep.mubr.bf16.mxu1 %v3202_v0 }
 0x8d1   : > { %v3073_v8 = vadd.f32 %v3072_v56, %v7676_v26  ;;  %v3074_v21 = vpop.f32.mrb[175].mxu0  ;;  %3458 = vmatmul.mubr.bf16.gmra.mrb[168].mxu1 %v3201_v36  ;;  %v3161_v52 = vmax.f32 %v3069_v51, 0.0 }
 0x8d2   : > { %v3075_v20 = vadd.f32 %v3074_v21, %v7680_v58  ;;  %v3162_v15 = vmax.f32 %v3071_v30, 0.0 }
 0x8d3   : > { %v3163_v61 = vmax.f32 %v3073_v8, 0.0 }
 0x8d4   : > { %v3164_v37 = vmax.f32 %v3075_v20, 0.0 }
 0x8d5   : > { %v3203_v2 = vpack.c.bf16 %v3163_v61, %v3161_v52 }
 0x8d6   : > { %v3204_v39 = vpack.c.bf16 %v3164_v37, %v3162_v15  ;;  %v3078_v50 = vpop.f32.mrb[176].mxu0 }
 0x8d7   : > { %v3079_v35 = vadd.f32 %v3078_v50, %v7676_v26  ;;  %v3080_v5 = vpop.f32.mrb[177].mxu0 }
 0x8d8   : > { %v3081_v34 = vadd.f32 %v3080_v5, %v7680_v58  ;;  %v3082_v12 = vpop.f32.mrb[178].mxu0  ;;  %3465 = vmatprep.mubr.bf16.mxu1 %v3204_v39 }
 0x8d9   : > { %v3083_v17 = vadd.f32 %v3082_v12, %v7676_v26  ;;  %v3084_v32 = vpop.f32.mrb[179].mxu0  ;;  %3466 = vmatmul.mubr.bf16.gmra.mrb[172].mxu1 %v3203_v2  ;;  %v3165_v42 = vmax.f32 %v3079_v35, 0.0 }
 0x8da   : > { %v3085_v4 = vadd.f32 %v3084_v32, %v7680_v58  ;;  %v3166_v53 = vmax.f32 %v3081_v34, 0.0 }
 0x8db   : > { %v3167_v47 = vmax.f32 %v3083_v17, 0.0 }
 0x8dc   : > { %v3168_v63 = vmax.f32 %v3085_v4, 0.0 }
 0x8dd   : > { %v3205_v13 = vpack.c.bf16 %v3167_v47, %v3165_v42 }
 0x8de   : > { %v3206_v29 = vpack.c.bf16 %v3168_v63, %v3166_v53  ;;  %v3088_v36 = vpop.f32.mrb[180].mxu0 }
 0x8df   : > { %v3089_v0 = vadd.f32 %v3088_v36, %v7676_v26  ;;  %v3090_v59 = vpop.f32.mrb[181].mxu0 }
 0x8e0   : > { %v3091_v51 = vadd.f32 %v3090_v59, %v7680_v58  ;;  %v3092_v43 = vpop.f32.mrb[182].mxu0  ;;  %3473 = vmatprep.mubr.bf16.mxu1 %v3206_v29 }
 0x8e1   : > { %v3093_v30 = vadd.f32 %v3092_v43, %v7676_v26  ;;  %v3094_v56 = vpop.f32.mrb[183].mxu0  ;;  %3474 = vmatmul.mubr.bf16.gmra.mrb[176].mxu1 %v3205_v13  ;;  %v3169_v21 = vmax.f32 %v3089_v0, 0.0 }
 0x8e2   : > { %v3095_v8 = vadd.f32 %v3094_v56, %v7680_v58  ;;  %v3170_v52 = vmax.f32 %v3091_v51, 0.0 }
 0x8e3   : > { %v3171_v20 = vmax.f32 %v3093_v30, 0.0 }
 0x8e4   : > { %v3172_v61 = vmax.f32 %v3095_v8, 0.0 }
 0x8e5   : > { %v3207_v15 = vpack.c.bf16 %v3171_v20, %v3169_v21 }
 0x8e6   : > { %v3208_v37 = vpack.c.bf16 %v3172_v61, %v3170_v52  ;;  %v3098_v2 = vpop.f32.mrb[184].mxu0 }
 0x8e7   : > { %v3099_v39 = vadd.f32 %v3098_v2, %v7676_v26  ;;  %v3100_v50 = vpop.f32.mrb[185].mxu0 }
 0x8e8   : > { %v3101_v35 = vadd.f32 %v3100_v50, %v7680_v58  ;;  %v3102_v5 = vpop.f32.mrb[186].mxu0  ;;  %3481 = vmatprep.mubr.bf16.mxu1 %v3208_v37  ;;  %v7749_v37 = vld [vmem:[%s8318_s8 + $0x2] ss:$0 sm:$0xff] }
 0x8e9   : > { %v3103_v34 = vadd.f32 %v3102_v5, %v7676_v26  ;;  %v3104_v12 = vpop.f32.mrb[187].mxu0  ;;  %3482 = vmatmul.mubr.bf16.gmra.mrb[180].mxu1 %v3207_v15  ;;  %v3173_v32 = vmax.f32 %v3099_v39, 0.0 }
 0x8ea   : > { %v3105_v17 = vadd.f32 %v3104_v12, %v7680_v58  ;;  %v3174_v42 = vmax.f32 %v3101_v35, 0.0 }
 0x8eb   : > { %v3175_v4 = vmax.f32 %v3103_v34, 0.0 }
 0x8ec   : > { %v3176_v47 = vmax.f32 %v3105_v17, 0.0 }
 0x8ed   : > { %v3209_v53 = vpack.c.bf16 %v3175_v4, %v3173_v32 }
 0x8ee   : > { %v3210_v63 = vpack.c.bf16 %v3176_v47, %v3174_v42  ;;  %v3108_v13 = vpop.f32.mrb[188].mxu0 }
 0x8ef   : > { %v3109_v29 = vadd.f32 %v3108_v13, %v7676_v26  ;;  %v3110_v36 = vpop.f32.mrb[189].mxu0 }
 0x8f0   : > { %v3111_v0 = vadd.f32 %v3110_v36, %v7680_v58  ;;  %v3112_v59 = vpop.f32.mrb[190].mxu0  ;;  %3489 = vmatprep.mubr.bf16.mxu1 %v3210_v63 }
 0x8f1   : > { %v3113_v51 = vadd.f32 %v3112_v59, %v7676_v26  ;;  %v3114_v43 = vpop.f32.mrb[191].mxu0  ;;  %3490 = vmatmul.mubr.bf16.gmra.mrb[184].mxu1 %v3209_v53  ;;  %v3177_v56 = vmax.f32 %v3109_v29, 0.0 }
 0x8f2   : > { %v3115_v30 = vadd.f32 %v3114_v43, %v7680_v58  ;;  %v3178_v21 = vmax.f32 %v3111_v0, 0.0 }
 0x8f3   : > { %v3179_v8 = vmax.f32 %v3113_v51, 0.0 }
 0x8f4   : > { %v3180_v20 = vmax.f32 %v3115_v30, 0.0 }
 0x8f5   : > { %v3211_v52 = vpack.c.bf16 %v3179_v8, %v3177_v56 }
 0x8f6   : > { %v3212_v61 = vpack.c.bf16 %v3180_v20, %v3178_v21 }
 0x8f8   : > { %3497 = vmatprep.mubr.bf16.mxu1 %v3212_v61 }
 0x8f9   : > { %3498 = vmatmul.mubr.bf16.gmra.mrb[188].mxu1 %v3211_v52 }
 0x90c   : > { %v4786_v15 = vpop.f32.mrb[128].mxu1 }
 0x90d   : > { %v4787_v2 = vpop.f32.mrb[129].mxu1 }
 0x90e   : > { %v4788_v26 = vadd.f32 %v4787_v2, %v4786_v15  ;;  %v4789_v39 = vpop.f32.mrb[130].mxu1 }
 0x90f   : > { %v4790_v50 = vpop.f32.mrb[131].mxu1 }
 0x910   : > { %v3380_v58 = vadd.f32 %v4788_v26, %v7749_v37  ;;  %v4791_v35 = vadd.f32 %v4790_v50, %v4789_v39 }
 0x912   : > { %v3383_v5 = vadd.f32 %v4791_v35, %v7749_v37  ;;  %v7754_v34 = vadd.f32 %v3380_v58, %v7429_v19 }
 0x914   : > { %3538 = vadd.xlane.f32.xlu0 %v7754_v34  ;;  %v4792_v12 = vpop.f32.mrb[132].mxu1  ;;  %v7758_v17 = vadd.f32 %v3383_v5, %v7432_v23 }
 0x915   : > { %v4793_v32 = vpop.f32.mrb[133].mxu1 }
 0x916   : > { %v4794_v4 = vadd.f32 %v4793_v32, %v4792_v12  ;;  %v4795_v42 = vpop.f32.mrb[134].mxu1  ;;  %3540 = vadd.xlane.f32.xlu1 %v7758_v17 }
 0x917   : > { %v4796_v47 = vpop.f32.mrb[135].mxu1 }
 0x918   : > { %v3388_v53 = vadd.f32 %v4794_v4, %v7749_v37  ;;  %v4797_v63 = vadd.f32 %v4796_v47, %v4795_v42 }
 0x91a   : > { %v3391_v13 = vadd.f32 %v4797_v63, %v7749_v37  ;;  %v7764_v19 = vadd.f32 %v3388_v53, %v7452_v31 }
 0x91c   : > { %3542 = vadd.xlane.f32.xlu0 %v7764_v19  ;;  %v4798_v29 = vpop.f32.mrb[136].mxu1  ;;  %v7768_v23 = vadd.f32 %v3391_v13, %v7455_v46 }
 0x91d   : > { %v4799_v36 = vpop.f32.mrb[137].mxu1 }
 0x91e   : > { %v4800_v0 = vadd.f32 %v4799_v36, %v4798_v29  ;;  %v4801_v59 = vpop.f32.mrb[138].mxu1  ;;  %3544 = vadd.xlane.f32.xlu1 %v7768_v23 }
 0x91f   : > { %v4802_v51 = vpop.f32.mrb[139].mxu1 }
 0x920   : > { %v3396_v43 = vadd.f32 %v4800_v0, %v7749_v37  ;;  %v4803_v30 = vadd.f32 %v4802_v51, %v4801_v59 }
 0x922   : > { %v3399_v56 = vadd.f32 %v4803_v30, %v7749_v37  ;;  %v7774_v31 = vadd.f32 %v3396_v43, %v7475_v10 }
 0x924   : > { %3546 = vadd.xlane.f32.xlu0 %v7774_v31  ;;  %v4804_v8 = vpop.f32.mrb[140].mxu1  ;;  %v7778_v46 = vadd.f32 %v3399_v56, %v7478_v27 }
 0x925   : > { %v4805_v21 = vpop.f32.mrb[141].mxu1 }
 0x926   : > { %v4806_v20 = vadd.f32 %v4805_v21, %v4804_v8  ;;  %v4807_v52 = vpop.f32.mrb[142].mxu1  ;;  %3548 = vadd.xlane.f32.xlu1 %v7778_v46 }
 0x927   : > { %v4808_v61 = vpop.f32.mrb[143].mxu1 }
 0x928   : > { %v3404_v15 = vadd.f32 %v4806_v20, %v7749_v37  ;;  %v4809_v2 = vadd.f32 %v4808_v61, %v4807_v52 }
 0x92a   : > { %v3407_v26 = vadd.f32 %v4809_v2, %v7749_v37  ;;  %v7784_v10 = vadd.f32 %v3404_v15, %v7498_v7 }
 0x92c   : > { %3550 = vadd.xlane.f32.xlu0 %v7784_v10  ;;  %v4810_v39 = vpop.f32.mrb[144].mxu1  ;;  %v7788_v27 = vadd.f32 %v3407_v26, %v7501_v45 }
 0x92d   : > { %v4811_v50 = vpop.f32.mrb[145].mxu1 }
 0x92e   : > { %v4812_v58 = vadd.f32 %v4811_v50, %v4810_v39  ;;  %v4813_v35 = vpop.f32.mrb[146].mxu1  ;;  %3552 = vadd.xlane.f32.xlu1 %v7788_v27 }
 0x92f   : > { %v4814_v5 = vpop.f32.mrb[147].mxu1 }
 0x930   : > { %v3412_v12 = vadd.f32 %v4812_v58, %v7749_v37  ;;  %v4815_v32 = vadd.f32 %v4814_v5, %v4813_v35 }
 0x932   : > { %v3415_v4 = vadd.f32 %v4815_v32, %v7749_v37  ;;  %v7794_v7 = vadd.f32 %v3412_v12, %v7521_v18 }
 0x934   : > { %3554 = vadd.xlane.f32.xlu0 %v7794_v7  ;;  %v4816_v42 = vpop.f32.mrb[148].mxu1  ;;  %v7798_v45 = vadd.f32 %v3415_v4, %v7524_v38 }
 0x935   : > { %v4817_v47 = vpop.f32.mrb[149].mxu1 }
 0x936   : > { %v4818_v53 = vadd.f32 %v4817_v47, %v4816_v42  ;;  %v4819_v63 = vpop.f32.mrb[150].mxu1  ;;  %3556 = vadd.xlane.f32.xlu1 %v7798_v45 }
 0x937   : > { %v4820_v13 = vpop.f32.mrb[151].mxu1 }
 0x938   : > { %v3420_v29 = vadd.f32 %v4818_v53, %v7749_v37  ;;  %v4821_v36 = vadd.f32 %v4820_v13, %v4819_v63 }
 0x93a   : > { %v3423_v0 = vadd.f32 %v4821_v36, %v7749_v37  ;;  %v7804_v18 = vadd.f32 %v3420_v29, %v7534_v22 }
 0x93c   : > { %3558 = vadd.xlane.f32.xlu0 %v7804_v18  ;;  %v4822_v59 = vpop.f32.mrb[152].mxu1  ;;  %v7808_v38 = vadd.f32 %v3423_v0, %v7537_v48 }
 0x93d   : > { %v4823_v51 = vpop.f32.mrb[153].mxu1 }
 0x93e   : > { %v4824_v43 = vadd.f32 %v4823_v51, %v4822_v59  ;;  %3560 = vadd.xlane.f32.xlu1 %v7808_v38  ;;  %v4825_v30 = vpop.f32.mrb[154].mxu1 }
 0x93f   : > { %v4826_v56 = vpop.f32.mrb[155].mxu1 }
 0x940   : > { %v3428_v8 = vadd.f32 %v4824_v43, %v7749_v37  ;;  %v4827_v21 = vadd.f32 %v4826_v56, %v4825_v30 }
 0x942   : > { %v3431_v20 = vadd.f32 %v4827_v21, %v7749_v37  ;;  %v7814_v22 = vadd.f32 %v3428_v8, %v7547_v44 }
 0x944   : > { %3562 = vadd.xlane.f32.xlu0 %v7814_v22  ;;  %v4828_v52 = vpop.f32.mrb[156].mxu1  ;;  %v7818_v48 = vadd.f32 %v3431_v20, %v7550_v60 }
 0x945   : > { %v4829_v61 = vpop.f32.mrb[157].mxu1 }
 0x946   : > { %v4830_v15 = vadd.f32 %v4829_v61, %v4828_v52  ;;  %3564 = vadd.xlane.f32.xlu1 %v7818_v48  ;;  %v4831_v2 = vpop.f32.mrb[158].mxu1 }
 0x947   : > { %v4832_v26 = vpop.f32.mrb[159].mxu1 }
 0x948   : > { %v3436_v39 = vadd.f32 %v4830_v15, %v7749_v37  ;;  %v4833_v50 = vadd.f32 %v4832_v26, %v4831_v2 }
 0x94a   : > { %v3439_v58 = vadd.f32 %v4833_v50, %v7749_v37  ;;  %v7824_v44 = vadd.f32 %v3436_v39, %v7563_v28 }
 0x94c   : > { %3566 = vadd.xlane.f32.xlu0 %v7824_v44  ;;  %v4834_v35 = vpop.f32.mrb[160].mxu1  ;;  %v7828_v60 = vadd.f32 %v3439_v58, %v7560_v55 }
 0x94d   : > { %v4835_v5 = vpop.f32.mrb[161].mxu1 }
 0x94e   : > { %v4836_v12 = vadd.f32 %v4835_v5, %v4834_v35  ;;  %3568 = vadd.xlane.f32.xlu1 %v7828_v60  ;;  %v4837_v32 = vpop.f32.mrb[162].mxu1 }
 0x94f   : > { %v4838_v4 = vpop.f32.mrb[163].mxu1 }
 0x950   : > { %v3444_v42 = vadd.f32 %v4836_v12, %v7749_v37  ;;  %v4839_v47 = vadd.f32 %v4838_v4, %v4837_v32 }
 0x952   : > { %v3447_v53 = vadd.f32 %v4839_v47, %v7749_v37  ;;  %v7834_v28 = vadd.f32 %v3444_v42, %v7573_v41 }
 0x954   : > { %3570 = vadd.xlane.f32.xlu0 %v7834_v28  ;;  %v4840_v63 = vpop.f32.mrb[164].mxu1  ;;  %v7838_v55 = vadd.f32 %v3447_v53, %v7576_v16 }
 0x955   : > { %v4841_v13 = vpop.f32.mrb[165].mxu1 }
 0x956   : > { %v4842_v29 = vadd.f32 %v4841_v13, %v4840_v63  ;;  %3572 = vadd.xlane.f32.xlu1 %v7838_v55  ;;  %v4843_v36 = vpop.f32.mrb[166].mxu1 }
 0x957   : > { %v4844_v0 = vpop.f32.mrb[167].mxu1 }
 0x958   : > { %v3452_v59 = vadd.f32 %v4842_v29, %v7749_v37  ;;  %v4845_v51 = vadd.f32 %v4844_v0, %v4843_v36 }
 0x95a   : > { %v3455_v43 = vadd.f32 %v4845_v51, %v7749_v37  ;;  %v7844_v41 = vadd.f32 %v3452_v59, %v7589_v14 }
 0x95c   : > { %3574 = vadd.xlane.f32.xlu0 %v7844_v41  ;;  %v7848_v30 = vadd.f32 %v3455_v43, %v7586_v1 }
 0x95e   : > { %3576 = vadd.xlane.f32.xlu1 %v7848_v30 }
 0x9a4   : > { %v4846_v16 = vpop.f32.mrb[168].mxu1 }
 0x9a5   : > { %v4847_v56 = vpop.f32.mrb[169].mxu1 }
 0x9a6   : > { %v4848_v8 = vadd.f32 %v4847_v56, %v4846_v16  ;;  %v4849_v21 = vpop.f32.mrb[170].mxu1 }
 0x9a7   : > { %v4850_v20 = vpop.f32.mrb[171].mxu1 }
 0x9a8   : > { %v3460_v52 = vadd.f32 %v4848_v8, %v7749_v37  ;;  %v4851_v61 = vadd.f32 %v4850_v20, %v4849_v21 }
 0x9aa   : > { %v3463_v15 = vadd.f32 %v4851_v61, %v7749_v37  ;;  %v7854_v14 = vadd.f32 %v3460_v52, %v7599_v54 }
 0x9ac   : > { %3578 = vadd.xlane.f32.xlu0 %v7854_v14  ;;  %v4852_v2 = vpop.f32.mrb[172].mxu1  ;;  %v7858_v1 = vadd.f32 %v3463_v15, %v7602_v49 }
 0x9ad   : > { %v4853_v26 = vpop.f32.mrb[173].mxu1 }
 0x9ae   : > { %v4854_v39 = vadd.f32 %v4853_v26, %v4852_v2  ;;  %3580 = vadd.xlane.f32.xlu1 %v7858_v1  ;;  %v4855_v50 = vpop.f32.mrb[174].mxu1 }
 0x9af   : > { %v4856_v58 = vpop.f32.mrb[175].mxu1 }
 0x9b0   : > { %v3468_v35 = vadd.f32 %v4854_v39, %v7749_v37  ;;  %v4857_v5 = vadd.f32 %v4856_v58, %v4855_v50  ;;  %v3539_v50 = vpop.xlane.xlu0 %3538 }
 0x9b2   : > { %v3471_v12 = vadd.f32 %v4857_v5, %v7749_v37  ;;  %v7864_v54 = vadd.f32 %v3468_v35, %v7612_v25  ;;  %v3541_v35 = vpop.xlane.xlu1 %3540 }
 0x9b4   : > { %3582 = vadd.xlane.f32.xlu0 %v7864_v54  ;;  %v4858_v32 = vpop.f32.mrb[176].mxu1  ;;  %v7868_v49 = vadd.f32 %v3471_v12, %v7615_v3  ;;  %v3602_v12 = vmul.f32 0.0078125, %v3539_v50 }
 0x9b5   : > { %v4859_v4 = vpop.f32.mrb[177].mxu1 }
 0x9b6   : > { %v4860_v42 = vadd.f32 %v4859_v4, %v4858_v32  ;;  %3584 = vadd.xlane.f32.xlu1 %v7868_v49  ;;  %v4861_v47 = vpop.f32.mrb[178].mxu1 }
 0x9b7   : > { %v4862_v53 = vpop.f32.mrb[179].mxu1 }
 0x9b8   : > { %v3476_v63 = vadd.f32 %v4860_v42, %v7749_v37  ;;  %v4863_v13 = vadd.f32 %v4862_v53, %v4861_v47  ;;  %v3543_v42 = vpop.xlane.xlu0 %3542  ;;  %v3603_v53 = vmul.f32 0.0078125, %v3541_v35 }
 0x9ba   : > { %v3479_v29 = vadd.f32 %v4863_v13, %v7749_v37  ;;  %v7874_v25 = vadd.f32 %v3476_v63, %v7625_v9  ;;  %v3545_v13 = vpop.xlane.xlu1 %3544 }
 0x9bc   : > { %3586 = vadd.xlane.f32.xlu0 %v7874_v25  ;;  %v4864_v36 = vpop.f32.mrb[180].mxu1  ;;  %v7878_v3 = vadd.f32 %v3479_v29, %v7628_v6  ;;  %v7903_v29 = vsub.f32 %v7754_v34, %v3602_v12 }
 0x9bd   : > { %v4865_v0 = vpop.f32.mrb[181].mxu1 }
 0x9be   : > { %v4866_v59 = vadd.f32 %v4865_v0, %v4864_v36  ;;  %3588 = vadd.xlane.f32.xlu1 %v7878_v3  ;;  %v4867_v51 = vpop.f32.mrb[182].mxu1  ;;  %v3604_v36 = vmul.f32 0.0078125, %v3543_v42 }
 0x9bf   : > { %v4868_v43 = vpop.f32.mrb[183].mxu1 }
 0x9c0   : > { %v3484_v16 = vadd.f32 %v4866_v59, %v7749_v37  ;;  %v4869_v56 = vadd.f32 %v4868_v43, %v4867_v51  ;;  %v3547_v59 = vpop.xlane.xlu0 %3546  ;;  %v7910_v51 = vsub.f32 %v7758_v17, %v3603_v53  ;;  %v3605_v43 = vmul.f32 0.0078125, %v3545_v13 }
 0x9c1   : > { %v7917_v34 = vsub.f32 %v7764_v19, %v3604_v36 }
 0x9c2   : > { %v3487_v8 = vadd.f32 %v4869_v56, %v7749_v37  ;;  %v7884_v9 = vadd.f32 %v3484_v16, %v7638_v33  ;;  %v3549_v56 = vpop.xlane.xlu1 %3548  ;;  %v7923_v17 = vsub.f32 %v7768_v23, %v3605_v43 }
 0x9c4   : > { %3590 = vadd.xlane.f32.xlu0 %v7884_v9  ;;  %v4870_v21 = vpop.f32.mrb[184].mxu1  ;;  %v7888_v6 = vadd.f32 %v3487_v8, %v7641_v62  ;;  %v3606_v8 = vmul.f32 0.0078125, %v3547_v59 }
 0x9c5   : > { %v4871_v20 = vpop.f32.mrb[185].mxu1 }
 0x9c6   : > { %v4872_v52 = vadd.f32 %v4871_v20, %v4870_v21  ;;  %3592 = vadd.xlane.f32.xlu1 %v7888_v6  ;;  %v4873_v61 = vpop.f32.mrb[186].mxu1  ;;  %v3607_v21 = vmul.f32 0.0078125, %v3549_v56  ;;  %v3553_v20 = vpop.xlane.xlu1 %3552 }
 0x9c7   : > { %v4874_v15 = vpop.f32.mrb[187].mxu1  ;;  %v3609_v23 = vmul.f32 0.0078125, %v3553_v20 }
 0x9c8   : > { %v3492_v2 = vadd.f32 %v4872_v52, %v7749_v37  ;;  %v4875_v26 = vadd.f32 %v4874_v15, %v4873_v61  ;;  %v7928_v52 = vsub.f32 %v7774_v31, %v3606_v8  ;;  %v3668_v61 = vmul.f32 %v7917_v34, %v7917_v34 }
 0x9ca   : > { %v3495_v39 = vadd.f32 %v4875_v26, %v7749_v37  ;;  %v7894_v33 = vadd.f32 %v3492_v2, %v7651_v11  ;;  %v7933_v2 = vsub.f32 %v7778_v46, %v3607_v21  ;;  %v3669_v26 = vmul.f32 %v7923_v17, %v7923_v17 }
 0x9cc   : > { %3594 = vadd.xlane.f32.xlu0 %v7894_v33  ;;  %v4876_v58 = vpop.f32.mrb[188].mxu1  ;;  %v7898_v62 = vadd.f32 %v3495_v39, %v7654_v24  ;;  %v3557_v39 = vpop.xlane.xlu1 %3556  ;;  %v3671_v12 = vmul.f32 %v7933_v2, %v7933_v2 }
 0x9cd   : > { %v4877_v5 = vpop.f32.mrb[189].mxu1  ;;  %v3611_v46 = vmul.f32 0.0078125, %v3557_v39 }
 0x9ce   : > { %v4878_v32 = vadd.f32 %v4877_v5, %v4876_v58  ;;  %3596 = vadd.xlane.f32.xlu1 %v7898_v62  ;;  %v4879_v4 = vpop.f32.mrb[190].mxu1  ;;  %v3670_v58 = vmul.f32 %v7928_v52, %v7928_v52  ;;  %v7943_v5 = vsub.f32 %v7788_v27, %v3609_v23 }
 0x9cf   : > { %v4880_v47 = vpop.f32.mrb[191].mxu1  ;;  %v7953_v53 = vsub.f32 %v7798_v45, %v3611_v46 }
 0x9d0   : > { %v3500_v11 = vadd.f32 %v4878_v32, %v7749_v37  ;;  %v4881_v63 = vadd.f32 %v4880_v47, %v4879_v4  ;;  %v3561_v32 = vpop.xlane.xlu1 %3560 }
 0x9d1   : > { %v3613_v27 = vmul.f32 0.0078125, %v3561_v32  ;;  %v3675_v43 = vmul.f32 %v7953_v53, %v7953_v53 }
 0x9d2   : > { %v3503_v24 = vadd.f32 %v4881_v63, %v7749_v37  ;;  %v7907_v0 = vadd.f32 %v3500_v11, %v7664_v57  ;;  %v3666_v57 = vmul.f32 %v7903_v29, %v7903_v29  ;;  %v3551_v37 = vpop.xlane.xlu0 %3550  ;;  %v3673_v11 = vmul.f32 %v7943_v5, %v7943_v5 }
 0x9d3   : > { %v3608_v19 = vmul.f32 0.0078125, %v3551_v37  ;;  %v7963_v59 = vsub.f32 %v7808_v38, %v3613_v27 }
 0x9d4   : > { %3598 = vadd.xlane.f32.xlu0 %v7907_v0  ;;  %v7914_v16 = vadd.f32 %v3503_v24, %v7667_v40  ;;  %v3667_v40 = vmul.f32 %v7910_v51, %v7910_v51  ;;  %v3565_v63 = vpop.xlane.xlu1 %3564 }
 0x9d5   : > { %v7938_v50 = vsub.f32 %v7784_v10, %v3608_v19  ;;  %v3615_v45 = vmul.f32 0.0078125, %v3565_v63 }
 0x9d6   : > { %3600 = vadd.xlane.f32.xlu1 %v7914_v16  ;;  %v3555_v15 = vpop.xlane.xlu0 %3554 }
 0x9d7   : > { %v3610_v31 = vmul.f32 0.0078125, %v3555_v15  ;;  %v3672_v42 = vmul.f32 %v7938_v50, %v7938_v50  ;;  %v7973_v21 = vsub.f32 %v7818_v48, %v3615_v45 }
 0x9d8   : > { %3698 = vadd.xlane.f32.xlu0 %v3666_v57 }
 0x9d9   : > { %v7948_v4 = vsub.f32 %v7794_v7, %v3610_v31 }
 0x9da   : > { %3700 = vadd.xlane.f32.xlu1 %v3667_v40  ;;  %v3559_v35 = vpop.xlane.xlu0 %3558  ;;  %v3677_v40 = vmul.f32 %v7963_v59, %v7963_v59 }
 0x9db   : > { %v3612_v10 = vmul.f32 0.0078125, %v3559_v35  ;;  %v3674_v36 = vmul.f32 %v7948_v4, %v7948_v4  ;;  %v3569_v56 = vpop.xlane.xlu1 %3568 }
 0x9dc   : > { %3702 = vadd.xlane.f32.xlu0 %v3668_v61  ;;  %v3617_v38 = vmul.f32 0.0078125, %v3569_v56 }
 0x9dd   : > { %v7958_v13 = vsub.f32 %v7804_v18, %v3612_v10 }
 0x9de   : > { %3704 = vadd.xlane.f32.xlu1 %v3669_v26  ;;  %v3563_v47 = vpop.xlane.xlu0 %3562  ;;  %v7983_v23 = vsub.f32 %v7828_v60, %v3617_v38  ;;  %v3679_v26 = vmul.f32 %v7973_v21, %v7973_v21 }
 0x9df   : > { %v3614_v7 = vmul.f32 0.0078125, %v3563_v47  ;;  %v3676_v57 = vmul.f32 %v7958_v13, %v7958_v13 }
 0x9e0   : > { %3706 = vadd.xlane.f32.xlu0 %v3670_v58  ;;  %v3681_v60 = vmul.f32 %v7983_v23, %v7983_v23 }
 0x9e1   : > { %v7968_v8 = vsub.f32 %v7814_v22, %v3614_v7 }
 0x9e2   : > { %3708 = vadd.xlane.f32.xlu1 %v3671_v12  ;;  %v3567_v24 = vpop.xlane.xlu0 %3566 }
 0x9e3   : > { %v3616_v18 = vmul.f32 0.0078125, %v3567_v24  ;;  %v3573_v20 = vpop.xlane.xlu1 %3572  ;;  %v3678_v61 = vmul.f32 %v7968_v8, %v7968_v8 }
 0x9e4   : > { %3710 = vadd.xlane.f32.xlu0 %v3672_v42  ;;  %v3619_v48 = vmul.f32 0.0078125, %v3573_v20 }
 0x9e5   : > { %v7978_v19 = vsub.f32 %v7824_v44, %v3616_v18 }
 0x9e6   : > { %3712 = vadd.xlane.f32.xlu1 %v3673_v11  ;;  %v3571_v37 = vpop.xlane.xlu0 %3570  ;;  %v7993_v35 = vsub.f32 %v7838_v55, %v3619_v48 }
 0x9e7   : > { %v3618_v22 = vmul.f32 0.0078125, %v3571_v37  ;;  %v3680_v58 = vmul.f32 %v7978_v19, %v7978_v19 }
 0x9e8   : > { %3714 = vadd.xlane.f32.xlu0 %v3674_v36  ;;  %v3683_v55 = vmul.f32 %v7993_v35, %v7993_v35 }
 0x9e9   : > { %v7988_v31 = vsub.f32 %v7834_v28, %v3618_v22 }
 0x9ea   : > { %3716 = vadd.xlane.f32.xlu1 %v3675_v43  ;;  %v3575_v15 = vpop.xlane.xlu0 %3574 }
 0x9eb   : > { %v3577_v39 = vpop.xlane.xlu1 %3576  ;;  %v3620_v44 = vmul.f32 0.0078125, %v3575_v15  ;;  %v3682_v28 = vmul.f32 %v7988_v31, %v7988_v31 }
 0x9ec   : > { %3718 = vadd.xlane.f32.xlu0 %v3676_v57  ;;  %v3621_v46 = vmul.f32 0.0078125, %v3577_v39 }
 0x9ed   : > { %v7998_v12 = vsub.f32 %v7844_v41, %v3620_v44 }
 0x9ee   : > { %3720 = vadd.xlane.f32.xlu1 %v3677_v40  ;;  %v8003_v32 = vsub.f32 %v7848_v30, %v3621_v46 }
 0x9ef   : > { %v3684_v10 = vmul.f32 %v7998_v12, %v7998_v12 }
 0x9f0   : > { %3722 = vadd.xlane.f32.xlu0 %v3678_v61  ;;  %v3685_v41 = vmul.f32 %v8003_v32, %v8003_v32 }
 0x9f2   : > { %3724 = vadd.xlane.f32.xlu1 %v3679_v26 }
 0x9f4   : > { %3726 = vadd.xlane.f32.xlu0 %v3680_v58 }
 0x9f6   : > { %3728 = vadd.xlane.f32.xlu1 %v3681_v60 }
 0x9f8   : > { %3730 = vadd.xlane.f32.xlu0 %v3682_v28 }
 0x9fa   : > { %3732 = vadd.xlane.f32.xlu1 %v3683_v55 }
 0x9fc   : > { %3734 = vadd.xlane.f32.xlu0 %v3684_v10 }
 0x9fe   : > { %3736 = vadd.xlane.f32.xlu1 %v3685_v41 }
 0xa39   : > { %v3579_v42 = vpop.xlane.xlu0 %3578 }
 0xa3a   : > { %v3622_v47 = vmul.f32 0.0078125, %v3579_v42 }
 0xa3b   : > { %v3581_v27 = vpop.xlane.xlu1 %3580 }
 0xa3c   : > { %v8012_v11 = vsub.f32 %v7854_v14, %v3622_v47  ;;  %v3623_v30 = vmul.f32 0.0078125, %v3581_v27 }
 0xa3e   : > { %v8015_v63 = vsub.f32 %v7858_v1, %v3623_v30  ;;  %v3686_v7 = vmul.f32 %v8012_v11, %v8012_v11 }
 0xa40   : > { %3738 = vadd.xlane.f32.xlu0 %v3686_v7  ;;  %v3687_v36 = vmul.f32 %v8015_v63, %v8015_v63 }
 0xa41   : > { %v3583_v24 = vpop.xlane.xlu0 %3582 }
 0xa42   : > { %v3624_v45 = vmul.f32 0.0078125, %v3583_v24  ;;  %3740 = vadd.xlane.f32.xlu1 %v3687_v36 }
 0xa43   : > { %v3585_v43 = vpop.xlane.xlu1 %3584 }
 0xa44   : > { %v8022_v56 = vsub.f32 %v7864_v54, %v3624_v45  ;;  %v3625_v14 = vmul.f32 0.0078125, %v3585_v43 }
 0xa46   : > { %v8025_v18 = vsub.f32 %v7868_v49, %v3625_v14  ;;  %v3688_v1 = vmul.f32 %v8022_v56, %v8022_v56 }
 0xa48   : > { %3742 = vadd.xlane.f32.xlu0 %v3688_v1  ;;  %v3689_v57 = vmul.f32 %v8025_v18, %v8025_v18 }
 0xa49   : > { %v3587_v37 = vpop.xlane.xlu0 %3586 }
 0xa4a   : > { %v3626_v38 = vmul.f32 0.0078125, %v3587_v37  ;;  %3744 = vadd.xlane.f32.xlu1 %v3689_v57 }
 0xa4b   : > { %v3589_v40 = vpop.xlane.xlu1 %3588 }
 0xa4c   : > { %v8032_v20 = vsub.f32 %v7874_v25, %v3626_v38  ;;  %v3627_v54 = vmul.f32 0.0078125, %v3589_v40 }
 0xa4e   : > { %v8035_v22 = vsub.f32 %v7878_v3, %v3627_v54  ;;  %v3690_v49 = vmul.f32 %v8032_v20, %v8032_v20 }
 0xa50   : > { %3746 = vadd.xlane.f32.xlu0 %v3690_v49  ;;  %v3691_v61 = vmul.f32 %v8035_v22, %v8035_v22 }
 0xa51   : > { %v3591_v15 = vpop.xlane.xlu0 %3590 }
 0xa52   : > { %v3628_v48 = vmul.f32 0.0078125, %v3591_v15  ;;  %3748 = vadd.xlane.f32.xlu1 %v3691_v61 }
 0xa53   : > { %v3593_v26 = vpop.xlane.xlu1 %3592 }
 0xa54   : > { %v8042_v39 = vsub.f32 %v7884_v9, %v3628_v48  ;;  %v3629_v25 = vmul.f32 0.0078125, %v3593_v26 }
 0xa56   : > { %v8045_v44 = vsub.f32 %v7888_v6, %v3629_v25  ;;  %v3692_v3 = vmul.f32 %v8042_v39, %v8042_v39 }
 0xa58   : > { %3750 = vadd.xlane.f32.xlu0 %v3692_v3  ;;  %v3693_v58 = vmul.f32 %v8045_v44, %v8045_v44 }
 0xa59   : > { %v3595_v46 = vpop.xlane.xlu0 %3594 }
 0xa5a   : > { %v3630_v60 = vmul.f32 0.0078125, %v3595_v46  ;;  %3752 = vadd.xlane.f32.xlu1 %v3693_v58 }
 0xa5b   : > { %v3597_v28 = vpop.xlane.xlu1 %3596 }
 0xa5c   : > { %v8052_v55 = vsub.f32 %v7894_v33, %v3630_v60  ;;  %v3631_v9 = vmul.f32 0.0078125, %v3597_v28  ;;  %v8074_v28 = vld [vmem:[%s8318_s8 + $0x5] ss:$0 sm:$0xff] }
 0xa5e   : > { %v8055_v10 = vsub.f32 %v7898_v62, %v3631_v9  ;;  %v3694_v6 = vmul.f32 %v8052_v55, %v8052_v55 }
 0xa60   : > { %3754 = vadd.xlane.f32.xlu0 %v3694_v6  ;;  %v3695_v41 = vmul.f32 %v8055_v10, %v8055_v10 }
 0xa61   : > { %v3599_v42 = vpop.xlane.xlu0 %3598 }
 0xa62   : > { %v3632_v47 = vmul.f32 0.0078125, %v3599_v42  ;;  %3756 = vadd.xlane.f32.xlu1 %v3695_v41 }
 0xa63   : > { %v3601_v27 = vpop.xlane.xlu1 %3600 }
 0xa64   : > { %v8062_v30 = vsub.f32 %v7907_v0, %v3632_v47  ;;  %v3633_v33 = vmul.f32 0.0078125, %v3601_v27  ;;  %v8080_v27 = vld [vmem:[%s8318_s8 + $0x6] ss:$0 sm:$0xff] }
 0xa65   : > { %v3699_v7 = vpop.xlane.xlu0 %3698 }
 0xa66   : > { %v8065_v36 = vsub.f32 %v7914_v16, %v3633_v33  ;;  %v3762_v62 = vmul.f32 0.0078125, %v3699_v7  ;;  %v3696_v24 = vmul.f32 %v8062_v30, %v8062_v30 }
 0xa67   : > { %v3701_v45 = vpop.xlane.xlu1 %3700 }
 0xa68   : > { %v3794_v43 = vadd.f32 1e-05, %v3762_v62  ;;  %v3763_v14 = vmul.f32 0.0078125, %v3701_v45  ;;  %3758 = vadd.xlane.f32.xlu0 %v3696_v24  ;;  %v3697_v1 = vmul.f32 %v8065_v36, %v8065_v36 }
 0xa69   : > { %v3703_v57 = vpop.xlane.xlu0 %3702 }
 0xa6a   : > { %5439 = vrsqrt.f32 %v3794_v43  ;;  %v3795_v0 = vadd.f32 1e-05, %v3763_v14  ;;  %v3764_v37 = vmul.f32 0.0078125, %v3703_v57  ;;  %3760 = vadd.xlane.f32.xlu1 %v3697_v1 }
 0xa6b   : > { %v3705_v38 = vpop.xlane.xlu1 %3704 }
 0xa6c   : > { %5441 = vrsqrt.f32 %v3795_v0  ;;  %v3796_v16 = vadd.f32 1e-05, %v3764_v37  ;;  %v3765_v40 = vmul.f32 0.0078125, %v3705_v38 }
 0xa6d   : > { %v3707_v54 = vpop.xlane.xlu0 %3706 }
 0xa6e   : > { %5443 = vrsqrt.f32 %v3796_v16  ;;  %v3797_v49 = vadd.f32 1e-05, %v3765_v40  ;;  %v3766_v61 = vmul.f32 0.0078125, %v3707_v54 }
 0xa6f   : > { %v3709_v15 = vpop.xlane.xlu1 %3708 }
 0xa70   : > { %5445 = vrsqrt.f32 %v3797_v49  ;;  %v3798_v48 = vadd.f32 1e-05, %v3766_v61  ;;  %v3767_v26 = vmul.f32 0.0078125, %v3709_v15 }
 0xa71   : > { %v3711_v25 = vpop.xlane.xlu0 %3710 }
 0xa72   : > { %5447 = vrsqrt.f32 %v3798_v48  ;;  %v3799_v3 = vadd.f32 1e-05, %v3767_v26  ;;  %v3768_v58 = vmul.f32 0.0078125, %v3711_v25 }
 0xa73   : > { %v3713_v46 = vpop.xlane.xlu1 %3712 }
 0xa74   : > { %v5440_v60 = vpop.eup %5439  ;;  %5449 = vrsqrt.f32 %v3799_v3  ;;  %v3800_v9 = vadd.f32 1e-05, %v3768_v58  ;;  %v3769_v6 = vmul.f32 0.0078125, %v3713_v46 }
 0xa75   : > { %v3858_v41 = vmul.f32 %v5440_v60, %v7903_v29  ;;  %v3715_v42 = vpop.xlane.xlu0 %3714 }
 0xa76   : > { %v5442_v47 = vpop.eup %5441  ;;  %5451 = vrsqrt.f32 %v3800_v9  ;;  %v3801_v33 = vadd.f32 1e-05, %v3769_v6  ;;  %v3770_v7 = vmul.f32 0.0078125, %v3715_v42 }
 0xa77   : > { %v3894_v62 = vmul.f32 %v8074_v28, %v3858_v41  ;;  %v3859_v24 = vmul.f32 %v5442_v47, %v7910_v51  ;;  %v3717_v45 = vpop.xlane.xlu1 %3716 }
 0xa78   : > { %v5444_v43 = vpop.eup %5443  ;;  %5453 = vrsqrt.f32 %v3801_v33  ;;  %v3802_v14 = vadd.f32 1e-05, %v3770_v7  ;;  %v3771_v29 = vmul.f32 0.0078125, %v3717_v45 }
 0xa79   : > { %v3930_v1 = vadd.f32 %v8080_v27, %v3894_v62  ;;  %v3895_v57 = vmul.f32 %v8074_v28, %v3859_v24  ;;  %v3860_v0 = vmul.f32 %v5444_v43, %v7917_v34  ;;  %v3719_v37 = vpop.xlane.xlu0 %3718 }
 0xa7a   : > { %v5446_v38 = vpop.eup %5445  ;;  %5455 = vrsqrt.f32 %v3802_v14  ;;  %v3803_v16 = vadd.f32 1e-05, %v3771_v29  ;;  %v3772_v40 = vmul.f32 0.0078125, %v3719_v37 }
 0xa7b   : > { %3962 = vst [vmem:[%s8088_s9] sm:$0xff] %v3930_v1  ;;  %v3931_v51 = vadd.f32 %v8080_v27, %v3895_v57  ;;  %v3896_v54 = vmul.f32 %v8074_v28, %v3860_v0  ;;  %v3861_v49 = vmul.f32 %v5446_v38, %v7923_v17  ;;  %v3721_v61 = vpop.xlane.xlu1 %3720 }
 0xa7c   : > { %v5448_v15 = vpop.eup %5447  ;;  %5457 = vrsqrt.f32 %v3803_v16  ;;  %v3804_v34 = vadd.f32 1e-05, %v3772_v40  ;;  %v3773_v48 = vmul.f32 0.0078125, %v3721_v61 }
 0xa7d   : > { %3963 = vst [vmem:[%s8088_s9 + $0x8] sm:$0xff] %v3931_v51  ;;  %v3932_v26 = vadd.f32 %v8080_v27, %v3896_v54  ;;  %v3897_v25 = vmul.f32 %v8074_v28, %v3861_v49  ;;  %v3862_v3 = vmul.f32 %v5448_v15, %v7928_v52  ;;  %v3723_v58 = vpop.xlane.xlu0 %3722 }
 0xa7e   : > { %v5450_v46 = vpop.eup %5449  ;;  %5459 = vrsqrt.f32 %v3804_v34  ;;  %v3805_v60 = vadd.f32 1e-05, %v3773_v48  ;;  %v3774_v9 = vmul.f32 0.0078125, %v3723_v58 }
 0xa7f   : > { %3964 = vst [vmem:[%s8088_s9 + $0x10] sm:$0xff] %v3932_v26  ;;  %v3933_v17 = vadd.f32 %v8080_v27, %v3897_v25  ;;  %v3898_v6 = vmul.f32 %v8074_v28, %v3862_v3  ;;  %v3863_v41 = vmul.f32 %v5450_v46, %v7933_v2  ;;  %v3725_v42 = vpop.xlane.xlu1 %3724 }
 0xa80   : > { %v5452_v47 = vpop.eup %5451  ;;  %5461 = vrsqrt.f32 %v3805_v60  ;;  %v3806_v33 = vadd.f32 1e-05, %v3774_v9  ;;  %v3775_v7 = vmul.f32 0.0078125, %v3725_v42 }
 0xa81   : > { %3965 = vst [vmem:[%s8088_s9 + $0x18] sm:$0xff] %v3933_v17  ;;  %v3934_v52 = vadd.f32 %v8080_v27, %v3898_v6  ;;  %v3899_v62 = vmul.f32 %v8074_v28, %v3863_v41  ;;  %v3864_v24 = vmul.f32 %v5452_v47, %v7938_v50  ;;  %v3727_v45 = vpop.xlane.xlu0 %3726 }
 0xa82   : > { %v5454_v43 = vpop.eup %5453  ;;  %5463 = vrsqrt.f32 %v3806_v33  ;;  %v3807_v14 = vadd.f32 1e-05, %v3775_v7  ;;  %v3776_v29 = vmul.f32 0.0078125, %v3727_v45 }
 0xa83   : > { %3966 = vst [vmem:[%s8088_s9 + $0x20] sm:$0xff] %v3934_v52  ;;  %v3935_v2 = vadd.f32 %v8080_v27, %v3899_v62  ;;  %v3900_v1 = vmul.f32 %v8074_v28, %v3864_v24  ;;  %v3865_v57 = vmul.f32 %v5454_v43, %v7943_v5  ;;  %v3729_v0 = vpop.xlane.xlu1 %3728 }
 0xa84   : > { %v5456_v37 = vpop.eup %5455  ;;  %5465 = vrsqrt.f32 %v3807_v14  ;;  %v3808_v38 = vadd.f32 1e-05, %v3776_v29  ;;  %v3777_v16 = vmul.f32 0.0078125, %v3729_v0 }
 0xa85   : > { %3967 = vst [vmem:[%s8088_s9 + $0x28] sm:$0xff] %v3935_v2  ;;  %v3936_v50 = vadd.f32 %v8080_v27, %v3900_v1  ;;  %v3901_v40 = vmul.f32 %v8074_v28, %v3865_v57  ;;  %v3866_v51 = vmul.f32 %v5456_v37, %v7948_v4  ;;  %v3731_v54 = vpop.xlane.xlu0 %3730 }
 0xa86   : > { %v5458_v49 = vpop.eup %5457  ;;  %5467 = vrsqrt.f32 %v3808_v38  ;;  %v3809_v61 = vadd.f32 1e-05, %v3777_v16  ;;  %v3778_v15 = vmul.f32 0.0078125, %v3731_v54 }
 0xa87   : > { %3968 = vst [vmem:[%s8088_s9 + $0x30] sm:$0xff] %v3936_v50  ;;  %v3937_v5 = vadd.f32 %v8080_v27, %v3901_v40  ;;  %v3902_v34 = vmul.f32 %v8074_v28, %v3866_v51  ;;  %v3867_v48 = vmul.f32 %v5458_v49, %v7953_v53  ;;  %v3733_v26 = vpop.xlane.xlu1 %3732 }
 0xa88   : > { %v5460_v25 = vpop.eup %5459  ;;  %5469 = vrsqrt.f32 %v3809_v61  ;;  %v3810_v3 = vadd.f32 1e-05, %v3778_v15  ;;  %v3779_v58 = vmul.f32 0.0078125, %v3733_v26 }
 0xa89   : > { %3969 = vst [vmem:[%s8088_s9 + $0x38] sm:$0xff] %v3937_v5  ;;  %v3938_v4 = vadd.f32 %v8080_v27, %v3902_v34  ;;  %v3903_v46 = vmul.f32 %v8074_v28, %v3867_v48  ;;  %v3868_v60 = vmul.f32 %v5460_v25, %v7958_v13  ;;  %v3735_v9 = vpop.xlane.xlu0 %3734 }
 0xa8a   : > { %v5462_v17 = vpop.eup %5461  ;;  %5471 = vrsqrt.f32 %v3810_v3  ;;  %v3811_v6 = vadd.f32 1e-05, %v3779_v58  ;;  %v3780_v41 = vmul.f32 0.0078125, %v3735_v9 }
 0xa8b   : > { %3970 = vst [vmem:[%s8088_s9 + $0x40] sm:$0xff] %v3938_v4  ;;  %v3939_v53 = vadd.f32 %v8080_v27, %v3903_v46  ;;  %v3904_v42 = vmul.f32 %v8074_v28, %v3868_v60  ;;  %v3869_v47 = vmul.f32 %v5462_v17, %v7963_v59  ;;  %v3737_v33 = vpop.xlane.xlu1 %3736 }
 0xa8c   : > { %v5464_v7 = vpop.eup %5463  ;;  %5473 = vrsqrt.f32 %v3811_v6  ;;  %v3812_v52 = vadd.f32 1e-05, %v3780_v41  ;;  %v3781_v13 = vmul.f32 0.0078125, %v3737_v33 }
 0xa8d   : > { %3971 = vst [vmem:[%s8088_s9 + $0x48] sm:$0xff] %v3939_v53  ;;  %v3940_v62 = vadd.f32 %v8080_v27, %v3904_v42  ;;  %v3905_v24 = vmul.f32 %v8074_v28, %v3869_v47  ;;  %v3870_v45 = vmul.f32 %v5464_v7, %v7968_v8 }
 0xa8e   : > { %v5466_v43 = vpop.eup %5465  ;;  %5475 = vrsqrt.f32 %v3812_v52  ;;  %v3813_v59 = vadd.f32 1e-05, %v3781_v13 }
 0xa8f   : > { %3972 = vst [vmem:[%s8088_s9 + $0x50] sm:$0xff] %v3940_v62  ;;  %v3941_v14 = vadd.f32 %v8080_v27, %v3905_v24  ;;  %v3906_v29 = vmul.f32 %v8074_v28, %v3870_v45  ;;  %v3871_v2 = vmul.f32 %v5466_v43, %v7973_v21 }
 0xa90   : > { %v5468_v1 = vpop.eup %5467  ;;  %5477 = vrsqrt.f32 %v3813_v59 }
 0xa91   : > { %3973 = vst [vmem:[%s8088_s9 + $0x58] sm:$0xff] %v3941_v14  ;;  %v3942_v8 = vadd.f32 %v8080_v27, %v3906_v29  ;;  %v3907_v57 = vmul.f32 %v8074_v28, %v3871_v2  ;;  %v3872_v0 = vmul.f32 %v5468_v1, %v7978_v19 }
 0xa92   : > { %v5470_v21 = vpop.eup %5469 }
 0xa93   : > { %5718 = shalt.err (!%p5715_p8)
}
 0xa94   : > { %s5719_s1 = scalar_lea.hbm %s8140_s3, 4096  ;;  %s5723_s12 = scalar_lea.hbm %s8471_s28, 8192 }
 0xa95   : > { %p5720_p3 = scmp.ne.s32.totalorder %s8140_s3, %s5719_s1  ;;  %p5724_p0 = scmp.lt.u32.totalorder %s8140_s3, %s8471_s28 }
 0xa96   : > { %p5725_p1 = scmp.lt.u32.totalorder %s5723_s12, %s5719_s1  ;;  %p5727_p6 = scmp.lt.u32.totalorder %s5719_s1, %s8140_s3 }
 0xa97   : > { %p5721_p12 = pnand %p5720_p3, %p8472_p5 }
 0xa98   : > { %p5726_p7 = por %p5725_p1, %p5724_p0 }
 0xa99   : > { %p5722_p13 = pneg %p5721_p12 }
 0xa9a   : > { %p5728_p10 = por %p5727_p6, %p5726_p7 }
 0xa9c   : > { %p5729_p11 = pnand %p5728_p10, %p5722_p13 }
 0xa9e   : > { %5732 = shalt.err (!%p5729_p11)
}
 0xa9f   : > { %s5845_s21 = smov 128   ;;  %s5846_s7 = smov 8   ;;  %3974 = vst [vmem:[%s8088_s9 + $0x60] sm:$0xff] %v3942_v8  ;;  %v3943_v19 = vadd.f32 %v8080_v27, %v3907_v57  ;;  %v3908_v37 = vmul.f32 %v8074_v28, %v3872_v0  ;;  %v3873_v38 = vmul.f32 %v5470_v21, %v7983_v23  ;;  %v5472_v16 = vpop.eup %5471 }
 0xaa0   : > { %5001 = dma.vmem_to_hbm [thread:$0]  (%p8472_p5), %s8147_s19, 4096, %s8140_s3, %s4192_s20, %s5845_s21, %s5845_s21, %s5846_s7   ;;  %v3874_v51 = vmul.f32 %v5472_v16, %v7988_v31  ;;  %v5474_v54 = vpop.eup %5473 }
 0xaa1   : > { %3975 = vst [vmem:[%s8088_s9 + $0x68] sm:$0xff] %v3943_v19  ;;  %v3944_v50 = vadd.f32 %v8080_v27, %v3908_v37  ;;  %v3909_v40 = vmul.f32 %v8074_v28, %v3873_v38  ;;  %v3875_v15 = vmul.f32 %v5474_v54, %v7993_v35  ;;  %v5476_v23 = vpop.eup %5475  ;;  %s4207_s3 = sshll.u32 %s8088_s9, 4  ;;  %s8473_s1 = sld [smem:[#allocation43_spill]]  ;;  %s8257_s3 = int_to_ptr.vmem [resolvable:$true] %s4207_s3 }
 0xaa2   : > { %v3910_v61 = vmul.f32 %v8074_v28, %v3874_v51  ;;  %v3876_v48 = vmul.f32 %v5476_v23, %v7998_v12  ;;  %v5478_v31 = vpop.eup %5477  ;;  %s4187_s29 = scalar_lea.sflag [#allocation6], %s6168_s23  ;;  %s5733_s12 = scalar_lea.vmem %s8257_s3, 4096 }
 0xaa3   : > { %3976 = vst [vmem:[%s8088_s9 + $0x70] sm:$0xff] %v3944_v50  ;;  %v3945_v49 = vadd.f32 %v8080_v27, %v3909_v40  ;;  %v3911_v34 = vmul.f32 %v8074_v28, %v3875_v15  ;;  %v3877_v3 = vmul.f32 %v5478_v31, %v8003_v32  ;;  %p5734_p2 = scmp.ne.s32.totalorder %s8257_s3, %s5733_s12  ;;  %s5847_s25 = smov [#allocation15]  }
 0xaa4   : > { %v3946_v5 = vadd.f32 %v8080_v27, %v3910_v61  ;;  %v3912_v25 = vmul.f32 %v8074_v28, %v3876_v48  ;;  %s5737_s26 = sshll.u32 %s5847_s25, 4  ;;  %s5738_s26 = int_to_ptr.vmem [resolvable:$false] %s5737_s26 }
 0xaa5   : > { %3977 = vst [vmem:[%s8088_s9 + $0x78] sm:$0xff] %v3945_v49  ;;  %v3947_v26 = vadd.f32 %v8080_v27, %v3911_v34  ;;  %v3913_v58 = vmul.f32 %v8074_v28, %v3877_v3  ;;  %p5735_p4 = pnand %p5734_p2, %p8472_p5  ;;  %s5739_s30 = scalar_lea.vmem %s5738_s26, 8192 }
 0xaa6   : > { %3978 = vst [vmem:[%s8088_s9 + $0x80] sm:$0xff] %v3946_v5  ;;  %v3948_v35 = vadd.f32 %v8080_v27, %v3912_v25  ;;  %p5740_p8 = scmp.lt.s32.totalorder %s8257_s3, %s5738_s26  ;;  %p5741_p3 = scmp.lt.s32.totalorder %s5739_s30, %s5733_s12 }
 0xaa7   : > { %3979 = vst [vmem:[%s8088_s9 + $0x88] sm:$0xff] %v3947_v26  ;;  %v3949_v4 = vadd.f32 %v8080_v27, %v3913_v58  ;;  %s8255_s11 = scalar_lea.hbm %s8473_s1, %s4560_s27  ;;  %p5736_p9 = pneg %p5735_p4 }
 0xaa8   : > { %3980 = vst [vmem:[%s8088_s9 + $0x90] sm:$0xff] %v3948_v35  ;;  %p5742_p12 = por %p5741_p3, %p5740_p8 }
 0xaa9   : > { %3981 = vst [vmem:[%s8088_s9 + $0x98] sm:$0xff] %v3949_v4 }
 0xaaa   : > { %p5743_p13 = pnand %p5742_p12, %p5736_p9 }
 0xacd   : > { %v3739_v46 = vpop.xlane.xlu0 %3738 }
 0xace   : > { %v3782_v60 = vmul.f32 0.0078125, %v3739_v46 }
 0xacf   : > { %v3741_v12 = vpop.xlane.xlu1 %3740 }
 0xad0   : > { %v3814_v9 = vadd.f32 1e-05, %v3782_v60  ;;  %v3783_v17 = vmul.f32 0.0078125, %v3741_v12 }
 0xad2   : > { %5479 = vrsqrt.f32 %v3814_v9  ;;  %v3815_v6 = vadd.f32 1e-05, %v3783_v17 }
 0xad4   : > { %5481 = vrsqrt.f32 %v3815_v6 }
 0xad5   : > { %v3743_v41 = vpop.xlane.xlu0 %3742 }
 0xad6   : > { %v3784_v53 = vmul.f32 0.0078125, %v3743_v41 }
 0xad7   : > { %v3745_v32 = vpop.xlane.xlu1 %3744 }
 0xad8   : > { %v3816_v42 = vadd.f32 1e-05, %v3784_v53  ;;  %v3785_v47 = vmul.f32 0.0078125, %v3745_v32 }
 0xada   : > { %5483 = vrsqrt.f32 %v3816_v42  ;;  %v3817_v33 = vadd.f32 1e-05, %v3785_v47 }
 0xadc   : > { %v5480_v7 = vpop.eup %5479  ;;  %5485 = vrsqrt.f32 %v3817_v33 }
 0xadd   : > { %v3878_v52 = vmul.f32 %v5480_v7, %v8012_v11  ;;  %v3747_v13 = vpop.xlane.xlu0 %3746 }
 0xade   : > { %v5482_v62 = vpop.eup %5481  ;;  %v3786_v24 = vmul.f32 0.0078125, %v3747_v13 }
 0xadf   : > { %v3914_v45 = vmul.f32 %v8074_v28, %v3878_v52  ;;  %v3879_v43 = vmul.f32 %v5482_v62, %v8015_v63  ;;  %v3749_v59 = vpop.xlane.xlu1 %3748 }
 0xae0   : > { %v3818_v14 = vadd.f32 1e-05, %v3786_v24  ;;  %v3787_v29 = vmul.f32 0.0078125, %v3749_v59 }
 0xae1   : > { %v3950_v2 = vadd.f32 %v8080_v27, %v3914_v45  ;;  %v3915_v1 = vmul.f32 %v8074_v28, %v3879_v43 }
 0xae2   : > { %5487 = vrsqrt.f32 %v3818_v14  ;;  %v3819_v8 = vadd.f32 1e-05, %v3787_v29 }
 0xae3   : > { %3982 = vst [vmem:[%s8088_s9 + $0xa0] sm:$0xff] %v3950_v2  ;;  %v3951_v11 = vadd.f32 %v8080_v27, %v3915_v1 }
 0xae4   : > { %v5484_v57 = vpop.eup %5483  ;;  %5489 = vrsqrt.f32 %v3819_v8 }
 0xae5   : > { %3983 = vst [vmem:[%s8088_s9 + $0xa8] sm:$0xff] %v3951_v11  ;;  %v3880_v0 = vmul.f32 %v5484_v57, %v8022_v56  ;;  %v3751_v21 = vpop.xlane.xlu0 %3750 }
 0xae6   : > { %v5486_v63 = vpop.eup %5485  ;;  %v3788_v19 = vmul.f32 0.0078125, %v3751_v21 }
 0xae7   : > { %v3916_v37 = vmul.f32 %v8074_v28, %v3880_v0  ;;  %v3881_v38 = vmul.f32 %v5486_v63, %v8025_v18  ;;  %v3753_v16 = vpop.xlane.xlu1 %3752 }
 0xae8   : > { %v3820_v50 = vadd.f32 1e-05, %v3788_v19  ;;  %v3789_v40 = vmul.f32 0.0078125, %v3753_v16 }
 0xae9   : > { %v3952_v51 = vadd.f32 %v8080_v27, %v3916_v37  ;;  %v3917_v54 = vmul.f32 %v8074_v28, %v3881_v38 }
 0xaea   : > { %5491 = vrsqrt.f32 %v3820_v50  ;;  %v3821_v49 = vadd.f32 1e-05, %v3789_v40 }
 0xaeb   : > { %3984 = vst [vmem:[%s8088_s9 + $0xb0] sm:$0xff] %v3952_v51  ;;  %v3953_v56 = vadd.f32 %v8080_v27, %v3917_v54 }
 0xaec   : > { %v5488_v61 = vpop.eup %5487  ;;  %5493 = vrsqrt.f32 %v3821_v49 }
 0xaed   : > { %3985 = vst [vmem:[%s8088_s9 + $0xb8] sm:$0xff] %v3953_v56  ;;  %v3882_v15 = vmul.f32 %v5488_v61, %v8032_v20  ;;  %v3755_v23 = vpop.xlane.xlu0 %3754 }
 0xaee   : > { %v5490_v18 = vpop.eup %5489  ;;  %v3790_v5 = vmul.f32 0.0078125, %v3755_v23 }
 0xaef   : > { %v3918_v34 = vmul.f32 %v8074_v28, %v3882_v15  ;;  %v3883_v48 = vmul.f32 %v5490_v18, %v8035_v22  ;;  %v3757_v31 = vpop.xlane.xlu1 %3756 }
 0xaf0   : > { %v3822_v26 = vadd.f32 1e-05, %v3790_v5  ;;  %v3791_v25 = vmul.f32 0.0078125, %v3757_v31 }
 0xaf1   : > { %v3954_v3 = vadd.f32 %v8080_v27, %v3918_v34  ;;  %v3919_v35 = vmul.f32 %v8074_v28, %v3883_v48 }
 0xaf2   : > { %5495 = vrsqrt.f32 %v3822_v26  ;;  %v3823_v58 = vadd.f32 1e-05, %v3791_v25 }
 0xaf3   : > { %3986 = vst [vmem:[%s8088_s9 + $0xc0] sm:$0xff] %v3954_v3  ;;  %v3955_v20 = vadd.f32 %v8080_v27, %v3919_v35 }
 0xaf4   : > { %v5492_v4 = vpop.eup %5491  ;;  %5497 = vrsqrt.f32 %v3823_v58 }
 0xaf5   : > { %3987 = vst [vmem:[%s8088_s9 + $0xc8] sm:$0xff] %v3955_v20  ;;  %v3884_v46 = vmul.f32 %v5492_v4, %v8042_v39  ;;  %v3759_v60 = vpop.xlane.xlu0 %3758 }
 0xaf6   : > { %v5494_v22 = vpop.eup %5493  ;;  %v3792_v12 = vmul.f32 0.0078125, %v3759_v60 }
 0xaf7   : > { %v3920_v9 = vmul.f32 %v8074_v28, %v3884_v46  ;;  %v3885_v17 = vmul.f32 %v5494_v22, %v8045_v44  ;;  %v3761_v6 = vpop.xlane.xlu1 %3760 }
 0xaf8   : > { %v3824_v41 = vadd.f32 1e-05, %v3792_v12  ;;  %v3793_v53 = vmul.f32 0.0078125, %v3761_v6 }
 0xaf9   : > { %v3956_v32 = vadd.f32 %v8080_v27, %v3920_v9  ;;  %v3921_v42 = vmul.f32 %v8074_v28, %v3885_v17 }
 0xafa   : > { %5499 = vrsqrt.f32 %v3824_v41  ;;  %v3825_v47 = vadd.f32 1e-05, %v3793_v53 }
 0xafb   : > { %3988 = vst [vmem:[%s8088_s9 + $0xd0] sm:$0xff] %v3956_v32  ;;  %v3957_v39 = vadd.f32 %v8080_v27, %v3921_v42 }
 0xafc   : > { %v5496_v33 = vpop.eup %5495  ;;  %5501 = vrsqrt.f32 %v3825_v47 }
 0xafd   : > { %3989 = vst [vmem:[%s8088_s9 + $0xd8] sm:$0xff] %v3957_v39  ;;  %v3886_v44 = vmul.f32 %v5496_v33, %v8052_v55 }
 0xafe   : > { %v5498_v7 = vpop.eup %5497 }
 0xaff   : > { %v3922_v52 = vmul.f32 %v8074_v28, %v3886_v44  ;;  %v3887_v13 = vmul.f32 %v5498_v7, %v8055_v10 }
 0xb01   : > { %v3958_v62 = vadd.f32 %v8080_v27, %v3922_v52  ;;  %v3923_v24 = vmul.f32 %v8074_v28, %v3887_v13 }
 0xb03   : > { %3990 = vst [vmem:[%s8088_s9 + $0xe0] sm:$0xff] %v3958_v62  ;;  %v3959_v45 = vadd.f32 %v8080_v27, %v3923_v24 }
 0xb04   : > { %v5500_v43 = vpop.eup %5499 }
 0xb05   : > { %3991 = vst [vmem:[%s8088_s9 + $0xe8] sm:$0xff] %v3959_v45  ;;  %v3888_v55 = vmul.f32 %v5500_v43, %v8062_v30 }
 0xb06   : > { %v5502_v59 = vpop.eup %5501 }
 0xb07   : > { %v3924_v14 = vmul.f32 %v8074_v28, %v3888_v55  ;;  %v3889_v10 = vmul.f32 %v5502_v59, %v8065_v36 }
 0xb09   : > { %v3960_v29 = vadd.f32 %v8080_v27, %v3924_v14  ;;  %v3925_v2 = vmul.f32 %v8074_v28, %v3889_v10 }
 0xb0b   : > { %3992 = vst [vmem:[%s8088_s9 + $0xf0] sm:$0xff] %v3960_v29  ;;  %v3961_v1 = vadd.f32 %v8080_v27, %v3925_v2 }
 0xb0d   : > { %3993 = vst [vmem:[%s8088_s9 + $0xf8] sm:$0xff] %v3961_v1 }
 0xb0e   : > { %5746 = shalt.err (!%p5743_p13)
}
 0xb0f   : > { %s5747_s9 = scalar_lea.hbm %s8255_s11, 4096  ;;  %s5751_s20 = scalar_lea.hbm %s8473_s1, 8192 }
 0xb10   : > { %p5748_p0 = scmp.ne.s32.totalorder %s8255_s11, %s5747_s9  ;;  %p5752_p6 = scmp.lt.u32.totalorder %s8255_s11, %s8473_s1 }
 0xb11   : > { %p5753_p10 = scmp.lt.u32.totalorder %s5751_s20, %s5747_s9  ;;  %p5755_p2 = scmp.lt.u32.totalorder %s5747_s9, %s8255_s11 }
 0xb12   : > { %p5749_p1 = pnand %p5748_p0, %p8472_p5 }
 0xb13   : > { %p5754_p11 = por %p5753_p10, %p5752_p6 }
 0xb14   : > { %p5750_p7 = pneg %p5749_p1 }
 0xb15   : > { %p5756_p4 = por %p5755_p2, %p5754_p11 }
 0xb17   : > { %p5757_p9 = pnand %p5756_p4, %p5750_p7 }
 0xb19   : > { %5760 = shalt.err (!%p5757_p9)
}
 0xb1a   : > { %5000 = dma.vmem_to_hbm [thread:$0]  (%p8472_p5), %s8257_s3, 4096, %s8255_s11, %s4187_s29, %s5845_s21, %s5845_s21, %s5846_s7  }
 0xb1b PF: > { %s4241_s12 = sand.u32 1, %s5811_s13   ;;  %p8474_p8 = scmp.ne.s32.totalorder %s8383_s22, 0 }
 0xb1c   : > { %p8475_p3 = scmp.ge.s32.totalorder %s5831_s18, 2  ;;  %s4242_s30 = scalar_lea.sflag [#allocation6], %s4241_s12 }
 0xb1e   : > { %p5025_p12 = pnand %p8475_p3, %p8474_p8 }
 0xb20   : > { %5802 = dma.done.wait (!%p5025_p12), %s4242_s30, 4096  }
 0xb21   : > { %5804 = vsyncadd (!%p5025_p12), %s4242_s30, 4294963200  ;;  %s4251_s10 = scalar_lea.sflag [#allocation17], %s4241_s12 }
 0xb22   : > { %5806 = dma.done.wait (!%p5025_p12), %s4251_s10, 4096  }
 0xb23   : > { %5808 = vsyncadd (!%p5025_p12), %s4251_s10, 4294963200  ;;  %s33_s18 = sadd.s32 1, %s5831_s18   ;;  %s8476_s13 = smov %s5815_s14 }
 0xb24   : > { %p30_p13 = scmp.ge.s32.totalorder %s33_s18, 4   ;;  %s8477_s14 = smov %s5819_s15 }
 0xb25   : > { %s8478_s15 = smov %s6113_s16  ;;  %s8479_s16 = smov %s5827_s17 }
 0xb26   : > { %s8480_s17 = smov %s8482_s24  ;;  %32 = sbr.rel (!%p30_p13) target bundleno = 17 (0x11), region = 143 }
 0xb2d   :  { %4256 = vsyncpa [#allocation5], 1 }
 0xb2e   :  { %4258 = vsyncpa [#allocation5 + $0x1], 1 }
 0xb2f   :  { %4259 = vsyncpa [#allocation8], 1 }
 0xb30   :  { %4260 = vsyncpa [#allocation11], 1 }
 0xb31   :  { %4261 = vsyncpa [#allocation14], 1 }
 0xb32   :  { %4262 = vsyncpa [#allocation6], 1 }
 0xb33   :  { %4264 = vsyncpa [#allocation6 + $0x1], 1 }
 0xb34   :  { %4265 = vsyncpa [#allocation17], 1 }
 0xb35   :  { %4267 = vsyncpa [#allocation17 + $0x1], 1 }

// kernel: tpu_custom_call.1
= control target key start
LH: loop header
LB: loop body
LE: loop exit
PB: predicated region body
PF: predicated region fallthrough
CT: control target
= control target key end

     0   :  { %s8310_s0 = inlined_call_operand.hbm [shape: f32[2,256,128], index: 0, kind: input, shape index: {}]   ;;  %s8311_s1 = inlined_call_operand.hbm [shape: bf16[128,128], index: 1, kind: input, shape index: {}]   ;;  %s8312_s2 = inlined_call_operand.hbm [shape: bf16[128,256], index: 2, kind: input, shape index: {}]   ;;  %s8313_s3 = inlined_call_operand.hbm [shape: bf16[128,128], index: 3, kind: input, shape index: {}]   ;;  %s8314_s4 = inlined_call_operand.hbm [shape: bf16[128,256], index: 4, kind: input, shape index: {}]   ;;  %s8315_s5 = inlined_call_operand.hbm [shape: bf16[256,128], index: 5, kind: input, shape index: {}]   ;;  %s8316_s6 = inlined_call_operand.vmem [shape: f32[1,256], index: 6, kind: input, shape index: {}]   ;;  %s8317_s7 = inlined_call_operand.vmem [shape: f32[1,256], index: 7, kind: input, shape index: {}]   ;;  %s8318_s8 = inlined_call_operand.vmem [shape: f32[8,128], index: 8, kind: input, shape index: {}]   ;;  %s8319_s9 = inlined_call_operand.hbm [shape: f32[2,256,128], index: 9, kind: output, shape index: {0}]   ;;  %s8320_s10 = inlined_call_operand.hbm [shape: bf16[2,256,256], index: 10, kind: output, shape index: {1}]  }
   0x1   :  { %8364 = sst [smem:[#allocation40_spill]] %s8311_s1 }
   0x2   :  { %8365 = sst [smem:[#allocation41_spill]] %s8313_s3 }
   0x3   :  { %8366 = sst [smem:[#allocation42_spill]] %s8317_s7 }
   0x4   :  { %8367 = sst [smem:[#allocation43_spill]] %s8319_s9 }
   0x5   :  { %8368 = sst [smem:[#allocation44_spill]] %s8320_s10 }
   0x6   :  { %16 = vsyncpa [#allocation5], 0 }
   0x7   :  { %18 = vsyncpa [#allocation5 + $0x1], 0 }
   0x8   :  { %19 = vsyncpa [#allocation8], 0 }
   0x9   :  { %20 = vsyncpa [#allocation11], 0 }
   0xa   :  { %21 = vsyncpa [#allocation14], 0 }
   0xb   :  { %22 = vsyncpa [#allocation6], 0 }
   0xc   :  { %24 = vsyncpa [#allocation6 + $0x1], 0 }
   0xd   :  { %25 = vsyncpa [#allocation17], 0 }
   0xe   :  { %27 = vsyncpa [#allocation17 + $0x1], 0  ;;  %s5903_s13 = smov 0   ;;  %s5905_s14 = smov 0  }
   0xf   :  { %s5907_s15 = smov 0   ;;  %s5909_s16 = smov 0  }
  0x10   :  { %s5911_s17 = smov 0   ;;  %s5913_s18 = smov 0  }
  0x11 LB: > { %8369 = sst [smem:[#allocation24_spill]] %s5823_s16  ;;  %s8321_s19 = sadd.s32 4294967295, %s5831_s18   ;;  %s5831_s18 = sphi %s5913_s18, %s33_s18   ;;  %s5827_s17 = sphi %s5911_s17, %s8480_s17   ;;  %s5823_s16 = sphi %s5909_s16, %s8479_s16   ;;  %s5819_s15 = sphi %s5907_s15, %s8478_s15   ;;  %s5815_s14 = sphi %s5905_s14, %s8477_s14   ;;  %s5811_s13 = sphi %s5903_s13, %s8476_s13  }
  0x12   : > { %p4397_p0 = scmp.ge.s32.totalorder %s5831_s18, 1  ;;  %p5937_p1 = scmp.eq.s32.totalorder %s8321_s19, 0 }
  0x13   : > { %p300_p2 = scmp.lt.s32.totalorder %s5831_s18, 3  ;;  %s5833_s22 = smov [#allocation7]  }
  0x14   : > { %s8370_s20 = scalar_select %p5937_p1, 1, 0 }
  0x15   : > { %p5942_p3 = pnand %p4397_p0, %p300_p2  ;;  %s312_s23 = sshll.u32 %s5833_s22, 4  ;;  %s5946_s23 = int_to_ptr.vmem [resolvable:$true] %s312_s23 }
  0x16   : > { %s5834_s25 = smov [#allocation10]   ;;  %s5835_s27 = smov [#allocation9]  }
  0x17   : > { %s8371_s21 = scalar_select %p5942_p3, 1, 0 }
  0x18   : > { %p5004_p4 = pneg %p5942_p3  ;;  %s338_s26 = sshll.u32 %s5834_s25, 4  ;;  %s5957_s26 = int_to_ptr.vmem [resolvable:$true] %s338_s26 }
  0x19   : > { %s5959_s28 = sshll.u32 %s5835_s27, 4  ;;  %s8373_s1 = sld [smem:[#allocation40_spill]]  ;;  %s326_s28 = int_to_ptr.vmem [resolvable:$true] %s5959_s28 }
  0x1a   : > { %p5953_p6 = pnand %p5004_p4, %p5937_p1 }
  0x1c   : > { %p5969_p8 = pneg %p5953_p6 }
  0x1f   : > { %s5535_s11 = scalar_lea.hbm %s8373_s1, 1024 }
  0x20   : > { %p5536_p7 = scmp.ne.s32.totalorder %s8373_s1, %s5535_s11  ;;  %p5542_p11 = scmp.lt.u32.totalorder %s5535_s11, %s8373_s1 }
  0x22   : > { %p5538_p9 = pnand %p5969_p8, %p5536_p7 }
  0x24   : > { %p5539_p10 = pneg %p5538_p9 }
  0x26   : > { %p5544_p12 = pnand %p5542_p11, %p5539_p10 }
  0x28   : > { %5547 = shalt.err (!%p5544_p12)
}
  0x29   : > { %s5548_s29 = scalar_lea.vmem %s5946_s23, 1024  ;;  %p5556_p4 = scmp.lt.s32.totalorder %s5946_s23, %s5946_s23 }
  0x2a   : > { %p5549_p13 = scmp.ne.s32.totalorder %s5946_s23, %s5548_s29  ;;  %p5557_p5 = scmp.lt.s32.totalorder %s5548_s29, %s5548_s29 }
  0x2c   : > { %p5551_p0 = pnand %p5549_p13, %p5969_p8  ;;  %p5558_p7 = por %p5557_p5, %p5556_p4 }
  0x2e   : > { %p5552_p2 = pneg %p5551_p0 }
  0x30   : > { %p5559_p9 = pnand %p5558_p7, %p5552_p2 }
  0x32   : > { %5562 = shalt.err (!%p5559_p9)
}
  0x33   : > { %s8328_s30 = smov 64   ;;  %s8329_s11 = smov 4  }
  0x34   : > { %5007 = dma.hbm_to_vmem [thread:$0]  (!%p5953_p6), %s8373_s1, 1024, %s5946_s23, [#allocation8], %s8328_s30, %s8328_s30, %s8329_s11  }
  0x35   : > { %s8375_s3 = sld [smem:[#allocation41_spill]] }
  0x3b   : > { %s5563_s29 = scalar_lea.hbm %s8375_s3, 1024 }
  0x3c   : > { %p5564_p5 = scmp.ne.s32.totalorder %s8375_s3, %s5563_s29  ;;  %p5570_p12 = scmp.lt.u32.totalorder %s5563_s29, %s8375_s3 }
  0x3e   : > { %p5566_p10 = pnand %p5564_p5, %p5969_p8 }
  0x40   : > { %p5567_p11 = pneg %p5566_p10 }
  0x42   : > { %p5572_p13 = pnand %p5570_p12, %p5567_p11 }
  0x44   : > { %5575 = shalt.err (!%p5572_p13)
}
  0x45   : > { %s5576_s23 = scalar_lea.vmem %s5957_s26, 1024  ;;  %p5584_p7 = scmp.lt.s32.totalorder %s5957_s26, %s5957_s26 }
  0x46   : > { %p5577_p0 = scmp.ne.s32.totalorder %s5957_s26, %s5576_s23  ;;  %p5585_p9 = scmp.lt.s32.totalorder %s5576_s23, %s5576_s23 }
  0x48   : > { %p5579_p2 = pnand %p5577_p0, %p5969_p8  ;;  %p5586_p5 = por %p5585_p9, %p5584_p7 }
  0x4a   : > { %p5580_p4 = pneg %p5579_p2 }
  0x4c   : > { %p5587_p10 = pnand %p5586_p5, %p5580_p4 }
  0x4e   : > { %5590 = shalt.err (!%p5587_p10)
}
  0x4f   : > { %5013 = dma.hbm_to_vmem [thread:$0]  (!%p5953_p6), %s8375_s3, 1024, %s5957_s26, [#allocation11], %s8328_s30, %s8328_s30, %s8329_s11  }
  0x50   : > { %s5591_s12 = scalar_lea.hbm %s8312_s2, 2048 }
  0x51   : > { %p5592_p11 = scmp.ne.s32.totalorder %s8312_s2, %s5591_s12  ;;  %p5598_p0 = scmp.lt.u32.totalorder %s5591_s12, %s8312_s2 }
  0x53   : > { %p5594_p12 = pnand %p5592_p11, %p5969_p8 }
  0x55   : > { %p5595_p13 = pneg %p5594_p12 }
  0x57   : > { %p5600_p2 = pnand %p5598_p0, %p5595_p13 }
  0x59   : > { %5603 = shalt.err (!%p5600_p2)
}
  0x5a   : > { %s5604_s23 = scalar_lea.vmem %s326_s28, 2048  ;;  %p5612_p5 = scmp.lt.s32.totalorder %s326_s28, %s326_s28 }
  0x5b   : > { %p5605_p4 = scmp.ne.s32.totalorder %s326_s28, %s5604_s23  ;;  %p5613_p10 = scmp.lt.s32.totalorder %s5604_s23, %s5604_s23 }
  0x5d   : > { %p5607_p7 = pnand %p5605_p4, %p5969_p8  ;;  %p5614_p3 = por %p5613_p10, %p5612_p5 }
  0x5f   : > { %p5608_p9 = pneg %p5607_p7 }
  0x61   : > { %p5615_p1 = pnand %p5614_p3, %p5608_p9 }
  0x63   : > { %5618 = shalt.err (!%p5615_p1)
}
  0x64   : > { %s5838_s26 = smov 128   ;;  %s5839_s7 = smov 8  }
  0x65   : > { %5010 = dma.hbm_to_vmem [thread:$0]  (!%p5953_p6), %s8312_s2, 2048, %s326_s28, [#allocation8], %s5838_s26, %s5838_s26, %s5839_s7  }
  0x66   : > { %s5840_s16 = smov [#allocation12]   ;;  %s5841_s22 = smov [#allocation13]  }
  0x67   : > { %s351_s12 = sshll.u32 %s5840_s16, 4  ;;  %s364_s25 = sshll.u32 %s5841_s22, 4  ;;  %s352_s12 = int_to_ptr.vmem [resolvable:$true] %s351_s12  ;;  %s365_s25 = int_to_ptr.vmem [resolvable:$true] %s364_s25 }
  0x68   : > { %s5619_s23 = scalar_lea.hbm %s8314_s4, 2048 }
  0x69   : > { %p5620_p1 = scmp.ne.s32.totalorder %s8314_s4, %s5619_s23  ;;  %p5626_p12 = scmp.lt.u32.totalorder %s5619_s23, %s8314_s4 }
  0x6b   : > { %p5622_p3 = pnand %p5620_p1, %p5969_p8 }
  0x6d   : > { %p5623_p11 = pneg %p5622_p3 }
  0x6f   : > { %p5628_p13 = pnand %p5626_p12, %p5623_p11 }
  0x71   : > { %5631 = shalt.err (!%p5628_p13)
}
  0x72   : > { %s5632_s28 = scalar_lea.vmem %s352_s12, 2048  ;;  %p5640_p7 = scmp.lt.s32.totalorder %s352_s12, %s352_s12 }
  0x73   : > { %p5633_p0 = scmp.ne.s32.totalorder %s352_s12, %s5632_s28  ;;  %p5641_p9 = scmp.lt.s32.totalorder %s5632_s28, %s5632_s28 }
  0x75   : > { %p5635_p2 = pnand %p5633_p0, %p5969_p8  ;;  %p5642_p5 = por %p5641_p9, %p5640_p7 }
  0x77   : > { %p5636_p4 = pneg %p5635_p2 }
  0x79   : > { %p5643_p10 = pnand %p5642_p5, %p5636_p4 }
  0x7b   : > { %5646 = shalt.err (!%p5643_p10)
}
  0x7c   : > { %5016 = dma.hbm_to_vmem [thread:$0]  (!%p5953_p6), %s8314_s4, 2048, %s352_s12, [#allocation11], %s5838_s26, %s5838_s26, %s5839_s7  }
  0x7d   : > { %s5647_s9 = scalar_lea.hbm %s8315_s5, 2048 }
  0x7e   : > { %p5648_p1 = scmp.ne.s32.totalorder %s8315_s5, %s5647_s9  ;;  %p5654_p12 = scmp.lt.u32.totalorder %s5647_s9, %s8315_s5 }
  0x80   : > { %p5650_p3 = pnand %p5648_p1, %p5969_p8 }
  0x82   : > { %p5651_p11 = pneg %p5650_p3 }
  0x84   : > { %p5656_p13 = pnand %p5654_p12, %p5651_p11 }
  0x86   : > { %5659 = shalt.err (!%p5656_p13)
}
  0x87   : > { %s5660_s29 = scalar_lea.vmem %s365_s25, 2048  ;;  %p5668_p7 = scmp.lt.s32.totalorder %s365_s25, %s365_s25 }
  0x88   : > { %p5661_p0 = scmp.ne.s32.totalorder %s365_s25, %s5660_s29  ;;  %p5669_p9 = scmp.lt.s32.totalorder %s5660_s29, %s5660_s29 }
  0x8a   : > { %p5663_p2 = pnand %p5661_p0, %p5969_p8  ;;  %p5670_p5 = por %p5669_p9, %p5668_p7 }
  0x8c   : > { %p5664_p4 = pneg %p5663_p2 }
  0x8e   : > { %p5671_p10 = pnand %p5670_p5, %p5664_p4 }
  0x90   : > { %5674 = shalt.err (!%p5671_p10)
}
  0x91   : > { %s8376_s12 = smov 4   ;;  %s8377_s23 = smov 64  }
  0x92   : > { %5019 = dma.hbm_to_vmem [thread:$0]  (!%p5953_p6), %s8315_s5, 2048, %s365_s25, [#allocation14], %s8377_s23, %s8377_s23, %s8376_s12  }
  0x93   : > { %s4396_s19 = sadd.s32 4294967294, %s5831_s18   ;;  %s45_s24 = sadd.s32 1, %s5827_s17 }
  0x94   : > { %s52_s3 = sadd.s32 1, %s5819_s15  ;;  %p47_p8 = scmp.ge.s32.totalorder %s45_s24, 2 }
  0x95   : > { %p59_p1 = scmp.ne.s32.totalorder %s5819_s15, %s5815_s14  ;;  %p60_p3 = scmp.eq.s32.totalorder %s5831_s18, 0 }
  0x96   : > { %p65_p11 = scmp.ne.s32.totalorder %s5815_s14, %s5811_s13  ;;  %s8482_s24 = smov (%p47_p8, %s45_s24), 0 }
  0x97   : > { %p6093_p12 = por %p60_p3, %p59_p1  ;;  %p8379_p13 = scmp.ne.s32.totalorder %s8370_s20, 0 }
  0x98   : > { %s49_s11 = ssub.s32 %s5827_s17, %s8482_s24  ;;  %s8381_s9 = sadd.s32 4294967295, %s5831_s18  }
  0x99   : > { %p6099_p6 = por %p8379_p13, %p65_p11  ;;  %p259_p0 = scmp.eq.s32.totalorder %s8381_s9, 1 }
  0x9a   : > { %p50_p2 = scmp.eq.s32.totalorder %s49_s11, 0  ;;  %p265_p4 = scmp.eq.s32.totalorder %s4396_s19, 1 }
  0x9b   : > { %p6107_p7 = por %p259_p0, %p59_p1  ;;  %p5036_p9 = scmp.lt.s32.totalorder %s5831_s18, 2 }
  0x9c   : > { %s6113_s16 = scalar_select %p50_p2, %s5819_s15, %s52_s3  }
  0x9d   : > { %s8382_s10 = scalar_select %p6107_p7, 1, 0 }
  0x9e   : > { %p6115_p5 = por %p265_p4, %p65_p11  ;;  %s387_s27 = sand.u32 1, %s5819_s15  }
  0x9f   : > { %s4404_s29 = sshll.u32 %s387_s27, 8  ;;  %s4527_s12 = sshll.u32 %s5827_s17, 12 }
  0xa0   : > { %s8383_s22 = scalar_select %p6115_p5, 1, 0 }
  0xa1   : > { %s6124_s1 = scalar_lea.hbm %s8310_s0, %s4527_s12  ;;  %s391_s19 = scalar_lea.vmem [#allocation4], %s4404_s29 }
  0xa2   : > { %s398_s11 = sshll.u32 %s391_s19, 4  ;;  %p6130_p10 = pnand %p5036_p9, %p6093_p12  ;;  %s6126_s11 = int_to_ptr.vmem [resolvable:$true] %s398_s11 }
  0xa3   : > { %s6134_s9 = scalar_lea.sflag [#allocation5], %s387_s27  ;;  %s5675_s23 = scalar_lea.hbm %s6124_s1, 4096 }
  0xa4   : > { %p5676_p8 = scmp.ne.s32.totalorder %s6124_s1, %s5675_s23  ;;  %p5677_p1 = pneg %p6130_p10 }
  0xa5   : > { %s5680_s30 = scalar_lea.hbm %s8310_s0, 8192  ;;  %p5681_p12 = scmp.lt.u32.totalorder %s6124_s1, %s8310_s0 }
  0xa6   : > { %p5678_p3 = pnand %p5677_p1, %p5676_p8  ;;  %p5682_p13 = scmp.lt.u32.totalorder %s5680_s30, %s5675_s23 }
  0xa7   : > { %p5684_p2 = scmp.lt.u32.totalorder %s5675_s23, %s6124_s1 }
  0xa8   : > { %p5679_p11 = pneg %p5678_p3  ;;  %p5683_p0 = por %p5682_p13, %p5681_p12 }
  0xaa   : > { %p5685_p4 = por %p5684_p2, %p5683_p0 }
  0xac   : > { %p5686_p9 = pnand %p5685_p4, %p5679_p11 }
  0xae   : > { %5689 = shalt.err (!%p5686_p9)
}
  0xaf   : > { %s5690_s27 = scalar_lea.vmem %s6126_s11, 4096  ;;  %s5842_s29 = smov [#allocation4]  }
  0xb0   : > { %p5691_p8 = scmp.ne.s32.totalorder %s6126_s11, %s5690_s27  ;;  %s5695_s12 = sshll.u32 %s5842_s29, 4  ;;  %s5696_s12 = int_to_ptr.vmem [resolvable:$false] %s5695_s12 }
  0xb1   : > { %s5697_s28 = scalar_lea.vmem %s5696_s12, 8192  ;;  %p5698_p7 = scmp.lt.s32.totalorder %s6126_s11, %s5696_s12 }
  0xb2   : > { %p5693_p3 = pnand %p5691_p8, %p5677_p1  ;;  %p5699_p12 = scmp.lt.s32.totalorder %s5697_s28, %s5690_s27 }
  0xb4   : > { %p5694_p5 = pneg %p5693_p3  ;;  %p5700_p13 = por %p5699_p12, %p5698_p7 }
  0xb6   : > { %p5701_p0 = pnand %p5700_p13, %p5694_p5 }
  0xb8   : > { %5704 = shalt.err (!%p5701_p0)
}
  0xb9   : > { %5023 = dma.hbm_to_vmem [thread:$0]  (!%p6130_p10), %s6124_s1, 4096, %s6126_s11, %s6134_s9, %s5838_s26, %s5838_s26, %s5839_s7  }
  0xba   : > { %p8385_p1 = scmp.ne.s32.totalorder %s8371_s21, 0 }
  0xbc   : > { %410 = sbr.rel (%p8385_p1) target bundleno = 2843 (0xb1b), region = 56 }
  0xc3   : > { %s6168_s23 = sand.u32 1, %s5815_s14  }
  0xc4   : > { %s6171_s30 = sshll.u32 %s6168_s23, 8  ;;  %s413_s3 = scalar_lea.sflag [#allocation5], %s6168_s23 }
  0xc5   : > { %s6175_s19 = scalar_lea.vmem [#allocation4], %s6171_s30 }
  0xc6   : > { %5786 = dma.done.wait (%p6099_p6), %s413_s3, 4096  }
  0xc7   : > { %5788 = vsyncadd (%p6099_p6), %s413_s3, 4294963200  ;;  %p8386_p7 = scmp.ne.s32.totalorder %s8370_s20, 0 }
  0xc9   : > { %5790 = dma.done.wait (%p8386_p7), [#allocation8], 3072  }
  0xca   : > { %5792 = vsyncadd (%p8386_p7), [#allocation8], 4294964224 }
  0xcb   : > { %5794 = dma.done.wait (%p8386_p7), [#allocation11], 3072  }
  0xcc   : > { %5796 = vsyncadd (%p8386_p7), [#allocation11], 4294964224 }
  0xcd   : > { %5798 = dma.done.wait (%p8386_p7), [#allocation14], 2048  }
  0xce   : > { %5800 = vsyncadd (%p8386_p7), [#allocation14], 4294965248  ;;  %v8333_v0 = vmov 0   ;;  %v5103_v1 = vld [vmem:[#allocation9 + $0x4] ss:$8 sps:$4 sm:$0xff]   ;;  %v5129_v20 = vld [vmem:[#allocation7 + $0x10] sm:$0xff]  }
  0xcf   : > { %673 = vmatprep.mubr.bf16.mxu0 %v8333_v0  ;;  %v5105_v2 = vld [vmem:[#allocation9] ss:$8 sps:$4 sm:$0xff]   ;;  %641 = vmatprep.subr.bf16.mxu0 %v5103_v1  ;;  %v5106_v3 = vld [vmem:[#allocation9 + $0x14] ss:$8 sps:$4 sm:$0xff]   ;;  %v5108_v4 = vld [vmem:[#allocation9 + $0x10] ss:$8 sps:$4 sm:$0xff]  }
  0xd0   : > { %642 = vmatpush1.bf16.msra.mxu0 %v5105_v2  ;;  %v5109_v5 = vld [vmem:[#allocation9 + $0x24] ss:$8 sps:$4 sm:$0xff]   ;;  %v5111_v6 = vld [vmem:[#allocation9 + $0x20] ss:$8 sps:$4 sm:$0xff]   ;;  %v5112_v7 = vld [vmem:[#allocation9 + $0x34] ss:$8 sps:$4 sm:$0xff]  }
  0xd1   : > { %643 = vmatprep.subr.bf16.mxu0 %v5106_v3  ;;  %v485_v8 = vld [vmem:[%s6175_s19] sm:$0xff]  ;;  %v5114_v9 = vld [vmem:[#allocation9 + $0x30] ss:$8 sps:$4 sm:$0xff]   ;;  %v486_v10 = vld [vmem:[%s6175_s19 + $0x8] sm:$0xff]  ;;  %s6976_s25 = scalar_lea.vmem [#allocation16], %s6171_s30  ;;  %s8088_s9 = scalar_lea.vmem [#allocation15], %s6171_s30 }
  0xd2   : > { %v5115_v11 = vld [vmem:[#allocation9 + $0x44] ss:$8 sps:$4 sm:$0xff]   ;;  %v517_v12 = vpack.c.bf16 %v486_v10, %v485_v8  ;;  %v5117_v13 = vld [vmem:[#allocation9 + $0x40] ss:$8 sps:$4 sm:$0xff]   ;;  %v5118_v14 = vld [vmem:[#allocation9 + $0x54] ss:$8 sps:$4 sm:$0xff]   ;;  %v551_v10 = vlaneseq }
  0xd3   : > { %v5120_v15 = vld [vmem:[#allocation9 + $0x50] ss:$8 sps:$4 sm:$0xff]   ;;  %v5127_v16 = vld [vmem:[#allocation7] sm:$0xff]   ;;  %v5128_v18 = vld [vmem:[#allocation7 + $0x8] sm:$0xff]   ;;  %s8470_s30 = sld [smem:[#allocation24_spill]]  ;;  %s8471_s28 = sld [smem:[#allocation44_spill]] }
  0xd4   : > { %644 = vmatpush1.bf16.msra.mxu0 %v5108_v4  ;;  %4898 = vmatprep.mubr.bf16.mxu1 %v517_v12  ;;  %v5121_v17 = vld [vmem:[#allocation9 + $0x64] ss:$8 sps:$4 sm:$0xff]   ;;  %v5123_v19 = vld [vmem:[#allocation9 + $0x60] ss:$8 sps:$4 sm:$0xff]   ;;  %v5124_v21 = vld [vmem:[#allocation9 + $0x74] ss:$8 sps:$4 sm:$0xff]  }
  0xd5   : > { %645 = vmatprep.subr.bf16.mxu0 %v5109_v5  ;;  %4882 = vmatprep.subr.bf16.mxu1 %v5127_v16  ;;  %v5126_v22 = vld [vmem:[#allocation9 + $0x70] ss:$8 sps:$4 sm:$0xff]   ;;  %v5131_v24 = vld [vmem:[#allocation7 + $0x20] sm:$0xff]   ;;  %v5132_v27 = vld [vmem:[#allocation7 + $0x28] sm:$0xff]   ;;  %s4192_s20 = scalar_lea.sflag [#allocation17], %s6168_s23  ;;  %p8472_p5 = scmp.ne.s32.totalorder %s8382_s10, 0 }
  0xd6   : > { %4883 = vmatpush3.bf16.msra.mxu1 %v5127_v16  ;;  %v5130_v23 = vld [vmem:[#allocation7 + $0x18] sm:$0xff]   ;;  %v487_v25 = vld [vmem:[%s6175_s19 + $0x10] sm:$0xff]  ;;  %v489_v30 = vld [vmem:[%s6175_s19 + $0x20] sm:$0xff] }
  0xd7   : > { %4884 = vmatprep.subr.bf16.mxu1 %v5128_v18  ;;  %v488_v26 = vld [vmem:[%s6175_s19 + $0x18] sm:$0xff]  ;;  %v5133_v28 = vld [vmem:[#allocation7 + $0x30] sm:$0xff]   ;;  %v490_v31 = vld [vmem:[%s6175_s19 + $0x28] sm:$0xff] }
  0xd8   : > { %646 = vmatpush1.bf16.msra.mxu0 %v5111_v6  ;;  %v518_v29 = vpack.c.bf16 %v488_v26, %v487_v25  ;;  %v5134_v32 = vld [vmem:[#allocation7 + $0x38] sm:$0xff]   ;;  %v519_v33 = vpack.c.bf16 %v490_v31, %v489_v30  ;;  %v491_v34 = vld [vmem:[%s6175_s19 + $0x30] sm:$0xff]  ;;  %v493_v37 = vld [vmem:[%s6175_s19 + $0x40] sm:$0xff] }
  0xd9   : > { %647 = vmatprep.subr.bf16.mxu0 %v5112_v7  ;;  %v492_v35 = vld [vmem:[%s6175_s19 + $0x38] sm:$0xff]  ;;  %v494_v38 = vld [vmem:[%s6175_s19 + $0x48] sm:$0xff]  ;;  %v495_v40 = vld [vmem:[%s6175_s19 + $0x50] sm:$0xff]  ;;  %s4560_s27 = sshll.u32 %s8470_s30, 12 }
  0xda   : > { %4885 = vmatpush3.bf16.msra.mxu1 %v5128_v18  ;;  %v520_v36 = vpack.c.bf16 %v492_v35, %v491_v34  ;;  %v521_v39 = vpack.c.bf16 %v494_v38, %v493_v37  ;;  %v496_v41 = vld [vmem:[%s6175_s19 + $0x58] sm:$0xff]  ;;  %v497_v42 = vld [vmem:[%s6175_s19 + $0x60] sm:$0xff]  ;;  %v498_v43 = vld [vmem:[%s6175_s19 + $0x68] sm:$0xff]  ;;  %s8140_s3 = scalar_lea.hbm %s8471_s28, %s4560_s27 }
  0xdb   : > { %4886 = vmatprep.subr.bf16.mxu1 %v5129_v20  ;;  %v522_v44 = vpack.c.bf16 %v496_v41, %v495_v40  ;;  %v523_v45 = vpack.c.bf16 %v498_v43, %v497_v42  ;;  %v499_v46 = vld [vmem:[%s6175_s19 + $0x70] sm:$0xff]  ;;  %v500_v47 = vld [vmem:[%s6175_s19 + $0x78] sm:$0xff]  ;;  %v501_v48 = vld [vmem:[%s6175_s19 + $0x80] sm:$0xff] }
  0xdc   : > { %648 = vmatpush1.bf16.msra.mxu0 %v5114_v9  ;;  %v502_v49 = vld [vmem:[%s6175_s19 + $0x88] sm:$0xff]  ;;  %v524_v50 = vpack.c.bf16 %v500_v47, %v499_v46  ;;  %v503_v52 = vld [vmem:[%s6175_s19 + $0x90] sm:$0xff]  ;;  %v504_v53 = vld [vmem:[%s6175_s19 + $0x98] sm:$0xff] }
  0xdd   : > { %649 = vmatprep.subr.bf16.mxu0 %v5115_v11  ;;  %v525_v51 = vpack.c.bf16 %v502_v49, %v501_v48  ;;  %v505_v54 = vld [vmem:[%s6175_s19 + $0xa0] sm:$0xff]  ;;  %v506_v55 = vld [vmem:[%s6175_s19 + $0xa8] sm:$0xff]  ;;  %v526_v56 = vpack.c.bf16 %v504_v53, %v503_v52  ;;  %v507_v58 = vld [vmem:[%s6175_s19 + $0xb0] sm:$0xff]  ;;  %v6241_v11 = vshrl.u32 %v551_v10, 7 }
  0xde   : > { %4887 = vmatpush3.bf16.msra.mxu1 %v5129_v20  ;;  %v527_v57 = vpack.c.bf16 %v506_v55, %v505_v54  ;;  %v508_v59 = vld [vmem:[%s6175_s19 + $0xb8] sm:$0xff]  ;;  %v509_v60 = vld [vmem:[%s6175_s19 + $0xc0] sm:$0xff]  ;;  %v510_v61 = vld [vmem:[%s6175_s19 + $0xc8] sm:$0xff] }
  0xdf   : > { %4888 = vmatprep.subr.bf16.mxu1 %v5130_v23  ;;  %v528_v62 = vpack.c.bf16 %v508_v59, %v507_v58  ;;  %v529_v63 = vpack.c.bf16 %v510_v61, %v509_v60  ;;  %v511_v1 = vld [vmem:[%s6175_s19 + $0xd0] sm:$0xff]  ;;  %v512_v2 = vld [vmem:[%s6175_s19 + $0xd8] sm:$0xff]  ;;  %v513_v3 = vld [vmem:[%s6175_s19 + $0xe0] sm:$0xff]  ;;  %8387 = vst [vmem:[#allocation25_spill] sm:$0xff] %v6241_v11 }
  0xe0   : > { %650 = vmatpush1.bf16.msra.mxu0 %v5117_v13  ;;  %v514_v4 = vld [vmem:[%s6175_s19 + $0xe8] sm:$0xff]  ;;  %v530_v5 = vpack.c.bf16 %v512_v2, %v511_v1  ;;  %v515_v7 = vld [vmem:[%s6175_s19 + $0xf0] sm:$0xff]  ;;  %v516_v8 = vld [vmem:[%s6175_s19 + $0xf8] sm:$0xff] }
  0xe1   : > { %651 = vmatprep.subr.bf16.mxu0 %v5118_v14  ;;  %v531_v6 = vpack.c.bf16 %v514_v4, %v513_v3  ;;  %v532_v9 = vpack.c.bf16 %v516_v8, %v515_v7  ;;  %v549_v13 = vld [vmem:[%s8316_s6] sm:$0x3]  ;;  %v8331_v14 = vsub.s32 1, %v6241_v11 }
  0xe2   : > { %4889 = vmatpush3.bf16.msra.mxu1 %v5130_v23 }
  0xe3   : > { %4890 = vmatprep.subr.bf16.mxu1 %v5131_v24 }
  0xe4   : > { %652 = vmatpush1.bf16.msra.mxu0 %v5120_v15 }
  0xe5   : > { %653 = vmatprep.subr.bf16.mxu0 %v5121_v17  ;;  %v6254_v17 = vrot.slane %v549_v13, %v8331_v14 }
  0xe6   : > { %4891 = vmatpush3.bf16.msra.mxu1 %v5131_v24 }
  0xe7   : > { %4892 = vmatprep.subr.bf16.mxu1 %v5132_v27 }
  0xe8   : > { %654 = vmatpush1.bf16.msra.mxu0 %v5123_v19 }
  0xe9   : > { %655 = vmatprep.subr.bf16.mxu0 %v5124_v21 }
  0xea   : > { %4893 = vmatpush3.bf16.msra.mxu1 %v5132_v27 }
  0xeb   : > { %4894 = vmatprep.subr.bf16.mxu1 %v5133_v28 }
  0xec   : > { %656 = vmatpush1.bf16.msra.mxu0 %v5126_v22 }
  0xee   : > { %4895 = vmatpush3.bf16.msra.mxu1 %v5133_v28 }
  0xef   : > { %674 = vmatmul.mubr.bf16.vlgmr.msra.gmra.mrb[0].mxu0 %v517_v12  ;;  %4896 = vmatprep.subr.bf16.mxu1 %v5134_v32  ;;  %v8332_v12 = vsub.s32 0, %v6241_v11 }
  0xf0   : > { %683 = vmatprep.mubr.bf16.mxu0 %v8333_v0 }
  0xf1   : > { %v6250_v15 = vrot.slane %v549_v13, %v8332_v12 }
  0xf2   : > { %4897 = vmatpush3.bf16.msra.mxu1 %v5134_v32 }
  0xf5   : > { %4899 = vmatmul.mubr.bf16.vlgmr.msra.gmra.mrb[0].mxu1 %v518_v29 }
  0xf6   : > { %4902 = vmatprep.mubr.bf16.mxu1 %v519_v33 }
  0xf7   : > { %684 = vmatmul.mubr.bf16.gmra.mrb[4].mxu0 %v518_v29 }
  0xf8   : > { %693 = vmatprep.mubr.bf16.mxu0 %v8333_v0 }
  0xfd   : > { %4903 = vmatmul.mubr.bf16.gmra.mrb[4].mxu1 %v520_v36 }
  0xfe   : > { %4906 = vmatprep.mubr.bf16.mxu1 %v521_v39 }
  0xff   : > { %694 = vmatmul.mubr.bf16.gmra.mrb[8].mxu0 %v519_v33 }
 0x100   : > { %703 = vmatprep.mubr.bf16.mxu0 %v8333_v0 }
 0x105   : > { %4907 = vmatmul.mubr.bf16.gmra.mrb[8].mxu1 %v522_v44 }
 0x106   : > { %4910 = vmatprep.mubr.bf16.mxu1 %v523_v45 }
 0x107   : > { %704 = vmatmul.mubr.bf16.gmra.mrb[12].mxu0 %v520_v36 }
 0x108   : > { %713 = vmatprep.mubr.bf16.mxu0 %v8333_v0 }
 0x10d   : > { %4911 = vmatmul.mubr.bf16.gmra.mrb[12].mxu1 %v524_v50 }
 0x10e   : > { %4914 = vmatprep.mubr.bf16.mxu1 %v525_v51 }
 0x10f   : > { %714 = vmatmul.mubr.bf16.gmra.mrb[16].mxu0 %v521_v39  ;;  %v6291_v39 = vld [vmem:[%s8318_s8] ss:$0 sm:$0xff] }
 0x110   : > { %723 = vmatprep.mubr.bf16.mxu0 %v8333_v0 }
 0x115   : > { %4915 = vmatmul.mubr.bf16.gmra.mrb[16].mxu1 %v526_v56 }
 0x116   : > { %4918 = vmatprep.mubr.bf16.mxu1 %v527_v57 }
 0x117   : > { %724 = vmatmul.mubr.bf16.gmra.mrb[20].mxu0 %v522_v44 }
 0x118   : > { %733 = vmatprep.mubr.bf16.mxu0 %v8333_v0 }
 0x11d   : > { %4919 = vmatmul.mubr.bf16.gmra.mrb[20].mxu1 %v528_v62 }
 0x11e   : > { %4922 = vmatprep.mubr.bf16.mxu1 %v529_v63 }
 0x11f   : > { %734 = vmatmul.mubr.bf16.gmra.mrb[24].mxu0 %v523_v45 }
 0x120   : > { %743 = vmatprep.mubr.bf16.mxu0 %v8333_v0 }
 0x125   : > { %4923 = vmatmul.mubr.bf16.gmra.mrb[24].mxu1 %v530_v5 }
 0x126   : > { %4926 = vmatprep.mubr.bf16.mxu1 %v531_v6 }
 0x127   : > { %744 = vmatmul.mubr.bf16.gmra.mrb[28].mxu0 %v524_v50 }
 0x128   : > { %753 = vmatprep.mubr.bf16.mxu0 %v8333_v0 }
 0x12d   : > { %4927 = vmatmul.mubr.bf16.gmra.mrb[28].mxu1 %v532_v9 }
 0x12f   : > { %754 = vmatmul.mubr.bf16.gmra.mrb[32].mxu0 %v525_v51 }
 0x130   : > { %763 = vmatprep.mubr.bf16.mxu0 %v8333_v0 }
 0x137   : > { %764 = vmatmul.mubr.bf16.gmra.mrb[36].mxu0 %v526_v56 }
 0x138   : > { %773 = vmatprep.mubr.bf16.mxu0 %v8333_v0 }
 0x13f   : > { %774 = vmatmul.mubr.bf16.gmra.mrb[40].mxu0 %v527_v57 }
 0x140   : > { %783 = vmatprep.mubr.bf16.mxu0 %v8333_v0 }
 0x147   : > { %784 = vmatmul.mubr.bf16.gmra.mrb[44].mxu0 %v528_v62 }
 0x148   : > { %793 = vmatprep.mubr.bf16.mxu0 %v8333_v0 }
 0x14f   : > { %794 = vmatmul.mubr.bf16.gmra.mrb[48].mxu0 %v529_v63 }
 0x150   : > { %803 = vmatprep.mubr.bf16.mxu0 %v8333_v0 }
 0x157   : > { %804 = vmatmul.mubr.bf16.gmra.mrb[52].mxu0 %v530_v5 }
 0x158   : > { %813 = vmatprep.mubr.bf16.mxu0 %v8333_v0 }
 0x15f   : > { %814 = vmatmul.mubr.bf16.gmra.mrb[56].mxu0 %v531_v6 }
 0x160   : > { %823 = vmatprep.mubr.bf16.mxu0 %v8333_v0 }
 0x167   : > { %824 = vmatmul.mubr.bf16.gmra.mrb[60].mxu0 %v532_v9 }
 0x1c2   : > { %v675_v16 = vpop.f32.mrb[0].mxu0 }
 0x1c3   : > { %v677_v18 = vpop.f32.mrb[1].mxu0  ;;  %v6257_v20 = vadd.f32 %v675_v16, %v6250_v15 }
 0x1c4   : > { %v679_v19 = vpop.f32.mrb[2].mxu0  ;;  %v6263_v23 = vadd.f32 %v677_v18, %v6254_v17 }
 0x1c5   : > { %v6260_v21 = vadd.f32 %v679_v19, %v6250_v15  ;;  %v681_v22 = vpop.f32.mrb[3].mxu0 }
 0x1c6   : > { %v6266_v24 = vadd.f32 %v681_v22, %v6254_v17 }
 0x1c7   : > { %v834_v25 = vpack.c.bf16 %v6260_v21, %v6257_v20 }
 0x1c8   : > { %v4900_v44 = vpop.f32.mrb[0].mxu1 }
 0x1c9   : > { %v1066_v47 = vadd.f32 %v4900_v44, %v6291_v39  ;;  %v1057_v48 = vpop.f32.mrb[1].mxu1 }
 0x1ca   : > { %v685_v27 = vpop.f32.mrb[4].mxu0  ;;  %v1058_v50 = vadd.f32 %v6291_v39, %v1057_v48  ;;  %v4901_v51 = vpop.f32.mrb[2].mxu1 }
 0x1cb   : > { %v687_v28 = vpop.f32.mrb[5].mxu0  ;;  %v6273_v30 = vadd.f32 %v685_v27, %v6250_v15  ;;  %v1069_v53 = vadd.f32 %v4901_v51, %v6291_v39  ;;  %v1060_v54 = vpop.f32.mrb[3].mxu1 }
 0x1cc   : > { %v689_v29 = vpop.f32.mrb[6].mxu0  ;;  %v6279_v33 = vadd.f32 %v687_v28, %v6254_v17  ;;  %v1061_v55 = vadd.f32 %v6291_v39, %v1060_v54 }
 0x1cd   : > { %v6276_v31 = vadd.f32 %v689_v29, %v6250_v15  ;;  %v691_v32 = vpop.f32.mrb[7].mxu0  ;;  %v6313_v57 = vpack.c.bf16 %v1069_v53, %v1066_v47 }
 0x1ce   : > { %v6282_v34 = vadd.f32 %v691_v32, %v6254_v17  ;;  %v6315_v59 = vpack.c.bf16 %v1061_v55, %v1058_v50 }
 0x1d0   : > { %4602 = vmatprep.mubr.bf16.mxu1 %v6315_v59  ;;  %v4904_v1 = vpop.f32.mrb[4].mxu1 }
 0x1d1   : > { %v1082_v4 = vadd.f32 %v4904_v1, %v6291_v39  ;;  %v1073_v5 = vpop.f32.mrb[5].mxu1 }
 0x1d2   : > { %v695_v37 = vpop.f32.mrb[8].mxu0  ;;  %v1074_v7 = vadd.f32 %v6291_v39, %v1073_v5  ;;  %v4905_v8 = vpop.f32.mrb[6].mxu1 }
 0x1d3   : > { %v697_v38 = vpop.f32.mrb[9].mxu0  ;;  %v6294_v41 = vadd.f32 %v695_v37, %v6250_v15  ;;  %v1085_v10 = vadd.f32 %v4905_v8, %v6291_v39  ;;  %v1076_v13 = vpop.f32.mrb[7].mxu1 }
 0x1d4   : > { %v699_v40 = vpop.f32.mrb[10].mxu0  ;;  %v6300_v45 = vadd.f32 %v697_v38, %v6254_v17  ;;  %v1077_v16 = vadd.f32 %v6291_v39, %v1076_v13 }
 0x1d5   : > { %v6297_v42 = vadd.f32 %v699_v40, %v6250_v15  ;;  %v701_v43 = vpop.f32.mrb[11].mxu0  ;;  %v6338_v19 = vpack.c.bf16 %v1085_v10, %v1082_v4 }
 0x1d6   : > { %v6303_v46 = vadd.f32 %v701_v43, %v6254_v17  ;;  %v6340_v27 = vpack.c.bf16 %v1077_v16, %v1074_v7 }
 0x1d8   : > { %v4908_v38 = vpop.f32.mrb[8].mxu1 }
 0x1d9   : > { %v1098_v44 = vadd.f32 %v4908_v38, %v6291_v39  ;;  %v1089_v47 = vpop.f32.mrb[9].mxu1 }
 0x1da   : > { %v705_v56 = vpop.f32.mrb[12].mxu0  ;;  %v1090_v50 = vadd.f32 %v6291_v39, %v1089_v47  ;;  %v4909_v51 = vpop.f32.mrb[10].mxu1 }
 0x1db   : > { %v707_v58 = vpop.f32.mrb[13].mxu0  ;;  %v6318_v61 = vadd.f32 %v705_v56, %v6250_v15  ;;  %v1101_v54 = vadd.f32 %v4909_v51, %v6291_v39  ;;  %v1092_v55 = vpop.f32.mrb[11].mxu1 }
 0x1dc   : > { %v709_v60 = vpop.f32.mrb[14].mxu0  ;;  %v6325_v2 = vadd.f32 %v707_v58, %v6254_v17  ;;  %v1093_v56 = vadd.f32 %v6291_v39, %v1092_v55 }
 0x1dd   : > { %v6321_v62 = vadd.f32 %v709_v60, %v6250_v15  ;;  %v711_v63 = vpop.f32.mrb[15].mxu0  ;;  %v6362_v60 = vpack.c.bf16 %v1101_v54, %v1098_v44 }
 0x1de   : > { %v6328_v3 = vadd.f32 %v711_v63, %v6254_v17  ;;  %v6364_v1 = vpack.c.bf16 %v1093_v56, %v1090_v50 }
 0x1e0   : > { %v4912_v10 = vpop.f32.mrb[12].mxu1 }
 0x1e2   : > { %v715_v18 = vpop.f32.mrb[16].mxu0 }
 0x1e3   : > { %v717_v22 = vpop.f32.mrb[17].mxu0  ;;  %v6343_v29 = vadd.f32 %v715_v18, %v6250_v15  ;;  %v1105_v18 = vpop.f32.mrb[13].mxu1 }
 0x1e4   : > { %v719_v28 = vpop.f32.mrb[18].mxu0  ;;  %v6349_v40 = vadd.f32 %v717_v22, %v6254_v17  ;;  %v1106_v38 = vadd.f32 %v6291_v39, %v1105_v18  ;;  %v4913_v44 = vpop.f32.mrb[14].mxu1 }
 0x1e5   : > { %v6346_v32 = vadd.f32 %v719_v28, %v6250_v15  ;;  %v721_v37 = vpop.f32.mrb[19].mxu0  ;;  %v1117_v50 = vadd.f32 %v4913_v44, %v6291_v39  ;;  %v1108_v51 = vpop.f32.mrb[15].mxu1 }
 0x1e6   : > { %v6352_v43 = vadd.f32 %v721_v37, %v6254_v17  ;;  %v1114_v37 = vadd.f32 %v4912_v10, %v6291_v39  ;;  %v1109_v55 = vadd.f32 %v6291_v39, %v1108_v51 }
 0x1e8   : > { %v6394_v10 = vpack.c.bf16 %v1109_v55, %v1106_v38 }
 0x1ea   : > { %v725_v58 = vpop.f32.mrb[20].mxu0 }
 0x1eb   : > { %v727_v63 = vpop.f32.mrb[21].mxu0  ;;  %v6367_v5 = vadd.f32 %v725_v58, %v6250_v15  ;;  %v6386_v58 = vpack.c.bf16 %v1117_v50, %v1114_v37 }
 0x1ec   : > { %v729_v4 = vpop.f32.mrb[22].mxu0  ;;  %v6373_v13 = vadd.f32 %v727_v63, %v6254_v17 }
 0x1ed   : > { %v6370_v7 = vadd.f32 %v729_v4, %v6250_v15  ;;  %v731_v8 = vpop.f32.mrb[23].mxu0 }
 0x1ee   : > { %v6376_v16 = vadd.f32 %v731_v8, %v6254_v17 }
 0x1f2   : > { %v735_v47 = vpop.f32.mrb[24].mxu0 }
 0x1f3   : > { %v737_v54 = vpop.f32.mrb[25].mxu0  ;;  %v6389_v63 = vadd.f32 %v735_v47, %v6250_v15  ;;  %v4916_v47 = vpop.f32.mrb[16].mxu1 }
 0x1f4   : > { %v739_v56 = vpop.f32.mrb[26].mxu0  ;;  %v6397_v18 = vadd.f32 %v737_v54, %v6254_v17  ;;  %v1121_v14 = vpop.f32.mrb[17].mxu1  ;;  %v1130_v28 = vadd.f32 %v4916_v47, %v6291_v39 }
 0x1f5   : > { %v6392_v4 = vadd.f32 %v739_v56, %v6250_v15  ;;  %v741_v8 = vpop.f32.mrb[27].mxu0  ;;  %v4917_v22 = vpop.f32.mrb[18].mxu1 }
 0x1f6   : > { %v6400_v44 = vadd.f32 %v741_v8, %v6254_v17  ;;  %v1133_v53 = vadd.f32 %v4917_v22, %v6291_v39  ;;  %v1124_v48 = vpop.f32.mrb[19].mxu1 }
 0x1f7   : > { %v1125_v9 = vadd.f32 %v6291_v39, %v1124_v48  ;;  %v4920_v35 = vpop.f32.mrb[20].mxu1 }
 0x1f8   : > { %v6426_v6 = vpack.c.bf16 %v1133_v53, %v1130_v28  ;;  %v1137_v48 = vpop.f32.mrb[21].mxu1  ;;  %v1146_v21 = vadd.f32 %v4920_v35, %v6291_v39 }
 0x1fa   : > { %v745_v50 = vpop.f32.mrb[28].mxu0 }
 0x1fb   : > { %v747_v56 = vpop.f32.mrb[29].mxu0  ;;  %v6407_v38 = vadd.f32 %v745_v50, %v6250_v15  ;;  %v1122_v50 = vadd.f32 %v6291_v39, %v1121_v14 }
 0x1fc   : > { %v749_v12 = vpop.f32.mrb[30].mxu0  ;;  %v6413_v8 = vadd.f32 %v747_v56, %v6254_v17 }
 0x1fd   : > { %v6410_v54 = vadd.f32 %v749_v12, %v6250_v15  ;;  %v751_v55 = vpop.f32.mrb[31].mxu0  ;;  %v6430_v49 = vpack.c.bf16 %v1125_v9, %v1122_v50  ;;  %v8388_v9 = vpack.c.bf16 %v6266_v24, %v6263_v23  ;;  %v8389_v24 = vpack.c.bf16 %v6276_v31, %v6273_v30 }
 0x1fe   : > { %v6416_v0 = vadd.f32 %v751_v55, %v6254_v17 }
 0x202   : > { %v755_v12 = vpop.f32.mrb[32].mxu0 }
 0x203   : > { %v757_v56 = vpop.f32.mrb[33].mxu0  ;;  %v756_v37 = vadd.f32 %v755_v12, %v6250_v15 }
 0x204   : > { %v759_v55 = vpop.f32.mrb[34].mxu0  ;;  %v758_v14 = vadd.f32 %v757_v56, %v6254_v17  ;;  %v4921_v56 = vpop.f32.mrb[22].mxu1 }
 0x205   : > { %v760_v52 = vadd.f32 %v759_v55, %v6250_v15  ;;  %v761_v51 = vpop.f32.mrb[35].mxu0  ;;  %v1140_v55 = vpop.f32.mrb[23].mxu1 }
 0x206   : > { %v762_v47 = vadd.f32 %v761_v51, %v6254_v17  ;;  %v1141_v35 = vadd.f32 %v6291_v39, %v1140_v55  ;;  %v8393_v55 = vpack.c.bf16 %v6321_v62, %v6318_v61 }
 0x207   : > { %v842_v36 = vpack.c.bf16 %v760_v52, %v756_v37 }
 0x208   : > { %v874_v22 = vpack.c.bf16 %v762_v47, %v758_v14  ;;  %v8390_v47 = vpack.c.bf16 %v6282_v34, %v6279_v33  ;;  %v8391_v34 = vpack.c.bf16 %v6297_v42, %v6294_v41  ;;  %v4924_v41 = vpop.f32.mrb[24].mxu1 }
 0x209   : > { %4586 = vmatprep.subr.bf16.mxu1 %v842_v36 }
 0x20a   : > { %v765_v26 = vpop.f32.mrb[36].mxu0  ;;  %4587 = vmatpush3.bf16.xpose.msra.mxu1 %v834_v25  ;;  %4634 = vmatprep.subr.bf16.mxu0 %v874_v22  ;;  %v1138_v25 = vadd.f32 %v6291_v39, %v1137_v48 }
 0x20b   : > { %v767_v53 = vpop.f32.mrb[37].mxu0  ;;  %4635 = vmatpush3.bf16.msra.mxu0 %v8388_v9  ;;  %v766_v50 = vadd.f32 %v765_v26, %v6250_v15  ;;  %v1149_v26 = vadd.f32 %v4921_v56, %v6291_v39 }
 0x20c   : > { %v769_v28 = vpop.f32.mrb[38].mxu0  ;;  %v768_v36 = vadd.f32 %v767_v53, %v6254_v17  ;;  %v6458_v31 = vpack.c.bf16 %v1141_v35, %v1138_v25 }
 0x20d   : > { %v770_v52 = vadd.f32 %v769_v28, %v6250_v15  ;;  %v771_v51 = vpop.f32.mrb[39].mxu0  ;;  %v6454_v53 = vpack.c.bf16 %v1149_v26, %v1146_v21 }
 0x20e   : > { %v772_v37 = vadd.f32 %v771_v51, %v6254_v17 }
 0x20f   : > { %v843_v12 = vpack.c.bf16 %v770_v52, %v766_v50 }
 0x210   : > { %v875_v20 = vpack.c.bf16 %v772_v37, %v768_v36  ;;  %v8392_v37 = vpack.c.bf16 %v6303_v46, %v6300_v45  ;;  %v1162_v45 = vadd.f32 %v4924_v41, %v6291_v39  ;;  %v1153_v46 = vpop.f32.mrb[25].mxu1 }
 0x211   : > { %4588 = vmatprep.subr.bf16.mxu1 %v843_v12  ;;  %v1154_v35 = vadd.f32 %v6291_v39, %v1153_v46 }
 0x212   : > { %v775_v23 = vpop.f32.mrb[40].mxu0  ;;  %4589 = vmatpush3.bf16.xpose.msra.mxu1 %v8389_v24  ;;  %4636 = vmatprep.subr.bf16.mxu0 %v875_v20 }
 0x213   : > { %v777_v14 = vpop.f32.mrb[41].mxu0  ;;  %4637 = vmatpush3.bf16.msra.mxu0 %v8390_v47  ;;  %v776_v48 = vadd.f32 %v775_v23, %v6250_v15  ;;  %v8394_v47 = vpack.c.bf16 %v6328_v3, %v6325_v2 }
 0x214   : > { %v779_v22 = vpop.f32.mrb[42].mxu0  ;;  %v778_v28 = vadd.f32 %v777_v14, %v6254_v17 }
 0x215   : > { %v780_v9 = vadd.f32 %v779_v22, %v6250_v15  ;;  %v781_v30 = vpop.f32.mrb[43].mxu0  ;;  %v4925_v22 = vpop.f32.mrb[26].mxu1 }
 0x216   : > { %v782_v50 = vadd.f32 %v781_v30, %v6254_v17  ;;  %v1156_v30 = vpop.f32.mrb[27].mxu1 }
 0x217   : > { %v844_v52 = vpack.c.bf16 %v780_v9, %v776_v48  ;;  %v1165_v9 = vadd.f32 %v4925_v22, %v6291_v39  ;;  %v8398_v22 = vpack.c.bf16 %v6376_v16, %v6373_v13  ;;  %v8399_v13 = vpack.c.bf16 %v6392_v4, %v6389_v63 }
 0x218   : > { %v876_v51 = vpack.c.bf16 %v782_v50, %v778_v28  ;;  %v1157_v50 = vadd.f32 %v6291_v39, %v1156_v30  ;;  %v8400_v16 = vpack.c.bf16 %v6400_v44, %v6397_v18  ;;  %v8401_v63 = vpack.c.bf16 %v6410_v54, %v6407_v38 }
 0x219   : > { %4590 = vmatprep.subr.bf16.mxu1 %v844_v52  ;;  %v6486_v2 = vpack.c.bf16 %v1165_v9, %v1162_v45  ;;  %v8402_v4 = vpack.c.bf16 %v6416_v0, %v6413_v8 }
 0x21a   : > { %v785_v33 = vpop.f32.mrb[44].mxu0  ;;  %4591 = vmatpush3.bf16.xpose.msra.mxu1 %v8391_v34  ;;  %4638 = vmatprep.subr.bf16.mxu0 %v876_v51 }
 0x21b   : > { %v787_v36 = vpop.f32.mrb[45].mxu0  ;;  %4639 = vmatpush3.bf16.msra.mxu0 %v8392_v37  ;;  %v786_v20 = vadd.f32 %v785_v33, %v6250_v15  ;;  %v6488_v33 = vpack.c.bf16 %v1157_v50, %v1154_v35 }
 0x21c   : > { %v789_v12 = vpop.f32.mrb[46].mxu0  ;;  %v788_v56 = vadd.f32 %v787_v36, %v6254_v17  ;;  %v4928_v36 = vpop.f32.mrb[28].mxu1 }
 0x21d   : > { %v790_v21 = vadd.f32 %v789_v12, %v6250_v15  ;;  %v791_v25 = vpop.f32.mrb[47].mxu0  ;;  %v8395_v12 = vpack.c.bf16 %v6346_v32, %v6343_v29  ;;  %v1178_v32 = vadd.f32 %v4928_v36, %v6291_v39 }
 0x21e   : > { %v792_v23 = vadd.f32 %v791_v25, %v6254_v17  ;;  %v8396_v25 = vpack.c.bf16 %v6352_v43, %v6349_v40  ;;  %v8397_v43 = vpack.c.bf16 %v6370_v7, %v6367_v5 }
 0x21f   : > { %v845_v24 = vpack.c.bf16 %v790_v21, %v786_v20  ;;  %v1169_v20 = vpop.f32.mrb[29].mxu1 }
 0x220   : > { %v877_v26 = vpack.c.bf16 %v792_v23, %v788_v56  ;;  %v1170_v45 = vadd.f32 %v6291_v39, %v1169_v20  ;;  %v4929_v46 = vpop.f32.mrb[30].mxu1 }
 0x221   : > { %4592 = vmatprep.subr.bf16.mxu1 %v845_v24 }
 0x222   : > { %v795_v42 = vpop.f32.mrb[48].mxu0  ;;  %4593 = vmatpush3.bf16.xpose.msra.mxu1 %v8393_v55  ;;  %4640 = vmatprep.subr.bf16.mxu0 %v877_v26 }
 0x223   : > { %v797_v14 = vpop.f32.mrb[49].mxu0  ;;  %4641 = vmatpush3.bf16.msra.mxu0 %v8394_v47  ;;  %v796_v28 = vadd.f32 %v795_v42, %v6250_v15  ;;  %v1172_v47 = vpop.f32.mrb[31].mxu1 }
 0x224   : > { %v799_v48 = vpop.f32.mrb[50].mxu0  ;;  %v798_v52 = vadd.f32 %v797_v14, %v6254_v17  ;;  %v1181_v14 = vadd.f32 %v4929_v46, %v6291_v39 }
 0x225   : > { %v800_v61 = vadd.f32 %v799_v48, %v6250_v15  ;;  %v801_v62 = vpop.f32.mrb[51].mxu0  ;;  %v1173_v48 = vadd.f32 %v6291_v39, %v1172_v47 }
 0x226   : > { %v802_v51 = vadd.f32 %v801_v62, %v6254_v17  ;;  %v1199_v30 = vpack.c.bf16 %v1181_v14, %v1178_v32 }
 0x227   : > { %v846_v3 = vpack.c.bf16 %v800_v61, %v796_v28  ;;  %v1198_v5 = vpack.c.bf16 %v1173_v48, %v1170_v45 }
 0x228   : > { %v878_v34 = vpack.c.bf16 %v802_v51, %v798_v52 }
 0x229   : > { %4594 = vmatprep.subr.bf16.mxu1 %v846_v3 }
 0x22a   : > { %v805_v37 = vpop.f32.mrb[52].mxu0  ;;  %4595 = vmatpush3.bf16.xpose.msra.mxu1 %v8395_v12  ;;  %4642 = vmatprep.subr.bf16.mxu0 %v878_v34 }
 0x22b   : > { %v807_v21 = vpop.f32.mrb[53].mxu0  ;;  %4643 = vmatpush3.bf16.msra.mxu0 %v8396_v25  ;;  %v806_v23 = vadd.f32 %v805_v37, %v6250_v15 }
 0x22c   : > { %v809_v56 = vpop.f32.mrb[54].mxu0  ;;  %v808_v41 = vadd.f32 %v807_v21, %v6254_v17 }
 0x22d   : > { %v810_v24 = vadd.f32 %v809_v56, %v6250_v15  ;;  %v811_v26 = vpop.f32.mrb[55].mxu0 }
 0x22e   : > { %v812_v42 = vadd.f32 %v811_v26, %v6254_v17 }
 0x22f   : > { %v847_v55 = vpack.c.bf16 %v810_v24, %v806_v23 }
 0x230   : > { %v879_v29 = vpack.c.bf16 %v812_v42, %v808_v41 }
 0x231   : > { %4596 = vmatprep.subr.bf16.mxu1 %v847_v55 }
 0x232   : > { %v815_v40 = vpop.f32.mrb[56].mxu0  ;;  %4597 = vmatpush3.bf16.xpose.msra.mxu1 %v8397_v43  ;;  %4644 = vmatprep.subr.bf16.mxu0 %v879_v29 }
 0x233   : > { %v817_v35 = vpop.f32.mrb[57].mxu0  ;;  %4645 = vmatpush3.bf16.msra.mxu0 %v8398_v22  ;;  %v816_v28 = vadd.f32 %v815_v40, %v6250_v15 }
 0x234   : > { %v819_v9 = vpop.f32.mrb[58].mxu0  ;;  %v818_v7 = vadd.f32 %v817_v35, %v6254_v17 }
 0x235   : > { %v820_v61 = vadd.f32 %v819_v9, %v6250_v15  ;;  %v821_v62 = vpop.f32.mrb[59].mxu0 }
 0x236   : > { %v822_v50 = vadd.f32 %v821_v62, %v6254_v17 }
 0x237   : > { %v848_v52 = vpack.c.bf16 %v820_v61, %v816_v28 }
 0x238   : > { %v880_v51 = vpack.c.bf16 %v822_v50, %v818_v7 }
 0x239   : > { %4598 = vmatprep.subr.bf16.mxu1 %v848_v52 }
 0x23a   : > { %v825_v3 = vpop.f32.mrb[60].mxu0  ;;  %4599 = vmatpush3.bf16.xpose.msra.mxu1 %v8399_v13  ;;  %4646 = vmatprep.subr.bf16.mxu0 %v880_v51 }
 0x23b   : > { %v827_v39 = vpop.f32.mrb[61].mxu0  ;;  %4647 = vmatpush3.bf16.msra.mxu0 %v8400_v16  ;;  %v826_v36 = vadd.f32 %v825_v3, %v6250_v15 }
 0x23c   : > { %v829_v34 = vpop.f32.mrb[62].mxu0  ;;  %v828_v20 = vadd.f32 %v827_v39, %v6254_v17 }
 0x23d   : > { %v830_v37 = vadd.f32 %v829_v34, %v6250_v15  ;;  %v831_v12 = vpop.f32.mrb[63].mxu0 }
 0x23e   : > { %v832_v21 = vadd.f32 %v831_v12, %v6254_v17 }
 0x23f   : > { %v849_v25 = vpack.c.bf16 %v830_v37, %v826_v36 }
 0x240   : > { %v881_v56 = vpack.c.bf16 %v832_v21, %v828_v20 }
 0x241   : > { %4600 = vmatprep.subr.bf16.mxu1 %v849_v25 }
 0x242   : > { %4601 = vmatpush3.bf16.xpose.msra.mxu1 %v8401_v63  ;;  %4648 = vmatprep.subr.bf16.mxu0 %v881_v56 }
 0x243   : > { %4649 = vmatpush3.bf16.msra.mxu0 %v8402_v4 }
 0x249   : > { %4603 = vmatmul.mubr.bf16.vlgmr.msra.gmra.mrb[32].mxu1 %v6315_v59 }
 0x24a   : > { %4604 = vmatprep.mubr.bf16.mxu1 %v6313_v57 }
 0x251   : > { %4605 = vmatmul.mubr.bf16.gmra.mrb[36].mxu1 %v6313_v57 }
 0x252   : > { %4606 = vmatprep.mubr.bf16.mxu1 %v6340_v27 }
 0x259   : > { %4607 = vmatmul.mubr.bf16.gmra.mrb[40].mxu1 %v6340_v27 }
 0x25a   : > { %4608 = vmatprep.mubr.bf16.mxu1 %v6338_v19 }
 0x261   : > { %4609 = vmatmul.mubr.bf16.gmra.mrb[44].mxu1 %v6338_v19 }
 0x262   : > { %4610 = vmatprep.mubr.bf16.mxu1 %v6364_v1 }
 0x269   : > { %4611 = vmatmul.mubr.bf16.gmra.mrb[48].mxu1 %v6364_v1 }
 0x26a   : > { %4612 = vmatprep.mubr.bf16.mxu1 %v6362_v60 }
 0x271   : > { %4613 = vmatmul.mubr.bf16.gmra.mrb[52].mxu1 %v6362_v60 }
 0x272   : > { %4614 = vmatprep.mubr.bf16.mxu1 %v6394_v10 }
 0x279   : > { %4615 = vmatmul.mubr.bf16.gmra.mrb[56].mxu1 %v6394_v10 }
 0x27a   : > { %4616 = vmatprep.mubr.bf16.mxu1 %v6386_v58 }
 0x281   : > { %4617 = vmatmul.mubr.bf16.gmra.mrb[60].mxu1 %v6386_v58 }
 0x282   : > { %4618 = vmatprep.mubr.bf16.mxu1 %v6430_v49 }
 0x289   : > { %4619 = vmatmul.mubr.bf16.gmra.mrb[64].mxu1 %v6430_v49 }
 0x28a   : > { %4620 = vmatprep.mubr.bf16.mxu1 %v6426_v6 }
 0x291   : > { %4621 = vmatmul.mubr.bf16.gmra.mrb[68].mxu1 %v6426_v6 }
 0x292   : > { %4622 = vmatprep.mubr.bf16.mxu1 %v6458_v31 }
 0x299   : > { %4623 = vmatmul.mubr.bf16.gmra.mrb[72].mxu1 %v6458_v31 }
 0x29a   : > { %4624 = vmatprep.mubr.bf16.mxu1 %v6454_v53 }
 0x2a1   : > { %4625 = vmatmul.mubr.bf16.gmra.mrb[76].mxu1 %v6454_v53 }
 0x2a2   : > { %4626 = vmatprep.mubr.bf16.mxu1 %v6488_v33 }
 0x2a9   : > { %4627 = vmatmul.mubr.bf16.gmra.mrb[80].mxu1 %v6488_v33 }
 0x2aa   : > { %4628 = vmatprep.mubr.bf16.mxu1 %v6486_v2 }
 0x2b1   : > { %4629 = vmatmul.mubr.bf16.gmra.mrb[84].mxu1 %v6486_v2 }
 0x2b2   : > { %4630 = vmatprep.mubr.bf16.mxu1 %v1198_v5 }
 0x2b9   : > { %4631 = vmatmul.mubr.bf16.gmra.mrb[88].mxu1 %v1198_v5 }
 0x2ba   : > { %4632 = vmatprep.mubr.bf16.mxu1 %v1199_v30 }
 0x2c1   : > { %4633 = vmatmul.mubr.bf16.gmra.mrb[92].mxu1 %v1199_v30 }
 0x31c   : > { %v6557_v0 = vpop.f32.mrb[32].mxu1 }
 0x31d   : > { %v6559_v15 = vpop.f32.mrb[33].mxu1 }
 0x31e   : > { %v6561_v17 = vpop.f32.mrb[34].mxu1  ;;  %v1409_v49 = vmax.f32 %v6557_v0, %v6559_v15 }
 0x31f   : > { %v6565_v57 = vpop.f32.mrb[35].mxu1 }
 0x320   : > { %1410 = vmax.xlane.f32.xlu0 %v1409_v49  ;;  %v1412_v59 = vmax.f32 %v6561_v17, %v6565_v57 }
 0x324   : > { %1413 = vmax.xlane.f32.xlu0 %v1412_v59  ;;  %v6569_v6 = vpop.f32.mrb[36].mxu1 }
 0x325   : > { %v6571_v19 = vpop.f32.mrb[37].mxu1 }
 0x326   : > { %v6573_v27 = vpop.f32.mrb[38].mxu1  ;;  %v1415_v60 = vmax.f32 %v6569_v6, %v6571_v19 }
 0x327   : > { %v6577_v1 = vpop.f32.mrb[39].mxu1 }
 0x328   : > { %1416 = vmax.xlane.f32.xlu1 %v1415_v60  ;;  %v1418_v58 = vmax.f32 %v6573_v27, %v6577_v1 }
 0x32c   : > { %1419 = vmax.xlane.f32.xlu1 %v1418_v58  ;;  %v6581_v10 = vpop.f32.mrb[40].mxu1 }
 0x32d   : > { %v6583_v18 = vpop.f32.mrb[41].mxu1 }
 0x32e   : > { %v6585_v44 = vpop.f32.mrb[42].mxu1  ;;  %v1421_v38 = vmax.f32 %v6581_v10, %v6583_v18 }
 0x32f   : > { %v6589_v54 = vpop.f32.mrb[43].mxu1 }
 0x330   : > { %1422 = vmax.xlane.f32.xlu0 %v1421_v38  ;;  %v1424_v8 = vmax.f32 %v6585_v44, %v6589_v54 }
 0x332   : > { %1425 = vmax.xlane.f32.xlu1 %v1424_v8 }
 0x334   : > { %v6593_v53 = vpop.f32.mrb[44].mxu1 }
 0x335   : > { %v6595_v31 = vpop.f32.mrb[45].mxu1 }
 0x336   : > { %v6597_v2 = vpop.f32.mrb[46].mxu1  ;;  %v1427_v33 = vmax.f32 %v6593_v53, %v6595_v31 }
 0x337   : > { %v6601_v23 = vpop.f32.mrb[47].mxu1 }
 0x338   : > { %1428 = vmax.xlane.f32.xlu0 %v1427_v33  ;;  %v1430_v24 = vmax.f32 %v6597_v2, %v6601_v23 }
 0x33a   : > { %1431 = vmax.xlane.f32.xlu1 %v1430_v24 }
 0x33c   : > { %v6605_v26 = vpop.f32.mrb[48].mxu1 }
 0x33d   : > { %v6607_v41 = vpop.f32.mrb[49].mxu1 }
 0x33e   : > { %v6609_v42 = vpop.f32.mrb[50].mxu1  ;;  %v1433_v55 = vmax.f32 %v6605_v26, %v6607_v41 }
 0x33f   : > { %v6613_v29 = vpop.f32.mrb[51].mxu1 }
 0x340   : > { %1434 = vmax.xlane.f32.xlu0 %v1433_v55  ;;  %v1436_v32 = vmax.f32 %v6609_v42, %v6613_v29 }
 0x342   : > { %1437 = vmax.xlane.f32.xlu1 %v1436_v32 }
 0x344   : > { %v6617_v45 = vpop.f32.mrb[52].mxu1 }
 0x345   : > { %v6619_v46 = vpop.f32.mrb[53].mxu1 }
 0x346   : > { %v6621_v40 = vpop.f32.mrb[54].mxu1  ;;  %v1439_v43 = vmax.f32 %v6617_v45, %v6619_v46 }
 0x347   : > { %v6625_v14 = vpop.f32.mrb[55].mxu1 }
 0x348   : > { %1440 = vmax.xlane.f32.xlu0 %v1439_v43  ;;  %v1442_v47 = vmax.f32 %v6621_v40, %v6625_v14 }
 0x34a   : > { %1443 = vmax.xlane.f32.xlu1 %v1442_v47 }
 0x34c   : > { %v6629_v35 = vpop.f32.mrb[56].mxu1 }
 0x34d   : > { %v6631_v22 = vpop.f32.mrb[57].mxu1 }
 0x34e   : > { %v6633_v48 = vpop.f32.mrb[58].mxu1  ;;  %v1445_v9 = vmax.f32 %v6629_v35, %v6631_v22 }
 0x34f   : > { %v6637_v30 = vpop.f32.mrb[59].mxu1 }
 0x350   : > { %1446 = vmax.xlane.f32.xlu0 %v1445_v9  ;;  %v1448_v28 = vmax.f32 %v6633_v48, %v6637_v30 }
 0x352   : > { %1449 = vmax.xlane.f32.xlu1 %v1448_v28 }
 0x354   : > { %v6641_v61 = vpop.f32.mrb[60].mxu1 }
 0x355   : > { %v6643_v62 = vpop.f32.mrb[61].mxu1 }
 0x356   : > { %v6645_v5 = vpop.f32.mrb[62].mxu1  ;;  %v1451_v7 = vmax.f32 %v6641_v61, %v6643_v62 }
 0x357   : > { %v6649_v50 = vpop.f32.mrb[63].mxu1 }
 0x358   : > { %1452 = vmax.xlane.f32.xlu0 %v1451_v7  ;;  %v1454_v52 = vmax.f32 %v6645_v5, %v6649_v50 }
 0x35a   : > { %1455 = vmax.xlane.f32.xlu1 %v1454_v52 }
 0x35c   : > { %v6653_v51 = vpop.f32.mrb[64].mxu1 }
 0x35d   : > { %v6655_v3 = vpop.f32.mrb[65].mxu1 }
 0x35e   : > { %v6657_v13 = vpop.f32.mrb[66].mxu1  ;;  %v1457_v39 = vmax.f32 %v6653_v51, %v6655_v3 }
 0x35f   : > { %v6661_v16 = vpop.f32.mrb[67].mxu1 }
 0x360   : > { %8403 = vst [vmem:[#allocation26_spill] sm:$0xff] %v6661_v16  ;;  %1458 = vmax.xlane.f32.xlu0 %v1457_v39  ;;  %v1460_v34 = vmax.f32 %v6657_v13, %v6661_v16 }
 0x362   : > { %1461 = vmax.xlane.f32.xlu1 %v1460_v34 }
 0x364   : > { %v6665_v36 = vpop.f32.mrb[68].mxu1 }
 0x365   : > { %8404 = vst [vmem:[#allocation27_spill] sm:$0xff] %v6665_v36  ;;  %v6667_v37 = vpop.f32.mrb[69].mxu1 }
 0x366   : > { %8405 = vst [vmem:[#allocation28_spill] sm:$0xff] %v6667_v37  ;;  %v6669_v12 = vpop.f32.mrb[70].mxu1  ;;  %v1463_v20 = vmax.f32 %v6665_v36, %v6667_v37 }
 0x367   : > { %8406 = vst [vmem:[#allocation29_spill] sm:$0xff] %v6669_v12  ;;  %v6673_v21 = vpop.f32.mrb[71].mxu1 }
 0x368   : > { %8407 = vst [vmem:[#allocation30_spill] sm:$0xff] %v6673_v21  ;;  %1464 = vmax.xlane.f32.xlu0 %v1463_v20  ;;  %v1466_v25 = vmax.f32 %v6669_v12, %v6673_v21 }
 0x36a   : > { %1467 = vmax.xlane.f32.xlu1 %v1466_v25 }
 0x36c   : > { %v6677_v56 = vpop.f32.mrb[72].mxu1 }
 0x36d   : > { %8408 = vst [vmem:[#allocation31_spill] sm:$0xff] %v6677_v56  ;;  %v6679_v63 = vpop.f32.mrb[73].mxu1 }
 0x36e   : > { %8409 = vst [vmem:[#allocation32_spill] sm:$0xff] %v6679_v63  ;;  %v6681_v4 = vpop.f32.mrb[74].mxu1  ;;  %v1469_v49 = vmax.f32 %v6677_v56, %v6679_v63 }
 0x36f   : > { %8410 = vst [vmem:[#allocation33_spill] sm:$0xff] %v6681_v4  ;;  %v6685_v59 = vpop.f32.mrb[75].mxu1 }
 0x370   : > { %8411 = vst [vmem:[#allocation34_spill] sm:$0xff] %v6685_v59  ;;  %1470 = vmax.xlane.f32.xlu0 %v1469_v49  ;;  %v1472_v60 = vmax.f32 %v6681_v4, %v6685_v59 }
 0x372   : > { %1473 = vmax.xlane.f32.xlu1 %v1472_v60 }
 0x374   : > { %v6689_v58 = vpop.f32.mrb[76].mxu1 }
 0x375   : > { %8412 = vst [vmem:[#allocation35_spill] sm:$0xff] %v6689_v58  ;;  %v6691_v38 = vpop.f32.mrb[77].mxu1 }
 0x376   : > { %8413 = vst [vmem:[#allocation36_spill] sm:$0xff] %v6691_v38  ;;  %v6693_v8 = vpop.f32.mrb[78].mxu1  ;;  %v1475_v33 = vmax.f32 %v6689_v58, %v6691_v38 }
 0x377   : > { %8414 = vst [vmem:[#allocation37_spill] sm:$0xff] %v6693_v8  ;;  %v6697_v24 = vpop.f32.mrb[79].mxu1 }
 0x378   : > { %8415 = vst [vmem:[#allocation38_spill] sm:$0xff] %v6697_v24  ;;  %1476 = vmax.xlane.f32.xlu0 %v1475_v33  ;;  %v1478_v55 = vmax.f32 %v6693_v8, %v6697_v24 }
 0x37a   : > { %1479 = vmax.xlane.f32.xlu1 %v1478_v55 }
 0x37c   : > { %v6701_v32 = vpop.f32.mrb[80].mxu1 }
 0x37d   : > { %v6703_v43 = vpop.f32.mrb[81].mxu1 }
 0x37e   : > { %v6705_v47 = vpop.f32.mrb[82].mxu1 }
 0x37f   : > { %v6709_v28 = vpop.f32.mrb[83].mxu1 }
 0x384   : > { %v6713_v52 = vpop.f32.mrb[84].mxu1 }
 0x385   : > { %v6715_v39 = vpop.f32.mrb[85].mxu1 }
 0x386   : > { %v6717_v34 = vpop.f32.mrb[86].mxu1 }
 0x387   : > { %v6721_v25 = vpop.f32.mrb[87].mxu1 }
 0x38c   : > { %v6725_v60 = vpop.f32.mrb[88].mxu1 }
 0x38d   : > { %v6727_v33 = vpop.f32.mrb[89].mxu1 }
 0x38e   : > { %v6729_v55 = vpop.f32.mrb[90].mxu1 }
 0x38f   : > { %v6733_v9 = vpop.f32.mrb[91].mxu1 }
 0x394   : > { %v6737_v20 = vpop.f32.mrb[92].mxu1 }
 0x395   : > { %v6739_v24 = vpop.f32.mrb[93].mxu1 }
 0x396   : > { %v6741_v8 = vpop.f32.mrb[94].mxu1 }
 0x397   : > { %v6745_v38 = vpop.f32.mrb[95].mxu1 }
 0x3ad   : > { %v1411_v7 = vpop.xlane.xlu0 %1410 }
 0x3ae   : > { %v1505_v59 = vsub.f32 %v6557_v0, %v1411_v7  ;;  %v1506_v4 = vsub.f32 %v6559_v15, %v1411_v7 }
 0x3b0   : > { %v1569_v11 = vmul.f32 1.442695, %v1505_v59  ;;  %v1571_v63 = vmul.f32 1.442695, %v1506_v4 }
 0x3b1   : > { %v1414_v56 = vpop.xlane.xlu0 %1413 }
 0x3b2   : > { %5183 = vpow2.f32 %v1569_v11  ;;  %v1507_v21 = vsub.f32 %v6561_v17, %v1414_v56  ;;  %v1508_v12 = vsub.f32 %v6565_v57, %v1414_v56 }
 0x3b3   : > { %5185 = vpow2.f32 %v1571_v63 }
 0x3b4   : > { %v1573_v49 = vmul.f32 1.442695, %v1507_v21  ;;  %v1575_v37 = vmul.f32 1.442695, %v1508_v12 }
 0x3b5   : > { %v1417_v36 = vpop.xlane.xlu1 %1416 }
 0x3b6   : > { %5187 = vpow2.f32 %v1573_v49  ;;  %v1509_v58 = vsub.f32 %v6569_v6, %v1417_v36  ;;  %v1510_v16 = vsub.f32 %v6571_v19, %v1417_v36 }
 0x3b7   : > { %5189 = vpow2.f32 %v1575_v37 }
 0x3b8   : > { %v1577_v0 = vmul.f32 1.442695, %v1509_v58  ;;  %v1579_v15 = vmul.f32 1.442695, %v1510_v16 }
 0x3b9   : > { %v1420_v59 = vpop.xlane.xlu1 %1419 }
 0x3ba   : > { %5191 = vpow2.f32 %v1577_v0  ;;  %v1511_v11 = vsub.f32 %v6573_v27, %v1420_v59  ;;  %v1512_v17 = vsub.f32 %v6577_v1, %v1420_v59 }
 0x3bb   : > { %5193 = vpow2.f32 %v1579_v15  ;;  %v8416_v15 = vmax.f32 %v6701_v32, %v6703_v43 }
 0x3bc   : > { %v6757_v57 = vpop.eup %5183  ;;  %v1581_v21 = vmul.f32 1.442695, %v1511_v11  ;;  %v1583_v12 = vmul.f32 1.442695, %v1512_v17 }
 0x3bd   : > { %v6759_v56 = vpop.eup %5185  ;;  %v1423_v63 = vpop.xlane.xlu0 %1422 }
 0x3be   : > { %5195 = vpow2.f32 %v1581_v21  ;;  %v1513_v6 = vsub.f32 %v6581_v10, %v1423_v63  ;;  %v1514_v19 = vsub.f32 %v6583_v18, %v1423_v63  ;;  %v1697_v16 = vadd.f32 %v6759_v56, %v6757_v57 }
 0x3bf   : > { %5197 = vpow2.f32 %v1583_v12  ;;  %v1426_v27 = vpop.xlane.xlu1 %1425 }
 0x3c0   : > { %v6765_v36 = vpop.eup %5187  ;;  %v1585_v1 = vmul.f32 1.442695, %v1513_v6  ;;  %v1587_v37 = vmul.f32 1.442695, %v1514_v19  ;;  %v1515_v4 = vsub.f32 %v6585_v44, %v1426_v27  ;;  %v1516_v58 = vsub.f32 %v6589_v54, %v1426_v27  ;;  %1698 = vadd.xlane.f32.xlu0 %v1697_v16 }
 0x3c1   : > { %v6769_v7 = vpop.eup %5189  ;;  %v8417_v27 = vmax.f32 %v6705_v47, %v6709_v28 }
 0x3c2   : > { %5199 = vpow2.f32 %v1585_v1  ;;  %v1589_v10 = vmul.f32 1.442695, %v1515_v4  ;;  %v1591_v49 = vmul.f32 1.442695, %v1516_v58  ;;  %v1700_v18 = vadd.f32 %v6769_v7, %v6765_v36 }
 0x3c3   : > { %5201 = vpow2.f32 %v1587_v37 }
 0x3c4   : > { %v6773_v0 = vpop.eup %5191  ;;  %5203 = vpow2.f32 %v1589_v10  ;;  %1701 = vadd.xlane.f32.xlu1 %v1700_v18  ;;  %1482 = vmax.xlane.f32.xlu0 %v8416_v15 }
 0x3c5   : > { %v6778_v44 = vpop.eup %5193  ;;  %5205 = vpow2.f32 %v1591_v49  ;;  %v1429_v54 = vpop.xlane.xlu0 %1428 }
 0x3c6   : > { %v1517_v59 = vsub.f32 %v6593_v53, %v1429_v54  ;;  %v1518_v11 = vsub.f32 %v6595_v31, %v1429_v54  ;;  %v1703_v17 = vadd.f32 %v6778_v44, %v6773_v0 }
 0x3c7   : > { %v1432_v21 = vpop.xlane.xlu1 %1431 }
 0x3c8   : > { %v6784_v12 = vpop.eup %5195  ;;  %v1593_v63 = vmul.f32 1.442695, %v1517_v59  ;;  %v1595_v6 = vmul.f32 1.442695, %v1518_v11  ;;  %v1519_v19 = vsub.f32 %v6597_v2, %v1432_v21  ;;  %v1520_v16 = vsub.f32 %v6601_v23, %v1432_v21  ;;  %1704 = vadd.xlane.f32.xlu0 %v1703_v17  ;;  %1485 = vmax.xlane.f32.xlu1 %v8417_v27 }
 0x3c9   : > { %v6791_v53 = vpop.eup %5197  ;;  %v8418_v2 = vmax.f32 %v6713_v52, %v6715_v39 }
 0x3ca   : > { %5207 = vpow2.f32 %v1593_v63  ;;  %v1597_v31 = vmul.f32 1.442695, %v1519_v19  ;;  %v1599_v1 = vmul.f32 1.442695, %v1520_v16  ;;  %v1706_v37 = vadd.f32 %v6791_v53, %v6784_v12 }
 0x3cb   : > { %5209 = vpow2.f32 %v1595_v6  ;;  %v8419_v6 = vmax.f32 %v6717_v34, %v6721_v25 }
 0x3cc   : > { %v6795_v4 = vpop.eup %5199  ;;  %5211 = vpow2.f32 %v1597_v31  ;;  %1707 = vadd.xlane.f32.xlu1 %v1706_v37  ;;  %1488 = vmax.xlane.f32.xlu0 %v8418_v2 }
 0x3cd   : > { %v6800_v23 = vpop.eup %5201  ;;  %5213 = vpow2.f32 %v1599_v1  ;;  %v1435_v58 = vpop.xlane.xlu0 %1434 }
 0x3ce   : > { %v6802_v10 = vpop.eup %5203  ;;  %v1521_v49 = vsub.f32 %v6605_v26, %v1435_v58  ;;  %v1522_v18 = vsub.f32 %v6607_v41, %v1435_v58  ;;  %v1709_v15 = vadd.f32 %v6800_v23, %v6795_v4 }
 0x3cf   : > { %v6808_v54 = vpop.eup %5205  ;;  %v1438_v59 = vpop.xlane.xlu1 %1437 }
 0x3d0   : > { %v1601_v11 = vmul.f32 1.442695, %v1521_v49  ;;  %v1603_v17 = vmul.f32 1.442695, %v1522_v18  ;;  %v1523_v21 = vsub.f32 %v6609_v42, %v1438_v59  ;;  %v1524_v63 = vsub.f32 %v6613_v29, %v1438_v59  ;;  %1710 = vadd.xlane.f32.xlu0 %v1709_v15  ;;  %1491 = vmax.xlane.f32.xlu1 %v8419_v6 }
 0x3d1   : > { %v1712_v19 = vadd.f32 %v6808_v54, %v6802_v10  ;;  %v8420_v42 = vmax.f32 %v6725_v60, %v6727_v33 }
 0x3d2   : > { %5215 = vpow2.f32 %v1601_v11  ;;  %v1605_v26 = vmul.f32 1.442695, %v1523_v21  ;;  %v1607_v41 = vmul.f32 1.442695, %v1524_v63 }
 0x3d3   : > { %5217 = vpow2.f32 %v1603_v17  ;;  %v8421_v17 = vmax.f32 %v6729_v55, %v6733_v9 }
 0x3d4   : > { %v6817_v16 = vpop.eup %5207  ;;  %5219 = vpow2.f32 %v1605_v26  ;;  %1713 = vadd.xlane.f32.xlu1 %v1712_v19  ;;  %1494 = vmax.xlane.f32.xlu0 %v8420_v42 }
 0x3d5   : > { %v6822_v29 = vpop.eup %5209  ;;  %5221 = vpow2.f32 %v1607_v41  ;;  %v1441_v27 = vpop.xlane.xlu0 %1440 }
 0x3d6   : > { %v6824_v31 = vpop.eup %5211  ;;  %v1525_v1 = vsub.f32 %v6617_v45, %v1441_v27  ;;  %v1526_v37 = vsub.f32 %v6619_v46, %v1441_v27  ;;  %v1715_v2 = vadd.f32 %v6822_v29, %v6817_v16 }
 0x3d7   : > { %v6830_v58 = vpop.eup %5213  ;;  %v1444_v49 = vpop.xlane.xlu1 %1443 }
 0x3d8   : > { %v1609_v18 = vmul.f32 1.442695, %v1525_v1  ;;  %v1611_v15 = vmul.f32 1.442695, %v1526_v37  ;;  %v1527_v59 = vsub.f32 %v6621_v40, %v1444_v49  ;;  %v1528_v11 = vsub.f32 %v6625_v14, %v1444_v49  ;;  %1716 = vadd.xlane.f32.xlu0 %v1715_v2  ;;  %1497 = vmax.xlane.f32.xlu1 %v8421_v17 }
 0x3d9   : > { %v1718_v21 = vadd.f32 %v6830_v58, %v6824_v31  ;;  %v8422_v40 = vmax.f32 %v6737_v20, %v6739_v24 }
 0x3da   : > { %5223 = vpow2.f32 %v1609_v18  ;;  %v1613_v45 = vmul.f32 1.442695, %v1527_v59  ;;  %v1615_v46 = vmul.f32 1.442695, %v1528_v11 }
 0x3db   : > { %5225 = vpow2.f32 %v1611_v15  ;;  %v8423_v15 = vmax.f32 %v6741_v8, %v6745_v38 }
 0x3dc   : > { %v6839_v63 = vpop.eup %5215  ;;  %5227 = vpow2.f32 %v1613_v45  ;;  %1719 = vadd.xlane.f32.xlu1 %v1718_v21  ;;  %1500 = vmax.xlane.f32.xlu0 %v8422_v40 }
 0x3dd   : > { %v6844_v14 = vpop.eup %5217  ;;  %5229 = vpow2.f32 %v1615_v46  ;;  %v1447_v6 = vpop.xlane.xlu0 %1446 }
 0x3de   : > { %v6846_v26 = vpop.eup %5219  ;;  %v1529_v41 = vsub.f32 %v6629_v35, %v1447_v6  ;;  %v1530_v19 = vsub.f32 %v6631_v22, %v1447_v6  ;;  %v1721_v42 = vadd.f32 %v6844_v14, %v6839_v63 }
 0x3df   : > { %v6852_v27 = vpop.eup %5221  ;;  %v1450_v1 = vpop.xlane.xlu1 %1449 }
 0x3e0   : > { %v1617_v37 = vmul.f32 1.442695, %v1529_v41  ;;  %v1619_v2 = vmul.f32 1.442695, %v1530_v19  ;;  %v1531_v49 = vsub.f32 %v6633_v48, %v1450_v1  ;;  %v1532_v18 = vsub.f32 %v6637_v30, %v1450_v1  ;;  %1722 = vadd.xlane.f32.xlu0 %v1721_v42  ;;  %1503 = vmax.xlane.f32.xlu1 %v8423_v15 }
 0x3e1   : > { %v1724_v59 = vadd.f32 %v6852_v27, %v6846_v26 }
 0x3e2   : > { %5231 = vpow2.f32 %v1617_v37  ;;  %v1621_v35 = vmul.f32 1.442695, %v1531_v49  ;;  %v1623_v22 = vmul.f32 1.442695, %v1532_v18 }
 0x3e3   : > { %5233 = vpow2.f32 %v1619_v2 }
 0x3e4   : > { %v6861_v11 = vpop.eup %5223  ;;  %5235 = vpow2.f32 %v1621_v35  ;;  %1725 = vadd.xlane.f32.xlu1 %v1724_v59 }
 0x3e5   : > { %v6863_v17 = vpop.eup %5225  ;;  %5237 = vpow2.f32 %v1623_v22  ;;  %v1453_v48 = vpop.xlane.xlu0 %1452 }
 0x3e6   : > { %v6865_v30 = vpop.eup %5227  ;;  %v1533_v45 = vsub.f32 %v6641_v61, %v1453_v48  ;;  %v1534_v46 = vsub.f32 %v6643_v62, %v1453_v48  ;;  %v1727_v21 = vadd.f32 %v6863_v17, %v6861_v11 }
 0x3e7   : > { %v6871_v40 = vpop.eup %5229  ;;  %v1456_v6 = vpop.xlane.xlu1 %1455 }
 0x3e8   : > { %v1625_v41 = vmul.f32 1.442695, %v1533_v45  ;;  %v1627_v19 = vmul.f32 1.442695, %v1534_v46  ;;  %v1535_v42 = vsub.f32 %v6645_v5, %v1456_v6  ;;  %v1536_v1 = vsub.f32 %v6649_v50, %v1456_v6  ;;  %1728 = vadd.xlane.f32.xlu0 %v1727_v21  ;;  %v8424_v21 = vld [vmem:[#allocation26_spill] sm:$0xff] }
 0x3e9   : > { %v1730_v37 = vadd.f32 %v6871_v40, %v6865_v30 }
 0x3ea   : > { %5239 = vpow2.f32 %v1625_v41  ;;  %v1629_v61 = vmul.f32 1.442695, %v1535_v42  ;;  %v1631_v2 = vmul.f32 1.442695, %v1536_v1 }
 0x3eb   : > { %5241 = vpow2.f32 %v1627_v19  ;;  %1731 = vadd.xlane.f32.xlu1 %v1730_v37 }
 0x3ec   : > { %v6877_v62 = vpop.eup %5231  ;;  %5243 = vpow2.f32 %v1629_v61 }
 0x3ed   : > { %v6879_v49 = vpop.eup %5233  ;;  %5245 = vpow2.f32 %v1631_v2  ;;  %v1459_v18 = vpop.xlane.xlu0 %1458  ;;  %v8428_v2 = vld [vmem:[#allocation28_spill] sm:$0xff] }
 0x3ee   : > { %v6881_v15 = vpop.eup %5235  ;;  %v1537_v5 = vsub.f32 %v6653_v51, %v1459_v18  ;;  %v1538_v50 = vsub.f32 %v6655_v3, %v1459_v18  ;;  %v1733_v35 = vadd.f32 %v6879_v49, %v6877_v62 }
 0x3ef   : > { %v6887_v22 = vpop.eup %5237  ;;  %v1462_v59 = vpop.xlane.xlu1 %1461 }
 0x3f0   : > { %v1633_v48 = vmul.f32 1.442695, %v1537_v5  ;;  %v1635_v45 = vmul.f32 1.442695, %v1538_v50  ;;  %v1539_v46 = vsub.f32 %v6657_v13, %v1462_v59  ;;  %v1540_v6 = vsub.f32 %v8424_v21, %v1462_v59  ;;  %1734 = vadd.xlane.f32.xlu0 %v1733_v35  ;;  %v8427_v13 = vld [vmem:[#allocation27_spill] sm:$0xff]  ;;  %v8431_v21 = vld [vmem:[#allocation30_spill] sm:$0xff] }
 0x3f1   : > { %v1736_v41 = vadd.f32 %v6887_v22, %v6881_v15 }
 0x3f2   : > { %5247 = vpow2.f32 %v1633_v48  ;;  %v1637_v51 = vmul.f32 1.442695, %v1539_v46  ;;  %v1639_v19 = vmul.f32 1.442695, %v1540_v6 }
 0x3f3   : > { %5249 = vpow2.f32 %v1635_v45  ;;  %1737 = vadd.xlane.f32.xlu1 %v1736_v41  ;;  %v8430_v45 = vld [vmem:[#allocation29_spill] sm:$0xff] }
 0x3f4   : > { %v6893_v3 = vpop.eup %5239  ;;  %5251 = vpow2.f32 %v1637_v51 }
 0x3f5   : > { %8425 = vst [vmem:[#allocation26_spill] sm:$0xff] %v6893_v3  ;;  %v6895_v42 = vpop.eup %5241  ;;  %5253 = vpow2.f32 %v1639_v19  ;;  %v1465_v1 = vpop.xlane.xlu0 %1464 }
 0x3f6   : > { %v6897_v37 = vpop.eup %5243  ;;  %v1541_v61 = vsub.f32 %v8427_v13, %v1465_v1  ;;  %v1542_v18 = vsub.f32 %v8428_v2, %v1465_v1  ;;  %v1739_v5 = vadd.f32 %v6895_v42, %v6893_v3 }
 0x3f7   : > { %8426 = vst [vmem:[#allocation39_spill] sm:$0xff] %v6897_v37  ;;  %v6903_v50 = vpop.eup %5245  ;;  %v1468_v35 = vpop.xlane.xlu1 %1467 }
 0x3f8   : > { %8429 = vst [vmem:[#allocation27_spill] sm:$0xff] %v6903_v50  ;;  %v1641_v59 = vmul.f32 1.442695, %v1541_v61  ;;  %v1643_v48 = vmul.f32 1.442695, %v1542_v18  ;;  %v1543_v46 = vsub.f32 %v8430_v45, %v1468_v35  ;;  %v1544_v6 = vsub.f32 %v8431_v21, %v1468_v35  ;;  %1740 = vadd.xlane.f32.xlu0 %v1739_v5  ;;  %v8435_v18 = vld [vmem:[#allocation31_spill] sm:$0xff] }
 0x3f9   : > { %v1742_v41 = vadd.f32 %v6903_v50, %v6897_v37  ;;  %v8436_v5 = vld [vmem:[#allocation32_spill] sm:$0xff]  ;;  %v8439_v37 = vld [vmem:[#allocation34_spill] sm:$0xff] }
 0x3fa   : > { %5255 = vpow2.f32 %v1641_v59  ;;  %v1645_v51 = vmul.f32 1.442695, %v1543_v46  ;;  %v1647_v19 = vmul.f32 1.442695, %v1544_v6 }
 0x3fb   : > { %5257 = vpow2.f32 %v1643_v48  ;;  %1743 = vadd.xlane.f32.xlu1 %v1742_v41  ;;  %v8438_v41 = vld [vmem:[#allocation33_spill] sm:$0xff] }
 0x3fc   : > { %v6909_v1 = vpop.eup %5247  ;;  %5259 = vpow2.f32 %v1645_v51 }
 0x3fd   : > { %8432 = vst [vmem:[#allocation28_spill] sm:$0xff] %v6909_v1  ;;  %v6911_v13 = vpop.eup %5249  ;;  %5261 = vpow2.f32 %v1647_v19  ;;  %v1471_v61 = vpop.xlane.xlu0 %1470 }
 0x3fe   : > { %8433 = vst [vmem:[#allocation29_spill] sm:$0xff] %v6911_v13  ;;  %v6913_v2 = vpop.eup %5251  ;;  %v1545_v35 = vsub.f32 %v8435_v18, %v1471_v61  ;;  %v1546_v45 = vsub.f32 %v8436_v5, %v1471_v61  ;;  %v1745_v59 = vadd.f32 %v6911_v13, %v6909_v1 }
 0x3ff   : > { %8434 = vst [vmem:[#allocation30_spill] sm:$0xff] %v6913_v2  ;;  %v6919_v46 = vpop.eup %5253  ;;  %v1474_v48 = vpop.xlane.xlu1 %1473 }
 0x400   : > { %8437 = vst [vmem:[#allocation31_spill] sm:$0xff] %v6919_v46  ;;  %v1649_v21 = vmul.f32 1.442695, %v1545_v35  ;;  %v1651_v6 = vmul.f32 1.442695, %v1546_v45  ;;  %v1547_v51 = vsub.f32 %v8438_v41, %v1474_v48  ;;  %v1548_v50 = vsub.f32 %v8439_v37, %v1474_v48  ;;  %1746 = vadd.xlane.f32.xlu0 %v1745_v59  ;;  %v8440_v41 = vld [vmem:[#allocation35_spill] sm:$0xff] }
 0x401   : > { %v1748_v19 = vadd.f32 %v6919_v46, %v6913_v2  ;;  %v8441_v59 = vld [vmem:[#allocation36_spill] sm:$0xff]  ;;  %v8442_v2 = vld [vmem:[#allocation37_spill] sm:$0xff]  ;;  %v8443_v46 = vld [vmem:[#allocation38_spill] sm:$0xff] }
 0x402   : > { %5263 = vpow2.f32 %v1649_v21  ;;  %v1653_v18 = vmul.f32 1.442695, %v1547_v51  ;;  %v1655_v3 = vmul.f32 1.442695, %v1548_v50 }
 0x403   : > { %5265 = vpow2.f32 %v1651_v6  ;;  %1749 = vadd.xlane.f32.xlu1 %v1748_v19 }
 0x404   : > { %v6925_v61 = vpop.eup %5255  ;;  %5267 = vpow2.f32 %v1653_v18 }
 0x405   : > { %v6927_v5 = vpop.eup %5257  ;;  %5269 = vpow2.f32 %v1655_v3  ;;  %v1477_v35 = vpop.xlane.xlu0 %1476 }
 0x406   : > { %v6929_v45 = vpop.eup %5259  ;;  %v1549_v37 = vsub.f32 %v8440_v41, %v1477_v35  ;;  %v1550_v48 = vsub.f32 %v8441_v59, %v1477_v35  ;;  %v1751_v21 = vadd.f32 %v6927_v5, %v6925_v61 }
 0x407   : > { %v6935_v51 = vpop.eup %5261  ;;  %v1480_v50 = vpop.xlane.xlu1 %1479 }
 0x408   : > { %v1657_v6 = vmul.f32 1.442695, %v1549_v37  ;;  %v1659_v19 = vmul.f32 1.442695, %v1550_v48  ;;  %v1551_v18 = vsub.f32 %v8442_v2, %v1480_v50  ;;  %v1552_v1 = vsub.f32 %v8443_v46, %v1480_v50  ;;  %1752 = vadd.xlane.f32.xlu0 %v1751_v21 }
 0x409   : > { %v1754_v3 = vadd.f32 %v6935_v51, %v6929_v45 }
 0x40a   : > { %5271 = vpow2.f32 %v1657_v6  ;;  %v1661_v41 = vmul.f32 1.442695, %v1551_v18  ;;  %v1663_v13 = vmul.f32 1.442695, %v1552_v1  ;;  %v5135_v18 = vld [vmem:[#allocation10] sm:$0xff]  }
 0x40b   : > { %5273 = vpow2.f32 %v1659_v19  ;;  %1755 = vadd.xlane.f32.xlu1 %v1754_v3  ;;  %v5136_v3 = vld [vmem:[#allocation10 + $0x8] sm:$0xff]   ;;  %4930 = vmatprep.subr.bf16.mxu1 %v5135_v18 }
 0x40c   : > { %v6941_v35 = vpop.eup %5263  ;;  %5275 = vpow2.f32 %v1661_v41  ;;  %4931 = vmatpush3.bf16.msra.mxu1 %v5135_v18  ;;  %v5137_v41 = vld [vmem:[#allocation10 + $0x10] sm:$0xff]  }
 0x40d   : > { %8444 = vst [vmem:[#allocation32_spill] sm:$0xff] %v6941_v35  ;;  %v6943_v59 = vpop.eup %5265  ;;  %5277 = vpow2.f32 %v1663_v13  ;;  %4932 = vmatprep.subr.bf16.mxu1 %v5136_v3 }
 0x40e   : > { %v6945_v37 = vpop.eup %5267  ;;  %v1757_v2 = vadd.f32 %v6943_v59, %v6941_v35 }
 0x40f   : > { %8445 = vst [vmem:[#allocation33_spill] sm:$0xff] %v6945_v37  ;;  %v6949_v46 = vpop.eup %5269 }
 0x410   : > { %8446 = vst [vmem:[#allocation34_spill] sm:$0xff] %v6949_v46  ;;  %1758 = vadd.xlane.f32.xlu0 %v1757_v2  ;;  %v1760_v48 = vadd.f32 %v6949_v46, %v6945_v37  ;;  %4933 = vmatpush3.bf16.msra.mxu1 %v5136_v3 }
 0x411   : > { %4934 = vmatprep.subr.bf16.mxu1 %v5137_v41 }
 0x412   : > { %1761 = vadd.xlane.f32.xlu1 %v1760_v48 }
 0x414   : > { %v6953_v1 = vpop.eup %5271  ;;  %4935 = vmatpush3.bf16.msra.mxu1 %v5137_v41 }
 0x415   : > { %8447 = vst [vmem:[#allocation35_spill] sm:$0xff] %v6953_v1  ;;  %v6955_v21 = vpop.eup %5273 }
 0x416   : > { %8448 = vst [vmem:[#allocation36_spill] sm:$0xff] %v6955_v21  ;;  %v6957_v50 = vpop.eup %5275  ;;  %v1763_v13 = vadd.f32 %v6955_v21, %v6953_v1 }
 0x417   : > { %8449 = vst [vmem:[#allocation37_spill] sm:$0xff] %v6957_v50  ;;  %v6961_v6 = vpop.eup %5277 }
 0x418   : > { %8450 = vst [vmem:[#allocation38_spill] sm:$0xff] %v6961_v6  ;;  %1764 = vadd.xlane.f32.xlu0 %v1763_v13  ;;  %v1766_v19 = vadd.f32 %v6961_v6, %v6957_v50 }
 0x41a   : > { %1767 = vadd.xlane.f32.xlu1 %v1766_v19 }
 0x44d   : > { %v1699_v2 = vpop.xlane.xlu0 %1698 }
 0x44e   : > { %5279 = vrcp.f32 %v1699_v2 }
 0x451   : > { %v1702_v48 = vpop.xlane.xlu1 %1701  ;;  %v1483_v1 = vpop.xlane.xlu0 %1482 }
 0x452   : > { %5281 = vrcp.f32 %v1702_v48  ;;  %v1553_v13 = vsub.f32 %v6701_v32, %v1483_v1  ;;  %v1554_v21 = vsub.f32 %v6703_v43, %v1483_v1 }
 0x454   : > { %v1665_v50 = vmul.f32 1.442695, %v1553_v13  ;;  %v1667_v19 = vmul.f32 1.442695, %v1554_v21 }
 0x455   : > { %v1705_v6 = vpop.xlane.xlu0 %1704  ;;  %v1486_v37 = vpop.xlane.xlu1 %1485 }
 0x456   : > { %5283 = vpow2.f32 %v1665_v50  ;;  %v1555_v18 = vsub.f32 %v6705_v47, %v1486_v37  ;;  %v1556_v3 = vsub.f32 %v6709_v28, %v1486_v37 }
 0x457   : > { %5285 = vpow2.f32 %v1667_v19 }
 0x458   : > { %v5280_v41 = vpop.eup %5279  ;;  %5287 = vrcp.f32 %v1705_v6  ;;  %v1669_v2 = vmul.f32 1.442695, %v1555_v18  ;;  %v1671_v46 = vmul.f32 1.442695, %v1556_v3 }
 0x459   : > { %v1708_v35 = vpop.xlane.xlu1 %1707  ;;  %v1489_v48 = vpop.xlane.xlu0 %1488  ;;  %v1794_v32 = vmul.f32 %v5280_v41, %v6757_v57  ;;  %v1795_v43 = vmul.f32 %v5280_v41, %v6759_v56 }
 0x45a   : > { %5289 = vpow2.f32 %v1669_v2  ;;  %v1557_v1 = vsub.f32 %v6713_v52, %v1489_v48  ;;  %v1558_v21 = vsub.f32 %v6715_v39, %v1489_v48 }
 0x45b   : > { %5291 = vpow2.f32 %v1671_v46  ;;  %v4528_v47 = vpack.c.bf16 %v1795_v43, %v1794_v32 }
 0x45c   : > { %v5282_v28 = vpop.eup %5281  ;;  %5293 = vrcp.f32 %v1708_v35  ;;  %v1673_v37 = vmul.f32 1.442695, %v1557_v1  ;;  %v1675_v50 = vmul.f32 1.442695, %v1558_v21 }
 0x45d   : > { %v1711_v6 = vpop.xlane.xlu0 %1710  ;;  %v1492_v13 = vpop.xlane.xlu1 %1491  ;;  %v1797_v19 = vmul.f32 %v5282_v28, %v6765_v36  ;;  %v1798_v18 = vmul.f32 %v5282_v28, %v6769_v7  ;;  %4154 = vst [vmem:[%s6976_s25] sm:$0xff] %v4528_v47 }
 0x45e   : > { %5295 = vpow2.f32 %v1673_v37  ;;  %v1559_v52 = vsub.f32 %v6717_v34, %v1492_v13  ;;  %v1560_v39 = vsub.f32 %v6721_v25, %v1492_v13 }
 0x45f   : > { %5297 = vpow2.f32 %v1675_v50  ;;  %v1890_v57 = vpack.c.bf16 %v1798_v18, %v1795_v43  ;;  %v4529_v56 = vpack.c.bf16 %v1798_v18, %v1797_v19  ;;  %v1889_v35 = vpack.c.bf16 %v1797_v19, %v1794_v32 }
 0x460   : > { %v6981_v46 = vpop.eup %5283  ;;  %5299 = vrcp.f32 %v1711_v6  ;;  %v1677_v36 = vmul.f32 1.442695, %v1559_v52  ;;  %v1679_v3 = vmul.f32 1.442695, %v1560_v39 }
 0x461   : > { %v6983_v7 = vpop.eup %5285  ;;  %1969 = vmatprep.mubr.bf16.mxu0 %v1890_v57  ;;  %4155 = vst [vmem:[%s6976_s25 + $0x8] sm:$0xff] %v4529_v56  ;;  %v1714_v41 = vpop.xlane.xlu1 %1713 }
 0x462   : > { %v1495_v2 = vpop.xlane.xlu0 %1494  ;;  %v5288_v48 = vpop.eup %5287  ;;  %5301 = vpow2.f32 %v1677_v36  ;;  %1970 = vmatmul.mubr.bf16.vlgmr.msra.gmra.mrb[64].mxu0 %v1889_v35  ;;  %v1769_v32 = vadd.f32 %v6983_v7, %v6981_v46 }
 0x463   : > { %v1561_v34 = vsub.f32 %v6725_v60, %v1495_v2  ;;  %v1562_v25 = vsub.f32 %v6727_v33, %v1495_v2  ;;  %5303 = vpow2.f32 %v1679_v3  ;;  %v1801_v43 = vmul.f32 %v5288_v48, %v6778_v44 }
 0x464   : > { %v1800_v1 = vmul.f32 %v5288_v48, %v6773_v0  ;;  %v6992_v21 = vpop.eup %5289  ;;  %5305 = vrcp.f32 %v1714_v41  ;;  %1770 = vadd.xlane.f32.xlu0 %v1769_v32 }
 0x465   : > { %v1681_v47 = vmul.f32 1.442695, %v1561_v34  ;;  %v1683_v28 = vmul.f32 1.442695, %v1562_v25  ;;  %v6994_v37 = vpop.eup %5291  ;;  %v1498_v33 = vpop.xlane.xlu1 %1497 }
 0x466   : > { %v1717_v60 = vpop.xlane.xlu0 %1716  ;;  %v4530_v50 = vpack.c.bf16 %v1801_v43, %v1800_v1  ;;  %v5294_v6 = vpop.eup %5293  ;;  %v1563_v13 = vsub.f32 %v6729_v55, %v1498_v33  ;;  %v1564_v44 = vsub.f32 %v6733_v9, %v1498_v33  ;;  %v1772_v0 = vadd.f32 %v6994_v37, %v6992_v21 }
 0x467   : > { %5307 = vpow2.f32 %v1681_v47  ;;  %v1804_v19 = vmul.f32 %v5294_v6, %v6791_v53  ;;  %v1803_v18 = vmul.f32 %v5294_v6, %v6784_v12 }
 0x468   : > { %5309 = vpow2.f32 %v1683_v28  ;;  %4156 = vst [vmem:[%s6976_s25 + $0x10] sm:$0xff] %v4530_v50  ;;  %v7003_v52 = vpop.eup %5295  ;;  %v1685_v39 = vmul.f32 1.442695, %v1563_v13  ;;  %v1687_v57 = vmul.f32 1.442695, %v1564_v44  ;;  %1773 = vadd.xlane.f32.xlu1 %v1772_v0 }
 0x469   : > { %5311 = vrcp.f32 %v1717_v60  ;;  %v7005_v56 = vpop.eup %5297  ;;  %v1892_v55 = vpack.c.bf16 %v1804_v19, %v1801_v43  ;;  %v1720_v9 = vpop.xlane.xlu1 %1719  ;;  %v1891_v36 = vpack.c.bf16 %v1803_v18, %v1800_v1  ;;  %v4531_v3 = vpack.c.bf16 %v1804_v19, %v1803_v18 }
 0x46a   : > { %v1501_v35 = vpop.xlane.xlu0 %1500  ;;  %v5300_v41 = vpop.eup %5299  ;;  %5313 = vpow2.f32 %v1685_v39  ;;  %v1775_v2 = vadd.f32 %v7005_v56, %v7003_v52 }
 0x46b   : > { %v1565_v53 = vsub.f32 %v6737_v20, %v1501_v35  ;;  %v1566_v12 = vsub.f32 %v6739_v24, %v1501_v35  ;;  %5315 = vpow2.f32 %v1687_v57  ;;  %1977 = vmatprep.mubr.bf16.mxu0 %v1892_v55  ;;  %4157 = vst [vmem:[%s6976_s25 + $0x18] sm:$0xff] %v4531_v3  ;;  %v1807_v48 = vmul.f32 %v5300_v41, %v6800_v23 }
 0x46c   : > { %v1806_v34 = vmul.f32 %v5300_v41, %v6795_v4  ;;  %v7014_v25 = vpop.eup %5301  ;;  %5317 = vrcp.f32 %v1720_v9  ;;  %1978 = vmatmul.mubr.bf16.gmra.mrb[68].mxu0 %v1891_v36  ;;  %1776 = vadd.xlane.f32.xlu0 %v1775_v2 }
 0x46d   : > { %v1689_v32 = vmul.f32 1.442695, %v1565_v53  ;;  %v1691_v43 = vmul.f32 1.442695, %v1566_v12  ;;  %v7016_v20 = vpop.eup %5303  ;;  %v1504_v1 = vpop.xlane.xlu1 %1503  ;;  %v5138_v53 = vld [vmem:[#allocation10 + $0x18] sm:$0xff]  }
 0x46e   : > { %v1723_v24 = vpop.xlane.xlu0 %1722  ;;  %v4532_v47 = vpack.c.bf16 %v1807_v48, %v1806_v34  ;;  %v5306_v28 = vpop.eup %5305  ;;  %v1567_v60 = vsub.f32 %v6741_v8, %v1504_v1  ;;  %v1568_v23 = vsub.f32 %v6745_v38, %v1504_v1  ;;  %v1778_v4 = vadd.f32 %v7016_v20, %v7014_v25  ;;  %4936 = vmatprep.subr.bf16.mxu1 %v5138_v53 }
 0x46f   : > { %5319 = vpow2.f32 %v1689_v32  ;;  %v1810_v33 = vmul.f32 %v5306_v28, %v6808_v54  ;;  %v1809_v50 = vmul.f32 %v5306_v28, %v6802_v10  ;;  %4937 = vmatpush3.bf16.msra.mxu1 %v5138_v53 }
 0x470   : > { %5321 = vpow2.f32 %v1691_v43  ;;  %4158 = vst [vmem:[%s6976_s25 + $0x20] sm:$0xff] %v4532_v47  ;;  %v1693_v13 = vmul.f32 1.442695, %v1567_v60  ;;  %v1695_v44 = vmul.f32 1.442695, %v1568_v23  ;;  %1779 = vadd.xlane.f32.xlu1 %v1778_v4 }
 0x471   : > { %v7025_v6 = vpop.eup %5307  ;;  %5323 = vrcp.f32 %v1723_v24  ;;  %v1894_v8 = vpack.c.bf16 %v1810_v33, %v1807_v48  ;;  %v1726_v38 = vpop.xlane.xlu1 %1725  ;;  %v1893_v19 = vpack.c.bf16 %v1809_v50, %v1806_v34  ;;  %v4533_v18 = vpack.c.bf16 %v1810_v33, %v1809_v50 }
 0x472   : > { %v7027_v0 = vpop.eup %5309  ;;  %5325 = vpow2.f32 %v1693_v13 }
 0x473   : > { %v5312_v39 = vpop.eup %5311  ;;  %v1781_v54 = vadd.f32 %v7027_v0, %v7025_v6  ;;  %5327 = vpow2.f32 %v1695_v44  ;;  %1985 = vmatprep.mubr.bf16.mxu0 %v1894_v8  ;;  %4159 = vst [vmem:[%s6976_s25 + $0x28] sm:$0xff] %v4533_v18 }
 0x474   : > { %v1813_v10 = vmul.f32 %v5312_v39, %v6822_v29  ;;  %v1812_v57 = vmul.f32 %v5312_v39, %v6817_v16  ;;  %v7034_v55 = vpop.eup %5313  ;;  %5329 = vrcp.f32 %v1726_v38  ;;  %1986 = vmatmul.mubr.bf16.gmra.mrb[72].mxu0 %v1893_v19 }
 0x475   : > { %1782 = vadd.xlane.f32.xlu0 %v1781_v54  ;;  %v7036_v9 = vpop.eup %5315  ;;  %v1729_v35 = vpop.xlane.xlu0 %1728 }
 0x476   : > { %v4534_v36 = vpack.c.bf16 %v1813_v10, %v1812_v57  ;;  %v5318_v3 = vpop.eup %5317  ;;  %5331 = vrcp.f32 %v1729_v35  ;;  %v1784_v41 = vadd.f32 %v7036_v9, %v7034_v55 }
 0x477   : > { %v1816_v12 = vmul.f32 %v5318_v3, %v6830_v58  ;;  %v1815_v16 = vmul.f32 %v5318_v3, %v6824_v31 }
 0x478   : > { %4160 = vst [vmem:[%s6976_s25 + $0x30] sm:$0xff] %v4534_v36  ;;  %1785 = vadd.xlane.f32.xlu1 %v1784_v41  ;;  %v1732_v2 = vpop.xlane.xlu1 %1731  ;;  %v5139_v36 = vld [vmem:[#allocation10 + $0x20] sm:$0xff]  }
 0x479   : > { %v7043_v29 = vpop.eup %5319  ;;  %5333 = vrcp.f32 %v1732_v2  ;;  %v1896_v34 = vpack.c.bf16 %v1816_v12, %v1813_v10  ;;  %v1895_v32 = vpack.c.bf16 %v1815_v16, %v1812_v57  ;;  %v4535_v43 = vpack.c.bf16 %v1816_v12, %v1815_v16  ;;  %4938 = vmatprep.subr.bf16.mxu1 %v5139_v36 }
 0x47a   : > { %v7045_v48 = vpop.eup %5321  ;;  %4939 = vmatpush3.bf16.msra.mxu1 %v5139_v36 }
 0x47b   : > { %v5324_v24 = vpop.eup %5323  ;;  %v1787_v58 = vadd.f32 %v7045_v48, %v7043_v29  ;;  %1993 = vmatprep.mubr.bf16.mxu0 %v1896_v34  ;;  %4161 = vst [vmem:[%s6976_s25 + $0x38] sm:$0xff] %v4535_v43 }
 0x47c   : > { %v1819_v31 = vmul.f32 %v5324_v24, %v6844_v14  ;;  %v1818_v1 = vmul.f32 %v5324_v24, %v6839_v63  ;;  %v7052_v47 = vpop.eup %5325  ;;  %1994 = vmatmul.mubr.bf16.gmra.mrb[76].mxu0 %v1895_v32  ;;  %v8451_v24 = vld [vmem:[#allocation26_spill] sm:$0xff] }
 0x47d   : > { %1788 = vadd.xlane.f32.xlu0 %v1787_v58  ;;  %v7054_v28 = vpop.eup %5327  ;;  %v1735_v60 = vpop.xlane.xlu0 %1734 }
 0x47e   : > { %v4536_v23 = vpack.c.bf16 %v1819_v31, %v1818_v1  ;;  %v5330_v4 = vpop.eup %5329  ;;  %5335 = vrcp.f32 %v1735_v60  ;;  %v1790_v33 = vadd.f32 %v7054_v28, %v7052_v47 }
 0x47f   : > { %v1822_v50 = vmul.f32 %v5330_v4, %v6852_v27  ;;  %v1821_v14 = vmul.f32 %v5330_v4, %v6846_v26 }
 0x480   : > { %4162 = vst [vmem:[%s6976_s25 + $0x40] sm:$0xff] %v4536_v23  ;;  %v5332_v63 = vpop.eup %5331  ;;  %1791 = vadd.xlane.f32.xlu1 %v1790_v33  ;;  %v1738_v13 = vpop.xlane.xlu1 %1737  ;;  %v8453_v23 = vld [vmem:[#allocation39_spill] sm:$0xff] }
 0x481   : > { %5337 = vrcp.f32 %v1738_v13  ;;  %v1898_v44 = vpack.c.bf16 %v1822_v50, %v1819_v31  ;;  %v1897_v8 = vpack.c.bf16 %v1821_v14, %v1818_v1  ;;  %v4537_v38 = vpack.c.bf16 %v1822_v50, %v1821_v14 }
 0x482   : > { %v1825_v19 = vmul.f32 %v5332_v63, %v6863_v17  ;;  %v1824_v18 = vmul.f32 %v5332_v63, %v6861_v11  ;;  %v5140_v63 = vld [vmem:[#allocation10 + $0x28] sm:$0xff]  }
 0x483   : > { %v5334_v39 = vpop.eup %5333  ;;  %2001 = vmatprep.mubr.bf16.mxu0 %v1898_v44  ;;  %4163 = vst [vmem:[%s6976_s25 + $0x48] sm:$0xff] %v4537_v38  ;;  %4940 = vmatprep.subr.bf16.mxu1 %v5140_v63  ;;  %v8454_v44 = vld [vmem:[#allocation29_spill] sm:$0xff]  ;;  %v8455_v38 = vld [vmem:[#allocation28_spill] sm:$0xff] }
 0x484   : > { %2002 = vmatmul.mubr.bf16.gmra.mrb[80].mxu0 %v1897_v8  ;;  %v1828_v26 = vmul.f32 %v5334_v39, %v6871_v40  ;;  %v1827_v27 = vmul.f32 %v5334_v39, %v6865_v30  ;;  %v4538_v54 = vpack.c.bf16 %v1825_v19, %v1824_v18  ;;  %4941 = vmatpush3.bf16.msra.mxu1 %v5140_v63 }
 0x485   : > { %v1741_v10 = vpop.xlane.xlu0 %1740 }
 0x486   : > { %5339 = vrcp.f32 %v1741_v10  ;;  %v1900_v57 = vpack.c.bf16 %v1828_v26, %v1825_v19  ;;  %v4539_v35 = vpack.c.bf16 %v1828_v26, %v1827_v27  ;;  %4164 = vst [vmem:[%s6976_s25 + $0x50] sm:$0xff] %v4538_v54  ;;  %v1899_v30 = vpack.c.bf16 %v1827_v27, %v1824_v18  ;;  %v8456_v27 = vld [vmem:[#allocation31_spill] sm:$0xff]  ;;  %v8457_v10 = vld [vmem:[#allocation30_spill] sm:$0xff] }
 0x488   : > { %v5336_v3 = vpop.eup %5335  ;;  %2009 = vmatprep.mubr.bf16.mxu0 %v1900_v57  ;;  %v1744_v11 = vpop.xlane.xlu1 %1743  ;;  %4165 = vst [vmem:[%s6976_s25 + $0x58] sm:$0xff] %v4539_v35 }
 0x489   : > { %5341 = vrcp.f32 %v1744_v11  ;;  %v1831_v17 = vmul.f32 %v5336_v3, %v6879_v49  ;;  %v1830_v40 = vmul.f32 %v5336_v3, %v6877_v62  ;;  %v5141_v11 = vld [vmem:[#allocation10 + $0x30] sm:$0xff]  }
 0x48a   : > { %4942 = vmatprep.subr.bf16.mxu1 %v5141_v11 }
 0x48b   : > { %v5338_v41 = vpop.eup %5337  ;;  %v4540_v53 = vpack.c.bf16 %v1831_v17, %v1830_v40  ;;  %4943 = vmatpush3.bf16.msra.mxu1 %v5141_v11 }
 0x48c   : > { %2010 = vmatmul.mubr.bf16.gmra.mrb[84].mxu0 %v1899_v30  ;;  %v1834_v12 = vmul.f32 %v5338_v41, %v6887_v22  ;;  %v1833_v16 = vmul.f32 %v5338_v41, %v6881_v15  ;;  %v8452_v15 = vld [vmem:[#allocation27_spill] sm:$0xff] }
 0x48d   : > { %v1747_v2 = vpop.xlane.xlu0 %1746  ;;  %4166 = vst [vmem:[%s6976_s25 + $0x60] sm:$0xff] %v4540_v53 }
 0x48e   : > { %5343 = vrcp.f32 %v1747_v2  ;;  %v1902_v34 = vpack.c.bf16 %v1834_v12, %v1831_v17  ;;  %v4541_v32 = vpack.c.bf16 %v1834_v12, %v1833_v16  ;;  %v1901_v31 = vpack.c.bf16 %v1833_v16, %v1830_v40 }
 0x490   : > { %v5340_v43 = vpop.eup %5339  ;;  %2017 = vmatprep.mubr.bf16.mxu0 %v1902_v34  ;;  %v1750_v49 = vpop.xlane.xlu1 %1749  ;;  %4167 = vst [vmem:[%s6976_s25 + $0x68] sm:$0xff] %v4541_v32 }
 0x491   : > { %5345 = vrcp.f32 %v1750_v49  ;;  %v1837_v62 = vmul.f32 %v5340_v43, %v6895_v42  ;;  %v1836_v58 = vmul.f32 %v5340_v43, %v8451_v24  ;;  %v8458_v24 = vld [vmem:[#allocation32_spill] sm:$0xff] }
 0x493   : > { %v5342_v22 = vpop.eup %5341  ;;  %v4542_v1 = vpack.c.bf16 %v1837_v62, %v1836_v58 }
 0x494   : > { %2018 = vmatmul.mubr.bf16.gmra.mrb[88].mxu0 %v1901_v31  ;;  %v1840_v60 = vmul.f32 %v5342_v22, %v8452_v15  ;;  %v1839_v4 = vmul.f32 %v5342_v22, %v8453_v23  ;;  %v8459_v22 = vld [vmem:[#allocation34_spill] sm:$0xff] }
 0x495   : > { %v1753_v33 = vpop.xlane.xlu0 %1752  ;;  %4168 = vst [vmem:[%s6976_s25 + $0x70] sm:$0xff] %v4542_v1  ;;  %v8460_v1 = vld [vmem:[#allocation33_spill] sm:$0xff] }
 0x496   : > { %5347 = vrcp.f32 %v1753_v33  ;;  %v1904_v50 = vpack.c.bf16 %v1840_v60, %v1837_v62  ;;  %v4543_v14 = vpack.c.bf16 %v1840_v60, %v1839_v4  ;;  %v1903_v18 = vpack.c.bf16 %v1839_v4, %v1836_v58 }
 0x498   : > { %v5344_v13 = vpop.eup %5343  ;;  %2025 = vmatprep.mubr.bf16.mxu0 %v1904_v50  ;;  %v1756_v42 = vpop.xlane.xlu1 %1755  ;;  %4169 = vst [vmem:[%s6976_s25 + $0x78] sm:$0xff] %v4543_v14  ;;  %v8461_v50 = vld [vmem:[#allocation36_spill] sm:$0xff]  ;;  %v8462_v14 = vld [vmem:[#allocation35_spill] sm:$0xff] }
 0x499   : > { %5349 = vrcp.f32 %v1756_v42  ;;  %v1843_v8 = vmul.f32 %v5344_v13, %v8454_v44  ;;  %v1842_v19 = vmul.f32 %v5344_v13, %v8455_v38  ;;  %v8463_v44 = vld [vmem:[#allocation38_spill] sm:$0xff]  ;;  %v8464_v38 = vld [vmem:[#allocation37_spill] sm:$0xff] }
 0x49b   : > { %v5346_v39 = vpop.eup %5345  ;;  %v4544_v26 = vpack.c.bf16 %v1843_v8, %v1842_v19 }
 0x49c   : > { %2026 = vmatmul.mubr.bf16.gmra.mrb[92].mxu0 %v1903_v18  ;;  %v1846_v54 = vmul.f32 %v5346_v39, %v8456_v27  ;;  %v1845_v57 = vmul.f32 %v5346_v39, %v8457_v10  ;;  %v5142_v27 = vld [vmem:[#allocation10 + $0x38] sm:$0xff]  }
 0x49d   : > { %v1759_v35 = vpop.xlane.xlu0 %1758  ;;  %4170 = vst [vmem:[%s6976_s25 + $0x80] sm:$0xff] %v4544_v26  ;;  %4944 = vmatprep.subr.bf16.mxu1 %v5142_v27 }
 0x49e   : > { %5351 = vrcp.f32 %v1759_v35  ;;  %v1906_v36 = vpack.c.bf16 %v1846_v54, %v1843_v8  ;;  %v4545_v3 = vpack.c.bf16 %v1846_v54, %v1845_v57  ;;  %v1905_v53 = vpack.c.bf16 %v1845_v57, %v1842_v19  ;;  %4945 = vmatpush3.bf16.msra.mxu1 %v5142_v27 }
 0x49f   : > { %v1762_v17 = vpop.xlane.xlu1 %1761 }
 0x4a0   : > { %v5348_v40 = vpop.eup %5347  ;;  %2033 = vmatprep.mubr.bf16.mxu0 %v1906_v36  ;;  %5353 = vrcp.f32 %v1762_v17  ;;  %4171 = vst [vmem:[%s6976_s25 + $0x88] sm:$0xff] %v4545_v3 }
 0x4a1   : > { %v1849_v30 = vmul.f32 %v5348_v40, %v6927_v5  ;;  %v1848_v41 = vmul.f32 %v5348_v40, %v6925_v61 }
 0x4a3   : > { %v5350_v12 = vpop.eup %5349  ;;  %v4546_v16 = vpack.c.bf16 %v1849_v30, %v1848_v41 }
 0x4a4   : > { %2034 = vmatmul.mubr.bf16.gmra.mrb[96].mxu0 %v1905_v53  ;;  %v1852_v2 = vmul.f32 %v5350_v12, %v6935_v51  ;;  %v1851_v34 = vmul.f32 %v5350_v12, %v6929_v45 }
 0x4a5   : > { %v1765_v32 = vpop.xlane.xlu0 %1764  ;;  %4172 = vst [vmem:[%s6976_s25 + $0x90] sm:$0xff] %v4546_v16 }
 0x4a6   : > { %5355 = vrcp.f32 %v1765_v32  ;;  %v1908_v43 = vpack.c.bf16 %v1852_v2, %v1849_v30  ;;  %v4547_v49 = vpack.c.bf16 %v1852_v2, %v1851_v34  ;;  %v1907_v51 = vpack.c.bf16 %v1851_v34, %v1848_v41 }
 0x4a7   : > { %v1768_v62 = vpop.xlane.xlu1 %1767 }
 0x4a8   : > { %v5352_v5 = vpop.eup %5351  ;;  %2041 = vmatprep.mubr.bf16.mxu0 %v1908_v43  ;;  %5357 = vrcp.f32 %v1768_v62  ;;  %4173 = vst [vmem:[%s6976_s25 + $0x98] sm:$0xff] %v4547_v49 }
 0x4a9   : > { %v1855_v61 = vmul.f32 %v5352_v5, %v6943_v59  ;;  %v1854_v58 = vmul.f32 %v5352_v5, %v8458_v24 }
 0x4aa   : > { %v5354_v31 = vpop.eup %5353 }
 0x4ab   : > { %v1858_v45 = vmul.f32 %v5354_v31, %v8459_v22  ;;  %v1857_v15 = vmul.f32 %v5354_v31, %v8460_v1  ;;  %v4548_v60 = vpack.c.bf16 %v1855_v61, %v1854_v58 }
 0x4ac   : > { %2042 = vmatmul.mubr.bf16.gmra.mrb[100].mxu0 %v1907_v51 }
 0x4ad   : > { %v1910_v23 = vpack.c.bf16 %v1858_v45, %v1855_v61  ;;  %v4549_v4 = vpack.c.bf16 %v1858_v45, %v1857_v15  ;;  %4174 = vst [vmem:[%s6976_s25 + $0xa0] sm:$0xff] %v4548_v60  ;;  %v1909_v42 = vpack.c.bf16 %v1857_v15, %v1854_v58 }
 0x4af   : > { %2049 = vmatprep.mubr.bf16.mxu0 %v1910_v23  ;;  %4175 = vst [vmem:[%s6976_s25 + $0xa8] sm:$0xff] %v4549_v4 }
 0x4b0   : > { %v5356_v33 = vpop.eup %5355 }
 0x4b1   : > { %v1861_v59 = vmul.f32 %v5356_v33, %v8461_v50  ;;  %v1860_v63 = vmul.f32 %v5356_v33, %v8462_v14 }
 0x4b2   : > { %v5358_v13 = vpop.eup %5357 }
 0x4b3   : > { %v1864_v8 = vmul.f32 %v5358_v13, %v8463_v44  ;;  %v1863_v19 = vmul.f32 %v5358_v13, %v8464_v38  ;;  %v4550_v18 = vpack.c.bf16 %v1861_v59, %v1860_v63 }
 0x4b4   : > { %2050 = vmatmul.mubr.bf16.gmra.mrb[104].mxu0 %v1909_v42 }
 0x4b5   : > { %v1912_v39 = vpack.c.bf16 %v1864_v8, %v1861_v59  ;;  %v4551_v26 = vpack.c.bf16 %v1864_v8, %v1863_v19  ;;  %4176 = vst [vmem:[%s6976_s25 + $0xb0] sm:$0xff] %v4550_v18  ;;  %v1911_v54 = vpack.c.bf16 %v1863_v19, %v1860_v63  ;;  %v8465_v63 = vmov 0  }
 0x4b7   : > { %2057 = vmatprep.mubr.bf16.mxu0 %v1912_v39  ;;  %4177 = vst [vmem:[%s6976_s25 + $0xb8] sm:$0xff] %v4551_v26 }
 0x4bc   : > { %2058 = vmatmul.mubr.bf16.gmra.mrb[108].mxu0 %v1911_v54 }
 0x4f1   : > { %v1771_v10 = vpop.xlane.xlu0 %1770 }
 0x4f2   : > { %5359 = vrcp.f32 %v1771_v10 }
 0x4f5   : > { %v1774_v57 = vpop.xlane.xlu1 %1773 }
 0x4f6   : > { %5361 = vrcp.f32 %v1774_v57 }
 0x4f9   : > { %v1777_v35 = vpop.xlane.xlu0 %1776 }
 0x4fa   : > { %5363 = vrcp.f32 %v1777_v35 }
 0x4fc   : > { %v5360_v36 = vpop.eup %5359 }
 0x4fd   : > { %v1780_v3 = vpop.xlane.xlu1 %1779  ;;  %v1867_v11 = vmul.f32 %v5360_v36, %v6983_v7  ;;  %v1866_v17 = vmul.f32 %v5360_v36, %v6981_v46 }
 0x4fe   : > { %5365 = vrcp.f32 %v1780_v3 }
 0x4ff   : > { %v4552_v40 = vpack.c.bf16 %v1867_v11, %v1866_v17 }
 0x500   : > { %v5362_v30 = vpop.eup %5361 }
 0x501   : > { %v1870_v53 = vmul.f32 %v5362_v30, %v6994_v37  ;;  %v1869_v12 = vmul.f32 %v5362_v30, %v6992_v21  ;;  %4178 = vst [vmem:[%s6976_s25 + $0xc0] sm:$0xff] %v4552_v40 }
 0x502   : > { %v1783_v41 = vpop.xlane.xlu0 %1782 }
 0x503   : > { %5367 = vrcp.f32 %v1783_v41  ;;  %v1914_v16 = vpack.c.bf16 %v1870_v53, %v1867_v11  ;;  %v1913_v2 = vpack.c.bf16 %v1869_v12, %v1866_v17  ;;  %v4553_v34 = vpack.c.bf16 %v1870_v53, %v1869_v12 }
 0x504   : > { %v5364_v32 = vpop.eup %5363 }
 0x505   : > { %2065 = vmatprep.mubr.bf16.mxu0 %v1914_v16  ;;  %v1786_v7 = vpop.xlane.xlu1 %1785  ;;  %4179 = vst [vmem:[%s6976_s25 + $0xc8] sm:$0xff] %v4553_v34  ;;  %v1873_v46 = vmul.f32 %v5364_v32, %v7005_v56  ;;  %v1872_v43 = vmul.f32 %v5364_v32, %v7003_v52 }
 0x506   : > { %5369 = vrcp.f32 %v1786_v7  ;;  %2066 = vmatmul.mubr.bf16.gmra.mrb[112].mxu0 %v1913_v2 }
 0x507   : > { %v4554_v37 = vpack.c.bf16 %v1873_v46, %v1872_v43 }
 0x508   : > { %v5366_v49 = vpop.eup %5365 }
 0x509   : > { %v1876_v62 = vmul.f32 %v5366_v49, %v7016_v20  ;;  %v1875_v5 = vmul.f32 %v5366_v49, %v7014_v25  ;;  %4180 = vst [vmem:[%s6976_s25 + $0xd0] sm:$0xff] %v4554_v37 }
 0x50a   : > { %v1789_v21 = vpop.xlane.xlu0 %1788 }
 0x50b   : > { %5371 = vrcp.f32 %v1789_v21  ;;  %v1916_v61 = vpack.c.bf16 %v1876_v62, %v1873_v46  ;;  %v1915_v24 = vpack.c.bf16 %v1875_v5, %v1872_v43  ;;  %v4555_v58 = vpack.c.bf16 %v1876_v62, %v1875_v5 }
 0x50d   : > { %v5368_v31 = vpop.eup %5367  ;;  %2073 = vmatprep.mubr.bf16.mxu0 %v1916_v61  ;;  %v1792_v56 = vpop.xlane.xlu1 %1791  ;;  %4181 = vst [vmem:[%s6976_s25 + $0xd8] sm:$0xff] %v4555_v58 }
 0x50e   : > { %v1879_v52 = vmul.f32 %v5368_v31, %v7027_v0  ;;  %v1878_v51 = vmul.f32 %v5368_v31, %v7025_v6  ;;  %5373 = vrcp.f32 %v1792_v56  ;;  %2074 = vmatmul.mubr.bf16.gmra.mrb[116].mxu0 %v1915_v24 }
 0x510   : > { %v4556_v20 = vpack.c.bf16 %v1879_v52, %v1878_v51  ;;  %v5370_v22 = vpop.eup %5369 }
 0x511   : > { %v1882_v25 = vmul.f32 %v5370_v22, %v7036_v9  ;;  %v1881_v45 = vmul.f32 %v5370_v22, %v7034_v55 }
 0x512   : > { %4182 = vst [vmem:[%s6976_s25 + $0xe0] sm:$0xff] %v4556_v20 }
 0x513   : > { %v1918_v1 = vpack.c.bf16 %v1882_v25, %v1879_v52  ;;  %v1917_v15 = vpack.c.bf16 %v1881_v45, %v1878_v51  ;;  %v4557_v60 = vpack.c.bf16 %v1882_v25, %v1881_v45 }
 0x515   : > { %v5372_v23 = vpop.eup %5371  ;;  %2081 = vmatprep.mubr.bf16.mxu0 %v1918_v1  ;;  %4183 = vst [vmem:[%s6976_s25 + $0xe8] sm:$0xff] %v4557_v60 }
 0x516   : > { %v1885_v0 = vmul.f32 %v5372_v23, %v7045_v48  ;;  %v1884_v6 = vmul.f32 %v5372_v23, %v7043_v29  ;;  %2082 = vmatmul.mubr.bf16.gmra.mrb[120].mxu0 %v1917_v15 }
 0x518   : > { %v4558_v4 = vpack.c.bf16 %v1885_v0, %v1884_v6  ;;  %v5374_v33 = vpop.eup %5373 }
 0x519   : > { %v1888_v9 = vmul.f32 %v5374_v33, %v7054_v28  ;;  %v1887_v50 = vmul.f32 %v5374_v33, %v7052_v47 }
 0x51a   : > { %4184 = vst [vmem:[%s6976_s25 + $0xf0] sm:$0xff] %v4558_v4 }
 0x51b   : > { %v1920_v55 = vpack.c.bf16 %v1888_v9, %v1885_v0  ;;  %v1919_v59 = vpack.c.bf16 %v1887_v50, %v1884_v6  ;;  %v4559_v14 = vpack.c.bf16 %v1888_v9, %v1887_v50 }
 0x51d   : > { %2089 = vmatprep.mubr.bf16.mxu0 %v1920_v55  ;;  %4185 = vst [vmem:[%s6976_s25 + $0xf8] sm:$0xff] %v4559_v14 }
 0x51e   : > { %2090 = vmatmul.mubr.bf16.gmra.mrb[124].mxu0 %v1919_v59 }
 0x51f   : > { %2956 = vmatprep.mubr.bf16.mxu0 %v8465_v63 }
 0x535   : > { %v4650_v13 = vpop.f32.mrb[64].mxu0 }
 0x536   : > { %v4651_v48 = vpop.f32.mrb[65].mxu0 }
 0x537   : > { %v4652_v42 = vadd.f32 %v4651_v48, %v4650_v13  ;;  %v4653_v29 = vpop.f32.mrb[66].mxu0 }
 0x538   : > { %v4654_v44 = vpop.f32.mrb[67].mxu0 }
 0x539   : > { %v4655_v8 = vadd.f32 %v4654_v44, %v4653_v29 }
 0x53b   : > { %v2098_v38 = vpack.c.bf16 %v4655_v8, %v4652_v42 }
 0x53d   : > { %4946 = vmatprep.mubr.bf16.mxu1 %v2098_v38 }
 0x53f   : > { %v4656_v28 = vpop.f32.mrb[68].mxu0 }
 0x540   : > { %v4657_v19 = vpop.f32.mrb[69].mxu0 }
 0x541   : > { %v4658_v47 = vadd.f32 %v4657_v19, %v4656_v28  ;;  %v4659_v18 = vpop.f32.mrb[70].mxu0 }
 0x542   : > { %v4660_v39 = vpop.f32.mrb[71].mxu0 }
 0x543   : > { %v4661_v26 = vadd.f32 %v4660_v39, %v4659_v18 }
 0x545   : > { %v2099_v27 = vpack.c.bf16 %v4661_v26, %v4658_v47 }
 0x547   : > { %v4662_v54 = vpop.f32.mrb[72].mxu0  ;;  %4947 = vmatmul.mubr.bf16.vlgmr.msra.gmra.mrb[96].mxu1 %v2099_v27 }
 0x548   : > { %v4663_v10 = vpop.f32.mrb[73].mxu0 }
 0x549   : > { %v4664_v57 = vadd.f32 %v4663_v10, %v4662_v54  ;;  %v4665_v35 = vpop.f32.mrb[74].mxu0 }
 0x54a   : > { %v4666_v36 = vpop.f32.mrb[75].mxu0 }
 0x54b   : > { %v4667_v3 = vadd.f32 %v4666_v36, %v4665_v35 }
 0x54d   : > { %v2100_v11 = vpack.c.bf16 %v4667_v3, %v4664_v57 }
 0x54f   : > { %v4668_v17 = vpop.f32.mrb[76].mxu0  ;;  %4950 = vmatprep.mubr.bf16.mxu1 %v2100_v11 }
 0x550   : > { %v4669_v40 = vpop.f32.mrb[77].mxu0 }
 0x551   : > { %v4670_v30 = vadd.f32 %v4669_v40, %v4668_v17  ;;  %v4671_v41 = vpop.f32.mrb[78].mxu0 }
 0x552   : > { %v4672_v53 = vpop.f32.mrb[79].mxu0 }
 0x553   : > { %v4673_v12 = vadd.f32 %v4672_v53, %v4671_v41 }
 0x555   : > { %v2101_v16 = vpack.c.bf16 %v4673_v12, %v4670_v30 }
 0x557   : > { %v4674_v2 = vpop.f32.mrb[80].mxu0  ;;  %4951 = vmatmul.mubr.bf16.gmra.mrb[100].mxu1 %v2101_v16 }
 0x558   : > { %v4675_v34 = vpop.f32.mrb[81].mxu0 }
 0x559   : > { %v4676_v32 = vadd.f32 %v4675_v34, %v4674_v2  ;;  %v4677_v7 = vpop.f32.mrb[82].mxu0 }
 0x55a   : > { %v4678_v46 = vpop.f32.mrb[83].mxu0 }
 0x55b   : > { %v4679_v43 = vadd.f32 %v4678_v46, %v4677_v7 }
 0x55d   : > { %v2102_v37 = vpack.c.bf16 %v4679_v43, %v4676_v32 }
 0x55f   : > { %v4680_v49 = vpop.f32.mrb[84].mxu0  ;;  %4954 = vmatprep.mubr.bf16.mxu1 %v2102_v37 }
 0x560   : > { %v4681_v21 = vpop.f32.mrb[85].mxu0 }
 0x561   : > { %v4682_v62 = vadd.f32 %v4681_v21, %v4680_v49  ;;  %v4683_v5 = vpop.f32.mrb[86].mxu0 }
 0x562   : > { %v4684_v61 = vpop.f32.mrb[87].mxu0 }
 0x563   : > { %v4685_v24 = vadd.f32 %v4684_v61, %v4683_v5 }
 0x565   : > { %v2103_v58 = vpack.c.bf16 %v4685_v24, %v4682_v62 }
 0x567   : > { %v4686_v31 = vpop.f32.mrb[88].mxu0  ;;  %4955 = vmatmul.mubr.bf16.gmra.mrb[104].mxu1 %v2103_v58 }
 0x568   : > { %v4687_v56 = vpop.f32.mrb[89].mxu0 }
 0x569   : > { %v4688_v52 = vadd.f32 %v4687_v56, %v4686_v31  ;;  %v4689_v51 = vpop.f32.mrb[90].mxu0 }
 0x56a   : > { %v4690_v20 = vpop.f32.mrb[91].mxu0 }
 0x56b   : > { %v4691_v22 = vadd.f32 %v4690_v20, %v4689_v51 }
 0x56d   : > { %v2104_v25 = vpack.c.bf16 %v4691_v22, %v4688_v52 }
 0x56f   : > { %v4692_v45 = vpop.f32.mrb[92].mxu0  ;;  %4958 = vmatprep.mubr.bf16.mxu1 %v2104_v25 }
 0x570   : > { %v4693_v1 = vpop.f32.mrb[93].mxu0 }
 0x571   : > { %v4694_v15 = vadd.f32 %v4693_v1, %v4692_v45  ;;  %v4695_v60 = vpop.f32.mrb[94].mxu0  ;;  %v7132_v45 = vld [vmem:[%s8318_s8 + $0x1] ss:$0 sm:$0xff] }
 0x572   : > { %v4696_v23 = vpop.f32.mrb[95].mxu0 }
 0x573   : > { %v4697_v0 = vadd.f32 %v4696_v23, %v4695_v60 }
 0x575   : > { %v2105_v6 = vpack.c.bf16 %v4697_v0, %v4694_v15 }
 0x577   : > { %v4698_v4 = vpop.f32.mrb[96].mxu0  ;;  %4959 = vmatmul.mubr.bf16.gmra.mrb[108].mxu1 %v2105_v6 }
 0x578   : > { %v4699_v33 = vpop.f32.mrb[97].mxu0 }
 0x579   : > { %v4700_v9 = vadd.f32 %v4699_v33, %v4698_v4  ;;  %v4701_v50 = vpop.f32.mrb[98].mxu0  ;;  %v5503_v33 = vld [vmem:[%s6175_s19] sm:$0xff] }
 0x57a   : > { %v4702_v55 = vpop.f32.mrb[99].mxu0 }
 0x57b   : > { %v4703_v59 = vadd.f32 %v4702_v55, %v4701_v50  ;;  %v5504_v55 = vld [vmem:[%s6175_s19 + $0x8] sm:$0xff] }
 0x57d   : > { %v2106_v14 = vpack.c.bf16 %v4703_v59, %v4700_v9 }
 0x57f   : > { %v4704_v13 = vpop.f32.mrb[100].mxu0  ;;  %4962 = vmatprep.mubr.bf16.mxu1 %v2106_v14  ;;  %v5505_v14 = vld [vmem:[%s6175_s19 + $0x10] sm:$0xff] }
 0x580   : > { %v4705_v48 = vpop.f32.mrb[101].mxu0 }
 0x581   : > { %v4706_v42 = vadd.f32 %v4705_v48, %v4704_v13  ;;  %v4707_v29 = vpop.f32.mrb[102].mxu0  ;;  %v5506_v48 = vld [vmem:[%s6175_s19 + $0x18] sm:$0xff] }
 0x582   : > { %v4708_v44 = vpop.f32.mrb[103].mxu0 }
 0x583   : > { %v4709_v8 = vadd.f32 %v4708_v44, %v4707_v29 }
 0x585   : > { %v2107_v38 = vpack.c.bf16 %v4709_v8, %v4706_v42 }
 0x587   : > { %v4710_v28 = vpop.f32.mrb[104].mxu0  ;;  %4963 = vmatmul.mubr.bf16.gmra.mrb[112].mxu1 %v2107_v38 }
 0x588   : > { %v4711_v19 = vpop.f32.mrb[105].mxu0 }
 0x589   : > { %v4712_v47 = vadd.f32 %v4711_v19, %v4710_v28  ;;  %v4713_v18 = vpop.f32.mrb[106].mxu0 }
 0x58a   : > { %v4714_v39 = vpop.f32.mrb[107].mxu0 }
 0x58b   : > { %v4715_v26 = vadd.f32 %v4714_v39, %v4713_v18  ;;  %v5507_v18 = vld [vmem:[%s6175_s19 + $0x20] sm:$0xff] }
 0x58d   : > { %v2108_v27 = vpack.c.bf16 %v4715_v26, %v4712_v47 }
 0x58f   : > { %v4716_v54 = vpop.f32.mrb[108].mxu0  ;;  %4966 = vmatprep.mubr.bf16.mxu1 %v2108_v27  ;;  %v5508_v27 = vld [vmem:[%s6175_s19 + $0x28] sm:$0xff] }
 0x590   : > { %v4717_v10 = vpop.f32.mrb[109].mxu0 }
 0x591   : > { %v4718_v57 = vadd.f32 %v4717_v10, %v4716_v54  ;;  %v4719_v35 = vpop.f32.mrb[110].mxu0  ;;  %v5509_v10 = vld [vmem:[%s6175_s19 + $0x30] sm:$0xff] }
 0x592   : > { %v4720_v36 = vpop.f32.mrb[111].mxu0 }
 0x593   : > { %v4721_v3 = vadd.f32 %v4720_v36, %v4719_v35  ;;  %v5510_v35 = vld [vmem:[%s6175_s19 + $0x38] sm:$0xff] }
 0x595   : > { %v2109_v11 = vpack.c.bf16 %v4721_v3, %v4718_v57 }
 0x597   : > { %4967 = vmatmul.mubr.bf16.gmra.mrb[116].mxu1 %v2109_v11 }
 0x5d9   : > { %v4722_v17 = vpop.f32.mrb[112].mxu0 }
 0x5da   : > { %v4723_v40 = vpop.f32.mrb[113].mxu0 }
 0x5db   : > { %v4724_v30 = vadd.f32 %v4723_v40, %v4722_v17  ;;  %v4725_v41 = vpop.f32.mrb[114].mxu0 }
 0x5dc   : > { %v4726_v53 = vpop.f32.mrb[115].mxu0 }
 0x5dd   : > { %v4727_v12 = vadd.f32 %v4726_v53, %v4725_v41 }
 0x5df   : > { %v2110_v16 = vpack.c.bf16 %v4727_v12, %v4724_v30  ;;  %v5511_v12 = vld [vmem:[%s6175_s19 + $0x40] sm:$0xff] }
 0x5e1   : > { %v4728_v2 = vpop.f32.mrb[116].mxu0  ;;  %4970 = vmatprep.mubr.bf16.mxu1 %v2110_v16 }
 0x5e2   : > { %v4729_v34 = vpop.f32.mrb[117].mxu0 }
 0x5e3   : > { %v4730_v32 = vadd.f32 %v4729_v34, %v4728_v2  ;;  %v4731_v7 = vpop.f32.mrb[118].mxu0  ;;  %v5512_v34 = vld [vmem:[%s6175_s19 + $0x48] sm:$0xff] }
 0x5e4   : > { %v4732_v46 = vpop.f32.mrb[119].mxu0 }
 0x5e5   : > { %v4733_v43 = vadd.f32 %v4732_v46, %v4731_v7  ;;  %v5513_v7 = vld [vmem:[%s6175_s19 + $0x50] sm:$0xff] }
 0x5e7   : > { %v2111_v37 = vpack.c.bf16 %v4733_v43, %v4730_v32  ;;  %v5514_v43 = vld [vmem:[%s6175_s19 + $0x58] sm:$0xff] }
 0x5e9   : > { %v4734_v49 = vpop.f32.mrb[120].mxu0  ;;  %4971 = vmatmul.mubr.bf16.gmra.mrb[120].mxu1 %v2111_v37 }
 0x5ea   : > { %v4735_v21 = vpop.f32.mrb[121].mxu0 }
 0x5eb   : > { %v4736_v62 = vadd.f32 %v4735_v21, %v4734_v49  ;;  %v4737_v5 = vpop.f32.mrb[122].mxu0 }
 0x5ec   : > { %v4738_v61 = vpop.f32.mrb[123].mxu0 }
 0x5ed   : > { %v4739_v24 = vadd.f32 %v4738_v61, %v4737_v5 }
 0x5ef   : > { %v2112_v58 = vpack.c.bf16 %v4739_v24, %v4736_v62 }
 0x5f1   : > { %v4740_v31 = vpop.f32.mrb[124].mxu0  ;;  %4974 = vmatprep.mubr.bf16.mxu1 %v2112_v58 }
 0x5f2   : > { %v4741_v56 = vpop.f32.mrb[125].mxu0 }
 0x5f3   : > { %v4742_v52 = vadd.f32 %v4741_v56, %v4740_v31  ;;  %v4743_v51 = vpop.f32.mrb[126].mxu0  ;;  %v5515_v31 = vld [vmem:[%s6175_s19 + $0x60] sm:$0xff] }
 0x5f4   : > { %v4744_v20 = vpop.f32.mrb[127].mxu0 }
 0x5f5   : > { %v4745_v22 = vadd.f32 %v4744_v20, %v4743_v51  ;;  %v5516_v51 = vld [vmem:[%s6175_s19 + $0x68] sm:$0xff] }
 0x5f7   : > { %v2113_v25 = vpack.c.bf16 %v4745_v22, %v4742_v52  ;;  %v5517_v22 = vld [vmem:[%s6175_s19 + $0x70] sm:$0xff] }
 0x5f9   : > { %4975 = vmatmul.mubr.bf16.gmra.mrb[124].mxu1 %v2113_v25 }
 0x61a   : > { %v4948_v1 = vpop.f32.mrb[96].mxu1 }
 0x61b   : > { %v2216_v15 = vpop.f32.mrb[97].mxu1  ;;  %v2225_v6 = vadd.f32 %v4948_v1, %v7132_v45  ;;  %v5518_v1 = vld [vmem:[%s6175_s19 + $0x78] sm:$0xff] }
 0x61c   : > { %v2217_v60 = vadd.f32 %v7132_v45, %v2216_v15  ;;  %v4949_v23 = vpop.f32.mrb[98].mxu1 }
 0x61d   : > { %v2219_v0 = vpop.f32.mrb[99].mxu1  ;;  %v2228_v50 = vadd.f32 %v4949_v23, %v7132_v45  ;;  %v7147_v13 = vadd.f32 %v5505_v14, %v2225_v6 }
 0x61e   : > { %v2220_v4 = vadd.f32 %v7132_v45, %v2219_v0  ;;  %v7138_v9 = vadd.f32 %v5503_v33, %v2217_v60 }
 0x61f   : > { %v7151_v42 = vadd.f32 %v5506_v48, %v2228_v50 }
 0x620   : > { %2375 = vadd.xlane.f32.xlu0 %v7138_v9  ;;  %v7143_v59 = vadd.f32 %v5504_v55, %v2220_v4  ;;  %v5519_v55 = vld [vmem:[%s6175_s19 + $0x80] sm:$0xff] }
 0x622   : > { %2377 = vadd.xlane.f32.xlu1 %v7143_v59 }
 0x624   : > { %2379 = vadd.xlane.f32.xlu0 %v7147_v13 }
 0x626   : > { %2381 = vadd.xlane.f32.xlu1 %v7151_v42 }
 0x62a   : > { %v4952_v29 = vpop.f32.mrb[100].mxu1 }
 0x62b   : > { %v2232_v44 = vpop.f32.mrb[101].mxu1  ;;  %v2241_v19 = vadd.f32 %v4952_v29, %v7132_v45  ;;  %v5520_v29 = vld [vmem:[%s6175_s19 + $0x88] sm:$0xff] }
 0x62c   : > { %v2233_v8 = vadd.f32 %v7132_v45, %v2232_v44  ;;  %v4953_v38 = vpop.f32.mrb[102].mxu1 }
 0x62d   : > { %v2235_v28 = vpop.f32.mrb[103].mxu1  ;;  %v2244_v26 = vadd.f32 %v4953_v38, %v7132_v45  ;;  %v7167_v57 = vadd.f32 %v5509_v10, %v2241_v19  ;;  %v5143_v10 = vld [vmem:[#allocation12] ss:$8 sps:$4 sm:$0xff]  }
 0x62e   : > { %v2236_v47 = vadd.f32 %v7132_v45, %v2235_v28  ;;  %v7158_v39 = vadd.f32 %v5507_v18, %v2233_v8  ;;  %v5521_v8 = vld [vmem:[%s6175_s19 + $0x90] sm:$0xff]  ;;  %v5522_v28 = vld [vmem:[%s6175_s19 + $0x98] sm:$0xff] }
 0x62f   : > { %v7171_v36 = vadd.f32 %v5510_v35, %v2244_v26  ;;  %v5145_v35 = vld [vmem:[#allocation12 + $0x4] ss:$8 sps:$4 sm:$0xff]  }
 0x630   : > { %2383 = vadd.xlane.f32.xlu0 %v7158_v39  ;;  %v7163_v54 = vadd.f32 %v5508_v27, %v2236_v47  ;;  %2924 = vmatprep.subr.bf16.mxu0 %v5145_v35  ;;  %v5149_v35 = vld [vmem:[#allocation12 + $0x20] ss:$8 sps:$4 sm:$0xff]  }
 0x631   : > { %2925 = vmatpush1.bf16.msra.mxu0 %v5143_v10 }
 0x632   : > { %2385 = vadd.xlane.f32.xlu1 %v7163_v54 }
 0x634   : > { %2387 = vadd.xlane.f32.xlu0 %v7167_v57 }
 0x636   : > { %2389 = vadd.xlane.f32.xlu1 %v7171_v36 }
 0x63a   : > { %v4956_v3 = vpop.f32.mrb[104].mxu1 }
 0x63b   : > { %v2248_v11 = vpop.f32.mrb[105].mxu1  ;;  %v2257_v41 = vadd.f32 %v4956_v3, %v7132_v45  ;;  %v5148_v3 = vld [vmem:[#allocation12 + $0x14] ss:$8 sps:$4 sm:$0xff]  }
 0x63c   : > { %v2249_v17 = vadd.f32 %v7132_v45, %v2248_v11  ;;  %v4957_v40 = vpop.f32.mrb[106].mxu1  ;;  %v5146_v11 = vld [vmem:[#allocation12 + $0x10] ss:$8 sps:$4 sm:$0xff]   ;;  %2926 = vmatprep.subr.bf16.mxu0 %v5148_v3 }
 0x63d   : > { %v2251_v30 = vpop.f32.mrb[107].mxu1  ;;  %v2260_v2 = vadd.f32 %v4957_v40, %v7132_v45  ;;  %v7187_v46 = vadd.f32 %v5513_v7, %v2257_v41  ;;  %2927 = vmatpush1.bf16.msra.mxu0 %v5146_v11 }
 0x63e   : > { %v2252_v53 = vadd.f32 %v7132_v45, %v2251_v30  ;;  %v7178_v16 = vadd.f32 %v5511_v12, %v2249_v17 }
 0x63f   : > { %v7191_v37 = vadd.f32 %v5514_v43, %v2260_v2 }
 0x640   : > { %2391 = vadd.xlane.f32.xlu0 %v7178_v16  ;;  %v7183_v32 = vadd.f32 %v5512_v34, %v2252_v53 }
 0x642   : > { %2393 = vadd.xlane.f32.xlu1 %v7183_v32 }
 0x644   : > { %2395 = vadd.xlane.f32.xlu0 %v7187_v46 }
 0x646   : > { %2397 = vadd.xlane.f32.xlu1 %v7191_v37 }
 0x64a   : > { %v4960_v49 = vpop.f32.mrb[108].mxu1 }
 0x64b   : > { %v2264_v21 = vpop.f32.mrb[109].mxu1  ;;  %v2273_v24 = vadd.f32 %v4960_v49, %v7132_v45 }
 0x64c   : > { %v2265_v62 = vadd.f32 %v7132_v45, %v2264_v21  ;;  %v4961_v5 = vpop.f32.mrb[110].mxu1 }
 0x64d   : > { %v2267_v61 = vpop.f32.mrb[111].mxu1  ;;  %v2276_v52 = vadd.f32 %v4961_v5, %v7132_v45  ;;  %v7207_v25 = vadd.f32 %v5517_v22, %v2273_v24  ;;  %v5523_v5 = vld [vmem:[%s6175_s19 + $0xa0] sm:$0xff] }
 0x64e   : > { %v2268_v58 = vadd.f32 %v7132_v45, %v2267_v61  ;;  %v7198_v56 = vadd.f32 %v5515_v31, %v2265_v62 }
 0x64f   : > { %v7211_v15 = vadd.f32 %v5518_v1, %v2276_v52 }
 0x650   : > { %2399 = vadd.xlane.f32.xlu0 %v7198_v56  ;;  %v7203_v20 = vadd.f32 %v5516_v51, %v2268_v58 }
 0x652   : > { %2401 = vadd.xlane.f32.xlu1 %v7203_v20 }
 0x654   : > { %2403 = vadd.xlane.f32.xlu0 %v7207_v25 }
 0x656   : > { %2405 = vadd.xlane.f32.xlu1 %v7211_v15 }
 0x65a   : > { %v4964_v60 = vpop.f32.mrb[112].mxu1 }
 0x65b   : > { %v2280_v23 = vpop.f32.mrb[113].mxu1  ;;  %v2289_v33 = vadd.f32 %v4964_v60, %v7132_v45 }
 0x65c   : > { %v2281_v0 = vadd.f32 %v7132_v45, %v2280_v23  ;;  %v4965_v6 = vpop.f32.mrb[114].mxu1 }
 0x65d   : > { %v2283_v4 = vpop.f32.mrb[115].mxu1  ;;  %v2292_v48 = vadd.f32 %v4965_v6, %v7132_v45  ;;  %v7227_v38 = vadd.f32 %v5521_v8, %v2289_v33  ;;  %v5525_v6 = vld [vmem:[%s6175_s19 + $0xb0] sm:$0xff] }
 0x65e   : > { %v2284_v50 = vadd.f32 %v7132_v45, %v2283_v4  ;;  %v7218_v14 = vadd.f32 %v5519_v55, %v2281_v0 }
 0x65f   : > { %v7231_v19 = vadd.f32 %v5522_v28, %v2292_v48  ;;  %v5526_v48 = vld [vmem:[%s6175_s19 + $0xb8] sm:$0xff] }
 0x660   : > { %2407 = vadd.xlane.f32.xlu0 %v7218_v14  ;;  %v7223_v44 = vadd.f32 %v5520_v29, %v2284_v50 }
 0x662   : > { %2409 = vadd.xlane.f32.xlu1 %v7223_v44 }
 0x664   : > { %2411 = vadd.xlane.f32.xlu0 %v7227_v38 }
 0x666   : > { %2413 = vadd.xlane.f32.xlu1 %v7231_v19 }
 0x66a   : > { %v4968_v47 = vpop.f32.mrb[116].mxu1 }
 0x66b   : > { %v2296_v18 = vpop.f32.mrb[117].mxu1  ;;  %v2305_v52 = vadd.f32 %v4968_v47, %v7132_v45  ;;  %v5151_v47 = vld [vmem:[#allocation12 + $0x24] ss:$8 sps:$4 sm:$0xff]  }
 0x66c   : > { %v4969_v26 = vpop.f32.mrb[118].mxu1  ;;  %v2297_v2 = vadd.f32 %v7132_v45, %v2296_v18  ;;  %2928 = vmatprep.subr.bf16.mxu0 %v5151_v47 }
 0x66d   : > { %v2299_v27 = vpop.f32.mrb[119].mxu1  ;;  %v7267_v4 = vadd.f32 %v5525_v6, %v2305_v52  ;;  %2929 = vmatpush1.bf16.msra.mxu0 %v5149_v35 }
 0x66e   : > { %v2300_v21 = vadd.f32 %v7132_v45, %v2299_v27  ;;  %v7247_v61 = vadd.f32 %v5523_v5, %v2297_v2  ;;  %v5528_v2 = vld [vmem:[%s6175_s19 + $0xc8] sm:$0xff] }
 0x6ad   : > { %v2376_v17 = vpop.xlane.xlu0 %2375 }
 0x6ae   : > { %v2440_v40 = vmul.f32 0.0078125, %v2376_v17 }
 0x6af   : > { %v2378_v30 = vpop.xlane.xlu1 %2377 }
 0x6b0   : > { %v2441_v41 = vmul.f32 0.0078125, %v2378_v30  ;;  %v7235_v53 = vsub.f32 %v7138_v9, %v2440_v40  ;;  %v5154_v40 = vld [vmem:[#allocation12 + $0x34] ss:$8 sps:$4 sm:$0xff]   ;;  %v5527_v30 = vld [vmem:[%s6175_s19 + $0xc0] sm:$0xff] }
 0x6b1   : > { %v2380_v12 = vpop.xlane.xlu0 %2379  ;;  %2930 = vmatprep.subr.bf16.mxu0 %v5154_v40 }
 0x6b2   : > { %v2442_v34 = vmul.f32 0.0078125, %v2380_v12  ;;  %v2504_v7 = vmul.f32 %v7235_v53, %v7235_v53  ;;  %v7241_v43 = vsub.f32 %v7143_v59, %v2441_v41  ;;  %v5524_v59 = vld [vmem:[%s6175_s19 + $0xa8] sm:$0xff]  ;;  %v5152_v12 = vld [vmem:[#allocation12 + $0x30] ss:$8 sps:$4 sm:$0xff]  }
 0x6b3   : > { %v2382_v49 = vpop.xlane.xlu1 %2381  ;;  %v7254_v58 = vadd.f32 %v5524_v59, %v2300_v21  ;;  %2931 = vmatpush1.bf16.msra.mxu0 %v5152_v12  ;;  %v5164_v12 = vld [vmem:[#allocation12 + $0x70] ss:$8 sps:$4 sm:$0xff]  }
 0x6b4   : > { %v2443_v62 = vmul.f32 0.0078125, %v2382_v49  ;;  %2536 = vadd.xlane.f32.xlu0 %v2504_v7  ;;  %v2505_v9 = vmul.f32 %v7241_v43, %v7241_v43  ;;  %v7250_v24 = vsub.f32 %v7147_v13, %v2442_v34  ;;  %v2308_v13 = vadd.f32 %v4969_v26, %v7132_v45  ;;  %v5157_v49 = vld [vmem:[#allocation12 + $0x44] ss:$8 sps:$4 sm:$0xff]  }
 0x6b5   : > { %2932 = vmatprep.subr.bf16.mxu0 %v5157_v49 }
 0x6b6   : > { %2538 = vadd.xlane.f32.xlu1 %v2505_v9  ;;  %v7257_v31 = vsub.f32 %v7151_v42, %v2443_v62  ;;  %v2506_v51 = vmul.f32 %v7250_v24, %v7250_v24  ;;  %v7271_v29 = vadd.f32 %v5526_v48, %v2308_v13  ;;  %v5155_v62 = vld [vmem:[#allocation12 + $0x40] ss:$8 sps:$4 sm:$0xff]   ;;  %v5529_v13 = vld [vmem:[%s6175_s19 + $0xd0] sm:$0xff] }
 0x6b7   : > { %2933 = vmatpush1.bf16.msra.mxu0 %v5155_v62 }
 0x6b8   : > { %2415 = vadd.xlane.f32.xlu0 %v7247_v61  ;;  %v2507_v1 = vmul.f32 %v7257_v31, %v7257_v31 }
 0x6ba   : > { %2417 = vadd.xlane.f32.xlu1 %v7254_v58 }
 0x6bc   : > { %2540 = vadd.xlane.f32.xlu0 %v2506_v51  ;;  %v4972_v22 = vpop.f32.mrb[120].mxu1  ;;  %v5160_v51 = vld [vmem:[#allocation12 + $0x54] ss:$8 sps:$4 sm:$0xff]  }
 0x6bd   : > { %v2384_v60 = vpop.xlane.xlu0 %2383  ;;  %v2312_v23 = vpop.f32.mrb[121].mxu1  ;;  %v2321_v21 = vadd.f32 %v4972_v22, %v7132_v45  ;;  %2934 = vmatprep.subr.bf16.mxu0 %v5160_v51 }
 0x6be   : > { %v2444_v0 = vmul.f32 0.0078125, %v2384_v60  ;;  %2542 = vadd.xlane.f32.xlu1 %v2507_v1  ;;  %v4973_v42 = vpop.f32.mrb[122].mxu1  ;;  %v2313_v18 = vadd.f32 %v7132_v45, %v2312_v23  ;;  %v5158_v23 = vld [vmem:[#allocation12 + $0x50] ss:$8 sps:$4 sm:$0xff]  }
 0x6bf   : > { %v2386_v33 = vpop.xlane.xlu1 %2385  ;;  %v2315_v50 = vpop.f32.mrb[123].mxu1  ;;  %v2324_v9 = vadd.f32 %v4973_v42, %v7132_v45  ;;  %v7307_v22 = vadd.f32 %v5529_v13, %v2321_v21  ;;  %v5530_v42 = vld [vmem:[%s6175_s19 + $0xd8] sm:$0xff]  ;;  %2935 = vmatpush1.bf16.msra.mxu0 %v5158_v23 }
 0x6c0   : > { %v2445_v55 = vmul.f32 0.0078125, %v2386_v33  ;;  %2419 = vadd.xlane.f32.xlu0 %v7267_v4  ;;  %v7274_v8 = vsub.f32 %v7158_v39, %v2444_v0  ;;  %v2316_v39 = vadd.f32 %v7132_v45, %v2315_v50  ;;  %v7287_v41 = vadd.f32 %v5527_v30, %v2313_v18  ;;  %v5534_v13 = vld [vmem:[%s6175_s19 + $0xf8] sm:$0xff] }
 0x6c1   : > { %v2388_v28 = vpop.xlane.xlu0 %2387  ;;  %v7310_v33 = vadd.f32 %v5530_v42, %v2324_v9 }
 0x6c2   : > { %v2446_v26 = vmul.f32 0.0078125, %v2388_v28  ;;  %2421 = vadd.xlane.f32.xlu1 %v7271_v29  ;;  %v2508_v27 = vmul.f32 %v7274_v8, %v7274_v8  ;;  %v7281_v10 = vsub.f32 %v7163_v54, %v2445_v55  ;;  %v7294_v34 = vadd.f32 %v5528_v2, %v2316_v39  ;;  %v5163_v28 = vld [vmem:[#allocation12 + $0x64] ss:$8 sps:$4 sm:$0xff]  }
 0x6c3   : > { %v2390_v3 = vpop.xlane.xlu1 %2389  ;;  %2936 = vmatprep.subr.bf16.mxu0 %v5163_v28  ;;  %v5532_v2 = vld [vmem:[%s6175_s19 + $0xe8] sm:$0xff] }
 0x6c4   : > { %v2447_v11 = vmul.f32 0.0078125, %v2390_v3  ;;  %2544 = vadd.xlane.f32.xlu0 %v2508_v27  ;;  %v2509_v17 = vmul.f32 %v7281_v10, %v7281_v10  ;;  %v7290_v54 = vsub.f32 %v7167_v57, %v2446_v26 }
 0x6c6   : > { %2546 = vadd.xlane.f32.xlu1 %v2509_v17  ;;  %v7297_v7 = vsub.f32 %v7171_v36, %v2447_v11  ;;  %v2510_v57 = vmul.f32 %v7290_v54, %v7290_v54  ;;  %v5531_v17 = vld [vmem:[%s6175_s19 + $0xe0] sm:$0xff] }
 0x6c8   : > { %2423 = vadd.xlane.f32.xlu0 %v7287_v41  ;;  %v2511_v36 = vmul.f32 %v7297_v7, %v7297_v7 }
 0x6ca   : > { %2425 = vadd.xlane.f32.xlu1 %v7294_v34 }
 0x6cc   : > { %2548 = vadd.xlane.f32.xlu0 %v2510_v57  ;;  %v4976_v5 = vpop.f32.mrb[124].mxu1 }
 0x6cd   : > { %v2392_v59 = vpop.xlane.xlu0 %2391  ;;  %v2328_v52 = vpop.f32.mrb[125].mxu1  ;;  %v2337_v57 = vadd.f32 %v4976_v5, %v7132_v45 }
 0x6ce   : > { %v2448_v1 = vmul.f32 0.0078125, %v2392_v59  ;;  %2550 = vadd.xlane.f32.xlu1 %v2511_v36  ;;  %v4977_v60 = vpop.f32.mrb[126].mxu1  ;;  %v2329_v47 = vadd.f32 %v7132_v45, %v2328_v52  ;;  %v5533_v59 = vld [vmem:[%s6175_s19 + $0xf0] sm:$0xff]  ;;  %s8466_s19 = sld [smem:[#allocation42_spill]] }
 0x6cf   : > { %v2394_v0 = vpop.xlane.xlu1 %2393  ;;  %v2331_v6 = vpop.f32.mrb[127].mxu1  ;;  %v2340_v62 = vadd.f32 %v4977_v60, %v7132_v45 }
 0x6d0   : > { %v7313_v50 = vsub.f32 %v7178_v16, %v2448_v1  ;;  %v2449_v55 = vmul.f32 0.0078125, %v2394_v0  ;;  %2427 = vadd.xlane.f32.xlu0 %v7307_v22  ;;  %v5161_v16 = vld [vmem:[#allocation12 + $0x60] ss:$8 sps:$4 sm:$0xff]   ;;  %v2332_v3 = vadd.f32 %v7132_v45, %v2331_v6  ;;  %v7327_v40 = vadd.f32 %v5531_v17, %v2329_v47 }
 0x6d1   : > { %v2396_v48 = vpop.xlane.xlu0 %2395  ;;  %2937 = vmatpush1.bf16.msra.mxu0 %v5161_v16  ;;  %v7350_v5 = vadd.f32 %v5534_v13, %v2340_v62 }
 0x6d2   : > { %v7318_v18 = vsub.f32 %v7183_v32, %v2449_v55  ;;  %v2450_v26 = vmul.f32 0.0078125, %v2396_v48  ;;  %2429 = vadd.xlane.f32.xlu1 %v7310_v33  ;;  %v2512_v27 = vmul.f32 %v7313_v50, %v7313_v50  ;;  %v5166_v32 = vld [vmem:[#allocation12 + $0x74] ss:$8 sps:$4 sm:$0xff]   ;;  %v7333_v49 = vadd.f32 %v5532_v2, %v2332_v3 }
 0x6d3   : > { %v2398_v35 = vpop.xlane.xlu1 %2397  ;;  %2938 = vmatprep.subr.bf16.mxu0 %v5166_v32 }
 0x6d4   : > { %v2451_v39 = vmul.f32 0.0078125, %v2398_v35  ;;  %2552 = vadd.xlane.f32.xlu0 %v2512_v27  ;;  %v2513_v11 = vmul.f32 %v7318_v18, %v7318_v18  ;;  %v7330_v30 = vsub.f32 %v7187_v46, %v2450_v26 }
 0x6d5   : > { %2939 = vmatpush1.bf16.msra.mxu0 %v5164_v12 }
 0x6d6   : > { %2554 = vadd.xlane.f32.xlu1 %v2513_v11  ;;  %v7336_v21 = vsub.f32 %v7191_v37, %v2451_v39  ;;  %v2514_v46 = vmul.f32 %v7330_v30, %v7330_v30  ;;  %v7347_v37 = vadd.f32 %v5533_v59, %v2337_v57 }
 0x6d8   : > { %2431 = vadd.xlane.f32.xlu0 %v7327_v40  ;;  %v2515_v9 = vmul.f32 %v7336_v21, %v7336_v21 }
 0x6da   : > { %2433 = vadd.xlane.f32.xlu1 %v7333_v49 }
 0x6dc   : > { %2556 = vadd.xlane.f32.xlu0 %v2514_v46 }
 0x6dd   : > { %v2400_v36 = vpop.xlane.xlu0 %2399 }
 0x6de   : > { %v2452_v52 = vmul.f32 0.0078125, %v2400_v36  ;;  %2558 = vadd.xlane.f32.xlu1 %v2515_v9 }
 0x6df   : > { %v2402_v51 = vpop.xlane.xlu1 %2401 }
 0x6e0   : > { %v7353_v1 = vsub.f32 %v7198_v56, %v2452_v52  ;;  %v2453_v23 = vmul.f32 0.0078125, %v2402_v51  ;;  %2435 = vadd.xlane.f32.xlu0 %v7347_v37 }
 0x6e1   : > { %v2404_v45 = vpop.xlane.xlu0 %2403 }
 0x6e2   : > { %v7357_v60 = vsub.f32 %v7203_v20, %v2453_v23  ;;  %v2454_v0 = vmul.f32 0.0078125, %v2404_v45  ;;  %2437 = vadd.xlane.f32.xlu1 %v7350_v5  ;;  %v2516_v6 = vmul.f32 %v7353_v1, %v7353_v1 }
 0x6e3   : > { %v2406_v42 = vpop.xlane.xlu1 %2405 }
 0x6e4   : > { %v7363_v55 = vsub.f32 %v7207_v25, %v2454_v0  ;;  %v2455_v48 = vmul.f32 0.0078125, %v2406_v42  ;;  %2560 = vadd.xlane.f32.xlu0 %v2516_v6  ;;  %v2517_v56 = vmul.f32 %v7357_v60, %v7357_v60 }
 0x6e6   : > { %v7368_v28 = vsub.f32 %v7211_v15, %v2455_v48  ;;  %2562 = vadd.xlane.f32.xlu1 %v2517_v56  ;;  %v2518_v20 = vmul.f32 %v7363_v55, %v7363_v55 }
 0x6e8   : > { %2564 = vadd.xlane.f32.xlu0 %v2518_v20  ;;  %v2519_v47 = vmul.f32 %v7368_v28, %v7368_v28 }
 0x6ea   : > { %2566 = vadd.xlane.f32.xlu1 %v2519_v47 }
 0x6ed   : > { %v2408_v26 = vpop.xlane.xlu0 %2407 }
 0x6ee   : > { %v2456_v25 = vmul.f32 0.0078125, %v2408_v26 }
 0x6ef   : > { %v2410_v27 = vpop.xlane.xlu1 %2409 }
 0x6f0   : > { %v7375_v16 = vsub.f32 %v7218_v14, %v2456_v25  ;;  %v2457_v35 = vmul.f32 0.0078125, %v2410_v27 }
 0x6f1   : > { %v2412_v3 = vpop.xlane.xlu0 %2411 }
 0x6f2   : > { %v7378_v15 = vsub.f32 %v7223_v44, %v2457_v35  ;;  %v2458_v39 = vmul.f32 0.0078125, %v2412_v3  ;;  %v2520_v11 = vmul.f32 %v7375_v16, %v7375_v16 }
 0x6f3   : > { %v2414_v32 = vpop.xlane.xlu1 %2413 }
 0x6f4   : > { %v7383_v17 = vsub.f32 %v7227_v38, %v2458_v39  ;;  %v2459_v12 = vmul.f32 0.0078125, %v2414_v32  ;;  %2568 = vadd.xlane.f32.xlu0 %v2520_v11  ;;  %v2521_v2 = vmul.f32 %v7378_v15, %v7378_v15 }
 0x6f6   : > { %v7388_v14 = vsub.f32 %v7231_v19, %v2459_v12  ;;  %2570 = vadd.xlane.f32.xlu1 %v2521_v2  ;;  %v2522_v44 = vmul.f32 %v7383_v17, %v7383_v17 }
 0x6f8   : > { %2572 = vadd.xlane.f32.xlu0 %v2522_v44  ;;  %v2523_v57 = vmul.f32 %v7388_v14, %v7388_v14 }
 0x6fa   : > { %2574 = vadd.xlane.f32.xlu1 %v2523_v57 }
 0x741   : > { %v2537_v46 = vpop.xlane.xlu0 %2536 }
 0x742   : > { %v2600_v38 = vmul.f32 0.0078125, %v2537_v46 }
 0x743   : > { %v2539_v62 = vpop.xlane.xlu1 %2538 }
 0x744   : > { %v2632_v9 = vadd.f32 1e-05, %v2600_v38  ;;  %v2601_v36 = vmul.f32 0.0078125, %v2539_v62 }
 0x745   : > { %v2416_v59 = vpop.xlane.xlu0 %2415 }
 0x746   : > { %5375 = vrsqrt.f32 %v2632_v9  ;;  %v2633_v52 = vadd.f32 1e-05, %v2601_v36  ;;  %v2460_v51 = vmul.f32 0.0078125, %v2416_v59 }
 0x747   : > { %v2418_v19 = vpop.xlane.xlu1 %2417 }
 0x748   : > { %5377 = vrsqrt.f32 %v2633_v52  ;;  %v7395_v13 = vsub.f32 %v7247_v61, %v2460_v51  ;;  %v2461_v23 = vmul.f32 0.0078125, %v2418_v19 }
 0x749   : > { %v2541_v45 = vpop.xlane.xlu0 %2540 }
 0x74a   : > { %v7398_v0 = vsub.f32 %v7254_v58, %v2461_v23  ;;  %v2602_v6 = vmul.f32 0.0078125, %v2541_v45  ;;  %v2524_v42 = vmul.f32 %v7395_v13, %v7395_v13  ;;  %v7407_v58 = vld [vmem:[%s8318_s8 + $0x3] ss:$0 sm:$0xff] }
 0x74b   : > { %v2543_v48 = vpop.xlane.xlu1 %2542 }
 0x74c   : > { %v2634_v56 = vadd.f32 1e-05, %v2602_v6  ;;  %v2603_v20 = vmul.f32 0.0078125, %v2543_v48  ;;  %2576 = vadd.xlane.f32.xlu0 %v2524_v42  ;;  %v2525_v47 = vmul.f32 %v7398_v0, %v7398_v0 }
 0x74d   : > { %v2420_v26 = vpop.xlane.xlu0 %2419 }
 0x74e   : > { %5379 = vrsqrt.f32 %v2634_v56  ;;  %v2635_v61 = vadd.f32 1e-05, %v2603_v20  ;;  %v2462_v25 = vmul.f32 0.0078125, %v2420_v26  ;;  %2578 = vadd.xlane.f32.xlu1 %v2525_v47 }
 0x74f   : > { %v2422_v27 = vpop.xlane.xlu1 %2421 }
 0x750   : > { %v5376_v35 = vpop.eup %5375  ;;  %5381 = vrsqrt.f32 %v2635_v61  ;;  %v7410_v3 = vsub.f32 %v7267_v4, %v2462_v25  ;;  %v2463_v39 = vmul.f32 0.0078125, %v2422_v27 }
 0x751   : > { %v2696_v11 = vmul.f32 %v5376_v35, %v7235_v53  ;;  %v2545_v32 = vpop.xlane.xlu0 %2544 }
 0x752   : > { %v5378_v12 = vpop.eup %5377  ;;  %v7414_v2 = vsub.f32 %v7271_v29, %v2463_v39  ;;  %v2604_v44 = vmul.f32 0.0078125, %v2545_v32  ;;  %v2526_v57 = vmul.f32 %v7410_v3, %v7410_v3  ;;  %v7425_v29 = vld [vmem:[%s8318_s8 + $0x4] ss:$0 sm:$0xff] }
 0x753   : > { %v2732_v46 = vmul.f32 %v7407_v58, %v2696_v11  ;;  %v2697_v38 = vmul.f32 %v5378_v12, %v7241_v43  ;;  %v2547_v62 = vpop.xlane.xlu1 %2546 }
 0x754   : > { %v2636_v9 = vadd.f32 1e-05, %v2604_v44  ;;  %v2605_v4 = vmul.f32 0.0078125, %v2547_v62  ;;  %2580 = vadd.xlane.f32.xlu0 %v2526_v57  ;;  %v2527_v53 = vmul.f32 %v7414_v2, %v7414_v2 }
 0x755   : > { %v2733_v36 = vmul.f32 %v7407_v58, %v2697_v38  ;;  %v2424_v59 = vpop.xlane.xlu0 %2423  ;;  %v7429_v19 = vadd.f32 %v7425_v29, %v2732_v46 }
 0x756   : > { %5383 = vrsqrt.f32 %v2636_v9  ;;  %v2637_v52 = vadd.f32 1e-05, %v2605_v4  ;;  %v2464_v51 = vmul.f32 0.0078125, %v2424_v59  ;;  %2582 = vadd.xlane.f32.xlu1 %v2527_v53 }
 0x757   : > { %v2426_v43 = vpop.xlane.xlu1 %2425  ;;  %v7432_v23 = vadd.f32 %v7425_v29, %v2733_v36 }
 0x758   : > { %v5380_v45 = vpop.eup %5379  ;;  %5385 = vrsqrt.f32 %v2637_v52  ;;  %v7435_v6 = vsub.f32 %v7287_v41, %v2464_v51  ;;  %v2465_v42 = vmul.f32 0.0078125, %v2426_v43 }
 0x759   : > { %v2549_v48 = vpop.xlane.xlu0 %2548  ;;  %v2800_v56 = vpack.c.bf16 %v7432_v23, %v7429_v19  ;;  %v2698_v20 = vmul.f32 %v5380_v45, %v7250_v24 }
 0x75a   : > { %v5382_v47 = vpop.eup %5381  ;;  %v7441_v26 = vsub.f32 %v7294_v34, %v2465_v42  ;;  %v2606_v61 = vmul.f32 0.0078125, %v2549_v48  ;;  %v2528_v25 = vmul.f32 %v7435_v6, %v7435_v6 }
 0x75b   : > { %2957 = vmatmul.mubr.bf16.vlgmr.msra.gmra.mrb[128].mxu0 %v2800_v56  ;;  %v2551_v27 = vpop.xlane.xlu1 %2550  ;;  %v2699_v41 = vmul.f32 %v5382_v47, %v7257_v31  ;;  %v2734_v35 = vmul.f32 %v7407_v58, %v2698_v20 }
 0x75c   : > { %v2638_v39 = vadd.f32 1e-05, %v2606_v61  ;;  %v2607_v11 = vmul.f32 0.0078125, %v2551_v27  ;;  %2584 = vadd.xlane.f32.xlu0 %v2528_v25  ;;  %v2529_v24 = vmul.f32 %v7441_v26, %v7441_v26  ;;  %2966 = vmatprep.mubr.bf16.mxu0 %v8465_v63 }
 0x75d   : > { %v2428_v34 = vpop.xlane.xlu0 %2427  ;;  %v2735_v32 = vmul.f32 %v7407_v58, %v2699_v41  ;;  %v7452_v31 = vadd.f32 %v7425_v29, %v2734_v35 }
 0x75e   : > { %5387 = vrsqrt.f32 %v2638_v39  ;;  %v2639_v12 = vadd.f32 1e-05, %v2607_v11  ;;  %v2466_v44 = vmul.f32 0.0078125, %v2428_v34  ;;  %2586 = vadd.xlane.f32.xlu1 %v2529_v24 }
 0x75f   : > { %v2430_v57 = vpop.xlane.xlu1 %2429  ;;  %v7455_v46 = vadd.f32 %v7425_v29, %v2735_v32 }
 0x760   : > { %v5384_v38 = vpop.eup %5383  ;;  %5389 = vrsqrt.f32 %v2639_v12  ;;  %v7458_v62 = vsub.f32 %v7307_v22, %v2466_v44  ;;  %v2467_v9 = vmul.f32 0.0078125, %v2430_v57 }
 0x761   : > { %v2553_v4 = vpop.xlane.xlu0 %2552  ;;  %v2801_v53 = vpack.c.bf16 %v7455_v46, %v7452_v31  ;;  %v2700_v36 = vmul.f32 %v5384_v38, %v7274_v8 }
 0x762   : > { %v5386_v59 = vpop.eup %5385  ;;  %v7464_v52 = vsub.f32 %v7310_v33, %v2467_v9  ;;  %v2608_v51 = vmul.f32 0.0078125, %v2553_v4  ;;  %v2530_v43 = vmul.f32 %v7458_v62, %v7458_v62 }
 0x763   : > { %2967 = vmatmul.mubr.bf16.gmra.mrb[132].mxu0 %v2801_v53  ;;  %v2555_v45 = vpop.xlane.xlu1 %2554  ;;  %v2701_v22 = vmul.f32 %v5386_v59, %v7281_v10  ;;  %v2736_v42 = vmul.f32 %v7407_v58, %v2700_v36 }
 0x764   : > { %v2640_v48 = vadd.f32 1e-05, %v2608_v51  ;;  %v2609_v56 = vmul.f32 0.0078125, %v2555_v45  ;;  %2588 = vadd.xlane.f32.xlu0 %v2530_v43  ;;  %v2531_v8 = vmul.f32 %v7464_v52, %v7464_v52  ;;  %2976 = vmatprep.mubr.bf16.mxu0 %v8465_v63 }
 0x765   : > { %v2432_v33 = vpop.xlane.xlu0 %2431  ;;  %v2737_v20 = vmul.f32 %v7407_v58, %v2701_v22  ;;  %v7475_v10 = vadd.f32 %v7425_v29, %v2736_v42 }
 0x766   : > { %5391 = vrsqrt.f32 %v2640_v48  ;;  %v2641_v47 = vadd.f32 1e-05, %v2609_v56  ;;  %v2468_v61 = vmul.f32 0.0078125, %v2432_v33  ;;  %2590 = vadd.xlane.f32.xlu1 %v2531_v8 }
 0x767   : > { %v2434_v25 = vpop.xlane.xlu1 %2433  ;;  %v7478_v27 = vadd.f32 %v7425_v29, %v2737_v20 }
 0x768   : > { %v5388_v41 = vpop.eup %5387  ;;  %5393 = vrsqrt.f32 %v2641_v47  ;;  %v7481_v35 = vsub.f32 %v7327_v40, %v2468_v61  ;;  %v2469_v39 = vmul.f32 0.0078125, %v2434_v25 }
 0x769   : > { %v2557_v11 = vpop.xlane.xlu0 %2556  ;;  %v2802_v24 = vpack.c.bf16 %v7478_v27, %v7475_v10  ;;  %v2702_v34 = vmul.f32 %v5388_v41, %v7290_v54 }
 0x76a   : > { %v5390_v32 = vpop.eup %5389  ;;  %v7487_v12 = vsub.f32 %v7333_v49, %v2469_v39  ;;  %v2610_v44 = vmul.f32 0.0078125, %v2557_v11  ;;  %v2532_v57 = vmul.f32 %v7481_v35, %v7481_v35 }
 0x76b   : > { %2977 = vmatmul.mubr.bf16.gmra.mrb[136].mxu0 %v2802_v24  ;;  %v2559_v38 = vpop.xlane.xlu1 %2558  ;;  %v2703_v40 = vmul.f32 %v5390_v32, %v7297_v7  ;;  %v2738_v9 = vmul.f32 %v7407_v58, %v2702_v34 }
 0x76c   : > { %v2642_v4 = vadd.f32 1e-05, %v2610_v44  ;;  %v2611_v53 = vmul.f32 0.0078125, %v2559_v38  ;;  %2592 = vadd.xlane.f32.xlu0 %v2532_v57  ;;  %v2533_v54 = vmul.f32 %v7487_v12, %v7487_v12  ;;  %2986 = vmatprep.mubr.bf16.mxu0 %v8465_v63 }
 0x76d   : > { %v2436_v49 = vpop.xlane.xlu0 %2435  ;;  %v2739_v36 = vmul.f32 %v7407_v58, %v2703_v40  ;;  %v7498_v7 = vadd.f32 %v7425_v29, %v2738_v9 }
 0x76e   : > { %5395 = vrsqrt.f32 %v2642_v4  ;;  %v2643_v59 = vadd.f32 1e-05, %v2611_v53  ;;  %v2470_v51 = vmul.f32 0.0078125, %v2436_v49  ;;  %2594 = vadd.xlane.f32.xlu1 %v2533_v54 }
 0x76f   : > { %v2438_v43 = vpop.xlane.xlu1 %2437  ;;  %v7501_v45 = vadd.f32 %v7425_v29, %v2739_v36 }
 0x770   : > { %v5392_v22 = vpop.eup %5391  ;;  %5397 = vrsqrt.f32 %v2643_v59  ;;  %v7504_v42 = vsub.f32 %v7347_v37, %v2470_v51  ;;  %v2471_v48 = vmul.f32 0.0078125, %v2438_v43 }
 0x771   : > { %v2561_v56 = vpop.xlane.xlu0 %2560  ;;  %v2803_v8 = vpack.c.bf16 %v7501_v45, %v7498_v7  ;;  %v2704_v33 = vmul.f32 %v5392_v22, %v7313_v50 }
 0x772   : > { %v5394_v20 = vpop.eup %5393  ;;  %v7510_v47 = vsub.f32 %v7350_v5, %v2471_v48  ;;  %v2612_v61 = vmul.f32 0.0078125, %v2561_v56  ;;  %v2534_v25 = vmul.f32 %v7504_v42, %v7504_v42 }
 0x773   : > { %2987 = vmatmul.mubr.bf16.gmra.mrb[140].mxu0 %v2803_v8  ;;  %v2563_v41 = vpop.xlane.xlu1 %2562  ;;  %v2705_v37 = vmul.f32 %v5394_v20, %v7318_v18  ;;  %v2740_v39 = vmul.f32 %v7407_v58, %v2704_v33 }
 0x774   : > { %v2644_v11 = vadd.f32 1e-05, %v2612_v61  ;;  %v2613_v24 = vmul.f32 0.0078125, %v2563_v41  ;;  %2596 = vadd.xlane.f32.xlu0 %v2534_v25  ;;  %v2535_v50 = vmul.f32 %v7510_v47, %v7510_v47  ;;  %2996 = vmatprep.mubr.bf16.mxu0 %v8465_v63 }
 0x775   : > { %v2565_v5 = vpop.xlane.xlu0 %2564  ;;  %v2741_v34 = vmul.f32 %v7407_v58, %v2705_v37  ;;  %v7521_v18 = vadd.f32 %v7425_v29, %v2740_v39 }
 0x776   : > { %5399 = vrsqrt.f32 %v2644_v11  ;;  %v2645_v32 = vadd.f32 1e-05, %v2613_v24  ;;  %v2614_v44 = vmul.f32 0.0078125, %v2565_v5  ;;  %2598 = vadd.xlane.f32.xlu1 %v2535_v50 }
 0x777   : > { %v2567_v57 = vpop.xlane.xlu1 %2566  ;;  %v7524_v38 = vadd.f32 %v7425_v29, %v2741_v34 }
 0x778   : > { %v5396_v40 = vpop.eup %5395  ;;  %5401 = vrsqrt.f32 %v2645_v32  ;;  %v2646_v9 = vadd.f32 1e-05, %v2614_v44  ;;  %v2615_v4 = vmul.f32 0.0078125, %v2567_v57 }
 0x779   : > { %v2804_v53 = vpack.c.bf16 %v7524_v38, %v7521_v18  ;;  %v2706_v54 = vmul.f32 %v5396_v40, %v7330_v30 }
 0x77a   : > { %v5398_v49 = vpop.eup %5397  ;;  %5403 = vrsqrt.f32 %v2646_v9  ;;  %v2647_v36 = vadd.f32 1e-05, %v2615_v4 }
 0x77b   : > { %2997 = vmatmul.mubr.bf16.gmra.mrb[144].mxu0 %v2804_v53  ;;  %v2707_v59 = vmul.f32 %v5398_v49, %v7336_v21  ;;  %v2742_v51 = vmul.f32 %v7407_v58, %v2706_v54 }
 0x77c   : > { %5405 = vrsqrt.f32 %v2647_v36  ;;  %3006 = vmatprep.mubr.bf16.mxu0 %v8465_v63 }
 0x77d   : > { %v2743_v43 = vmul.f32 %v7407_v58, %v2707_v59  ;;  %v7534_v22 = vadd.f32 %v7425_v29, %v2742_v51 }
 0x77f   : > { %v7537_v48 = vadd.f32 %v7425_v29, %v2743_v43 }
 0x780   : > { %v5400_v30 = vpop.eup %5399 }
 0x781   : > { %v2569_v56 = vpop.xlane.xlu0 %2568  ;;  %v2805_v8 = vpack.c.bf16 %v7537_v48, %v7534_v22  ;;  %v2708_v21 = vmul.f32 %v5400_v30, %v7353_v1 }
 0x782   : > { %v5402_v33 = vpop.eup %5401  ;;  %v2616_v20 = vmul.f32 0.0078125, %v2569_v56 }
 0x783   : > { %3007 = vmatmul.mubr.bf16.gmra.mrb[148].mxu0 %v2805_v8  ;;  %v2571_v61 = vpop.xlane.xlu1 %2570  ;;  %v2709_v25 = vmul.f32 %v5402_v33, %v7357_v60  ;;  %v2744_v41 = vmul.f32 %v7407_v58, %v2708_v21  ;;  %v5167_v21 = vld [vmem:[#allocation13 + $0x40] sm:$0xff]  }
 0x784   : > { %v5404_v37 = vpop.eup %5403  ;;  %v2648_v39 = vadd.f32 1e-05, %v2616_v20  ;;  %v2617_v11 = vmul.f32 0.0078125, %v2571_v61  ;;  %3016 = vmatprep.mubr.bf16.mxu0 %v8465_v63  ;;  %v5168_v20 = vld [vmem:[#allocation13] sm:$0xff]   ;;  %4770 = vmatprep.subr.bf16.mxu1 %v5167_v21 }
 0x785   : > { %v2573_v24 = vpop.xlane.xlu0 %2572  ;;  %v2745_v50 = vmul.f32 %v7407_v58, %v2709_v25  ;;  %v7547_v44 = vadd.f32 %v7425_v29, %v2744_v41  ;;  %v2710_v57 = vmul.f32 %v5404_v37, %v7363_v55  ;;  %4771 = vmatpush3.bf16.msra.mxu1 %v5168_v20 }
 0x786   : > { %v5406_v5 = vpop.eup %5405  ;;  %5407 = vrsqrt.f32 %v2648_v39  ;;  %v2649_v34 = vadd.f32 1e-05, %v2617_v11  ;;  %v2618_v1 = vmul.f32 0.0078125, %v2573_v24 }
 0x787   : > { %v2575_v32 = vpop.xlane.xlu1 %2574  ;;  %v7550_v60 = vadd.f32 %v7425_v29, %v2745_v50  ;;  %v2711_v40 = vmul.f32 %v5406_v5, %v7368_v28  ;;  %v2746_v36 = vmul.f32 %v7407_v58, %v2710_v57  ;;  %v5169_v50 = vld [vmem:[#allocation13 + $0x48] sm:$0xff]  }
 0x788   : > { %5409 = vrsqrt.f32 %v2649_v34  ;;  %v2650_v9 = vadd.f32 1e-05, %v2618_v1  ;;  %v2619_v4 = vmul.f32 0.0078125, %v2575_v32  ;;  %v5170_v5 = vld [vmem:[#allocation13 + $0x8] sm:$0xff]   ;;  %v5171_v34 = vld [vmem:[#allocation13 + $0x50] sm:$0xff]   ;;  %4772 = vmatprep.subr.bf16.mxu1 %v5169_v50  ;;  %v5173_v32 = vld [vmem:[#allocation13 + $0x58] sm:$0xff]  }
 0x789   : > { %v2806_v53 = vpack.c.bf16 %v7550_v60, %v7547_v44  ;;  %v2747_v54 = vmul.f32 %v7407_v58, %v2711_v40  ;;  %v7563_v28 = vadd.f32 %v7425_v29, %v2746_v36  ;;  %4773 = vmatpush3.bf16.msra.mxu1 %v5170_v5  ;;  %v5174_v40 = vld [vmem:[#allocation13 + $0x18] sm:$0xff]   ;;  %v5180_v36 = vld [vmem:[#allocation13 + $0x30] sm:$0xff]  }
 0x78a   : > { %5411 = vrsqrt.f32 %v2650_v9  ;;  %v2651_v49 = vadd.f32 1e-05, %v2619_v4  ;;  %4774 = vmatprep.subr.bf16.mxu1 %v5171_v34  ;;  %v5175_v9 = vld [vmem:[#allocation13 + $0x60] sm:$0xff]  }
 0x78b   : > { %3017 = vmatmul.mubr.bf16.gmra.mrb[152].mxu0 %v2806_v53  ;;  %v7560_v55 = vadd.f32 %v7425_v29, %v2747_v54  ;;  %v5176_v4 = vld [vmem:[#allocation13 + $0x20] sm:$0xff]   ;;  %v5177_v53 = vld [vmem:[#allocation13 + $0x68] sm:$0xff]  }
 0x78c   : > { %5413 = vrsqrt.f32 %v2651_v49  ;;  %3026 = vmatprep.mubr.bf16.mxu0 %v8465_v63  ;;  %v5178_v54 = vld [vmem:[#allocation13 + $0x28] sm:$0xff]   ;;  %v5179_v49 = vld [vmem:[#allocation13 + $0x70] sm:$0xff]  }
 0x78d   : > { %v2807_v51 = vpack.c.bf16 %v7560_v55, %v7563_v28 }
 0x790   : > { %v5408_v59 = vpop.eup %5407 }
 0x791   : > { %v2712_v43 = vmul.f32 %v5408_v59, %v7375_v16  ;;  %v5181_v59 = vld [vmem:[#allocation13 + $0x78] sm:$0xff]  }
 0x792   : > { %v5410_v30 = vpop.eup %5409 }
 0x793   : > { %3027 = vmatmul.mubr.bf16.gmra.mrb[156].mxu0 %v2807_v51  ;;  %v2713_v56 = vmul.f32 %v5410_v30, %v7378_v15  ;;  %v2748_v8 = vmul.f32 %v7407_v58, %v2712_v43  ;;  %v5182_v51 = vld [vmem:[#allocation13 + $0x38] sm:$0xff]  }
 0x794   : > { %v5412_v33 = vpop.eup %5411  ;;  %3036 = vmatprep.mubr.bf16.mxu0 %v8465_v63 }
 0x795   : > { %v2749_v61 = vmul.f32 %v7407_v58, %v2713_v56  ;;  %v7573_v41 = vadd.f32 %v7425_v29, %v2748_v8  ;;  %v2714_v15 = vmul.f32 %v5412_v33, %v7383_v17  ;;  %v5172_v17 = vld [vmem:[#allocation13 + $0x10] sm:$0xff]  }
 0x796   : > { %v5414_v25 = vpop.eup %5413  ;;  %4775 = vmatpush3.bf16.msra.mxu1 %v5172_v17 }
 0x797   : > { %v7576_v16 = vadd.f32 %v7425_v29, %v2749_v61  ;;  %v2715_v37 = vmul.f32 %v5414_v25, %v7388_v14  ;;  %v2750_v24 = vmul.f32 %v7407_v58, %v2714_v15  ;;  %4776 = vmatprep.subr.bf16.mxu1 %v5173_v32 }
 0x799   : > { %v2808_v39 = vpack.c.bf16 %v7576_v16, %v7573_v41  ;;  %v2751_v11 = vmul.f32 %v7407_v58, %v2715_v37  ;;  %v7589_v14 = vadd.f32 %v7425_v29, %v2750_v24 }
 0x79a   : > { %4777 = vmatpush3.bf16.msra.mxu1 %v5174_v40 }
 0x79b   : > { %3037 = vmatmul.mubr.bf16.gmra.mrb[160].mxu0 %v2808_v39  ;;  %v7586_v1 = vadd.f32 %v7425_v29, %v2751_v11  ;;  %4778 = vmatprep.subr.bf16.mxu1 %v5175_v9 }
 0x79c   : > { %3046 = vmatprep.mubr.bf16.mxu0 %v8465_v63 }
 0x79d   : > { %v2809_v57 = vpack.c.bf16 %v7586_v1, %v7589_v14 }
 0x79e   : > { %4779 = vmatpush3.bf16.msra.mxu1 %v5176_v4 }
 0x79f   : > { %4780 = vmatprep.subr.bf16.mxu1 %v5177_v53 }
 0x7a2   : > { %4781 = vmatpush3.bf16.msra.mxu1 %v5178_v54 }
 0x7a3   : > { %3047 = vmatmul.mubr.bf16.gmra.mrb[164].mxu0 %v2809_v57  ;;  %4782 = vmatprep.subr.bf16.mxu1 %v5179_v49 }
 0x7a4   : > { %3056 = vmatprep.mubr.bf16.mxu0 %v8465_v63 }
 0x7a6   : > { %4783 = vmatpush3.bf16.msra.mxu1 %v5180_v36 }
 0x7a7   : > { %4784 = vmatprep.subr.bf16.mxu1 %v5181_v59 }
 0x7aa   : > { %4785 = vmatpush3.bf16.msra.mxu1 %v5182_v51 }
 0x7d9   : > { %v2577_v43 = vpop.xlane.xlu0 %2576 }
 0x7da   : > { %v2620_v30 = vmul.f32 0.0078125, %v2577_v43 }
 0x7db   : > { %v2579_v56 = vpop.xlane.xlu1 %2578 }
 0x7dc   : > { %v2652_v8 = vadd.f32 1e-05, %v2620_v30  ;;  %v2621_v21 = vmul.f32 0.0078125, %v2579_v56 }
 0x7de   : > { %5415 = vrsqrt.f32 %v2652_v8  ;;  %v2653_v33 = vadd.f32 1e-05, %v2621_v21 }
 0x7e0   : > { %5417 = vrsqrt.f32 %v2653_v33 }
 0x7e1   : > { %v2581_v20 = vpop.xlane.xlu0 %2580 }
 0x7e2   : > { %v2622_v61 = vmul.f32 0.0078125, %v2581_v20 }
 0x7e3   : > { %v2583_v25 = vpop.xlane.xlu1 %2582 }
 0x7e4   : > { %v2654_v15 = vadd.f32 1e-05, %v2622_v61  ;;  %v2623_v37 = vmul.f32 0.0078125, %v2583_v25 }
 0x7e6   : > { %5419 = vrsqrt.f32 %v2654_v15  ;;  %v2655_v39 = vadd.f32 1e-05, %v2623_v37 }
 0x7e8   : > { %v5416_v11 = vpop.eup %5415  ;;  %5421 = vrsqrt.f32 %v2655_v39 }
 0x7e9   : > { %v2585_v24 = vpop.xlane.xlu0 %2584  ;;  %v2716_v50 = vmul.f32 %v5416_v11, %v7395_v13 }
 0x7ea   : > { %v5418_v5 = vpop.eup %5417  ;;  %v2624_v34 = vmul.f32 0.0078125, %v2585_v24 }
 0x7eb   : > { %v2587_v17 = vpop.xlane.xlu1 %2586  ;;  %v2717_v32 = vmul.f32 %v5418_v5, %v7398_v0  ;;  %v2752_v57 = vmul.f32 %v7407_v58, %v2716_v50 }
 0x7ec   : > { %v2656_v40 = vadd.f32 1e-05, %v2624_v34  ;;  %v2625_v9 = vmul.f32 0.0078125, %v2587_v17 }
 0x7ed   : > { %v2753_v4 = vmul.f32 %v7407_v58, %v2717_v32  ;;  %v7599_v54 = vadd.f32 %v7425_v29, %v2752_v57 }
 0x7ee   : > { %5423 = vrsqrt.f32 %v2656_v40  ;;  %v2657_v53 = vadd.f32 1e-05, %v2625_v9 }
 0x7ef   : > { %v7602_v49 = vadd.f32 %v7425_v29, %v2753_v4 }
 0x7f0   : > { %v5420_v13 = vpop.eup %5419  ;;  %5425 = vrsqrt.f32 %v2657_v53 }
 0x7f1   : > { %v2589_v36 = vpop.xlane.xlu0 %2588  ;;  %v2810_v0 = vpack.c.bf16 %v7602_v49, %v7599_v54  ;;  %v2718_v59 = vmul.f32 %v5420_v13, %v7410_v3 }
 0x7f2   : > { %v5422_v51 = vpop.eup %5421  ;;  %v2626_v43 = vmul.f32 0.0078125, %v2589_v36 }
 0x7f3   : > { %3057 = vmatmul.mubr.bf16.gmra.mrb[168].mxu0 %v2810_v0  ;;  %v2591_v30 = vpop.xlane.xlu1 %2590  ;;  %v2719_v56 = vmul.f32 %v5422_v51, %v7414_v2  ;;  %v2754_v8 = vmul.f32 %v7407_v58, %v2718_v59 }
 0x7f4   : > { %v2658_v21 = vadd.f32 1e-05, %v2626_v43  ;;  %v2627_v33 = vmul.f32 0.0078125, %v2591_v30  ;;  %3066 = vmatprep.mubr.bf16.mxu0 %v8465_v63 }
 0x7f5   : > { %v2755_v20 = vmul.f32 %v7407_v58, %v2719_v56  ;;  %v7612_v25 = vadd.f32 %v7425_v29, %v2754_v8 }
 0x7f6   : > { %5427 = vrsqrt.f32 %v2658_v21  ;;  %v2659_v61 = vadd.f32 1e-05, %v2627_v33 }
 0x7f7   : > { %v7615_v3 = vadd.f32 %v7425_v29, %v2755_v20 }
 0x7f8   : > { %v5424_v15 = vpop.eup %5423  ;;  %5429 = vrsqrt.f32 %v2659_v61 }
 0x7f9   : > { %v2593_v37 = vpop.xlane.xlu0 %2592  ;;  %v2811_v2 = vpack.c.bf16 %v7615_v3, %v7612_v25  ;;  %v2720_v39 = vmul.f32 %v5424_v15, %v7435_v6 }
 0x7fa   : > { %v5426_v11 = vpop.eup %5425  ;;  %v2628_v24 = vmul.f32 0.0078125, %v2593_v37 }
 0x7fb   : > { %3067 = vmatmul.mubr.bf16.gmra.mrb[172].mxu0 %v2811_v2  ;;  %v2595_v50 = vpop.xlane.xlu1 %2594  ;;  %v2721_v5 = vmul.f32 %v5426_v11, %v7441_v26  ;;  %v2756_v34 = vmul.f32 %v7407_v58, %v2720_v39 }
 0x7fc   : > { %v2660_v17 = vadd.f32 1e-05, %v2628_v24  ;;  %v2629_v32 = vmul.f32 0.0078125, %v2595_v50  ;;  %3076 = vmatprep.mubr.bf16.mxu0 %v8465_v63 }
 0x7fd   : > { %v2757_v57 = vmul.f32 %v7407_v58, %v2721_v5  ;;  %v7625_v9 = vadd.f32 %v7425_v29, %v2756_v34 }
 0x7fe   : > { %5431 = vrsqrt.f32 %v2660_v17  ;;  %v2661_v40 = vadd.f32 1e-05, %v2629_v32 }
 0x7ff   : > { %v7628_v6 = vadd.f32 %v7425_v29, %v2757_v57 }
 0x800   : > { %v5428_v4 = vpop.eup %5427  ;;  %5433 = vrsqrt.f32 %v2661_v40 }
 0x801   : > { %v2597_v53 = vpop.xlane.xlu0 %2596  ;;  %v2812_v26 = vpack.c.bf16 %v7628_v6, %v7625_v9  ;;  %v2722_v13 = vmul.f32 %v5428_v4, %v7458_v62 }
 0x802   : > { %v5430_v36 = vpop.eup %5429  ;;  %v2630_v0 = vmul.f32 0.0078125, %v2597_v53 }
 0x803   : > { %3077 = vmatmul.mubr.bf16.gmra.mrb[176].mxu0 %v2812_v26  ;;  %v2599_v59 = vpop.xlane.xlu1 %2598  ;;  %v2723_v51 = vmul.f32 %v5430_v36, %v7464_v52  ;;  %v2758_v43 = vmul.f32 %v7407_v58, %v2722_v13 }
 0x804   : > { %v2662_v30 = vadd.f32 1e-05, %v2630_v0  ;;  %v2631_v56 = vmul.f32 0.0078125, %v2599_v59  ;;  %3086 = vmatprep.mubr.bf16.mxu0 %v8465_v63 }
 0x805   : > { %v2759_v8 = vmul.f32 %v7407_v58, %v2723_v51  ;;  %v7638_v33 = vadd.f32 %v7425_v29, %v2758_v43 }
 0x806   : > { %5435 = vrsqrt.f32 %v2662_v30  ;;  %v2663_v21 = vadd.f32 1e-05, %v2631_v56 }
 0x807   : > { %v7641_v62 = vadd.f32 %v7425_v29, %v2759_v8 }
 0x808   : > { %v5432_v20 = vpop.eup %5431  ;;  %5437 = vrsqrt.f32 %v2663_v21 }
 0x809   : > { %v2813_v52 = vpack.c.bf16 %v7641_v62, %v7638_v33  ;;  %v2724_v61 = vmul.f32 %v5432_v20, %v7481_v35 }
 0x80a   : > { %v5434_v15 = vpop.eup %5433 }
 0x80b   : > { %3087 = vmatmul.mubr.bf16.gmra.mrb[180].mxu0 %v2813_v52  ;;  %v2725_v37 = vmul.f32 %v5434_v15, %v7487_v12  ;;  %v2760_v2 = vmul.f32 %v7407_v58, %v2724_v61 }
 0x80c   : > { %3096 = vmatprep.mubr.bf16.mxu0 %v8465_v63 }
 0x80d   : > { %v2761_v39 = vmul.f32 %v7407_v58, %v2725_v37  ;;  %v7651_v11 = vadd.f32 %v7425_v29, %v2760_v2 }
 0x80f   : > { %v7654_v24 = vadd.f32 %v7425_v29, %v2761_v39 }
 0x810   : > { %v5436_v50 = vpop.eup %5435 }
 0x811   : > { %v2814_v35 = vpack.c.bf16 %v7654_v24, %v7651_v11  ;;  %v2726_v5 = vmul.f32 %v5436_v50, %v7504_v42  ;;  %v2832_v42 = vld [vmem:[%s8466_s19] sm:$0x3]  ;;  %s4226_s19 = sshll.u32 %s6976_s25, 4  ;;  %s5844_s25 = smov [#allocation16]   ;;  %s8147_s19 = int_to_ptr.vmem [resolvable:$true] %s4226_s19 }
 0x812   : > { %v5438_v34 = vpop.eup %5437  ;;  %s5705_s21 = scalar_lea.vmem %s8147_s19, 4096  ;;  %s5709_s26 = sshll.u32 %s5844_s25, 4  ;;  %s5710_s26 = int_to_ptr.vmem [resolvable:$false] %s5709_s26 }
 0x813   : > { %3097 = vmatmul.mubr.bf16.gmra.mrb[184].mxu0 %v2814_v35  ;;  %v2727_v12 = vmul.f32 %v5438_v34, %v7510_v47  ;;  %v2762_v17 = vmul.f32 %v7407_v58, %v2726_v5  ;;  %v8467_v47 = vld [vmem:[#allocation25_spill] sm:$0xff]  ;;  %p5706_p6 = scmp.ne.s32.totalorder %s8147_s19, %s5705_s21  ;;  %s5711_s7 = scalar_lea.vmem %s5710_s26, 8192 }
 0x814   : > { %3106 = vmatprep.mubr.bf16.mxu0 %v8465_v63  ;;  %v8468_v53 = vsub.s32 0, %v8467_v47  ;;  %v8469_v63 = vsub.s32 1, %v8467_v47  ;;  %p5712_p2 = scmp.lt.s32.totalorder %s8147_s19, %s5710_s26  ;;  %p5713_p4 = scmp.lt.s32.totalorder %s5711_s7, %s5705_s21 }
 0x815   : > { %v2763_v32 = vmul.f32 %v7407_v58, %v2727_v12  ;;  %v7664_v57 = vadd.f32 %v7425_v29, %v2762_v17  ;;  %p5707_p10 = pnand %p5706_p6, %p8472_p5 }
 0x816   : > { %v7676_v26 = vrot.slane %v2832_v42, %v8468_v53  ;;  %v7680_v58 = vrot.slane %v2832_v42, %v8469_v63  ;;  %p5714_p9 = por %p5713_p4, %p5712_p2 }
 0x817   : > { %v7667_v40 = vadd.f32 %v7425_v29, %v2763_v32  ;;  %p5708_p11 = pneg %p5707_p10 }
 0x819   : > { %v2815_v4 = vpack.c.bf16 %v7667_v40, %v7664_v57  ;;  %p5715_p8 = pnand %p5714_p9, %p5708_p11 }
 0x81b   : > { %3107 = vmatmul.mubr.bf16.gmra.mrb[188].mxu0 %v2815_v4 }
 0x82e   : > { %v2958_v13 = vpop.f32.mrb[128].mxu0 }
 0x82f   : > { %v2959_v29 = vadd.f32 %v2958_v13, %v7676_v26  ;;  %v2960_v36 = vpop.f32.mrb[129].mxu0 }
 0x830   : > { %v2961_v0 = vadd.f32 %v2960_v36, %v7680_v58  ;;  %v2962_v59 = vpop.f32.mrb[130].mxu0 }
 0x831   : > { %v2963_v51 = vadd.f32 %v2962_v59, %v7676_v26  ;;  %v2964_v43 = vpop.f32.mrb[131].mxu0  ;;  %v3117_v56 = vmax.f32 %v2959_v29, 0.0 }
 0x832   : > { %v2965_v30 = vadd.f32 %v2964_v43, %v7680_v58  ;;  %v3118_v21 = vmax.f32 %v2961_v0, 0.0 }
 0x833   : > { %v3119_v8 = vmax.f32 %v2963_v51, 0.0 }
 0x834   : > { %v3120_v20 = vmax.f32 %v2965_v30, 0.0 }
 0x835   : > { %v3181_v52 = vpack.c.bf16 %v3119_v8, %v3117_v56 }
 0x836   : > { %v3182_v61 = vpack.c.bf16 %v3120_v20, %v3118_v21  ;;  %v2968_v15 = vpop.f32.mrb[132].mxu0 }
 0x837   : > { %v2969_v37 = vadd.f32 %v2968_v15, %v7676_v26  ;;  %v2970_v2 = vpop.f32.mrb[133].mxu0 }
 0x838   : > { %v2971_v39 = vadd.f32 %v2970_v2, %v7680_v58  ;;  %v2972_v50 = vpop.f32.mrb[134].mxu0  ;;  %3377 = vmatprep.mubr.bf16.mxu1 %v3182_v61 }
 0x839   : > { %v2973_v35 = vadd.f32 %v2972_v50, %v7676_v26  ;;  %v2974_v5 = vpop.f32.mrb[135].mxu0  ;;  %3378 = vmatmul.mubr.bf16.vlgmr.msra.gmra.mrb[128].mxu1 %v3181_v52  ;;  %v3121_v12 = vmax.f32 %v2969_v37, 0.0 }
 0x83a   : > { %v2975_v34 = vadd.f32 %v2974_v5, %v7680_v58  ;;  %v3122_v32 = vmax.f32 %v2971_v39, 0.0 }
 0x83b   : > { %v3123_v17 = vmax.f32 %v2973_v35, 0.0 }
 0x83c   : > { %v3124_v4 = vmax.f32 %v2975_v34, 0.0 }
 0x83d   : > { %v3183_v42 = vpack.c.bf16 %v3123_v17, %v3121_v12 }
 0x83e   : > { %v3184_v47 = vpack.c.bf16 %v3124_v4, %v3122_v32  ;;  %v2978_v53 = vpop.f32.mrb[136].mxu0 }
 0x83f   : > { %v2979_v63 = vadd.f32 %v2978_v53, %v7676_v26  ;;  %v2980_v13 = vpop.f32.mrb[137].mxu0 }
 0x840   : > { %v2981_v29 = vadd.f32 %v2980_v13, %v7680_v58  ;;  %v2982_v36 = vpop.f32.mrb[138].mxu0  ;;  %3385 = vmatprep.mubr.bf16.mxu1 %v3184_v47 }
 0x841   : > { %v2983_v0 = vadd.f32 %v2982_v36, %v7676_v26  ;;  %v2984_v59 = vpop.f32.mrb[139].mxu0  ;;  %3386 = vmatmul.mubr.bf16.gmra.mrb[132].mxu1 %v3183_v42  ;;  %v3125_v43 = vmax.f32 %v2979_v63, 0.0 }
 0x842   : > { %v2985_v51 = vadd.f32 %v2984_v59, %v7680_v58  ;;  %v3126_v56 = vmax.f32 %v2981_v29, 0.0 }
 0x843   : > { %v3127_v30 = vmax.f32 %v2983_v0, 0.0 }
 0x844   : > { %v3128_v8 = vmax.f32 %v2985_v51, 0.0 }
 0x845   : > { %v3185_v21 = vpack.c.bf16 %v3127_v30, %v3125_v43 }
 0x846   : > { %v3186_v20 = vpack.c.bf16 %v3128_v8, %v3126_v56  ;;  %v2988_v52 = vpop.f32.mrb[140].mxu0 }
 0x847   : > { %v2989_v61 = vadd.f32 %v2988_v52, %v7676_v26  ;;  %v2990_v15 = vpop.f32.mrb[141].mxu0 }
 0x848   : > { %v2991_v37 = vadd.f32 %v2990_v15, %v7680_v58  ;;  %v2992_v2 = vpop.f32.mrb[142].mxu0  ;;  %3393 = vmatprep.mubr.bf16.mxu1 %v3186_v20 }
 0x849   : > { %v2993_v39 = vadd.f32 %v2992_v2, %v7676_v26  ;;  %v2994_v50 = vpop.f32.mrb[143].mxu0  ;;  %3394 = vmatmul.mubr.bf16.gmra.mrb[136].mxu1 %v3185_v21  ;;  %v3129_v5 = vmax.f32 %v2989_v61, 0.0 }
 0x84a   : > { %v2995_v35 = vadd.f32 %v2994_v50, %v7680_v58  ;;  %v3130_v12 = vmax.f32 %v2991_v37, 0.0 }
 0x84b   : > { %v3131_v34 = vmax.f32 %v2993_v39, 0.0 }
 0x84c   : > { %v3132_v17 = vmax.f32 %v2995_v35, 0.0 }
 0x84d   : > { %v3187_v32 = vpack.c.bf16 %v3131_v34, %v3129_v5 }
 0x84e   : > { %v3188_v4 = vpack.c.bf16 %v3132_v17, %v3130_v12  ;;  %v2998_v42 = vpop.f32.mrb[144].mxu0 }
 0x84f   : > { %v2999_v47 = vadd.f32 %v2998_v42, %v7676_v26  ;;  %v3000_v53 = vpop.f32.mrb[145].mxu0 }
 0x850   : > { %v3001_v63 = vadd.f32 %v3000_v53, %v7680_v58  ;;  %v3002_v13 = vpop.f32.mrb[146].mxu0  ;;  %3401 = vmatprep.mubr.bf16.mxu1 %v3188_v4 }
 0x851   : > { %v3003_v29 = vadd.f32 %v3002_v13, %v7676_v26  ;;  %v3004_v36 = vpop.f32.mrb[147].mxu0  ;;  %3402 = vmatmul.mubr.bf16.gmra.mrb[140].mxu1 %v3187_v32  ;;  %v3133_v59 = vmax.f32 %v2999_v47, 0.0 }
 0x852   : > { %v3005_v0 = vadd.f32 %v3004_v36, %v7680_v58  ;;  %v3134_v43 = vmax.f32 %v3001_v63, 0.0 }
 0x853   : > { %v3135_v51 = vmax.f32 %v3003_v29, 0.0 }
 0x854   : > { %v3136_v30 = vmax.f32 %v3005_v0, 0.0 }
 0x855   : > { %v3189_v56 = vpack.c.bf16 %v3135_v51, %v3133_v59 }
 0x856   : > { %v3190_v8 = vpack.c.bf16 %v3136_v30, %v3134_v43  ;;  %v3008_v21 = vpop.f32.mrb[148].mxu0 }
 0x857   : > { %v3009_v20 = vadd.f32 %v3008_v21, %v7676_v26  ;;  %v3010_v52 = vpop.f32.mrb[149].mxu0 }
 0x858   : > { %v3011_v61 = vadd.f32 %v3010_v52, %v7680_v58  ;;  %v3012_v15 = vpop.f32.mrb[150].mxu0  ;;  %3409 = vmatprep.mubr.bf16.mxu1 %v3190_v8 }
 0x859   : > { %v3013_v37 = vadd.f32 %v3012_v15, %v7676_v26  ;;  %v3014_v2 = vpop.f32.mrb[151].mxu0  ;;  %3410 = vmatmul.mubr.bf16.gmra.mrb[144].mxu1 %v3189_v56  ;;  %v3137_v50 = vmax.f32 %v3009_v20, 0.0 }
 0x85a   : > { %v3015_v39 = vadd.f32 %v3014_v2, %v7680_v58  ;;  %v3138_v5 = vmax.f32 %v3011_v61, 0.0 }
 0x85b   : > { %v3139_v35 = vmax.f32 %v3013_v37, 0.0 }
 0x85c   : > { %v3140_v34 = vmax.f32 %v3015_v39, 0.0 }
 0x85d   : > { %v3191_v12 = vpack.c.bf16 %v3139_v35, %v3137_v50 }
 0x85e   : > { %v3192_v17 = vpack.c.bf16 %v3140_v34, %v3138_v5  ;;  %v3018_v32 = vpop.f32.mrb[152].mxu0 }
 0x85f   : > { %v3019_v4 = vadd.f32 %v3018_v32, %v7676_v26  ;;  %v3020_v42 = vpop.f32.mrb[153].mxu0 }
 0x860   : > { %v3021_v47 = vadd.f32 %v3020_v42, %v7680_v58  ;;  %v3022_v53 = vpop.f32.mrb[154].mxu0  ;;  %3417 = vmatprep.mubr.bf16.mxu1 %v3192_v17 }
 0x861   : > { %v3023_v63 = vadd.f32 %v3022_v53, %v7676_v26  ;;  %v3024_v13 = vpop.f32.mrb[155].mxu0  ;;  %3418 = vmatmul.mubr.bf16.gmra.mrb[148].mxu1 %v3191_v12  ;;  %v3141_v36 = vmax.f32 %v3019_v4, 0.0 }
 0x862   : > { %v3025_v29 = vadd.f32 %v3024_v13, %v7680_v58  ;;  %v3142_v59 = vmax.f32 %v3021_v47, 0.0 }
 0x863   : > { %v3143_v0 = vmax.f32 %v3023_v63, 0.0 }
 0x864   : > { %v3144_v51 = vmax.f32 %v3025_v29, 0.0 }
 0x865   : > { %v3193_v43 = vpack.c.bf16 %v3143_v0, %v3141_v36 }
 0x866   : > { %v3194_v30 = vpack.c.bf16 %v3144_v51, %v3142_v59  ;;  %v3028_v56 = vpop.f32.mrb[156].mxu0 }
 0x867   : > { %v3029_v8 = vadd.f32 %v3028_v56, %v7676_v26  ;;  %v3030_v21 = vpop.f32.mrb[157].mxu0 }
 0x868   : > { %v3031_v20 = vadd.f32 %v3030_v21, %v7680_v58  ;;  %v3032_v52 = vpop.f32.mrb[158].mxu0  ;;  %3425 = vmatprep.mubr.bf16.mxu1 %v3194_v30 }
 0x869   : > { %v3033_v61 = vadd.f32 %v3032_v52, %v7676_v26  ;;  %v3034_v15 = vpop.f32.mrb[159].mxu0  ;;  %3426 = vmatmul.mubr.bf16.gmra.mrb[152].mxu1 %v3193_v43  ;;  %v3145_v2 = vmax.f32 %v3029_v8, 0.0 }
 0x86a   : > { %v3035_v37 = vadd.f32 %v3034_v15, %v7680_v58  ;;  %v3146_v50 = vmax.f32 %v3031_v20, 0.0 }
 0x86b   : > { %v3147_v39 = vmax.f32 %v3033_v61, 0.0 }
 0x86c   : > { %v3148_v35 = vmax.f32 %v3035_v37, 0.0 }
 0x86d   : > { %v3195_v5 = vpack.c.bf16 %v3147_v39, %v3145_v2 }
 0x86e   : > { %v3196_v34 = vpack.c.bf16 %v3148_v35, %v3146_v50  ;;  %v3038_v12 = vpop.f32.mrb[160].mxu0 }
 0x86f   : > { %v3039_v17 = vadd.f32 %v3038_v12, %v7676_v26  ;;  %v3040_v32 = vpop.f32.mrb[161].mxu0 }
 0x870   : > { %v3041_v4 = vadd.f32 %v3040_v32, %v7680_v58  ;;  %v3042_v42 = vpop.f32.mrb[162].mxu0  ;;  %3433 = vmatprep.mubr.bf16.mxu1 %v3196_v34 }
 0x871   : > { %v3043_v47 = vadd.f32 %v3042_v42, %v7676_v26  ;;  %v3044_v53 = vpop.f32.mrb[163].mxu0  ;;  %3434 = vmatmul.mubr.bf16.gmra.mrb[156].mxu1 %v3195_v5  ;;  %v3149_v13 = vmax.f32 %v3039_v17, 0.0 }
 0x872   : > { %v3045_v63 = vadd.f32 %v3044_v53, %v7680_v58  ;;  %v3150_v36 = vmax.f32 %v3041_v4, 0.0 }
 0x873   : > { %v3151_v29 = vmax.f32 %v3043_v47, 0.0 }
 0x874   : > { %v3152_v0 = vmax.f32 %v3045_v63, 0.0 }
 0x875   : > { %v3197_v59 = vpack.c.bf16 %v3151_v29, %v3149_v13 }
 0x876   : > { %v3198_v51 = vpack.c.bf16 %v3152_v0, %v3150_v36  ;;  %v3048_v43 = vpop.f32.mrb[164].mxu0 }
 0x877   : > { %v3049_v30 = vadd.f32 %v3048_v43, %v7676_v26  ;;  %v3050_v56 = vpop.f32.mrb[165].mxu0 }
 0x878   : > { %v3051_v8 = vadd.f32 %v3050_v56, %v7680_v58  ;;  %v3052_v21 = vpop.f32.mrb[166].mxu0  ;;  %3441 = vmatprep.mubr.bf16.mxu1 %v3198_v51 }
 0x879   : > { %v3053_v20 = vadd.f32 %v3052_v21, %v7676_v26  ;;  %v3054_v52 = vpop.f32.mrb[167].mxu0  ;;  %3442 = vmatmul.mubr.bf16.gmra.mrb[160].mxu1 %v3197_v59  ;;  %v3153_v15 = vmax.f32 %v3049_v30, 0.0 }
 0x87a   : > { %v3055_v61 = vadd.f32 %v3054_v52, %v7680_v58  ;;  %v3154_v2 = vmax.f32 %v3051_v8, 0.0 }
 0x87b   : > { %v3155_v37 = vmax.f32 %v3053_v20, 0.0 }
 0x87c   : > { %v3156_v39 = vmax.f32 %v3055_v61, 0.0 }
 0x87d   : > { %v3199_v50 = vpack.c.bf16 %v3155_v37, %v3153_v15 }
 0x87e   : > { %v3200_v35 = vpack.c.bf16 %v3156_v39, %v3154_v2 }
 0x880   : > { %3449 = vmatprep.mubr.bf16.mxu1 %v3200_v35 }
 0x881   : > { %3450 = vmatmul.mubr.bf16.gmra.mrb[164].mxu1 %v3199_v50 }
 0x8c6   : > { %v3058_v5 = vpop.f32.mrb[168].mxu0 }
 0x8c7   : > { %v3059_v34 = vadd.f32 %v3058_v5, %v7676_v26  ;;  %v3060_v12 = vpop.f32.mrb[169].mxu0 }
 0x8c8   : > { %v3061_v17 = vadd.f32 %v3060_v12, %v7680_v58  ;;  %v3062_v32 = vpop.f32.mrb[170].mxu0 }
 0x8c9   : > { %v3063_v4 = vadd.f32 %v3062_v32, %v7676_v26  ;;  %v3064_v42 = vpop.f32.mrb[171].mxu0  ;;  %v3157_v53 = vmax.f32 %v3059_v34, 0.0 }
 0x8ca   : > { %v3065_v47 = vadd.f32 %v3064_v42, %v7680_v58  ;;  %v3158_v13 = vmax.f32 %v3061_v17, 0.0 }
 0x8cb   : > { %v3159_v63 = vmax.f32 %v3063_v4, 0.0 }
 0x8cc   : > { %v3160_v29 = vmax.f32 %v3065_v47, 0.0 }
 0x8cd   : > { %v3201_v36 = vpack.c.bf16 %v3159_v63, %v3157_v53 }
 0x8ce   : > { %v3202_v0 = vpack.c.bf16 %v3160_v29, %v3158_v13  ;;  %v3068_v59 = vpop.f32.mrb[172].mxu0 }
 0x8cf   : > { %v3069_v51 = vadd.f32 %v3068_v59, %v7676_v26  ;;  %v3070_v43 = vpop.f32.mrb[173].mxu0 }
 0x8d0   : > { %v3071_v30 = vadd.f32 %v3070_v43, %v7680_v58  ;;  %v3072_v56 = vpop.f32.mrb[174].mxu0  ;;  %3457 = vmatprep.mubr.bf16.mxu1 %v3202_v0 }
 0x8d1   : > { %v3073_v8 = vadd.f32 %v3072_v56, %v7676_v26  ;;  %v3074_v21 = vpop.f32.mrb[175].mxu0  ;;  %3458 = vmatmul.mubr.bf16.gmra.mrb[168].mxu1 %v3201_v36  ;;  %v3161_v52 = vmax.f32 %v3069_v51, 0.0 }
 0x8d2   : > { %v3075_v20 = vadd.f32 %v3074_v21, %v7680_v58  ;;  %v3162_v15 = vmax.f32 %v3071_v30, 0.0 }
 0x8d3   : > { %v3163_v61 = vmax.f32 %v3073_v8, 0.0 }
 0x8d4   : > { %v3164_v37 = vmax.f32 %v3075_v20, 0.0 }
 0x8d5   : > { %v3203_v2 = vpack.c.bf16 %v3163_v61, %v3161_v52 }
 0x8d6   : > { %v3204_v39 = vpack.c.bf16 %v3164_v37, %v3162_v15  ;;  %v3078_v50 = vpop.f32.mrb[176].mxu0 }
 0x8d7   : > { %v3079_v35 = vadd.f32 %v3078_v50, %v7676_v26  ;;  %v3080_v5 = vpop.f32.mrb[177].mxu0 }
 0x8d8   : > { %v3081_v34 = vadd.f32 %v3080_v5, %v7680_v58  ;;  %v3082_v12 = vpop.f32.mrb[178].mxu0  ;;  %3465 = vmatprep.mubr.bf16.mxu1 %v3204_v39 }
 0x8d9   : > { %v3083_v17 = vadd.f32 %v3082_v12, %v7676_v26  ;;  %v3084_v32 = vpop.f32.mrb[179].mxu0  ;;  %3466 = vmatmul.mubr.bf16.gmra.mrb[172].mxu1 %v3203_v2  ;;  %v3165_v42 = vmax.f32 %v3079_v35, 0.0 }
 0x8da   : > { %v3085_v4 = vadd.f32 %v3084_v32, %v7680_v58  ;;  %v3166_v53 = vmax.f32 %v3081_v34, 0.0 }
 0x8db   : > { %v3167_v47 = vmax.f32 %v3083_v17, 0.0 }
 0x8dc   : > { %v3168_v63 = vmax.f32 %v3085_v4, 0.0 }
 0x8dd   : > { %v3205_v13 = vpack.c.bf16 %v3167_v47, %v3165_v42 }
 0x8de   : > { %v3206_v29 = vpack.c.bf16 %v3168_v63, %v3166_v53  ;;  %v3088_v36 = vpop.f32.mrb[180].mxu0 }
 0x8df   : > { %v3089_v0 = vadd.f32 %v3088_v36, %v7676_v26  ;;  %v3090_v59 = vpop.f32.mrb[181].mxu0 }
 0x8e0   : > { %v3091_v51 = vadd.f32 %v3090_v59, %v7680_v58  ;;  %v3092_v43 = vpop.f32.mrb[182].mxu0  ;;  %3473 = vmatprep.mubr.bf16.mxu1 %v3206_v29 }
 0x8e1   : > { %v3093_v30 = vadd.f32 %v3092_v43, %v7676_v26  ;;  %v3094_v56 = vpop.f32.mrb[183].mxu0  ;;  %3474 = vmatmul.mubr.bf16.gmra.mrb[176].mxu1 %v3205_v13  ;;  %v3169_v21 = vmax.f32 %v3089_v0, 0.0 }
 0x8e2   : > { %v3095_v8 = vadd.f32 %v3094_v56, %v7680_v58  ;;  %v3170_v52 = vmax.f32 %v3091_v51, 0.0 }
 0x8e3   : > { %v3171_v20 = vmax.f32 %v3093_v30, 0.0 }
 0x8e4   : > { %v3172_v61 = vmax.f32 %v3095_v8, 0.0 }
 0x8e5   : > { %v3207_v15 = vpack.c.bf16 %v3171_v20, %v3169_v21 }
 0x8e6   : > { %v3208_v37 = vpack.c.bf16 %v3172_v61, %v3170_v52  ;;  %v3098_v2 = vpop.f32.mrb[184].mxu0 }
 0x8e7   : > { %v3099_v39 = vadd.f32 %v3098_v2, %v7676_v26  ;;  %v3100_v50 = vpop.f32.mrb[185].mxu0 }
 0x8e8   : > { %v3101_v35 = vadd.f32 %v3100_v50, %v7680_v58  ;;  %v3102_v5 = vpop.f32.mrb[186].mxu0  ;;  %3481 = vmatprep.mubr.bf16.mxu1 %v3208_v37  ;;  %v7749_v37 = vld [vmem:[%s8318_s8 + $0x2] ss:$0 sm:$0xff] }
 0x8e9   : > { %v3103_v34 = vadd.f32 %v3102_v5, %v7676_v26  ;;  %v3104_v12 = vpop.f32.mrb[187].mxu0  ;;  %3482 = vmatmul.mubr.bf16.gmra.mrb[180].mxu1 %v3207_v15  ;;  %v3173_v32 = vmax.f32 %v3099_v39, 0.0 }
 0x8ea   : > { %v3105_v17 = vadd.f32 %v3104_v12, %v7680_v58  ;;  %v3174_v42 = vmax.f32 %v3101_v35, 0.0 }
 0x8eb   : > { %v3175_v4 = vmax.f32 %v3103_v34, 0.0 }
 0x8ec   : > { %v3176_v47 = vmax.f32 %v3105_v17, 0.0 }
 0x8ed   : > { %v3209_v53 = vpack.c.bf16 %v3175_v4, %v3173_v32 }
 0x8ee   : > { %v3210_v63 = vpack.c.bf16 %v3176_v47, %v3174_v42  ;;  %v3108_v13 = vpop.f32.mrb[188].mxu0 }
 0x8ef   : > { %v3109_v29 = vadd.f32 %v3108_v13, %v7676_v26  ;;  %v3110_v36 = vpop.f32.mrb[189].mxu0 }
 0x8f0   : > { %v3111_v0 = vadd.f32 %v3110_v36, %v7680_v58  ;;  %v3112_v59 = vpop.f32.mrb[190].mxu0  ;;  %3489 = vmatprep.mubr.bf16.mxu1 %v3210_v63 }
 0x8f1   : > { %v3113_v51 = vadd.f32 %v3112_v59, %v7676_v26  ;;  %v3114_v43 = vpop.f32.mrb[191].mxu0  ;;  %3490 = vmatmul.mubr.bf16.gmra.mrb[184].mxu1 %v3209_v53  ;;  %v3177_v56 = vmax.f32 %v3109_v29, 0.0 }
 0x8f2   : > { %v3115_v30 = vadd.f32 %v3114_v43, %v7680_v58  ;;  %v3178_v21 = vmax.f32 %v3111_v0, 0.0 }
 0x8f3   : > { %v3179_v8 = vmax.f32 %v3113_v51, 0.0 }
 0x8f4   : > { %v3180_v20 = vmax.f32 %v3115_v30, 0.0 }
 0x8f5   : > { %v3211_v52 = vpack.c.bf16 %v3179_v8, %v3177_v56 }
 0x8f6   : > { %v3212_v61 = vpack.c.bf16 %v3180_v20, %v3178_v21 }
 0x8f8   : > { %3497 = vmatprep.mubr.bf16.mxu1 %v3212_v61 }
 0x8f9   : > { %3498 = vmatmul.mubr.bf16.gmra.mrb[188].mxu1 %v3211_v52 }
 0x90c   : > { %v4786_v15 = vpop.f32.mrb[128].mxu1 }
 0x90d   : > { %v4787_v2 = vpop.f32.mrb[129].mxu1 }
 0x90e   : > { %v4788_v26 = vadd.f32 %v4787_v2, %v4786_v15  ;;  %v4789_v39 = vpop.f32.mrb[130].mxu1 }
 0x90f   : > { %v4790_v50 = vpop.f32.mrb[131].mxu1 }
 0x910   : > { %v3380_v58 = vadd.f32 %v4788_v26, %v7749_v37  ;;  %v4791_v35 = vadd.f32 %v4790_v50, %v4789_v39 }
 0x912   : > { %v3383_v5 = vadd.f32 %v4791_v35, %v7749_v37  ;;  %v7754_v34 = vadd.f32 %v3380_v58, %v7429_v19 }
 0x914   : > { %3538 = vadd.xlane.f32.xlu0 %v7754_v34  ;;  %v4792_v12 = vpop.f32.mrb[132].mxu1  ;;  %v7758_v17 = vadd.f32 %v3383_v5, %v7432_v23 }
 0x915   : > { %v4793_v32 = vpop.f32.mrb[133].mxu1 }
 0x916   : > { %v4794_v4 = vadd.f32 %v4793_v32, %v4792_v12  ;;  %v4795_v42 = vpop.f32.mrb[134].mxu1  ;;  %3540 = vadd.xlane.f32.xlu1 %v7758_v17 }
 0x917   : > { %v4796_v47 = vpop.f32.mrb[135].mxu1 }
 0x918   : > { %v3388_v53 = vadd.f32 %v4794_v4, %v7749_v37  ;;  %v4797_v63 = vadd.f32 %v4796_v47, %v4795_v42 }
 0x91a   : > { %v3391_v13 = vadd.f32 %v4797_v63, %v7749_v37  ;;  %v7764_v19 = vadd.f32 %v3388_v53, %v7452_v31 }
 0x91c   : > { %3542 = vadd.xlane.f32.xlu0 %v7764_v19  ;;  %v4798_v29 = vpop.f32.mrb[136].mxu1  ;;  %v7768_v23 = vadd.f32 %v3391_v13, %v7455_v46 }
 0x91d   : > { %v4799_v36 = vpop.f32.mrb[137].mxu1 }
 0x91e   : > { %v4800_v0 = vadd.f32 %v4799_v36, %v4798_v29  ;;  %v4801_v59 = vpop.f32.mrb[138].mxu1  ;;  %3544 = vadd.xlane.f32.xlu1 %v7768_v23 }
 0x91f   : > { %v4802_v51 = vpop.f32.mrb[139].mxu1 }
 0x920   : > { %v3396_v43 = vadd.f32 %v4800_v0, %v7749_v37  ;;  %v4803_v30 = vadd.f32 %v4802_v51, %v4801_v59 }
 0x922   : > { %v3399_v56 = vadd.f32 %v4803_v30, %v7749_v37  ;;  %v7774_v31 = vadd.f32 %v3396_v43, %v7475_v10 }
 0x924   : > { %3546 = vadd.xlane.f32.xlu0 %v7774_v31  ;;  %v4804_v8 = vpop.f32.mrb[140].mxu1  ;;  %v7778_v46 = vadd.f32 %v3399_v56, %v7478_v27 }
 0x925   : > { %v4805_v21 = vpop.f32.mrb[141].mxu1 }
 0x926   : > { %v4806_v20 = vadd.f32 %v4805_v21, %v4804_v8  ;;  %v4807_v52 = vpop.f32.mrb[142].mxu1  ;;  %3548 = vadd.xlane.f32.xlu1 %v7778_v46 }
 0x927   : > { %v4808_v61 = vpop.f32.mrb[143].mxu1 }
 0x928   : > { %v3404_v15 = vadd.f32 %v4806_v20, %v7749_v37  ;;  %v4809_v2 = vadd.f32 %v4808_v61, %v4807_v52 }
 0x92a   : > { %v3407_v26 = vadd.f32 %v4809_v2, %v7749_v37  ;;  %v7784_v10 = vadd.f32 %v3404_v15, %v7498_v7 }
 0x92c   : > { %3550 = vadd.xlane.f32.xlu0 %v7784_v10  ;;  %v4810_v39 = vpop.f32.mrb[144].mxu1  ;;  %v7788_v27 = vadd.f32 %v3407_v26, %v7501_v45 }
 0x92d   : > { %v4811_v50 = vpop.f32.mrb[145].mxu1 }
 0x92e   : > { %v4812_v58 = vadd.f32 %v4811_v50, %v4810_v39  ;;  %v4813_v35 = vpop.f32.mrb[146].mxu1  ;;  %3552 = vadd.xlane.f32.xlu1 %v7788_v27 }
 0x92f   : > { %v4814_v5 = vpop.f32.mrb[147].mxu1 }
 0x930   : > { %v3412_v12 = vadd.f32 %v4812_v58, %v7749_v37  ;;  %v4815_v32 = vadd.f32 %v4814_v5, %v4813_v35 }
 0x932   : > { %v3415_v4 = vadd.f32 %v4815_v32, %v7749_v37  ;;  %v7794_v7 = vadd.f32 %v3412_v12, %v7521_v18 }
 0x934   : > { %3554 = vadd.xlane.f32.xlu0 %v7794_v7  ;;  %v4816_v42 = vpop.f32.mrb[148].mxu1  ;;  %v7798_v45 = vadd.f32 %v3415_v4, %v7524_v38 }
 0x935   : > { %v4817_v47 = vpop.f32.mrb[149].mxu1 }
 0x936   : > { %v4818_v53 = vadd.f32 %v4817_v47, %v4816_v42  ;;  %v4819_v63 = vpop.f32.mrb[150].mxu1  ;;  %3556 = vadd.xlane.f32.xlu1 %v7798_v45 }
 0x937   : > { %v4820_v13 = vpop.f32.mrb[151].mxu1 }
 0x938   : > { %v3420_v29 = vadd.f32 %v4818_v53, %v7749_v37  ;;  %v4821_v36 = vadd.f32 %v4820_v13, %v4819_v63 }
 0x93a   : > { %v3423_v0 = vadd.f32 %v4821_v36, %v7749_v37  ;;  %v7804_v18 = vadd.f32 %v3420_v29, %v7534_v22 }
 0x93c   : > { %3558 = vadd.xlane.f32.xlu0 %v7804_v18  ;;  %v4822_v59 = vpop.f32.mrb[152].mxu1  ;;  %v7808_v38 = vadd.f32 %v3423_v0, %v7537_v48 }
 0x93d   : > { %v4823_v51 = vpop.f32.mrb[153].mxu1 }
 0x93e   : > { %v4824_v43 = vadd.f32 %v4823_v51, %v4822_v59  ;;  %3560 = vadd.xlane.f32.xlu1 %v7808_v38  ;;  %v4825_v30 = vpop.f32.mrb[154].mxu1 }
 0x93f   : > { %v4826_v56 = vpop.f32.mrb[155].mxu1 }
 0x940   : > { %v3428_v8 = vadd.f32 %v4824_v43, %v7749_v37  ;;  %v4827_v21 = vadd.f32 %v4826_v56, %v4825_v30 }
 0x942   : > { %v3431_v20 = vadd.f32 %v4827_v21, %v7749_v37  ;;  %v7814_v22 = vadd.f32 %v3428_v8, %v7547_v44 }
 0x944   : > { %3562 = vadd.xlane.f32.xlu0 %v7814_v22  ;;  %v4828_v52 = vpop.f32.mrb[156].mxu1  ;;  %v7818_v48 = vadd.f32 %v3431_v20, %v7550_v60 }
 0x945   : > { %v4829_v61 = vpop.f32.mrb[157].mxu1 }
 0x946   : > { %v4830_v15 = vadd.f32 %v4829_v61, %v4828_v52  ;;  %3564 = vadd.xlane.f32.xlu1 %v7818_v48  ;;  %v4831_v2 = vpop.f32.mrb[158].mxu1 }
 0x947   : > { %v4832_v26 = vpop.f32.mrb[159].mxu1 }
 0x948   : > { %v3436_v39 = vadd.f32 %v4830_v15, %v7749_v37  ;;  %v4833_v50 = vadd.f32 %v4832_v26, %v4831_v2 }
 0x94a   : > { %v3439_v58 = vadd.f32 %v4833_v50, %v7749_v37  ;;  %v7824_v44 = vadd.f32 %v3436_v39, %v7563_v28 }
 0x94c   : > { %3566 = vadd.xlane.f32.xlu0 %v7824_v44  ;;  %v4834_v35 = vpop.f32.mrb[160].mxu1  ;;  %v7828_v60 = vadd.f32 %v3439_v58, %v7560_v55 }
 0x94d   : > { %v4835_v5 = vpop.f32.mrb[161].mxu1 }
 0x94e   : > { %v4836_v12 = vadd.f32 %v4835_v5, %v4834_v35  ;;  %3568 = vadd.xlane.f32.xlu1 %v7828_v60  ;;  %v4837_v32 = vpop.f32.mrb[162].mxu1 }
 0x94f   : > { %v4838_v4 = vpop.f32.mrb[163].mxu1 }
 0x950   : > { %v3444_v42 = vadd.f32 %v4836_v12, %v7749_v37  ;;  %v4839_v47 = vadd.f32 %v4838_v4, %v4837_v32 }
 0x952   : > { %v3447_v53 = vadd.f32 %v4839_v47, %v7749_v37  ;;  %v7834_v28 = vadd.f32 %v3444_v42, %v7573_v41 }
 0x954   : > { %3570 = vadd.xlane.f32.xlu0 %v7834_v28  ;;  %v4840_v63 = vpop.f32.mrb[164].mxu1  ;;  %v7838_v55 = vadd.f32 %v3447_v53, %v7576_v16 }
 0x955   : > { %v4841_v13 = vpop.f32.mrb[165].mxu1 }
 0x956   : > { %v4842_v29 = vadd.f32 %v4841_v13, %v4840_v63  ;;  %3572 = vadd.xlane.f32.xlu1 %v7838_v55  ;;  %v4843_v36 = vpop.f32.mrb[166].mxu1 }
 0x957   : > { %v4844_v0 = vpop.f32.mrb[167].mxu1 }
 0x958   : > { %v3452_v59 = vadd.f32 %v4842_v29, %v7749_v37  ;;  %v4845_v51 = vadd.f32 %v4844_v0, %v4843_v36 }
 0x95a   : > { %v3455_v43 = vadd.f32 %v4845_v51, %v7749_v37  ;;  %v7844_v41 = vadd.f32 %v3452_v59, %v7589_v14 }
 0x95c   : > { %3574 = vadd.xlane.f32.xlu0 %v7844_v41  ;;  %v7848_v30 = vadd.f32 %v3455_v43, %v7586_v1 }
 0x95e   : > { %3576 = vadd.xlane.f32.xlu1 %v7848_v30 }
 0x9a4   : > { %v4846_v16 = vpop.f32.mrb[168].mxu1 }
 0x9a5   : > { %v4847_v56 = vpop.f32.mrb[169].mxu1 }
 0x9a6   : > { %v4848_v8 = vadd.f32 %v4847_v56, %v4846_v16  ;;  %v4849_v21 = vpop.f32.mrb[170].mxu1 }
 0x9a7   : > { %v4850_v20 = vpop.f32.mrb[171].mxu1 }
 0x9a8   : > { %v3460_v52 = vadd.f32 %v4848_v8, %v7749_v37  ;;  %v4851_v61 = vadd.f32 %v4850_v20, %v4849_v21 }
 0x9aa   : > { %v3463_v15 = vadd.f32 %v4851_v61, %v7749_v37  ;;  %v7854_v14 = vadd.f32 %v3460_v52, %v7599_v54 }
 0x9ac   : > { %3578 = vadd.xlane.f32.xlu0 %v7854_v14  ;;  %v4852_v2 = vpop.f32.mrb[172].mxu1  ;;  %v7858_v1 = vadd.f32 %v3463_v15, %v7602_v49 }
 0x9ad   : > { %v4853_v26 = vpop.f32.mrb[173].mxu1 }
 0x9ae   : > { %v4854_v39 = vadd.f32 %v4853_v26, %v4852_v2  ;;  %3580 = vadd.xlane.f32.xlu1 %v7858_v1  ;;  %v4855_v50 = vpop.f32.mrb[174].mxu1 }
 0x9af   : > { %v4856_v58 = vpop.f32.mrb[175].mxu1 }
 0x9b0   : > { %v3468_v35 = vadd.f32 %v4854_v39, %v7749_v37  ;;  %v4857_v5 = vadd.f32 %v4856_v58, %v4855_v50  ;;  %v3539_v50 = vpop.xlane.xlu0 %3538 }
 0x9b2   : > { %v3471_v12 = vadd.f32 %v4857_v5, %v7749_v37  ;;  %v7864_v54 = vadd.f32 %v3468_v35, %v7612_v25  ;;  %v3541_v35 = vpop.xlane.xlu1 %3540 }
 0x9b4   : > { %3582 = vadd.xlane.f32.xlu0 %v7864_v54  ;;  %v4858_v32 = vpop.f32.mrb[176].mxu1  ;;  %v7868_v49 = vadd.f32 %v3471_v12, %v7615_v3  ;;  %v3602_v12 = vmul.f32 0.0078125, %v3539_v50 }
 0x9b5   : > { %v4859_v4 = vpop.f32.mrb[177].mxu1 }
 0x9b6   : > { %v4860_v42 = vadd.f32 %v4859_v4, %v4858_v32  ;;  %3584 = vadd.xlane.f32.xlu1 %v7868_v49  ;;  %v4861_v47 = vpop.f32.mrb[178].mxu1 }
 0x9b7   : > { %v4862_v53 = vpop.f32.mrb[179].mxu1 }
 0x9b8   : > { %v3476_v63 = vadd.f32 %v4860_v42, %v7749_v37  ;;  %v4863_v13 = vadd.f32 %v4862_v53, %v4861_v47  ;;  %v3543_v42 = vpop.xlane.xlu0 %3542  ;;  %v3603_v53 = vmul.f32 0.0078125, %v3541_v35 }
 0x9ba   : > { %v3479_v29 = vadd.f32 %v4863_v13, %v7749_v37  ;;  %v7874_v25 = vadd.f32 %v3476_v63, %v7625_v9  ;;  %v3545_v13 = vpop.xlane.xlu1 %3544 }
 0x9bc   : > { %3586 = vadd.xlane.f32.xlu0 %v7874_v25  ;;  %v4864_v36 = vpop.f32.mrb[180].mxu1  ;;  %v7878_v3 = vadd.f32 %v3479_v29, %v7628_v6  ;;  %v7903_v29 = vsub.f32 %v7754_v34, %v3602_v12 }
 0x9bd   : > { %v4865_v0 = vpop.f32.mrb[181].mxu1 }
 0x9be   : > { %v4866_v59 = vadd.f32 %v4865_v0, %v4864_v36  ;;  %3588 = vadd.xlane.f32.xlu1 %v7878_v3  ;;  %v4867_v51 = vpop.f32.mrb[182].mxu1  ;;  %v3604_v36 = vmul.f32 0.0078125, %v3543_v42 }
 0x9bf   : > { %v4868_v43 = vpop.f32.mrb[183].mxu1 }
 0x9c0   : > { %v3484_v16 = vadd.f32 %v4866_v59, %v7749_v37  ;;  %v4869_v56 = vadd.f32 %v4868_v43, %v4867_v51  ;;  %v3547_v59 = vpop.xlane.xlu0 %3546  ;;  %v7910_v51 = vsub.f32 %v7758_v17, %v3603_v53  ;;  %v3605_v43 = vmul.f32 0.0078125, %v3545_v13 }
 0x9c1   : > { %v7917_v34 = vsub.f32 %v7764_v19, %v3604_v36 }
 0x9c2   : > { %v3487_v8 = vadd.f32 %v4869_v56, %v7749_v37  ;;  %v7884_v9 = vadd.f32 %v3484_v16, %v7638_v33  ;;  %v3549_v56 = vpop.xlane.xlu1 %3548  ;;  %v7923_v17 = vsub.f32 %v7768_v23, %v3605_v43 }
 0x9c4   : > { %3590 = vadd.xlane.f32.xlu0 %v7884_v9  ;;  %v4870_v21 = vpop.f32.mrb[184].mxu1  ;;  %v7888_v6 = vadd.f32 %v3487_v8, %v7641_v62  ;;  %v3606_v8 = vmul.f32 0.0078125, %v3547_v59 }
 0x9c5   : > { %v4871_v20 = vpop.f32.mrb[185].mxu1 }
 0x9c6   : > { %v4872_v52 = vadd.f32 %v4871_v20, %v4870_v21  ;;  %3592 = vadd.xlane.f32.xlu1 %v7888_v6  ;;  %v4873_v61 = vpop.f32.mrb[186].mxu1  ;;  %v3607_v21 = vmul.f32 0.0078125, %v3549_v56  ;;  %v3553_v20 = vpop.xlane.xlu1 %3552 }
 0x9c7   : > { %v4874_v15 = vpop.f32.mrb[187].mxu1  ;;  %v3609_v23 = vmul.f32 0.0078125, %v3553_v20 }
 0x9c8   : > { %v3492_v2 = vadd.f32 %v4872_v52, %v7749_v37  ;;  %v4875_v26 = vadd.f32 %v4874_v15, %v4873_v61  ;;  %v7928_v52 = vsub.f32 %v7774_v31, %v3606_v8  ;;  %v3668_v61 = vmul.f32 %v7917_v34, %v7917_v34 }
 0x9ca   : > { %v3495_v39 = vadd.f32 %v4875_v26, %v7749_v37  ;;  %v7894_v33 = vadd.f32 %v3492_v2, %v7651_v11  ;;  %v7933_v2 = vsub.f32 %v7778_v46, %v3607_v21  ;;  %v3669_v26 = vmul.f32 %v7923_v17, %v7923_v17 }
 0x9cc   : > { %3594 = vadd.xlane.f32.xlu0 %v7894_v33  ;;  %v4876_v58 = vpop.f32.mrb[188].mxu1  ;;  %v7898_v62 = vadd.f32 %v3495_v39, %v7654_v24  ;;  %v3557_v39 = vpop.xlane.xlu1 %3556  ;;  %v3671_v12 = vmul.f32 %v7933_v2, %v7933_v2 }
 0x9cd   : > { %v4877_v5 = vpop.f32.mrb[189].mxu1  ;;  %v3611_v46 = vmul.f32 0.0078125, %v3557_v39 }
 0x9ce   : > { %v4878_v32 = vadd.f32 %v4877_v5, %v4876_v58  ;;  %3596 = vadd.xlane.f32.xlu1 %v7898_v62  ;;  %v4879_v4 = vpop.f32.mrb[190].mxu1  ;;  %v3670_v58 = vmul.f32 %v7928_v52, %v7928_v52  ;;  %v7943_v5 = vsub.f32 %v7788_v27, %v3609_v23 }
 0x9cf   : > { %v4880_v47 = vpop.f32.mrb[191].mxu1  ;;  %v7953_v53 = vsub.f32 %v7798_v45, %v3611_v46 }
 0x9d0   : > { %v3500_v11 = vadd.f32 %v4878_v32, %v7749_v37  ;;  %v4881_v63 = vadd.f32 %v4880_v47, %v4879_v4  ;;  %v3561_v32 = vpop.xlane.xlu1 %3560 }
 0x9d1   : > { %v3613_v27 = vmul.f32 0.0078125, %v3561_v32  ;;  %v3675_v43 = vmul.f32 %v7953_v53, %v7953_v53 }
 0x9d2   : > { %v3503_v24 = vadd.f32 %v4881_v63, %v7749_v37  ;;  %v7907_v0 = vadd.f32 %v3500_v11, %v7664_v57  ;;  %v3666_v57 = vmul.f32 %v7903_v29, %v7903_v29  ;;  %v3551_v37 = vpop.xlane.xlu0 %3550  ;;  %v3673_v11 = vmul.f32 %v7943_v5, %v7943_v5 }
 0x9d3   : > { %v3608_v19 = vmul.f32 0.0078125, %v3551_v37  ;;  %v7963_v59 = vsub.f32 %v7808_v38, %v3613_v27 }
 0x9d4   : > { %3598 = vadd.xlane.f32.xlu0 %v7907_v0  ;;  %v7914_v16 = vadd.f32 %v3503_v24, %v7667_v40  ;;  %v3667_v40 = vmul.f32 %v7910_v51, %v7910_v51  ;;  %v3565_v63 = vpop.xlane.xlu1 %3564 }
 0x9d5   : > { %v7938_v50 = vsub.f32 %v7784_v10, %v3608_v19  ;;  %v3615_v45 = vmul.f32 0.0078125, %v3565_v63 }
 0x9d6   : > { %3600 = vadd.xlane.f32.xlu1 %v7914_v16  ;;  %v3555_v15 = vpop.xlane.xlu0 %3554 }
 0x9d7   : > { %v3610_v31 = vmul.f32 0.0078125, %v3555_v15  ;;  %v3672_v42 = vmul.f32 %v7938_v50, %v7938_v50  ;;  %v7973_v21 = vsub.f32 %v7818_v48, %v3615_v45 }
 0x9d8   : > { %3698 = vadd.xlane.f32.xlu0 %v3666_v57 }
 0x9d9   : > { %v7948_v4 = vsub.f32 %v7794_v7, %v3610_v31 }
 0x9da   : > { %3700 = vadd.xlane.f32.xlu1 %v3667_v40  ;;  %v3559_v35 = vpop.xlane.xlu0 %3558  ;;  %v3677_v40 = vmul.f32 %v7963_v59, %v7963_v59 }
 0x9db   : > { %v3612_v10 = vmul.f32 0.0078125, %v3559_v35  ;;  %v3674_v36 = vmul.f32 %v7948_v4, %v7948_v4  ;;  %v3569_v56 = vpop.xlane.xlu1 %3568 }
 0x9dc   : > { %3702 = vadd.xlane.f32.xlu0 %v3668_v61  ;;  %v3617_v38 = vmul.f32 0.0078125, %v3569_v56 }
 0x9dd   : > { %v7958_v13 = vsub.f32 %v7804_v18, %v3612_v10 }
 0x9de   : > { %3704 = vadd.xlane.f32.xlu1 %v3669_v26  ;;  %v3563_v47 = vpop.xlane.xlu0 %3562  ;;  %v7983_v23 = vsub.f32 %v7828_v60, %v3617_v38  ;;  %v3679_v26 = vmul.f32 %v7973_v21, %v7973_v21 }
 0x9df   : > { %v3614_v7 = vmul.f32 0.0078125, %v3563_v47  ;;  %v3676_v57 = vmul.f32 %v7958_v13, %v7958_v13 }
 0x9e0   : > { %3706 = vadd.xlane.f32.xlu0 %v3670_v58  ;;  %v3681_v60 = vmul.f32 %v7983_v23, %v7983_v23 }
 0x9e1   : > { %v7968_v8 = vsub.f32 %v7814_v22, %v3614_v7 }
 0x9e2   : > { %3708 = vadd.xlane.f32.xlu1 %v3671_v12  ;;  %v3567_v24 = vpop.xlane.xlu0 %3566 }
 0x9e3   : > { %v3616_v18 = vmul.f32 0.0078125, %v3567_v24  ;;  %v3573_v20 = vpop.xlane.xlu1 %3572  ;;  %v3678_v61 = vmul.f32 %v7968_v8, %v7968_v8 }
 0x9e4   : > { %3710 = vadd.xlane.f32.xlu0 %v3672_v42  ;;  %v3619_v48 = vmul.f32 0.0078125, %v3573_v20 }
 0x9e5   : > { %v7978_v19 = vsub.f32 %v7824_v44, %v3616_v18 }
 0x9e6   : > { %3712 = vadd.xlane.f32.xlu1 %v3673_v11  ;;  %v3571_v37 = vpop.xlane.xlu0 %3570  ;;  %v7993_v35 = vsub.f32 %v7838_v55, %v3619_v48 }
 0x9e7   : > { %v3618_v22 = vmul.f32 0.0078125, %v3571_v37  ;;  %v3680_v58 = vmul.f32 %v7978_v19, %v7978_v19 }
 0x9e8   : > { %3714 = vadd.xlane.f32.xlu0 %v3674_v36  ;;  %v3683_v55 = vmul.f32 %v7993_v35, %v7993_v35 }
 0x9e9   : > { %v7988_v31 = vsub.f32 %v7834_v28, %v3618_v22 }
 0x9ea   : > { %3716 = vadd.xlane.f32.xlu1 %v3675_v43  ;;  %v3575_v15 = vpop.xlane.xlu0 %3574 }
 0x9eb   : > { %v3577_v39 = vpop.xlane.xlu1 %3576  ;;  %v3620_v44 = vmul.f32 0.0078125, %v3575_v15  ;;  %v3682_v28 = vmul.f32 %v7988_v31, %v7988_v31 }
 0x9ec   : > { %3718 = vadd.xlane.f32.xlu0 %v3676_v57  ;;  %v3621_v46 = vmul.f32 0.0078125, %v3577_v39 }
 0x9ed   : > { %v7998_v12 = vsub.f32 %v7844_v41, %v3620_v44 }
 0x9ee   : > { %3720 = vadd.xlane.f32.xlu1 %v3677_v40  ;;  %v8003_v32 = vsub.f32 %v7848_v30, %v3621_v46 }
 0x9ef   : > { %v3684_v10 = vmul.f32 %v7998_v12, %v7998_v12 }
 0x9f0   : > { %3722 = vadd.xlane.f32.xlu0 %v3678_v61  ;;  %v3685_v41 = vmul.f32 %v8003_v32, %v8003_v32 }
 0x9f2   : > { %3724 = vadd.xlane.f32.xlu1 %v3679_v26 }
 0x9f4   : > { %3726 = vadd.xlane.f32.xlu0 %v3680_v58 }
 0x9f6   : > { %3728 = vadd.xlane.f32.xlu1 %v3681_v60 }
 0x9f8   : > { %3730 = vadd.xlane.f32.xlu0 %v3682_v28 }
 0x9fa   : > { %3732 = vadd.xlane.f32.xlu1 %v3683_v55 }
 0x9fc   : > { %3734 = vadd.xlane.f32.xlu0 %v3684_v10 }
 0x9fe   : > { %3736 = vadd.xlane.f32.xlu1 %v3685_v41 }
 0xa39   : > { %v3579_v42 = vpop.xlane.xlu0 %3578 }
 0xa3a   : > { %v3622_v47 = vmul.f32 0.0078125, %v3579_v42 }
 0xa3b   : > { %v3581_v27 = vpop.xlane.xlu1 %3580 }
 0xa3c   : > { %v8012_v11 = vsub.f32 %v7854_v14, %v3622_v47  ;;  %v3623_v30 = vmul.f32 0.0078125, %v3581_v27 }
 0xa3e   : > { %v8015_v63 = vsub.f32 %v7858_v1, %v3623_v30  ;;  %v3686_v7 = vmul.f32 %v8012_v11, %v8012_v11 }
 0xa40   : > { %3738 = vadd.xlane.f32.xlu0 %v3686_v7  ;;  %v3687_v36 = vmul.f32 %v8015_v63, %v8015_v63 }
 0xa41   : > { %v3583_v24 = vpop.xlane.xlu0 %3582 }
 0xa42   : > { %v3624_v45 = vmul.f32 0.0078125, %v3583_v24  ;;  %3740 = vadd.xlane.f32.xlu1 %v3687_v36 }
 0xa43   : > { %v3585_v43 = vpop.xlane.xlu1 %3584 }
 0xa44   : > { %v8022_v56 = vsub.f32 %v7864_v54, %v3624_v45  ;;  %v3625_v14 = vmul.f32 0.0078125, %v3585_v43 }
 0xa46   : > { %v8025_v18 = vsub.f32 %v7868_v49, %v3625_v14  ;;  %v3688_v1 = vmul.f32 %v8022_v56, %v8022_v56 }
 0xa48   : > { %3742 = vadd.xlane.f32.xlu0 %v3688_v1  ;;  %v3689_v57 = vmul.f32 %v8025_v18, %v8025_v18 }
 0xa49   : > { %v3587_v37 = vpop.xlane.xlu0 %3586 }
 0xa4a   : > { %v3626_v38 = vmul.f32 0.0078125, %v3587_v37  ;;  %3744 = vadd.xlane.f32.xlu1 %v3689_v57 }
 0xa4b   : > { %v3589_v40 = vpop.xlane.xlu1 %3588 }
 0xa4c   : > { %v8032_v20 = vsub.f32 %v7874_v25, %v3626_v38  ;;  %v3627_v54 = vmul.f32 0.0078125, %v3589_v40 }
 0xa4e   : > { %v8035_v22 = vsub.f32 %v7878_v3, %v3627_v54  ;;  %v3690_v49 = vmul.f32 %v8032_v20, %v8032_v20 }
 0xa50   : > { %3746 = vadd.xlane.f32.xlu0 %v3690_v49  ;;  %v3691_v61 = vmul.f32 %v8035_v22, %v8035_v22 }
 0xa51   : > { %v3591_v15 = vpop.xlane.xlu0 %3590 }
 0xa52   : > { %v3628_v48 = vmul.f32 0.0078125, %v3591_v15  ;;  %3748 = vadd.xlane.f32.xlu1 %v3691_v61 }
 0xa53   : > { %v3593_v26 = vpop.xlane.xlu1 %3592 }
 0xa54   : > { %v8042_v39 = vsub.f32 %v7884_v9, %v3628_v48  ;;  %v3629_v25 = vmul.f32 0.0078125, %v3593_v26 }
 0xa56   : > { %v8045_v44 = vsub.f32 %v7888_v6, %v3629_v25  ;;  %v3692_v3 = vmul.f32 %v8042_v39, %v8042_v39 }
 0xa58   : > { %3750 = vadd.xlane.f32.xlu0 %v3692_v3  ;;  %v3693_v58 = vmul.f32 %v8045_v44, %v8045_v44 }
 0xa59   : > { %v3595_v46 = vpop.xlane.xlu0 %3594 }
 0xa5a   : > { %v3630_v60 = vmul.f32 0.0078125, %v3595_v46  ;;  %3752 = vadd.xlane.f32.xlu1 %v3693_v58 }
 0xa5b   : > { %v3597_v28 = vpop.xlane.xlu1 %3596 }
 0xa5c   : > { %v8052_v55 = vsub.f32 %v7894_v33, %v3630_v60  ;;  %v3631_v9 = vmul.f32 0.0078125, %v3597_v28  ;;  %v8074_v28 = vld [vmem:[%s8318_s8 + $0x5] ss:$0 sm:$0xff] }
 0xa5e   : > { %v8055_v10 = vsub.f32 %v7898_v62, %v3631_v9  ;;  %v3694_v6 = vmul.f32 %v8052_v55, %v8052_v55 }
 0xa60   : > { %3754 = vadd.xlane.f32.xlu0 %v3694_v6  ;;  %v3695_v41 = vmul.f32 %v8055_v10, %v8055_v10 }
 0xa61   : > { %v3599_v42 = vpop.xlane.xlu0 %3598 }
 0xa62   : > { %v3632_v47 = vmul.f32 0.0078125, %v3599_v42  ;;  %3756 = vadd.xlane.f32.xlu1 %v3695_v41 }
 0xa63   : > { %v3601_v27 = vpop.xlane.xlu1 %3600 }
 0xa64   : > { %v8062_v30 = vsub.f32 %v7907_v0, %v3632_v47  ;;  %v3633_v33 = vmul.f32 0.0078125, %v3601_v27  ;;  %v8080_v27 = vld [vmem:[%s8318_s8 + $0x6] ss:$0 sm:$0xff] }
 0xa65   : > { %v3699_v7 = vpop.xlane.xlu0 %3698 }
 0xa66   : > { %v8065_v36 = vsub.f32 %v7914_v16, %v3633_v33  ;;  %v3762_v62 = vmul.f32 0.0078125, %v3699_v7  ;;  %v3696_v24 = vmul.f32 %v8062_v30, %v8062_v30 }
 0xa67   : > { %v3701_v45 = vpop.xlane.xlu1 %3700 }
 0xa68   : > { %v3794_v43 = vadd.f32 1e-05, %v3762_v62  ;;  %v3763_v14 = vmul.f32 0.0078125, %v3701_v45  ;;  %3758 = vadd.xlane.f32.xlu0 %v3696_v24  ;;  %v3697_v1 = vmul.f32 %v8065_v36, %v8065_v36 }
 0xa69   : > { %v3703_v57 = vpop.xlane.xlu0 %3702 }
 0xa6a   : > { %5439 = vrsqrt.f32 %v3794_v43  ;;  %v3795_v0 = vadd.f32 1e-05, %v3763_v14  ;;  %v3764_v37 = vmul.f32 0.0078125, %v3703_v57  ;;  %3760 = vadd.xlane.f32.xlu1 %v3697_v1 }
 0xa6b   : > { %v3705_v38 = vpop.xlane.xlu1 %3704 }
 0xa6c   : > { %5441 = vrsqrt.f32 %v3795_v0  ;;  %v3796_v16 = vadd.f32 1e-05, %v3764_v37  ;;  %v3765_v40 = vmul.f32 0.0078125, %v3705_v38 }
 0xa6d   : > { %v3707_v54 = vpop.xlane.xlu0 %3706 }
 0xa6e   : > { %5443 = vrsqrt.f32 %v3796_v16  ;;  %v3797_v49 = vadd.f32 1e-05, %v3765_v40  ;;  %v3766_v61 = vmul.f32 0.0078125, %v3707_v54 }
 0xa6f   : > { %v3709_v15 = vpop.xlane.xlu1 %3708 }
 0xa70   : > { %5445 = vrsqrt.f32 %v3797_v49  ;;  %v3798_v48 = vadd.f32 1e-05, %v3766_v61  ;;  %v3767_v26 = vmul.f32 0.0078125, %v3709_v15 }
 0xa71   : > { %v3711_v25 = vpop.xlane.xlu0 %3710 }
 0xa72   : > { %5447 = vrsqrt.f32 %v3798_v48  ;;  %v3799_v3 = vadd.f32 1e-05, %v3767_v26  ;;  %v3768_v58 = vmul.f32 0.0078125, %v3711_v25 }
 0xa73   : > { %v3713_v46 = vpop.xlane.xlu1 %3712 }
 0xa74   : > { %v5440_v60 = vpop.eup %5439  ;;  %5449 = vrsqrt.f32 %v3799_v3  ;;  %v3800_v9 = vadd.f32 1e-05, %v3768_v58  ;;  %v3769_v6 = vmul.f32 0.0078125, %v3713_v46 }
 0xa75   : > { %v3858_v41 = vmul.f32 %v5440_v60, %v7903_v29  ;;  %v3715_v42 = vpop.xlane.xlu0 %3714 }
 0xa76   : > { %v5442_v47 = vpop.eup %5441  ;;  %5451 = vrsqrt.f32 %v3800_v9  ;;  %v3801_v33 = vadd.f32 1e-05, %v3769_v6  ;;  %v3770_v7 = vmul.f32 0.0078125, %v3715_v42 }
 0xa77   : > { %v3894_v62 = vmul.f32 %v8074_v28, %v3858_v41  ;;  %v3859_v24 = vmul.f32 %v5442_v47, %v7910_v51  ;;  %v3717_v45 = vpop.xlane.xlu1 %3716 }
 0xa78   : > { %v5444_v43 = vpop.eup %5443  ;;  %5453 = vrsqrt.f32 %v3801_v33  ;;  %v3802_v14 = vadd.f32 1e-05, %v3770_v7  ;;  %v3771_v29 = vmul.f32 0.0078125, %v3717_v45 }
 0xa79   : > { %v3930_v1 = vadd.f32 %v8080_v27, %v3894_v62  ;;  %v3895_v57 = vmul.f32 %v8074_v28, %v3859_v24  ;;  %v3860_v0 = vmul.f32 %v5444_v43, %v7917_v34  ;;  %v3719_v37 = vpop.xlane.xlu0 %3718 }
 0xa7a   : > { %v5446_v38 = vpop.eup %5445  ;;  %5455 = vrsqrt.f32 %v3802_v14  ;;  %v3803_v16 = vadd.f32 1e-05, %v3771_v29  ;;  %v3772_v40 = vmul.f32 0.0078125, %v3719_v37 }
 0xa7b   : > { %3962 = vst [vmem:[%s8088_s9] sm:$0xff] %v3930_v1  ;;  %v3931_v51 = vadd.f32 %v8080_v27, %v3895_v57  ;;  %v3896_v54 = vmul.f32 %v8074_v28, %v3860_v0  ;;  %v3861_v49 = vmul.f32 %v5446_v38, %v7923_v17  ;;  %v3721_v61 = vpop.xlane.xlu1 %3720 }
 0xa7c   : > { %v5448_v15 = vpop.eup %5447  ;;  %5457 = vrsqrt.f32 %v3803_v16  ;;  %v3804_v34 = vadd.f32 1e-05, %v3772_v40  ;;  %v3773_v48 = vmul.f32 0.0078125, %v3721_v61 }
 0xa7d   : > { %3963 = vst [vmem:[%s8088_s9 + $0x8] sm:$0xff] %v3931_v51  ;;  %v3932_v26 = vadd.f32 %v8080_v27, %v3896_v54  ;;  %v3897_v25 = vmul.f32 %v8074_v28, %v3861_v49  ;;  %v3862_v3 = vmul.f32 %v5448_v15, %v7928_v52  ;;  %v3723_v58 = vpop.xlane.xlu0 %3722 }
 0xa7e   : > { %v5450_v46 = vpop.eup %5449  ;;  %5459 = vrsqrt.f32 %v3804_v34  ;;  %v3805_v60 = vadd.f32 1e-05, %v3773_v48  ;;  %v3774_v9 = vmul.f32 0.0078125, %v3723_v58 }
 0xa7f   : > { %3964 = vst [vmem:[%s8088_s9 + $0x10] sm:$0xff] %v3932_v26  ;;  %v3933_v17 = vadd.f32 %v8080_v27, %v3897_v25  ;;  %v3898_v6 = vmul.f32 %v8074_v28, %v3862_v3  ;;  %v3863_v41 = vmul.f32 %v5450_v46, %v7933_v2  ;;  %v3725_v42 = vpop.xlane.xlu1 %3724 }
 0xa80   : > { %v5452_v47 = vpop.eup %5451  ;;  %5461 = vrsqrt.f32 %v3805_v60  ;;  %v3806_v33 = vadd.f32 1e-05, %v3774_v9  ;;  %v3775_v7 = vmul.f32 0.0078125, %v3725_v42 }
 0xa81   : > { %3965 = vst [vmem:[%s8088_s9 + $0x18] sm:$0xff] %v3933_v17  ;;  %v3934_v52 = vadd.f32 %v8080_v27, %v3898_v6  ;;  %v3899_v62 = vmul.f32 %v8074_v28, %v3863_v41  ;;  %v3864_v24 = vmul.f32 %v5452_v47, %v7938_v50  ;;  %v3727_v45 = vpop.xlane.xlu0 %3726 }
 0xa82   : > { %v5454_v43 = vpop.eup %5453  ;;  %5463 = vrsqrt.f32 %v3806_v33  ;;  %v3807_v14 = vadd.f32 1e-05, %v3775_v7  ;;  %v3776_v29 = vmul.f32 0.0078125, %v3727_v45 }
 0xa83   : > { %3966 = vst [vmem:[%s8088_s9 + $0x20] sm:$0xff] %v3934_v52  ;;  %v3935_v2 = vadd.f32 %v8080_v27, %v3899_v62  ;;  %v3900_v1 = vmul.f32 %v8074_v28, %v3864_v24  ;;  %v3865_v57 = vmul.f32 %v5454_v43, %v7943_v5  ;;  %v3729_v0 = vpop.xlane.xlu1 %3728 }
 0xa84   : > { %v5456_v37 = vpop.eup %5455  ;;  %5465 = vrsqrt.f32 %v3807_v14  ;;  %v3808_v38 = vadd.f32 1e-05, %v3776_v29  ;;  %v3777_v16 = vmul.f32 0.0078125, %v3729_v0 }
 0xa85   : > { %3967 = vst [vmem:[%s8088_s9 + $0x28] sm:$0xff] %v3935_v2  ;;  %v3936_v50 = vadd.f32 %v8080_v27, %v3900_v1  ;;  %v3901_v40 = vmul.f32 %v8074_v28, %v3865_v57  ;;  %v3866_v51 = vmul.f32 %v5456_v37, %v7948_v4  ;;  %v3731_v54 = vpop.xlane.xlu0 %3730 }
 0xa86   : > { %v5458_v49 = vpop.eup %5457  ;;  %5467 = vrsqrt.f32 %v3808_v38  ;;  %v3809_v61 = vadd.f32 1e-05, %v3777_v16  ;;  %v3778_v15 = vmul.f32 0.0078125, %v3731_v54 }
 0xa87   : > { %3968 = vst [vmem:[%s8088_s9 + $0x30] sm:$0xff] %v3936_v50  ;;  %v3937_v5 = vadd.f32 %v8080_v27, %v3901_v40  ;;  %v3902_v34 = vmul.f32 %v8074_v28, %v3866_v51  ;;  %v3867_v48 = vmul.f32 %v5458_v49, %v7953_v53  ;;  %v3733_v26 = vpop.xlane.xlu1 %3732 }
 0xa88   : > { %v5460_v25 = vpop.eup %5459  ;;  %5469 = vrsqrt.f32 %v3809_v61  ;;  %v3810_v3 = vadd.f32 1e-05, %v3778_v15  ;;  %v3779_v58 = vmul.f32 0.0078125, %v3733_v26 }
 0xa89   : > { %3969 = vst [vmem:[%s8088_s9 + $0x38] sm:$0xff] %v3937_v5  ;;  %v3938_v4 = vadd.f32 %v8080_v27, %v3902_v34  ;;  %v3903_v46 = vmul.f32 %v8074_v28, %v3867_v48  ;;  %v3868_v60 = vmul.f32 %v5460_v25, %v7958_v13  ;;  %v3735_v9 = vpop.xlane.xlu0 %3734 }
 0xa8a   : > { %v5462_v17 = vpop.eup %5461  ;;  %5471 = vrsqrt.f32 %v3810_v3  ;;  %v3811_v6 = vadd.f32 1e-05, %v3779_v58  ;;  %v3780_v41 = vmul.f32 0.0078125, %v3735_v9 }
 0xa8b   : > { %3970 = vst [vmem:[%s8088_s9 + $0x40] sm:$0xff] %v3938_v4  ;;  %v3939_v53 = vadd.f32 %v8080_v27, %v3903_v46  ;;  %v3904_v42 = vmul.f32 %v8074_v28, %v3868_v60  ;;  %v3869_v47 = vmul.f32 %v5462_v17, %v7963_v59  ;;  %v3737_v33 = vpop.xlane.xlu1 %3736 }
 0xa8c   : > { %v5464_v7 = vpop.eup %5463  ;;  %5473 = vrsqrt.f32 %v3811_v6  ;;  %v3812_v52 = vadd.f32 1e-05, %v3780_v41  ;;  %v3781_v13 = vmul.f32 0.0078125, %v3737_v33 }
 0xa8d   : > { %3971 = vst [vmem:[%s8088_s9 + $0x48] sm:$0xff] %v3939_v53  ;;  %v3940_v62 = vadd.f32 %v8080_v27, %v3904_v42  ;;  %v3905_v24 = vmul.f32 %v8074_v28, %v3869_v47  ;;  %v3870_v45 = vmul.f32 %v5464_v7, %v7968_v8 }
 0xa8e   : > { %v5466_v43 = vpop.eup %5465  ;;  %5475 = vrsqrt.f32 %v3812_v52  ;;  %v3813_v59 = vadd.f32 1e-05, %v3781_v13 }
 0xa8f   : > { %3972 = vst [vmem:[%s8088_s9 + $0x50] sm:$0xff] %v3940_v62  ;;  %v3941_v14 = vadd.f32 %v8080_v27, %v3905_v24  ;;  %v3906_v29 = vmul.f32 %v8074_v28, %v3870_v45  ;;  %v3871_v2 = vmul.f32 %v5466_v43, %v7973_v21 }
 0xa90   : > { %v5468_v1 = vpop.eup %5467  ;;  %5477 = vrsqrt.f32 %v3813_v59 }
 0xa91   : > { %3973 = vst [vmem:[%s8088_s9 + $0x58] sm:$0xff] %v3941_v14  ;;  %v3942_v8 = vadd.f32 %v8080_v27, %v3906_v29  ;;  %v3907_v57 = vmul.f32 %v8074_v28, %v3871_v2  ;;  %v3872_v0 = vmul.f32 %v5468_v1, %v7978_v19 }
 0xa92   : > { %v5470_v21 = vpop.eup %5469 }
 0xa93   : > { %5718 = shalt.err (!%p5715_p8)
}
 0xa94   : > { %s5719_s1 = scalar_lea.hbm %s8140_s3, 4096  ;;  %s5723_s12 = scalar_lea.hbm %s8471_s28, 8192 }
 0xa95   : > { %p5720_p3 = scmp.ne.s32.totalorder %s8140_s3, %s5719_s1  ;;  %p5724_p0 = scmp.lt.u32.totalorder %s8140_s3, %s8471_s28 }
 0xa96   : > { %p5725_p1 = scmp.lt.u32.totalorder %s5723_s12, %s5719_s1  ;;  %p5727_p6 = scmp.lt.u32.totalorder %s5719_s1, %s8140_s3 }
 0xa97   : > { %p5721_p12 = pnand %p5720_p3, %p8472_p5 }
 0xa98   : > { %p5726_p7 = por %p5725_p1, %p5724_p0 }
 0xa99   : > { %p5722_p13 = pneg %p5721_p12 }
 0xa9a   : > { %p5728_p10 = por %p5727_p6, %p5726_p7 }
 0xa9c   : > { %p5729_p11 = pnand %p5728_p10, %p5722_p13 }
 0xa9e   : > { %5732 = shalt.err (!%p5729_p11)
}
 0xa9f   : > { %s5845_s21 = smov 128   ;;  %s5846_s7 = smov 8   ;;  %3974 = vst [vmem:[%s8088_s9 + $0x60] sm:$0xff] %v3942_v8  ;;  %v3943_v19 = vadd.f32 %v8080_v27, %v3907_v57  ;;  %v3908_v37 = vmul.f32 %v8074_v28, %v3872_v0  ;;  %v3873_v38 = vmul.f32 %v5470_v21, %v7983_v23  ;;  %v5472_v16 = vpop.eup %5471 }
 0xaa0   : > { %5001 = dma.vmem_to_hbm [thread:$0]  (%p8472_p5), %s8147_s19, 4096, %s8140_s3, %s4192_s20, %s5845_s21, %s5845_s21, %s5846_s7   ;;  %v3874_v51 = vmul.f32 %v5472_v16, %v7988_v31  ;;  %v5474_v54 = vpop.eup %5473 }
 0xaa1   : > { %3975 = vst [vmem:[%s8088_s9 + $0x68] sm:$0xff] %v3943_v19  ;;  %v3944_v50 = vadd.f32 %v8080_v27, %v3908_v37  ;;  %v3909_v40 = vmul.f32 %v8074_v28, %v3873_v38  ;;  %v3875_v15 = vmul.f32 %v5474_v54, %v7993_v35  ;;  %v5476_v23 = vpop.eup %5475  ;;  %s4207_s3 = sshll.u32 %s8088_s9, 4  ;;  %s8473_s1 = sld [smem:[#allocation43_spill]]  ;;  %s8257_s3 = int_to_ptr.vmem [resolvable:$true] %s4207_s3 }
 0xaa2   : > { %v3910_v61 = vmul.f32 %v8074_v28, %v3874_v51  ;;  %v3876_v48 = vmul.f32 %v5476_v23, %v7998_v12  ;;  %v5478_v31 = vpop.eup %5477  ;;  %s4187_s29 = scalar_lea.sflag [#allocation6], %s6168_s23  ;;  %s5733_s12 = scalar_lea.vmem %s8257_s3, 4096 }
 0xaa3   : > { %3976 = vst [vmem:[%s8088_s9 + $0x70] sm:$0xff] %v3944_v50  ;;  %v3945_v49 = vadd.f32 %v8080_v27, %v3909_v40  ;;  %v3911_v34 = vmul.f32 %v8074_v28, %v3875_v15  ;;  %v3877_v3 = vmul.f32 %v5478_v31, %v8003_v32  ;;  %p5734_p2 = scmp.ne.s32.totalorder %s8257_s3, %s5733_s12  ;;  %s5847_s25 = smov [#allocation15]  }
 0xaa4   : > { %v3946_v5 = vadd.f32 %v8080_v27, %v3910_v61  ;;  %v3912_v25 = vmul.f32 %v8074_v28, %v3876_v48  ;;  %s5737_s26 = sshll.u32 %s5847_s25, 4  ;;  %s5738_s26 = int_to_ptr.vmem [resolvable:$false] %s5737_s26 }
 0xaa5   : > { %3977 = vst [vmem:[%s8088_s9 + $0x78] sm:$0xff] %v3945_v49  ;;  %v3947_v26 = vadd.f32 %v8080_v27, %v3911_v34  ;;  %v3913_v58 = vmul.f32 %v8074_v28, %v3877_v3  ;;  %p5735_p4 = pnand %p5734_p2, %p8472_p5  ;;  %s5739_s30 = scalar_lea.vmem %s5738_s26, 8192 }
 0xaa6   : > { %3978 = vst [vmem:[%s8088_s9 + $0x80] sm:$0xff] %v3946_v5  ;;  %v3948_v35 = vadd.f32 %v8080_v27, %v3912_v25  ;;  %p5740_p8 = scmp.lt.s32.totalorder %s8257_s3, %s5738_s26  ;;  %p5741_p3 = scmp.lt.s32.totalorder %s5739_s30, %s5733_s12 }
 0xaa7   : > { %3979 = vst [vmem:[%s8088_s9 + $0x88] sm:$0xff] %v3947_v26  ;;  %v3949_v4 = vadd.f32 %v8080_v27, %v3913_v58  ;;  %s8255_s11 = scalar_lea.hbm %s8473_s1, %s4560_s27  ;;  %p5736_p9 = pneg %p5735_p4 }
 0xaa8   : > { %3980 = vst [vmem:[%s8088_s9 + $0x90] sm:$0xff] %v3948_v35  ;;  %p5742_p12 = por %p5741_p3, %p5740_p8 }
 0xaa9   : > { %3981 = vst [vmem:[%s8088_s9 + $0x98] sm:$0xff] %v3949_v4 }
 0xaaa   : > { %p5743_p13 = pnand %p5742_p12, %p5736_p9 }
 0xacd   : > { %v3739_v46 = vpop.xlane.xlu0 %3738 }
 0xace   : > { %v3782_v60 = vmul.f32 0.0078125, %v3739_v46 }
 0xacf   : > { %v3741_v12 = vpop.xlane.xlu1 %3740 }
 0xad0   : > { %v3814_v9 = vadd.f32 1e-05, %v3782_v60  ;;  %v3783_v17 = vmul.f32 0.0078125, %v3741_v12 }
 0xad2   : > { %5479 = vrsqrt.f32 %v3814_v9  ;;  %v3815_v6 = vadd.f32 1e-05, %v3783_v17 }
 0xad4   : > { %5481 = vrsqrt.f32 %v3815_v6 }
 0xad5   : > { %v3743_v41 = vpop.xlane.xlu0 %3742 }
 0xad6   : > { %v3784_v53 = vmul.f32 0.0078125, %v3743_v41 }
 0xad7   : > { %v3745_v32 = vpop.xlane.xlu1 %3744 }
 0xad8   : > { %v3816_v42 = vadd.f32 1e-05, %v3784_v53  ;;  %v3785_v47 = vmul.f32 0.0078125, %v3745_v32 }
 0xada   : > { %5483 = vrsqrt.f32 %v3816_v42  ;;  %v3817_v33 = vadd.f32 1e-05, %v3785_v47 }
 0xadc   : > { %v5480_v7 = vpop.eup %5479  ;;  %5485 = vrsqrt.f32 %v3817_v33 }
 0xadd   : > { %v3878_v52 = vmul.f32 %v5480_v7, %v8012_v11  ;;  %v3747_v13 = vpop.xlane.xlu0 %3746 }
 0xade   : > { %v5482_v62 = vpop.eup %5481  ;;  %v3786_v24 = vmul.f32 0.0078125, %v3747_v13 }
 0xadf   : > { %v3914_v45 = vmul.f32 %v8074_v28, %v3878_v52  ;;  %v3879_v43 = vmul.f32 %v5482_v62, %v8015_v63  ;;  %v3749_v59 = vpop.xlane.xlu1 %3748 }
 0xae0   : > { %v3818_v14 = vadd.f32 1e-05, %v3786_v24  ;;  %v3787_v29 = vmul.f32 0.0078125, %v3749_v59 }
 0xae1   : > { %v3950_v2 = vadd.f32 %v8080_v27, %v3914_v45  ;;  %v3915_v1 = vmul.f32 %v8074_v28, %v3879_v43 }
 0xae2   : > { %5487 = vrsqrt.f32 %v3818_v14  ;;  %v3819_v8 = vadd.f32 1e-05, %v3787_v29 }
 0xae3   : > { %3982 = vst [vmem:[%s8088_s9 + $0xa0] sm:$0xff] %v3950_v2  ;;  %v3951_v11 = vadd.f32 %v8080_v27, %v3915_v1 }
 0xae4   : > { %v5484_v57 = vpop.eup %5483  ;;  %5489 = vrsqrt.f32 %v3819_v8 }
 0xae5   : > { %3983 = vst [vmem:[%s8088_s9 + $0xa8] sm:$0xff] %v3951_v11  ;;  %v3880_v0 = vmul.f32 %v5484_v57, %v8022_v56  ;;  %v3751_v21 = vpop.xlane.xlu0 %3750 }
 0xae6   : > { %v5486_v63 = vpop.eup %5485  ;;  %v3788_v19 = vmul.f32 0.0078125, %v3751_v21 }
 0xae7   : > { %v3916_v37 = vmul.f32 %v8074_v28, %v3880_v0  ;;  %v3881_v38 = vmul.f32 %v5486_v63, %v8025_v18  ;;  %v3753_v16 = vpop.xlane.xlu1 %3752 }
 0xae8   : > { %v3820_v50 = vadd.f32 1e-05, %v3788_v19  ;;  %v3789_v40 = vmul.f32 0.0078125, %v3753_v16 }
 0xae9   : > { %v3952_v51 = vadd.f32 %v8080_v27, %v3916_v37  ;;  %v3917_v54 = vmul.f32 %v8074_v28, %v3881_v38 }
 0xaea   : > { %5491 = vrsqrt.f32 %v3820_v50  ;;  %v3821_v49 = vadd.f32 1e-05, %v3789_v40 }
 0xaeb   : > { %3984 = vst [vmem:[%s8088_s9 + $0xb0] sm:$0xff] %v3952_v51  ;;  %v3953_v56 = vadd.f32 %v8080_v27, %v3917_v54 }
 0xaec   : > { %v5488_v61 = vpop.eup %5487  ;;  %5493 = vrsqrt.f32 %v3821_v49 }
 0xaed   : > { %3985 = vst [vmem:[%s8088_s9 + $0xb8] sm:$0xff] %v3953_v56  ;;  %v3882_v15 = vmul.f32 %v5488_v61, %v8032_v20  ;;  %v3755_v23 = vpop.xlane.xlu0 %3754 }
 0xaee   : > { %v5490_v18 = vpop.eup %5489  ;;  %v3790_v5 = vmul.f32 0.0078125, %v3755_v23 }
 0xaef   : > { %v3918_v34 = vmul.f32 %v8074_v28, %v3882_v15  ;;  %v3883_v48 = vmul.f32 %v5490_v18, %v8035_v22  ;;  %v3757_v31 = vpop.xlane.xlu1 %3756 }
 0xaf0   : > { %v3822_v26 = vadd.f32 1e-05, %v3790_v5  ;;  %v3791_v25 = vmul.f32 0.0078125, %v3757_v31 }
 0xaf1   : > { %v3954_v3 = vadd.f32 %v8080_v27, %v3918_v34  ;;  %v3919_v35 = vmul.f32 %v8074_v28, %v3883_v48 }
 0xaf2   : > { %5495 = vrsqrt.f32 %v3822_v26  ;;  %v3823_v58 = vadd.f32 1e-05, %v3791_v25 }
 0xaf3   : > { %3986 = vst [vmem:[%s8088_s9 + $0xc0] sm:$0xff] %v3954_v3  ;;  %v3955_v20 = vadd.f32 %v8080_v27, %v3919_v35 }
 0xaf4   : > { %v5492_v4 = vpop.eup %5491  ;;  %5497 = vrsqrt.f32 %v3823_v58 }
 0xaf5   : > { %3987 = vst [vmem:[%s8088_s9 + $0xc8] sm:$0xff] %v3955_v20  ;;  %v3884_v46 = vmul.f32 %v5492_v4, %v8042_v39  ;;  %v3759_v60 = vpop.xlane.xlu0 %3758 }
 0xaf6   : > { %v5494_v22 = vpop.eup %5493  ;;  %v3792_v12 = vmul.f32 0.0078125, %v3759_v60 }
 0xaf7   : > { %v3920_v9 = vmul.f32 %v8074_v28, %v3884_v46  ;;  %v3885_v17 = vmul.f32 %v5494_v22, %v8045_v44  ;;  %v3761_v6 = vpop.xlane.xlu1 %3760 }
 0xaf8   : > { %v3824_v41 = vadd.f32 1e-05, %v3792_v12  ;;  %v3793_v53 = vmul.f32 0.0078125, %v3761_v6 }
 0xaf9   : > { %v3956_v32 = vadd.f32 %v8080_v27, %v3920_v9  ;;  %v3921_v42 = vmul.f32 %v8074_v28, %v3885_v17 }
 0xafa   : > { %5499 = vrsqrt.f32 %v3824_v41  ;;  %v3825_v47 = vadd.f32 1e-05, %v3793_v53 }
 0xafb   : > { %3988 = vst [vmem:[%s8088_s9 + $0xd0] sm:$0xff] %v3956_v32  ;;  %v3957_v39 = vadd.f32 %v8080_v27, %v3921_v42 }
 0xafc   : > { %v5496_v33 = vpop.eup %5495  ;;  %5501 = vrsqrt.f32 %v3825_v47 }
 0xafd   : > { %3989 = vst [vmem:[%s8088_s9 + $0xd8] sm:$0xff] %v3957_v39  ;;  %v3886_v44 = vmul.f32 %v5496_v33, %v8052_v55 }
 0xafe   : > { %v5498_v7 = vpop.eup %5497 }
 0xaff   : > { %v3922_v52 = vmul.f32 %v8074_v28, %v3886_v44  ;;  %v3887_v13 = vmul.f32 %v5498_v7, %v8055_v10 }
 0xb01   : > { %v3958_v62 = vadd.f32 %v8080_v27, %v3922_v52  ;;  %v3923_v24 = vmul.f32 %v8074_v28, %v3887_v13 }
 0xb03   : > { %3990 = vst [vmem:[%s8088_s9 + $0xe0] sm:$0xff] %v3958_v62  ;;  %v3959_v45 = vadd.f32 %v8080_v27, %v3923_v24 }
 0xb04   : > { %v5500_v43 = vpop.eup %5499 }
 0xb05   : > { %3991 = vst [vmem:[%s8088_s9 + $0xe8] sm:$0xff] %v3959_v45  ;;  %v3888_v55 = vmul.f32 %v5500_v43, %v8062_v30 }
 0xb06   : > { %v5502_v59 = vpop.eup %5501 }
 0xb07   : > { %v3924_v14 = vmul.f32 %v8074_v28, %v3888_v55  ;;  %v3889_v10 = vmul.f32 %v5502_v59, %v8065_v36 }
 0xb09   : > { %v3960_v29 = vadd.f32 %v8080_v27, %v3924_v14  ;;  %v3925_v2 = vmul.f32 %v8074_v28, %v3889_v10 }
 0xb0b   : > { %3992 = vst [vmem:[%s8088_s9 + $0xf0] sm:$0xff] %v3960_v29  ;;  %v3961_v1 = vadd.f32 %v8080_v27, %v3925_v2 }
 0xb0d   : > { %3993 = vst [vmem:[%s8088_s9 + $0xf8] sm:$0xff] %v3961_v1 }
 0xb0e   : > { %5746 = shalt.err (!%p5743_p13)
}
 0xb0f   : > { %s5747_s9 = scalar_lea.hbm %s8255_s11, 4096  ;;  %s5751_s20 = scalar_lea.hbm %s8473_s1, 8192 }
 0xb10   : > { %p5748_p0 = scmp.ne.s32.totalorder %s8255_s11, %s5747_s9  ;;  %p5752_p6 = scmp.lt.u32.totalorder %s8255_s11, %s8473_s1 }
 0xb11   : > { %p5753_p10 = scmp.lt.u32.totalorder %s5751_s20, %s5747_s9  ;;  %p5755_p2 = scmp.lt.u32.totalorder %s5747_s9, %s8255_s11 }
 0xb12   : > { %p5749_p1 = pnand %p5748_p0, %p8472_p5 }
 0xb13   : > { %p5754_p11 = por %p5753_p10, %p5752_p6 }
 0xb14   : > { %p5750_p7 = pneg %p5749_p1 }
 0xb15   : > { %p5756_p4 = por %p5755_p2, %p5754_p11 }
 0xb17   : > { %p5757_p9 = pnand %p5756_p4, %p5750_p7 }
 0xb19   : > { %5760 = shalt.err (!%p5757_p9)
}
 0xb1a   : > { %5000 = dma.vmem_to_hbm [thread:$0]  (%p8472_p5), %s8257_s3, 4096, %s8255_s11, %s4187_s29, %s5845_s21, %s5845_s21, %s5846_s7  }
 0xb1b PF: > { %s4241_s12 = sand.u32 1, %s5811_s13   ;;  %p8474_p8 = scmp.ne.s32.totalorder %s8383_s22, 0 }
 0xb1c   : > { %p8475_p3 = scmp.ge.s32.totalorder %s5831_s18, 2  ;;  %s4242_s30 = scalar_lea.sflag [#allocation6], %s4241_s12 }
 0xb1e   : > { %p5025_p12 = pnand %p8475_p3, %p8474_p8 }
 0xb20   : > { %5802 = dma.done.wait (!%p5025_p12), %s4242_s30, 4096  }
 0xb21   : > { %5804 = vsyncadd (!%p5025_p12), %s4242_s30, 4294963200  ;;  %s4251_s10 = scalar_lea.sflag [#allocation17], %s4241_s12 }
 0xb22   : > { %5806 = dma.done.wait (!%p5025_p12), %s4251_s10, 4096  }
 0xb23   : > { %5808 = vsyncadd (!%p5025_p12), %s4251_s10, 4294963200  ;;  %s33_s18 = sadd.s32 1, %s5831_s18   ;;  %s8476_s13 = smov %s5815_s14 }
 0xb24   : > { %p30_p13 = scmp.ge.s32.totalorder %s33_s18, 4   ;;  %s8477_s14 = smov %s5819_s15 }
 0xb25   : > { %s8478_s15 = smov %s6113_s16  ;;  %s8479_s16 = smov %s5827_s17 }
 0xb26   : > { %s8480_s17 = smov %s8482_s24  ;;  %32 = sbr.rel (!%p30_p13) target bundleno = 17 (0x11), region = 143 }
 0xb2d   :  { %4256 = vsyncpa [#allocation5], 1 }
 0xb2e   :  { %4258 = vsyncpa [#allocation5 + $0x1], 1 }
 0xb2f   :  { %4259 = vsyncpa [#allocation8], 1 }
 0xb30   :  { %4260 = vsyncpa [#allocation11], 1 }
 0xb31   :  { %4261 = vsyncpa [#allocation14], 1 }
 0xb32   :  { %4262 = vsyncpa [#allocation6], 1 }
 0xb33   :  { %4264 = vsyncpa [#allocation6 + $0x1], 1 }
 0xb34   :  { %4265 = vsyncpa [#allocation17], 1 }
 0xb35   :  { %4267 = vsyncpa [#allocation17 + $0x1], 1 }

</bundles_post_ra>
